<compile_context>
chip_gen: v7x
topology: tpu7x:2x2x1
jax: 0.10.0
libtpu: 0.0.40
codegen_flags: <defaults>
</compile_context>

<pallas_src>
import functools

import numpy as np
import jax
import jax.numpy as jnp
from jax.experimental import pallas as pl
from jax.experimental.pallas import tpu as pltpu


# ----------------------------- layout constants -----------------------------
C1, C1P = 20, 32          # conv1 out-channels (padded to 32 lanes)
C2, C2P = 50, 64          # conv2 out-channels (padded to 64 lanes)
P1W = 12                  # width after pool1
P2W = 4                   # width after pool2
N1 = 2 * P1W * C1P        # 768: conv1 output lanes, col = dw*384 + pw*32 + co
K2 = P1W * C1P            # 384: conv2 contraction,  row = pw_in*32 + ci
N2 = 2 * P2W * C2P        # 512: conv2 output lanes, col = dw*256 + pw*64 + co
NF1 = 512                 # fc1 output lanes (500 padded to 512)
NOUT = 128                # fc2 output lanes (ways padded to 128)

# Row-gather index for the pre-packed conv1 LHS slabs:
#   _ROW_IDX[ki, r*6 + q] = 4*q + r + ki   (input image row feeding conv1 output
#   row 4q+r through Toeplitz band ki).  Built once at import time.
_ROW_IDX = (4 * np.arange(6)[None, None, :]        # q (6 values)
            + np.arange(4)[None, :, None]          # r (output-row phase)
            + np.arange(5)[:, None, None]          # ki (kernel row)
            ).reshape(5, 24).astype(np.int32)


# ----------------------------- fused kernel ---------------------------------
def _net_fused_kernel(xl_ref, t1_ref, b1_ref, t2_ref, b2_ref,
                      wf1_ref, bf1_ref, wf2_ref, bf2_ref, out_ref, *, ways):
    f32 = jnp.float32

    # ---- conv1 (1->20, 5x5) + ReLU ------------------------------------------
    # xl_ref[0, ki] is the host-prepacked sliding-window LHS slab (24 rows =
    # 4 output-row phases x 6 rows each); conv1 is exactly 5 MXU matmuls and
    # each 28x768 Toeplitz RHS is pushed through the MXU once.
    # a1[r*6 + q, dw*384 + pw*32 + co] == relu(conv1)[co, 4q + r, 2*pw + dw]
    acc1 = jnp.dot(xl_ref[0, 0], t1_ref[0], preferred_element_type=f32)
    for ki in range(1, 5):
        acc1 = acc1 + jnp.dot(xl_ref[0, ki], t1_ref[ki],
                              preferred_element_type=f32)      # [24, N1]
    a1 = jnp.maximum(acc1 + b1_ref[...], 0.0)

    # 2x2 max-pool #1: H-pool over output-row phases, W-pool over the two
    # 128-aligned "dw" lane halves.
    m_even = jnp.maximum(a1[0:6], a1[6:12])      # pooled rows 0,2,...,10
    m_odd = jnp.maximum(a1[12:18], a1[18:24])    # pooled rows 1,3,...,11
    half1 = P1W * C1P                            # 384
    p1e = jnp.maximum(m_even[:, :half1], m_even[:, half1:])    # [6, 384]
    p1o = jnp.maximum(m_odd[:, :half1], m_odd[:, half1:])      # [6, 384]

    # ---- conv2 (20->50, 5x5) + ReLU ------------------------------------------
    # Both output-row parities stacked into one 8-row LHS per kernel row, so
    # each 384x512 Toeplitz RHS is pushed through the MXU once.
    # a2[dh*4 + p, dw*256 + pw*64 + co] == relu(conv2)[co, 2p + dh, 2*pw + dw]
    acc2 = None
    for ki in range(5):
        rows = []
        for dh in range(2):
            u = dh + ki                                   # p1 pooled row = 2p + u
            src = p1e if (u % 2 == 0) else p1o
            rows.append(src[(u // 2):(u // 2) + 4, :])    # [4, K2]
        lhs = jnp.concatenate(rows, axis=0)               # [8, K2]
        d = jnp.dot(lhs, t2_ref[ki], preferred_element_type=f32)  # [8, N2]
        acc2 = d if acc2 is None else acc2 + d
    a2 = jnp.maximum(acc2 + b2_ref[...], 0.0)             # [8, N2]

    h2 = jnp.maximum(a2[0:4], a2[4:8])                    # H-pool #2: [4, 512]
    half2 = P2W * C2P                                     # 256
    p2 = jnp.maximum(h2[:, :half2], h2[:, half2:])        # W-pool #2: [4, 256]

    # ---- fc1 (800->500) + ReLU: contraction split over the 4 pooled rows ----
    acc = None
    for ph in range(P2W):
        d = jnp.dot(p2[ph:ph + 1, :], wf1_ref[ph],
                    preferred_element_type=f32)           # [1, NF1]
        acc = d if acc is None else acc + d
    hid = jnp.maximum(acc + bf1_ref[...], 0.0)            # [1, 512]

    # ---- fc2 (500->ways) + log_softmax (padded lanes masked out) ------------
    logits = jnp.dot(hid, wf2_ref[...], preferred_element_type=f32) + bf2_ref[...]
    col = jax.lax.broadcasted_iota(jnp.int32, (1, NOUT), 1)
    logits = jnp.where(col < ways, logits, f32(-1e30))
    m = jnp.max(logits, axis=-1, keepdims=True)
    s = logits - m
    lse = jnp.log(jnp.sum(jnp.exp(s), axis=-1, keepdims=True))
    out_ref[0] = s - lse


# ----------------------------- wrapper ---------------------------------------
@functools.partial(jax.jit, static_argnames=("ways",))
def net_forward(x, prepped, ways=3):
    """x: [B, 1, 28, 28] float32 -> log-probs [B, ways]."""
    B = x.shape[0]
    xi = x.reshape(B, 28, 28)
    # Pre-gather the conv1 sliding-window LHS slabs on the host side (tiny
    # gather) so the kernel's conv1 is 5 plain MXU matmuls with no in-kernel
    # row shuffling: x_lhs[b, ki, r*6+q, :] = x[b, 0, 4q+r+ki, :].
    x_lhs = xi[:, jnp.asarray(_ROW_IDX), :]               # [B, 5, 24, 28]

    kernel = functools.partial(_net_fused_kernel, ways=ways)
    out = pl.pallas_call(
        kernel,
        out_shape=jax.ShapeDtypeStruct((B, 1, NOUT), jnp.float32),
        grid=(B,),
        in_specs=[
            pl.BlockSpec((1, 5, 24, 28), lambda b: (b, 0, 0, 0)),      # conv1 LHS slabs
            pl.BlockSpec((5, 28, N1), lambda b: (0, 0, 0)),            # conv1 Toeplitz weights
            pl.BlockSpec((1, N1), lambda b: (0, 0)),                   # conv1 bias row
            pl.BlockSpec((5, K2, N2), lambda b: (0, 0, 0)),            # conv2 Toeplitz weights
            pl.BlockSpec((1, N2), lambda b: (0, 0)),                   # conv2 bias row
            pl.BlockSpec((P2W, P2W * C2P, NF1), lambda b: (0, 0, 0)),  # fc1 weights (per ph)
            pl.BlockSpec((1, NF1), lambda b: (0, 0)),                  # fc1 bias row
            pl.BlockSpec((NF1, NOUT), lambda b: (0, 0)),               # fc2 weights
            pl.BlockSpec((1, NOUT), lambda b: (0, 0)),                 # fc2 bias row
        ],
        out_specs=pl.BlockSpec((1, 1, NOUT), lambda b: (b, 0, 0)),
        compiler_params=pltpu.CompilerParams(
            dimension_semantics=("parallel",),        # batch sharded across TCs on v7x
            vmem_limit_bytes=48 * 1024 * 1024,
        ),
    )(x_lhs, prepped["t1"], prepped["b1"], prepped["t2"], prepped["b2"],
      prepped["wf1"], prepped["bf1"], prepped["wf2"], prepped["bf2"])
    return out.reshape(B, NOUT)[:, :ways]


# ----------------------------- one-time weight prep ---------------------------
def prepare_params(params, ways=3):
    """One-time host-side repack of the torch-layout weights into the padded,
    lane-dense matmul operands the fused kernel consumes (hoisted out of the
    forward path)."""
    w1 = np.asarray(params["conv1_w"], np.float32)    # [20, 1, 5, 5]
    b1 = np.asarray(params["conv1_b"], np.float32)    # [20]
    w2 = np.asarray(params["conv2_w"], np.float32)    # [50, 20, 5, 5]
    b2 = np.asarray(params["conv2_b"], np.float32)    # [50]
    fw1 = np.asarray(params["fc1_w"], np.float32)     # [500, 800] (torch [out, in])
    fb1 = np.asarray(params["fc1_b"], np.float32)     # [500]
    fw2 = np.asarray(params["fc2_w"], np.float32)     # [ways, 500]
    fb2 = np.asarray(params["fc2_b"], np.float32)     # [ways]

    # conv1 as 5 banded matmuls over the 28 input columns; output column
    # index = dw*384 + pw*32 + co  (ow = 2*pw + dw, co padded 20->32).
    t1 = np.zeros((5, 28, N1), np.float32)
    b1row = np.zeros((1, N1), np.float32)
    for dw in range(2):
        for pw in range(P1W):
            c0 = dw * P1W * C1P + pw * C1P
            b1row[0, c0:c0 + C1] = b1
            ow = 2 * pw + dw
            for ki in range(5):
                for kj in range(5):
                    t1[ki, ow + kj, c0:c0 + C1] = w1[:, 0, ki, kj]

    # conv2: contraction row index = pw_in*32 + ci, output column index =
    # dw*256 + pw*64 + co  (ow = 2*pw + dw, co padded 50->64).
    t2 = np.zeros((5, K2, N2), np.float32)
    b2row = np.zeros((1, N2), np.float32)
    for dw in range(2):
        for pw in range(P2W):
            c0 = dw * P2W * C2P + pw * C2P
            b2row[0, c0:c0 + C2] = b2
            ow = 2 * pw + dw
            for ki in range(5):
                for kj in range(5):
                    r0 = (ow + kj) * C1P
                    t2[ki, r0:r0 + C1, c0:c0 + C2] = w2[:, :, ki, kj].T

    # fc1: contraction split over the 4 pooled rows ph; row index = pw*64 + co
    # matches the p2 lane layout; torch flatten index = co*16 + ph*4 + pw.
    wf1 = np.zeros((P2W, P2W * C2P, NF1), np.float32)
    for ph in range(P2W):
        for pw in range(P2W):
            for co in range(C2):
                wf1[ph, pw * C2P + co, :500] = fw1[:, co * 16 + ph * 4 + pw]
    bf1 = np.zeros((1, NF1), np.float32)
    bf1[0, :500] = fb1

    wf2 = np.zeros((NF1, NOUT), np.float32)
    wf2[:500, :ways] = fw2.T
    bf2 = np.zeros((1, NOUT), np.float32)
    bf2[0, :ways] = fb2

    arrays = dict(t1=t1, b1=b1row, t2=t2, b2=b2row,
                  wf1=wf1, bf1=bf1, wf2=wf2, bf2=bf2)
    return {k: jnp.asarray(v) for k, v in arrays.items()}


# ----------------------------- params / reference -----------------------------
def init_params(key, ways=3):
    ks = jax.random.split(key, 8)
    s = 0.05
    return {
        "conv1_w": s * jax.random.normal(ks[0], (20, 1, 5, 5), jnp.float32),
        "conv1_b": s * jax.random.normal(ks[1], (20,), jnp.float32),
        "conv2_w": s * jax.random.normal(ks[2], (50, 20, 5, 5), jnp.float32),
        "conv2_b": s * jax.random.normal(ks[3], (50,), jnp.float32),
        "fc1_w":   s * jax.random.normal(ks[4], (500, 800), jnp.float32),  # torch [out, in]
        "fc1_b":   s * jax.random.normal(ks[5], (500,), jnp.float32),
        "fc2_w":   s * jax.random.normal(ks[6], (ways, 500), jnp.float32),
        "fc2_b":   s * jax.random.normal(ks[7], (ways,), jnp.float32),
    }


def reference_forward(x, params):
    """Pure-JAX reference for a correctness check."""
    def conv(x, w, b):
        y = jax.lax.conv_general_dilated(
            x, w, window_strides=(1, 1), padding="VALID",
            dimension_numbers=("NCHW", "OIHW", "NCHW"))
        return jax.nn.relu(y + b[None, :, None, None])

    def pool(x):
        B, C, H, W = x.shape
        return x.reshape(B, C, H // 2, 2, W // 2, 2).max(axis=(3, 5))

    x = pool(conv(x, params["conv1_w"], params["conv1_b"]))
    x = pool(conv(x, params["conv2_w"], params["conv2_b"]))
    x = x.reshape(x.shape[0], 4 * 4 * 50)
    x = jax.nn.relu(x @ params["fc1_w"].T + params["fc1_b"])
    x = x @ params["fc2_w"].T + params["fc2_b"]
    return jax.nn.log_softmax(x, axis=1)


if __name__ == "__main__":
    key = jax.random.PRNGKey(0)
    kx, kp = jax.random.split(key)
    # Input spatial size must be 28 so that the 4*4*50 flatten holds (as in MNIST).
    B, ways = 2, 3
    x = jax.random.normal(kx, (B, 1, 28, 28), jnp.float32)
    params = init_params(kp, ways=ways)
    prepped = prepare_params(params, ways=ways)     # one-time weight repack (hoisted)

    out = net_forward(x, prepped, ways=ways)
    out = jax.block_until_ready(out)
    assert out.shape == (B, ways) and out.dtype == jnp.float32

    ref = jax.block_until_ready(reference_forward(x, params))
    assert jnp.allclose(out, ref, rtol=1e-3, atol=1e-3), "mismatch vs JAX reference"

    print("KERNEL_OK")
</pallas_src>

<mosaic_0001>
module attributes {stable_mosaic.version = 11 : i64} {
  func.func @_net_fused_kernel(%arg0: i32, %arg1: memref<1x5x24x28xf32, #tpu.memory_space<vmem>>, %arg2: memref<5x28x768xf32, #tpu.memory_space<vmem>>, %arg3: memref<1x768xf32, #tpu.memory_space<vmem>>, %arg4: memref<5x384x512xf32, #tpu.memory_space<vmem>>, %arg5: memref<1x512xf32, #tpu.memory_space<vmem>>, %arg6: memref<4x256x512xf32, #tpu.memory_space<vmem>>, %arg7: memref<1x512xf32, #tpu.memory_space<vmem>>, %arg8: memref<512x128xf32, #tpu.memory_space<vmem>>, %arg9: memref<1x128xf32, #tpu.memory_space<vmem>>, %arg10: memref<1x1x128xf32, #tpu.memory_space<vmem>>) attributes {dimension_semantics = [#tpu.dimension_semantics<parallel>], iteration_bounds = array<i64: 2>, scalar_prefetch = 0 : i64, scratch_operands = 0 : i64, tpu.core_type = #tpu.core_type<tc>, window_params = [{transform_indices = @transform_0, window_bounds = array<i64: 1, 5, 24, 28>}, {pipeline_mode = #tpu.pipeline_mode<synchronous>, transform_indices = @transform_1, window_bounds = array<i64: 5, 28, 768>}, {pipeline_mode = #tpu.pipeline_mode<synchronous>, transform_indices = @transform_2, window_bounds = array<i64: 1, 768>}, {pipeline_mode = #tpu.pipeline_mode<synchronous>, transform_indices = @transform_3, window_bounds = array<i64: 5, 384, 512>}, {pipeline_mode = #tpu.pipeline_mode<synchronous>, transform_indices = @transform_4, window_bounds = array<i64: 1, 512>}, {pipeline_mode = #tpu.pipeline_mode<synchronous>, transform_indices = @transform_5, window_bounds = array<i64: 4, 256, 512>}, {pipeline_mode = #tpu.pipeline_mode<synchronous>, transform_indices = @transform_6, window_bounds = array<i64: 1, 512>}, {pipeline_mode = #tpu.pipeline_mode<synchronous>, transform_indices = @transform_7, window_bounds = array<i64: 512, 128>}, {pipeline_mode = #tpu.pipeline_mode<synchronous>, transform_indices = @transform_8, window_bounds = array<i64: 1, 128>}, {transform_indices = @transform_9, window_bounds = array<i64: 1, 1, 128>}]} {
    %c0 = arith.constant 0 : index
    %c0_0 = arith.constant 0 : index
    %c0_1 = arith.constant 0 : index
    %c0_2 = arith.constant 0 : index
    %0 = vector.load %arg1[%c0, %c0_0, %c0_1, %c0_2] : memref<1x5x24x28xf32, #tpu.memory_space<vmem>>, vector<1x1x24x28xf32>
    %1 = vector.shape_cast %0 : vector<1x1x24x28xf32> to vector<24x28xf32>
    %c0_3 = arith.constant 0 : index
    %c0_4 = arith.constant 0 : index
    %c0_5 = arith.constant 0 : index
    %2 = vector.load %arg2[%c0_3, %c0_4, %c0_5] : memref<5x28x768xf32, #tpu.memory_space<vmem>>, vector<1x28x768xf32>
    %3 = vector.shape_cast %2 : vector<1x28x768xf32> to vector<28x768xf32>
    %cst = arith.constant dense<0.000000e+00> : vector<24x768xf32>
    %4 = tpu.matmul %1, %3, %cst {dimension_numbers = #tpu.dot_dimension_numbers<[1], [0], [0], [1], [0, 0, 1, 1], [], []>} : vector<24x28xf32>, vector<28x768xf32>, vector<24x768xf32> -> vector<24x768xf32>
    %c0_6 = arith.constant 0 : index
    %c1 = arith.constant 1 : index
    %c0_7 = arith.constant 0 : index
    %c0_8 = arith.constant 0 : index
    %5 = vector.load %arg1[%c0_6, %c1, %c0_7, %c0_8] : memref<1x5x24x28xf32, #tpu.memory_space<vmem>>, vector<1x1x24x28xf32>
    %6 = vector.shape_cast %5 : vector<1x1x24x28xf32> to vector<24x28xf32>
    %c1_9 = arith.constant 1 : index
    %c0_10 = arith.constant 0 : index
    %c0_11 = arith.constant 0 : index
    %7 = vector.load %arg2[%c1_9, %c0_10, %c0_11] : memref<5x28x768xf32, #tpu.memory_space<vmem>>, vector<1x28x768xf32>
    %8 = vector.shape_cast %7 : vector<1x28x768xf32> to vector<28x768xf32>
    %cst_12 = arith.constant dense<0.000000e+00> : vector<24x768xf32>
    %9 = tpu.matmul %6, %8, %cst_12 {dimension_numbers = #tpu.dot_dimension_numbers<[1], [0], [0], [1], [0, 0, 1, 1], [], []>} : vector<24x28xf32>, vector<28x768xf32>, vector<24x768xf32> -> vector<24x768xf32>
    %10 = arith.addf %4, %9 : vector<24x768xf32>
    %c0_13 = arith.constant 0 : index
    %c2 = arith.constant 2 : index
    %c0_14 = arith.constant 0 : index
    %c0_15 = arith.constant 0 : index
    %11 = vector.load %arg1[%c0_13, %c2, %c0_14, %c0_15] : memref<1x5x24x28xf32, #tpu.memory_space<vmem>>, vector<1x1x24x28xf32>
    %12 = vector.shape_cast %11 : vector<1x1x24x28xf32> to vector<24x28xf32>
    %c2_16 = arith.constant 2 : index
    %c0_17 = arith.constant 0 : index
    %c0_18 = arith.constant 0 : index
    %13 = vector.load %arg2[%c2_16, %c0_17, %c0_18] : memref<5x28x768xf32, #tpu.memory_space<vmem>>, vector<1x28x768xf32>
    %14 = vector.shape_cast %13 : vector<1x28x768xf32> to vector<28x768xf32>
    %cst_19 = arith.constant dense<0.000000e+00> : vector<24x768xf32>
    %15 = tpu.matmul %12, %14, %cst_19 {dimension_numbers = #tpu.dot_dimension_numbers<[1], [0], [0], [1], [0, 0, 1, 1], [], []>} : vector<24x28xf32>, vector<28x768xf32>, vector<24x768xf32> -> vector<24x768xf32>
    %16 = arith.addf %10, %15 : vector<24x768xf32>
    %c0_20 = arith.constant 0 : index
    %c3 = arith.constant 3 : index
    %c0_21 = arith.constant 0 : index
    %c0_22 = arith.constant 0 : index
    %17 = vector.load %arg1[%c0_20, %c3, %c0_21, %c0_22] : memref<1x5x24x28xf32, #tpu.memory_space<vmem>>, vector<1x1x24x28xf32>
    %18 = vector.shape_cast %17 : vector<1x1x24x28xf32> to vector<24x28xf32>
    %c3_23 = arith.constant 3 : index
    %c0_24 = arith.constant 0 : index
    %c0_25 = arith.constant 0 : index
    %19 = vector.load %arg2[%c3_23, %c0_24, %c0_25] : memref<5x28x768xf32, #tpu.memory_space<vmem>>, vector<1x28x768xf32>
    %20 = vector.shape_cast %19 : vector<1x28x768xf32> to vector<28x768xf32>
    %cst_26 = arith.constant dense<0.000000e+00> : vector<24x768xf32>
    %21 = tpu.matmul %18, %20, %cst_26 {dimension_numbers = #tpu.dot_dimension_numbers<[1], [0], [0], [1], [0, 0, 1, 1], [], []>} : vector<24x28xf32>, vector<28x768xf32>, vector<24x768xf32> -> vector<24x768xf32>
    %22 = arith.addf %16, %21 : vector<24x768xf32>
    %c0_27 = arith.constant 0 : index
    %c4 = arith.constant 4 : index
    %c0_28 = arith.constant 0 : index
    %c0_29 = arith.constant 0 : index
    %23 = vector.load %arg1[%c0_27, %c4, %c0_28, %c0_29] : memref<1x5x24x28xf32, #tpu.memory_space<vmem>>, vector<1x1x24x28xf32>
    %24 = vector.shape_cast %23 : vector<1x1x24x28xf32> to vector<24x28xf32>
    %c4_30 = arith.constant 4 : index
    %c0_31 = arith.constant 0 : index
    %c0_32 = arith.constant 0 : index
    %25 = vector.load %arg2[%c4_30, %c0_31, %c0_32] : memref<5x28x768xf32, #tpu.memory_space<vmem>>, vector<1x28x768xf32>
    %26 = vector.shape_cast %25 : vector<1x28x768xf32> to vector<28x768xf32>
    %cst_33 = arith.constant dense<0.000000e+00> : vector<24x768xf32>
    %27 = tpu.matmul %24, %26, %cst_33 {dimension_numbers = #tpu.dot_dimension_numbers<[1], [0], [0], [1], [0, 0, 1, 1], [], []>} : vector<24x28xf32>, vector<28x768xf32>, vector<24x768xf32> -> vector<24x768xf32>
    %28 = arith.addf %22, %27 : vector<24x768xf32>
    %c0_34 = arith.constant 0 : index
    %c0_35 = arith.constant 0 : index
    %29 = vector.load %arg3[%c0_34, %c0_35] : memref<1x768xf32, #tpu.memory_space<vmem>>, vector<1x768xf32>
    %30 = vector.broadcast %29 : vector<1x768xf32> to vector<24x768xf32>
    %31 = arith.addf %28, %30 : vector<24x768xf32>
    %cst_36 = arith.constant 0.000000e+00 : f32
    %32 = vector.broadcast %cst_36 : f32 to vector<24x768xf32>
    %33 = arith.maximumf %31, %32 : vector<24x768xf32>
    %34 = vector.extract_strided_slice %33 {offsets = [0, 0], sizes = [6, 768], strides = [1, 1]} : vector<24x768xf32> to vector<6x768xf32>
    %35 = vector.extract_strided_slice %33 {offsets = [6, 0], sizes = [6, 768], strides = [1, 1]} : vector<24x768xf32> to vector<6x768xf32>
    %36 = arith.maximumf %34, %35 : vector<6x768xf32>
    %37 = vector.extract_strided_slice %33 {offsets = [12, 0], sizes = [6, 768], strides = [1, 1]} : vector<24x768xf32> to vector<6x768xf32>
    %38 = vector.extract_strided_slice %33 {offsets = [18, 0], sizes = [6, 768], strides = [1, 1]} : vector<24x768xf32> to vector<6x768xf32>
    %39 = arith.maximumf %37, %38 : vector<6x768xf32>
    %40 = vector.extract_strided_slice %36 {offsets = [0, 0], sizes = [6, 384], strides = [1, 1]} : vector<6x768xf32> to vector<6x384xf32>
    %41 = vector.extract_strided_slice %36 {offsets = [0, 384], sizes = [6, 384], strides = [1, 1]} : vector<6x768xf32> to vector<6x384xf32>
    %42 = arith.maximumf %40, %41 : vector<6x384xf32>
    %43 = vector.extract_strided_slice %39 {offsets = [0, 0], sizes = [6, 384], strides = [1, 1]} : vector<6x768xf32> to vector<6x384xf32>
    %44 = vector.extract_strided_slice %39 {offsets = [0, 384], sizes = [6, 384], strides = [1, 1]} : vector<6x768xf32> to vector<6x384xf32>
    %45 = arith.maximumf %43, %44 : vector<6x384xf32>
    %46 = vector.extract_strided_slice %42 {offsets = [0, 0], sizes = [4, 384], strides = [1, 1]} : vector<6x384xf32> to vector<4x384xf32>
    %47 = vector.extract_strided_slice %45 {offsets = [0, 0], sizes = [4, 384], strides = [1, 1]} : vector<6x384xf32> to vector<4x384xf32>
    %48 = tpu.concatenate %46, %47 in 0 : vector<4x384xf32>, vector<4x384xf32> -> vector<8x384xf32>
    %c0_37 = arith.constant 0 : index
    %c0_38 = arith.constant 0 : index
    %c0_39 = arith.constant 0 : index
    %49 = vector.load %arg4[%c0_37, %c0_38, %c0_39] : memref<5x384x512xf32, #tpu.memory_space<vmem>>, vector<1x384x512xf32>
    %50 = vector.shape_cast %49 : vector<1x384x512xf32> to vector<384x512xf32>
    %cst_40 = arith.constant dense<0.000000e+00> : vector<8x512xf32>
    %51 = tpu.matmul %48, %50, %cst_40 {dimension_numbers = #tpu.dot_dimension_numbers<[1], [0], [0], [1], [0, 0, 1, 1], [], []>} : vector<8x384xf32>, vector<384x512xf32>, vector<8x512xf32> -> vector<8x512xf32>
    %52 = vector.extract_strided_slice %45 {offsets = [0, 0], sizes = [4, 384], strides = [1, 1]} : vector<6x384xf32> to vector<4x384xf32>
    %53 = vector.extract_strided_slice %42 {offsets = [1, 0], sizes = [4, 384], strides = [1, 1]} : vector<6x384xf32> to vector<4x384xf32>
    %54 = tpu.concatenate %52, %53 in 0 : vector<4x384xf32>, vector<4x384xf32> -> vector<8x384xf32>
    %c1_41 = arith.constant 1 : index
    %c0_42 = arith.constant 0 : index
    %c0_43 = arith.constant 0 : index
    %55 = vector.load %arg4[%c1_41, %c0_42, %c0_43] : memref<5x384x512xf32, #tpu.memory_space<vmem>>, vector<1x384x512xf32>
    %56 = vector.shape_cast %55 : vector<1x384x512xf32> to vector<384x512xf32>
    %cst_44 = arith.constant dense<0.000000e+00> : vector<8x512xf32>
    %57 = tpu.matmul %54, %56, %cst_44 {dimension_numbers = #tpu.dot_dimension_numbers<[1], [0], [0], [1], [0, 0, 1, 1], [], []>} : vector<8x384xf32>, vector<384x512xf32>, vector<8x512xf32> -> vector<8x512xf32>
    %58 = arith.addf %51, %57 : vector<8x512xf32>
    %59 = vector.extract_strided_slice %42 {offsets = [1, 0], sizes = [4, 384], strides = [1, 1]} : vector<6x384xf32> to vector<4x384xf32>
    %60 = vector.extract_strided_slice %45 {offsets = [1, 0], sizes = [4, 384], strides = [1, 1]} : vector<6x384xf32> to vector<4x384xf32>
    %61 = tpu.concatenate %59, %60 in 0 : vector<4x384xf32>, vector<4x384xf32> -> vector<8x384xf32>
    %c2_45 = arith.constant 2 : index
    %c0_46 = arith.constant 0 : index
    %c0_47 = arith.constant 0 : index
    %62 = vector.load %arg4[%c2_45, %c0_46, %c0_47] : memref<5x384x512xf32, #tpu.memory_space<vmem>>, vector<1x384x512xf32>
    %63 = vector.shape_cast %62 : vector<1x384x512xf32> to vector<384x512xf32>
    %cst_48 = arith.constant dense<0.000000e+00> : vector<8x512xf32>
    %64 = tpu.matmul %61, %63, %cst_48 {dimension_numbers = #tpu.dot_dimension_numbers<[1], [0], [0], [1], [0, 0, 1, 1], [], []>} : vector<8x384xf32>, vector<384x512xf32>, vector<8x512xf32> -> vector<8x512xf32>
    %65 = arith.addf %58, %64 : vector<8x512xf32>
    %66 = vector.extract_strided_slice %45 {offsets = [1, 0], sizes = [4, 384], strides = [1, 1]} : vector<6x384xf32> to vector<4x384xf32>
    %67 = vector.extract_strided_slice %42 {offsets = [2, 0], sizes = [4, 384], strides = [1, 1]} : vector<6x384xf32> to vector<4x384xf32>
    %68 = tpu.concatenate %66, %67 in 0 : vector<4x384xf32>, vector<4x384xf32> -> vector<8x384xf32>
    %c3_49 = arith.constant 3 : index
    %c0_50 = arith.constant 0 : index
    %c0_51 = arith.constant 0 : index
    %69 = vector.load %arg4[%c3_49, %c0_50, %c0_51] : memref<5x384x512xf32, #tpu.memory_space<vmem>>, vector<1x384x512xf32>
    %70 = vector.shape_cast %69 : vector<1x384x512xf32> to vector<384x512xf32>
    %cst_52 = arith.constant dense<0.000000e+00> : vector<8x512xf32>
    %71 = tpu.matmul %68, %70, %cst_52 {dimension_numbers = #tpu.dot_dimension_numbers<[1], [0], [0], [1], [0, 0, 1, 1], [], []>} : vector<8x384xf32>, vector<384x512xf32>, vector<8x512xf32> -> vector<8x512xf32>
    %72 = arith.addf %65, %71 : vector<8x512xf32>
    %73 = vector.extract_strided_slice %42 {offsets = [2, 0], sizes = [4, 384], strides = [1, 1]} : vector<6x384xf32> to vector<4x384xf32>
    %74 = vector.extract_strided_slice %45 {offsets = [2, 0], sizes = [4, 384], strides = [1, 1]} : vector<6x384xf32> to vector<4x384xf32>
    %75 = tpu.concatenate %73, %74 in 0 : vector<4x384xf32>, vector<4x384xf32> -> vector<8x384xf32>
    %c4_53 = arith.constant 4 : index
    %c0_54 = arith.constant 0 : index
    %c0_55 = arith.constant 0 : index
    %76 = vector.load %arg4[%c4_53, %c0_54, %c0_55] : memref<5x384x512xf32, #tpu.memory_space<vmem>>, vector<1x384x512xf32>
    %77 = vector.shape_cast %76 : vector<1x384x512xf32> to vector<384x512xf32>
    %cst_56 = arith.constant dense<0.000000e+00> : vector<8x512xf32>
    %78 = tpu.matmul %75, %77, %cst_56 {dimension_numbers = #tpu.dot_dimension_numbers<[1], [0], [0], [1], [0, 0, 1, 1], [], []>} : vector<8x384xf32>, vector<384x512xf32>, vector<8x512xf32> -> vector<8x512xf32>
    %79 = arith.addf %72, %78 : vector<8x512xf32>
    %c0_57 = arith.constant 0 : index
    %c0_58 = arith.constant 0 : index
    %80 = vector.load %arg5[%c0_57, %c0_58] : memref<1x512xf32, #tpu.memory_space<vmem>>, vector<1x512xf32>
    %81 = vector.broadcast %80 : vector<1x512xf32> to vector<8x512xf32>
    %82 = arith.addf %79, %81 : vector<8x512xf32>
    %cst_59 = arith.constant 0.000000e+00 : f32
    %83 = vector.broadcast %cst_59 : f32 to vector<8x512xf32>
    %84 = arith.maximumf %82, %83 : vector<8x512xf32>
    %85 = vector.extract_strided_slice %84 {offsets = [0, 0], sizes = [4, 512], strides = [1, 1]} : vector<8x512xf32> to vector<4x512xf32>
    %86 = vector.extract_strided_slice %84 {offsets = [4, 0], sizes = [4, 512], strides = [1, 1]} : vector<8x512xf32> to vector<4x512xf32>
    %87 = arith.maximumf %85, %86 : vector<4x512xf32>
    %88 = vector.extract_strided_slice %87 {offsets = [0, 0], sizes = [4, 256], strides = [1, 1]} : vector<4x512xf32> to vector<4x256xf32>
    %89 = vector.extract_strided_slice %87 {offsets = [0, 256], sizes = [4, 256], strides = [1, 1]} : vector<4x512xf32> to vector<4x256xf32>
    %90 = arith.maximumf %88, %89 : vector<4x256xf32>
    %91 = vector.extract_strided_slice %90 {offsets = [0, 0], sizes = [1, 256], strides = [1, 1]} : vector<4x256xf32> to vector<1x256xf32>
    %c0_60 = arith.constant 0 : index
    %c0_61 = arith.constant 0 : index
    %c0_62 = arith.constant 0 : index
    %92 = vector.load %arg6[%c0_60, %c0_61, %c0_62] : memref<4x256x512xf32, #tpu.memory_space<vmem>>, vector<1x256x512xf32>
    %93 = vector.shape_cast %92 : vector<1x256x512xf32> to vector<256x512xf32>
    %cst_63 = arith.constant dense<0.000000e+00> : vector<1x512xf32>
    %94 = tpu.matmul %91, %93, %cst_63 {dimension_numbers = #tpu.dot_dimension_numbers<[1], [0], [0], [1], [0, 0, 1, 1], [], []>} : vector<1x256xf32>, vector<256x512xf32>, vector<1x512xf32> -> vector<1x512xf32>
    %95 = vector.extract_strided_slice %90 {offsets = [1, 0], sizes = [1, 256], strides = [1, 1]} : vector<4x256xf32> to vector<1x256xf32>
    %c1_64 = arith.constant 1 : index
    %c0_65 = arith.constant 0 : index
    %c0_66 = arith.constant 0 : index
    %96 = vector.load %arg6[%c1_64, %c0_65, %c0_66] : memref<4x256x512xf32, #tpu.memory_space<vmem>>, vector<1x256x512xf32>
    %97 = vector.shape_cast %96 : vector<1x256x512xf32> to vector<256x512xf32>
    %cst_67 = arith.constant dense<0.000000e+00> : vector<1x512xf32>
    %98 = tpu.matmul %95, %97, %cst_67 {dimension_numbers = #tpu.dot_dimension_numbers<[1], [0], [0], [1], [0, 0, 1, 1], [], []>} : vector<1x256xf32>, vector<256x512xf32>, vector<1x512xf32> -> vector<1x512xf32>
    %99 = arith.addf %94, %98 : vector<1x512xf32>
    %100 = vector.extract_strided_slice %90 {offsets = [2, 0], sizes = [1, 256], strides = [1, 1]} : vector<4x256xf32> to vector<1x256xf32>
    %c2_68 = arith.constant 2 : index
    %c0_69 = arith.constant 0 : index
    %c0_70 = arith.constant 0 : index
    %101 = vector.load %arg6[%c2_68, %c0_69, %c0_70] : memref<4x256x512xf32, #tpu.memory_space<vmem>>, vector<1x256x512xf32>
    %102 = vector.shape_cast %101 : vector<1x256x512xf32> to vector<256x512xf32>
    %cst_71 = arith.constant dense<0.000000e+00> : vector<1x512xf32>
    %103 = tpu.matmul %100, %102, %cst_71 {dimension_numbers = #tpu.dot_dimension_numbers<[1], [0], [0], [1], [0, 0, 1, 1], [], []>} : vector<1x256xf32>, vector<256x512xf32>, vector<1x512xf32> -> vector<1x512xf32>
    %104 = arith.addf %99, %103 : vector<1x512xf32>
    %105 = vector.extract_strided_slice %90 {offsets = [3, 0], sizes = [1, 256], strides = [1, 1]} : vector<4x256xf32> to vector<1x256xf32>
    %c3_72 = arith.constant 3 : index
    %c0_73 = arith.constant 0 : index
    %c0_74 = arith.constant 0 : index
    %106 = vector.load %arg6[%c3_72, %c0_73, %c0_74] : memref<4x256x512xf32, #tpu.memory_space<vmem>>, vector<1x256x512xf32>
    %107 = vector.shape_cast %106 : vector<1x256x512xf32> to vector<256x512xf32>
    %cst_75 = arith.constant dense<0.000000e+00> : vector<1x512xf32>
    %108 = tpu.matmul %105, %107, %cst_75 {dimension_numbers = #tpu.dot_dimension_numbers<[1], [0], [0], [1], [0, 0, 1, 1], [], []>} : vector<1x256xf32>, vector<256x512xf32>, vector<1x512xf32> -> vector<1x512xf32>
    %109 = arith.addf %104, %108 : vector<1x512xf32>
    %c0_76 = arith.constant 0 : index
    %c0_77 = arith.constant 0 : index
    %110 = vector.load %arg7[%c0_76, %c0_77] : memref<1x512xf32, #tpu.memory_space<vmem>>, vector<1x512xf32>
    %111 = arith.addf %109, %110 : vector<1x512xf32>
    %cst_78 = arith.constant 0.000000e+00 : f32
    %112 = vector.broadcast %cst_78 : f32 to vector<1x512xf32>
    %113 = arith.maximumf %111, %112 : vector<1x512xf32>
    %c0_79 = arith.constant 0 : index
    %c0_80 = arith.constant 0 : index
    %114 = vector.load %arg8[%c0_79, %c0_80] : memref<512x128xf32, #tpu.memory_space<vmem>>, vector<512x128xf32>
    %cst_81 = arith.constant dense<0.000000e+00> : vector<1x128xf32>
    %115 = tpu.matmul %113, %114, %cst_81 {dimension_numbers = #tpu.dot_dimension_numbers<[1], [0], [0], [1], [0, 0, 1, 1], [], []>} : vector<1x512xf32>, vector<512x128xf32>, vector<1x128xf32> -> vector<1x128xf32>
    %c0_82 = arith.constant 0 : index
    %c0_83 = arith.constant 0 : index
    %116 = vector.load %arg9[%c0_82, %c0_83] : memref<1x128xf32, #tpu.memory_space<vmem>>, vector<1x128xf32>
    %117 = arith.addf %115, %116 : vector<1x128xf32>
    %118 = tpu.iota {dimensions = array<i32: 1>} : vector<1x128xi32>
    %c3_i32 = arith.constant 3 : i32
    %119 = vector.broadcast %c3_i32 : i32 to vector<1x128xi32>
    %120 = arith.cmpi slt, %118, %119 : vector<1x128xi32>
    %cst_84 = arith.constant -1.000000e+30 : f32
    %121 = vector.broadcast %cst_84 : f32 to vector<1x128xf32>
    %122 = arith.select %120, %117, %121 : vector<1x128xi1>, vector<1x128xf32>
    %cst_85 = arith.constant dense<0xFF800000> : vector<1xf32>
    %123 = vector.multi_reduction <maximumf>, %122, %cst_85 [1] : vector<1x128xf32> to vector<1xf32>
    %124 = vector.shape_cast %123 : vector<1xf32> to vector<1x1xf32>
    %125 = vector.broadcast %124 : vector<1x1xf32> to vector<1x128xf32>
    %126 = arith.subf %122, %125 : vector<1x128xf32>
    %127 = math.exp %126 : vector<1x128xf32>
    %cst_86 = arith.constant dense<0.000000e+00> : vector<1xf32>
    %128 = vector.multi_reduction <add>, %127, %cst_86 [1] : vector<1x128xf32> to vector<1xf32>
    %129 = vector.shape_cast %128 : vector<1xf32> to vector<1x1xf32>
    %130 = math.log %129 : vector<1x1xf32>
    %131 = vector.broadcast %130 : vector<1x1xf32> to vector<1x128xf32>
    %132 = arith.subf %126, %131 : vector<1x128xf32>
    %c0_87 = arith.constant 0 : index
    %c0_88 = arith.constant 0 : index
    %c0_89 = arith.constant 0 : index
    %133 = vector.load %arg10[%c0_87, %c0_88, %c0_89] : memref<1x1x128xf32, #tpu.memory_space<vmem>>, vector<1x1x128xf32>
    %134 = vector.shape_cast %133 : vector<1x1x128xf32> to vector<1x128xf32>
    %135 = vector.shape_cast %132 : vector<1x128xf32> to vector<1x1x128xf32>
    tpu.vector_store %arg10[%c0_87, %c0_88, %c0_89], %135 {strides = array<i32>} : memref<1x1x128xf32, #tpu.memory_space<vmem>>, vector<1x1x128xf32>,
    return
  }
  func.func @transform_0(%arg0: i32) -> (i32, i32, i32, i32) {
    %c0_i32 = arith.constant 0 : i32
    %c0_i32_0 = arith.constant 0 : i32
    %c0_i32_1 = arith.constant 0 : i32
    %c0_i32_2 = arith.constant 0 : i32
    return %arg0, %c0_i32, %c0_i32_0, %c0_i32_1 : i32, i32, i32, i32
  }
  func.func @transform_1(%arg0: i32) -> (i32, i32, i32) {
    %c0_i32 = arith.constant 0 : i32
    %c0_i32_0 = arith.constant 0 : i32
    %c0_i32_1 = arith.constant 0 : i32
    %c0_i32_2 = arith.constant 0 : i32
    return %c0_i32, %c0_i32_0, %c0_i32_1 : i32, i32, i32
  }
  func.func @transform_2(%arg0: i32) -> (i32, i32) {
    %c0_i32 = arith.constant 0 : i32
    %c0_i32_0 = arith.constant 0 : i32
    %c0_i32_1 = arith.constant 0 : i32
    return %c0_i32, %c0_i32_0 : i32, i32
  }
  func.func @transform_3(%arg0: i32) -> (i32, i32, i32) {
    %c0_i32 = arith.constant 0 : i32
    %c0_i32_0 = arith.constant 0 : i32
    %c0_i32_1 = arith.constant 0 : i32
    %c0_i32_2 = arith.constant 0 : i32
    return %c0_i32, %c0_i32_0, %c0_i32_1 : i32, i32, i32
  }
  func.func @transform_4(%arg0: i32) -> (i32, i32) {
    %c0_i32 = arith.constant 0 : i32
    %c0_i32_0 = arith.constant 0 : i32
    %c0_i32_1 = arith.constant 0 : i32
    return %c0_i32, %c0_i32_0 : i32, i32
  }
  func.func @transform_5(%arg0: i32) -> (i32, i32, i32) {
    %c0_i32 = arith.constant 0 : i32
    %c0_i32_0 = arith.constant 0 : i32
    %c0_i32_1 = arith.constant 0 : i32
    %c0_i32_2 = arith.constant 0 : i32
    return %c0_i32, %c0_i32_0, %c0_i32_1 : i32, i32, i32
  }
  func.func @transform_6(%arg0: i32) -> (i32, i32) {
    %c0_i32 = arith.constant 0 : i32
    %c0_i32_0 = arith.constant 0 : i32
    %c0_i32_1 = arith.constant 0 : i32
    return %c0_i32, %c0_i32_0 : i32, i32
  }
  func.func @transform_7(%arg0: i32) -> (i32, i32) {
    %c0_i32 = arith.constant 0 : i32
    %c0_i32_0 = arith.constant 0 : i32
    %c0_i32_1 = arith.constant 0 : i32
    return %c0_i32, %c0_i32_0 : i32, i32
  }
  func.func @transform_8(%arg0: i32) -> (i32, i32) {
    %c0_i32 = arith.constant 0 : i32
    %c0_i32_0 = arith.constant 0 : i32
    %c0_i32_1 = arith.constant 0 : i32
    return %c0_i32, %c0_i32_0 : i32, i32
  }
  func.func @transform_9(%arg0: i32) -> (i32, i32, i32) {
    %c0_i32 = arith.constant 0 : i32
    %c0_i32_0 = arith.constant 0 : i32
    %c0_i32_1 = arith.constant 0 : i32
    return %arg0, %c0_i32, %c0_i32_0 : i32, i32, i32
  }
}

</mosaic_0001>

<bundles_post_ra>
// kernel: net_forward.1
= control target key start
LH: loop header
LB: loop body
LE: loop exit
PB: predicated region body
PF: predicated region fallthrough
CT: control target
= control target key end

     0   :  { %s9516_s0 = inlined_call_operand.vmem [shape: f32[2,5,24,28], index: 0, kind: input, shape index: {}]   ;;  %s9517_s1 = inlined_call_operand.hbm [shape: f32[5,28,768], index: 1, kind: input, shape index: {}]   ;;  %s9518_s2 = inlined_call_operand.hbm [shape: f32[1,768], index: 2, kind: input, shape index: {}]   ;;  %s9519_s3 = inlined_call_operand.hbm [shape: f32[5,384,512], index: 3, kind: input, shape index: {}]   ;;  %s9520_s4 = inlined_call_operand.hbm [shape: f32[1,512], index: 4, kind: input, shape index: {}]   ;;  %s9521_s5 = inlined_call_operand.hbm [shape: f32[4,256,512], index: 5, kind: input, shape index: {}]   ;;  %s9522_s6 = inlined_call_operand.hbm [shape: f32[1,512], index: 6, kind: input, shape index: {}]   ;;  %s9523_s7 = inlined_call_operand.hbm [shape: f32[512,128], index: 7, kind: input, shape index: {}]   ;;  %s9524_s8 = inlined_call_operand.hbm [shape: f32[1,128], index: 8, kind: input, shape index: {}]   ;;  %s9525_s9 = inlined_call_operand.hbm [shape: f32[2,1,128], index: 9, kind: output, shape index: {}]  }
   0x1   :  { %9532 = sst [smem:[#allocation26_spill]] %s9517_s1 }
   0x2   :  { %9533 = sst [smem:[#allocation27_spill]] %s9518_s2 }
   0x3   :  { %9534 = sst [smem:[#allocation28_spill]] %s9520_s4 }
   0x4   :  { %9535 = sst [smem:[#allocation29_spill]] %s9522_s6 }
   0x5   :  { %14 = vsyncpa [#allocation3], 0 }
   0x6   :  { %15 = vsyncpa [#allocation6], 0 }
   0x7   :  { %16 = vsyncpa [#allocation9], 0 }
   0x8   :  { %17 = vsyncpa [#allocation12], 0 }
   0x9   :  { %18 = vsyncpa [#allocation15], 0 }
   0xa   :  { %19 = vsyncpa [#allocation4], 0 }
   0xb   :  { %21 = vsyncpa [#allocation4 + $0x1], 0  ;;  %s8705_s30 = smov 0   ;;  %s8707_s10 = smov 0  }
   0xc   :  { %s8709_s11 = smov 0   ;;  %s8711_s12 = smov 0  }
   0xd LB: > { %9536 = sst [smem:[#allocation23_spill]] %s8632_s11  ;;  %s8726_s13 = sadd.s32 4294967295, %s8636_s12   ;;  %s8636_s12 = sphi %s8711_s12, %s9563_s12   ;;  %s8632_s11 = sphi %s8709_s11, %s9565_s11   ;;  %s8628_s10 = sphi %s8707_s10, %s9567_s10   ;;  %s8624_s30 = sphi %s8705_s30, %s9566_s30  }
   0xe   : > { %s6210_s14 = sadd.s32 4294967294, %s8636_s12   ;;  %s8730_s15 = sadd.s32 1, %s8636_s12  }
   0xf   : > { %9537 = sst [smem:[#allocation24_spill]] %s8730_s15  ;;  %s228_s16 = sadd.s32 1, %s8632_s11 }
  0x10   : > { %s225_s17 = ssub.s32 %s8636_s12, %s8730_s15  ;;  %p238_p0 = scmp.ne.s32.totalorder %s8632_s11, %s8628_s10 }
  0x11   : > { %p226_p1 = scmp.eq.s32.totalorder %s225_s17, 0  ;;  %p239_p2 = scmp.eq.s32.totalorder %s8726_s13, 1 }
  0x12   : > { %p244_p3 = scmp.ne.s32.totalorder %s8628_s10, %s8624_s30  ;;  %p245_p4 = scmp.eq.s32.totalorder %s6210_s14, 1 }
  0x13   : > { %s8741_s18 = scalar_select %p226_p1, %s8632_s11, %s228_s16  }
  0x14   : > { %p8743_p5 = por %p239_p2, %p238_p0  ;;  %p8747_p6 = por %p245_p4, %p244_p3 }
  0x15   : > { %9538 = sst [smem:[#allocation25_spill]] %s8741_s18  ;;  %p6211_p7 = scmp.ge.s32.totalorder %s8636_s12, 1 }
  0x16   : > { %s9539_s19 = scalar_select %p8743_p5, 1, 0 }
  0x17   : > { %s9540_s20 = scalar_select %p8747_p6, 1, 0 }
  0x18   : > { %p252_p8 = scmp.lt.s32.totalorder %s8636_s12, 3  ;;  %p9526_p9 = scmp.eq.s32.totalorder %s8726_s13, 0 }
  0x19   : > { %s8638_s22 = smov [#allocation5]   ;;  %s8639_s24 = smov [#allocation8]  }
  0x1a   : > { %p8754_p10 = pnand %p6211_p7, %p252_p8  ;;  %s278_s23 = sshll.u32 %s8638_s22, 4  ;;  %s279_s23 = int_to_ptr.vmem [resolvable:$true] %s278_s23 }
  0x1b   : > { %s302_s25 = sshll.u32 %s8639_s24, 4  ;;  %s8640_s27 = smov [#allocation11]   ;;  %s8766_s25 = int_to_ptr.vmem [resolvable:$true] %s302_s25 }
  0x1c   : > { %s9541_s21 = scalar_select %p8754_p10, 1, 0 }
  0x1d   : > { %p8232_p11 = pneg %p8754_p10  ;;  %s326_s28 = sshll.u32 %s8640_s27, 4  ;;  %s8768_s28 = int_to_ptr.vmem [resolvable:$true] %s326_s28 }
  0x1e   : > { %s9543_s2 = sld [smem:[#allocation27_spill]] }
  0x1f   : > { %p8762_p12 = pnand %p9526_p9, %p8232_p11 }
  0x21   : > { %p8778_p0 = pneg %p8762_p12 }
  0x24   : > { %s8330_s16 = scalar_lea.hbm %s9543_s2, 96 }
  0x25   : > { %p8331_p13 = scmp.ne.s32.totalorder %s9543_s2, %s8330_s16  ;;  %p8337_p3 = scmp.lt.u32.totalorder %s8330_s16, %s9543_s2 }
  0x27   : > { %p8333_p1 = pnand %p8778_p0, %p8331_p13 }
  0x29   : > { %p8334_p2 = pneg %p8333_p1 }
  0x2b   : > { %p8339_p4 = pnand %p8337_p3, %p8334_p2 }
  0x2d   : > { %8342 = shalt.err (!%p8339_p4)
}
  0x2e   : > { %s8343_s29 = scalar_lea.vmem %s279_s23, 96  ;;  %p8351_p9 = scmp.lt.s32.totalorder %s279_s23, %s279_s23 }
  0x2f   : > { %p8344_p7 = scmp.ne.s32.totalorder %s279_s23, %s8343_s29  ;;  %p8352_p6 = scmp.lt.s32.totalorder %s8343_s29, %s8343_s29 }
  0x31   : > { %p8346_p8 = pnand %p8344_p7, %p8778_p0  ;;  %p8353_p5 = por %p8352_p6, %p8351_p9 }
  0x33   : > { %p8347_p11 = pneg %p8346_p8 }
  0x35   : > { %p8354_p10 = pnand %p8353_p5, %p8347_p11 }
  0x37   : > { %8357 = shalt.err (!%p8354_p10)
}
  0x38   : > { %8238 = dma.hbm_to_vmem [thread:$0]  (!%p8762_p12), %s9543_s2, 96, %s279_s23, [#allocation6]  }
  0x39   : > { %s9545_s4 = sld [smem:[#allocation28_spill]] }
  0x3f   : > { %s8358_s22 = scalar_lea.hbm %s9545_s4, 64 }
  0x40   : > { %p8359_p13 = scmp.ne.s32.totalorder %s9545_s4, %s8358_s22  ;;  %p8365_p5 = scmp.lt.u32.totalorder %s8358_s22, %s9545_s4 }
  0x42   : > { %p8361_p1 = pnand %p8359_p13, %p8778_p0 }
  0x44   : > { %p8362_p6 = pneg %p8361_p1 }
  0x46   : > { %p8367_p9 = pnand %p8365_p5, %p8362_p6 }
  0x48   : > { %8370 = shalt.err (!%p8367_p9)
}
  0x49   : > { %s8371_s23 = scalar_lea.vmem %s8766_s25, 64  ;;  %p8379_p4 = scmp.lt.s32.totalorder %s8766_s25, %s8766_s25 }
  0x4a   : > { %p8372_p10 = scmp.ne.s32.totalorder %s8766_s25, %s8371_s23  ;;  %p8380_p7 = scmp.lt.s32.totalorder %s8371_s23, %s8371_s23 }
  0x4c   : > { %p8374_p2 = pnand %p8372_p10, %p8778_p0  ;;  %p8381_p8 = por %p8380_p7, %p8379_p4 }
  0x4e   : > { %p8375_p3 = pneg %p8374_p2 }
  0x50   : > { %p8382_p11 = pnand %p8381_p8, %p8375_p3 }
  0x52   : > { %8385 = shalt.err (!%p8382_p11)
}
  0x53   : > { %8244 = dma.hbm_to_vmem [thread:$0]  (!%p8762_p12), %s9545_s4, 64, %s8766_s25, [#allocation9]  }
  0x54   : > { %s9546_s6 = sld [smem:[#allocation29_spill]] }
  0x5a   : > { %s8386_s18 = scalar_lea.hbm %s9546_s6, 64 }
  0x5b   : > { %p8387_p13 = scmp.ne.s32.totalorder %s9546_s6, %s8386_s18  ;;  %p8393_p5 = scmp.lt.u32.totalorder %s8386_s18, %s9546_s6 }
  0x5d   : > { %p8389_p1 = pnand %p8387_p13, %p8778_p0 }
  0x5f   : > { %p8390_p6 = pneg %p8389_p1 }
  0x61   : > { %p8395_p9 = pnand %p8393_p5, %p8390_p6 }
  0x63   : > { %8398 = shalt.err (!%p8395_p9)
}
  0x64   : > { %s8399_s25 = scalar_lea.vmem %s8768_s28, 64  ;;  %p8407_p4 = scmp.lt.s32.totalorder %s8768_s28, %s8768_s28 }
  0x65   : > { %p8400_p10 = scmp.ne.s32.totalorder %s8768_s28, %s8399_s25  ;;  %p8408_p7 = scmp.lt.s32.totalorder %s8399_s25, %s8399_s25 }
  0x67   : > { %p8402_p2 = pnand %p8400_p10, %p8778_p0  ;;  %p8409_p8 = por %p8408_p7, %p8407_p4 }
  0x69   : > { %p8403_p3 = pneg %p8402_p2 }
  0x6b   : > { %p8410_p11 = pnand %p8409_p8, %p8403_p3 }
  0x6d   : > { %8413 = shalt.err (!%p8410_p11)
}
  0x6e   : > { %8250 = dma.hbm_to_vmem [thread:$0]  (!%p8762_p12), %s9546_s6, 64, %s8768_s28, [#allocation12]  }
  0x6f   : > { %s8641_s15 = smov [#allocation2]   ;;  %s9547_s1 = sld [smem:[#allocation26_spill]] }
  0x70   : > { %s264_s14 = sshll.u32 %s8641_s15, 4  ;;  %s265_s14 = int_to_ptr.vmem [resolvable:$true] %s264_s14 }
  0x75   : > { %s8414_s16 = scalar_lea.hbm %s9547_s1, 15360 }
  0x76   : > { %p8415_p13 = scmp.ne.s32.totalorder %s9547_s1, %s8414_s16  ;;  %p8421_p5 = scmp.lt.u32.totalorder %s8414_s16, %s9547_s1 }
  0x78   : > { %p8417_p1 = pnand %p8415_p13, %p8778_p0 }
  0x7a   : > { %p8418_p6 = pneg %p8417_p1 }
  0x7c   : > { %p8423_p9 = pnand %p8421_p5, %p8418_p6 }
  0x7e   : > { %8426 = shalt.err (!%p8423_p9)
}
  0x7f   : > { %s8427_s28 = scalar_lea.vmem %s265_s14, 15360  ;;  %p8435_p4 = scmp.lt.s32.totalorder %s265_s14, %s265_s14 }
  0x80   : > { %p8428_p10 = scmp.ne.s32.totalorder %s265_s14, %s8427_s28  ;;  %p8436_p7 = scmp.lt.s32.totalorder %s8427_s28, %s8427_s28 }
  0x82   : > { %p8430_p2 = pnand %p8428_p10, %p8778_p0  ;;  %p8437_p8 = por %p8436_p7, %p8435_p4 }
  0x84   : > { %p8431_p3 = pneg %p8430_p2 }
  0x86   : > { %p8438_p11 = pnand %p8437_p8, %p8431_p3 }
  0x88   : > { %8441 = shalt.err (!%p8438_p11)
}
  0x89   : > { %s8642_s23 = smov 768   ;;  %s8643_s11 = smov 48  }
  0x8a   : > { %8235 = dma.hbm_to_vmem [thread:$0]  (!%p8762_p12), %s9547_s1, 15360, %s265_s14, [#allocation3], %s8642_s23, %s8642_s23, %s8643_s11  }
  0x8b   : > { %s8644_s18 = smov [#allocation7]   ;;  %s8442_s29 = scalar_lea.hbm %s9519_s3, 122880 }
  0x8c   : > { %s288_s16 = sshll.u32 %s8644_s18, 4  ;;  %p8443_p13 = scmp.ne.s32.totalorder %s9519_s3, %s8442_s29  ;;  %s289_s16 = int_to_ptr.vmem [resolvable:$true] %s288_s16 }
  0x8d   : > { %p8449_p5 = scmp.lt.u32.totalorder %s8442_s29, %s9519_s3 }
  0x8e   : > { %p8445_p1 = pnand %p8443_p13, %p8778_p0 }
  0x90   : > { %p8446_p6 = pneg %p8445_p1 }
  0x92   : > { %p8451_p9 = pnand %p8449_p5, %p8446_p6 }
  0x94   : > { %8454 = shalt.err (!%p8451_p9)
}
  0x95   : > { %s8455_s14 = scalar_lea.vmem %s289_s16, 122880  ;;  %p8463_p4 = scmp.lt.s32.totalorder %s289_s16, %s289_s16 }
  0x96   : > { %p8456_p10 = scmp.ne.s32.totalorder %s289_s16, %s8455_s14  ;;  %p8464_p7 = scmp.lt.s32.totalorder %s8455_s14, %s8455_s14 }
  0x98   : > { %p8458_p2 = pnand %p8456_p10, %p8778_p0  ;;  %p8465_p8 = por %p8464_p7, %p8463_p4 }
  0x9a   : > { %p8459_p3 = pneg %p8458_p2 }
  0x9c   : > { %p8466_p11 = pnand %p8465_p8, %p8459_p3 }
  0x9e   : > { %8469 = shalt.err (!%p8466_p11)
}
  0x9f   : > { %s8645_s23 = smov 512   ;;  %s8646_s11 = smov 32  }
  0xa0   : > { %8241 = dma.hbm_to_vmem [thread:$0]  (!%p8762_p12), %s9519_s3, 122880, %s289_s16, [#allocation6], %s8645_s23, %s8645_s23, %s8646_s11  }
  0xa1   : > { %s8647_s15 = smov [#allocation10]   ;;  %s8648_s18 = smov [#allocation13]  }
  0xa2   : > { %s312_s17 = sshll.u32 %s8647_s15, 4  ;;  %s336_s22 = sshll.u32 %s8648_s18, 4  ;;  %s313_s17 = int_to_ptr.vmem [resolvable:$true] %s312_s17  ;;  %s337_s22 = int_to_ptr.vmem [resolvable:$true] %s336_s22 }
  0xa3   : > { %s8470_s25 = scalar_lea.hbm %s9521_s5, 65536 }
  0xa4   : > { %p8471_p13 = scmp.ne.s32.totalorder %s9521_s5, %s8470_s25  ;;  %p8477_p5 = scmp.lt.u32.totalorder %s8470_s25, %s9521_s5 }
  0xa6   : > { %p8473_p1 = pnand %p8471_p13, %p8778_p0 }
  0xa8   : > { %p8474_p6 = pneg %p8473_p1 }
  0xaa   : > { %p8479_p9 = pnand %p8477_p5, %p8474_p6 }
  0xac   : > { %8482 = shalt.err (!%p8479_p9)
}
  0xad   : > { %s8483_s16 = scalar_lea.vmem %s313_s17, 65536  ;;  %p8491_p4 = scmp.lt.s32.totalorder %s313_s17, %s313_s17 }
  0xae   : > { %p8484_p10 = scmp.ne.s32.totalorder %s313_s17, %s8483_s16  ;;  %p8492_p7 = scmp.lt.s32.totalorder %s8483_s16, %s8483_s16 }
  0xb0   : > { %p8486_p2 = pnand %p8484_p10, %p8778_p0  ;;  %p8493_p8 = por %p8492_p7, %p8491_p4 }
  0xb2   : > { %p8487_p3 = pneg %p8486_p2 }
  0xb4   : > { %p8494_p11 = pnand %p8493_p8, %p8487_p3 }
  0xb6   : > { %8497 = shalt.err (!%p8494_p11)
}
  0xb7   : > { %8247 = dma.hbm_to_vmem [thread:$0]  (!%p8762_p12), %s9521_s5, 65536, %s313_s17, [#allocation9], %s8645_s23, %s8645_s23, %s8646_s11  }
  0xb8   : > { %s8498_s15 = scalar_lea.hbm %s9523_s7, 8192 }
  0xb9   : > { %p8499_p13 = scmp.ne.s32.totalorder %s9523_s7, %s8498_s15  ;;  %p8505_p5 = scmp.lt.u32.totalorder %s8498_s15, %s9523_s7 }
  0xbb   : > { %p8501_p1 = pnand %p8499_p13, %p8778_p0 }
  0xbd   : > { %p8502_p6 = pneg %p8501_p1 }
  0xbf   : > { %p8507_p9 = pnand %p8505_p5, %p8502_p6 }
  0xc1   : > { %8510 = shalt.err (!%p8507_p9)
}
  0xc2   : > { %s8511_s28 = scalar_lea.vmem %s337_s22, 8192  ;;  %p8519_p4 = scmp.lt.s32.totalorder %s337_s22, %s337_s22 }
  0xc3   : > { %p8512_p10 = scmp.ne.s32.totalorder %s337_s22, %s8511_s28  ;;  %p8520_p7 = scmp.lt.s32.totalorder %s8511_s28, %s8511_s28 }
  0xc5   : > { %p8514_p2 = pnand %p8512_p10, %p8778_p0  ;;  %p8521_p8 = por %p8520_p7, %p8519_p4 }
  0xc7   : > { %p8515_p3 = pneg %p8514_p2 }
  0xc9   : > { %p8522_p11 = pnand %p8521_p8, %p8515_p3 }
  0xcb   : > { %8525 = shalt.err (!%p8522_p11)
}
  0xcc   : > { %s8649_s23 = smov 128   ;;  %s8650_s11 = smov 8  }
  0xcd   : > { %8253 = dma.hbm_to_vmem [thread:$0]  (!%p8762_p12), %s9523_s7, 8192, %s337_s22, [#allocation12], %s8649_s23, %s8649_s23, %s8650_s11  }
  0xce   : > { %s8651_s16 = smov [#allocation14]   ;;  %s8526_s6 = scalar_lea.hbm %s9524_s8, 16 }
  0xcf   : > { %s350_s2 = sshll.u32 %s8651_s16, 4  ;;  %p8527_p13 = scmp.ne.s32.totalorder %s9524_s8, %s8526_s6  ;;  %s351_s2 = int_to_ptr.vmem [resolvable:$true] %s350_s2 }
  0xd0   : > { %p8533_p5 = scmp.lt.u32.totalorder %s8526_s6, %s9524_s8 }
  0xd1   : > { %p8529_p1 = pnand %p8527_p13, %p8778_p0 }
  0xd3   : > { %p8530_p6 = pneg %p8529_p1 }
  0xd5   : > { %p8535_p9 = pnand %p8533_p5, %p8530_p6 }
  0xd7   : > { %8538 = shalt.err (!%p8535_p9)
}
  0xd8   : > { %s8539_s22 = scalar_lea.vmem %s351_s2, 16  ;;  %s8546_s25 = scalar_lea.vmem %s351_s2, 32 }
  0xd9   : > { %p8540_p10 = scmp.ne.s32.totalorder %s351_s2, %s8539_s22  ;;  %p8547_p4 = scmp.lt.s32.totalorder %s351_s2, %s351_s2 }
  0xda   : > { %p8548_p7 = scmp.lt.s32.totalorder %s8546_s25, %s8539_s22 }
  0xdb   : > { %p8542_p2 = pnand %p8540_p10, %p8778_p0 }
  0xdc   : > { %p8549_p8 = por %p8548_p7, %p8547_p4 }
  0xdd   : > { %p8543_p3 = pneg %p8542_p2 }
  0xdf   : > { %p8550_p11 = pnand %p8549_p8, %p8543_p3 }
  0xe1   : > { %8553 = shalt.err (!%p8550_p11)
}
  0xe2   : > { %8256 = dma.hbm_to_vmem [thread:$0]  (!%p8762_p12), %s9524_s8, 16, %s351_s2, [#allocation15]  }
  0xe3   : > { %p9548_p13 = scmp.ne.s32.totalorder %s9541_s21, 0 }
  0xe4   : > { %p9549_p1 = scmp.eq.s32.totalorder (!%p9548_p13), %s8726_s13, 0 }
  0xe5   : > { %371 = sbr.rel (%p9548_p13) target bundleno = 2237 (0x8bd), region = 56 }
  0xec   : > { %8599 = dma.done.wait (%p9549_p1), [#allocation3], 15360   ;;  %p9550_p0 = pmov %p9549_p1 }
  0xee   : > { %8601 = vsyncadd (%p9550_p0), [#allocation3], 4294951936  ;;  %p9551_p6 = pmov %p9550_p0 }
  0xef   : > { %p9552_p5 = pmov %p9550_p0 }
  0xf0   : > { %8603 = dma.done.wait (%p9551_p6), [#allocation6], 122976  }
  0xf1   : > { %8605 = vsyncadd (%p9552_p5), [#allocation6], 4294844320  ;;  %p9553_p9 = pmov %p9550_p0 }
  0xf2   : > { %p9554_p12 = pmov %p9550_p0 }
  0xf3   : > { %8607 = dma.done.wait (%p9553_p9), [#allocation9], 65600  }
  0xf4   : > { %8609 = vsyncadd (%p9554_p12), [#allocation9], 4294901696  ;;  %p9555_p10 = pmov %p9550_p0 }
  0xf5   : > { %p9556_p2 = pmov %p9550_p0 }
  0xf6   : > { %8611 = dma.done.wait (%p9555_p10), [#allocation12], 8256  }
  0xf7   : > { %8613 = vsyncadd (%p9556_p2), [#allocation12], 4294959040  ;;  %p9557_p3 = pmov %p9550_p0 }
  0xf8   : > { %p9558_p4 = pmov %p9550_p0 }
  0xf9   : > { %8615 = dma.done.wait (%p9557_p3), [#allocation15], 16  }
  0xfa   : > { %8617 = vsyncadd (%p9558_p4), [#allocation15], 4294967280  ;;  %p434_p7 = scmp.lt.s32.totalorder %s8726_s13, 1  ;;  %v8652_v0 = vmov 0.0   ;;  %vm505_vm0 = vcmask 1043456   ;;  %vm8653_vm1 = vmmov 1  }
  0xfb   : > { %588 = vmatprep.mubr.f32.mxu0 %v8652_v0  ;;  %671 = vmatprep.mubr.f32.mxu1 %v8652_v0  ;;  %vm8957_vm2 = vmpackc.low %vm505_vm0, %vm8653_vm1  ;;  %v472_v2 = vld [vmem:[#allocation2 + $0xc8] sm:$0xff]  ;;  %v478_v3 = vld [vmem:[#allocation2 + $0xf8] sm:$0xff]  ;;  %vm495_vm3 = vcmask 228352   ;;  %vm2098_vm4 = vcmask 1041408   ;;  %vm3154_vm5 = vcmask 1046528   ;;  %vm3651_vm6 = vcmask 1042432  }
  0xfc   : > { %s435_s21 = scalar_select %p434_p7, %s8726_s13, 1  ;;  %v471_v4 = vld [vmem:[#allocation2 + $0xc0] sm:$0xff]  ;;  %v6391_v5 = vpack.c.bf16 %v478_v3, %v472_v2  ;;  %v477_v6 = vld [vmem:[#allocation2 + $0xf0] sm:$0xff]  ;;  %v484_v7 = vld [vmem:[#allocation2 + $0x128] sm:$0xff]  ;;  %vm4160_vm7 = vcmask 1045504   ;;  %vm6049_vm9 = vcmask 1040384  }
  0xfd   : > { %v490_v8 = vld [vmem:[#allocation2 + $0x158] sm:$0xf]  ;;  %v6393_v9 = vpack.c.bf16 %v477_v6, %v471_v4  ;;  %v483_v11 = vld [vmem:[#allocation2 + $0x120] sm:$0xff]  ;;  %v489_v12 = vld [vmem:[#allocation2 + $0x150] sm:$0xf]  ;;  %s432_s14 = sand.u32 1, %s8628_s10  }
  0xfe   : > { %s8197_s26 = smul.u32 120, %s435_s21  ;;  %v6395_v10 = vpack.c.bf16 %v490_v8, %v484_v7  ;;  %v474_v13 = vld [vmem:[#allocation2 + $0xd8] sm:$0xff]  ;;  %6392 = vmatprep.subr.bf16.mxu0 %v6391_v5  ;;  %v480_v14 = vld [vmem:[#allocation2 + $0x108] sm:$0xff]  ;;  %v473_v15 = vld [vmem:[#allocation2 + $0xd0] sm:$0xff]  ;;  %v6398_v17 = vpack.c.bf16 %v489_v12, %v483_v11  ;;  %s6318_s16 = sshll.u32 %s8726_s13, 4 }
  0xff   : > { %v479_v16 = vld [vmem:[#allocation2 + $0x100] sm:$0xff]  ;;  %6394 = vmatpush1.bf16.msra.mxu0 %v6393_v9  ;;  %v6401_v18 = vpack.c.bf16 %v480_v14, %v474_v13  ;;  %v476_v20 = vld [vmem:[#allocation2 + $0xe8] sm:$0xff]  ;;  %v482_v21 = vld [vmem:[#allocation2 + $0x118] sm:$0xff]  ;;  %s433_s2 = scalar_lea.vmem [#allocation16], %s432_s14  ;;  %s9474_s15 = scalar_lea.hbm %s9525_s9, %s6318_s16 }
 0x100   : > { %v6403_v19 = vpack.c.bf16 %v479_v16, %v473_v15  ;;  %6397 = vmatprep.subr.msk.bf16.mxu0 %vm8957_vm2, %v6395_v10  ;;  %s8966_s17 = scalar_lea.vmem %s9516_s0, %s8197_s26  ;;  %v6411_v22 = vpack.c.bf16 %v482_v21, %v476_v20  ;;  %v486_v23 = vld [vmem:[#allocation2 + $0x138] sm:$0xff]  ;;  %v492_v24 = vld [vmem:[#allocation2 + $0x168] sm:$0xf]  ;;  %v475_v25 = vld [vmem:[#allocation2 + $0xe0] sm:$0xff]  ;;  %s6076_s4 = sshll.u32 %s433_s2, 4  ;;  %s9476_s4 = int_to_ptr.vmem [resolvable:$true] %s6076_s4 }
 0x101   : > { %6402 = vmatprep.subr.bf16.mxu1 %v6401_v18  ;;  %v6405_v26 = vpack.c.bf16 %v492_v24, %v486_v23  ;;  %v481_v27 = vld [vmem:[#allocation2 + $0x110] sm:$0xff]  ;;  %v491_v29 = vld [vmem:[#allocation2 + $0x160] sm:$0xf]  ;;  %v488_v31 = vld [vmem:[#allocation2 + $0x148] sm:$0xff]  ;;  %s6064_s18 = scalar_lea.sflag [#allocation4], %s432_s14  ;;  %s8554_s27 = scalar_lea.vmem %s9476_s4, 16 }
 0x102   : > { %v485_v28 = vld [vmem:[#allocation2 + $0x130] sm:$0xff]  ;;  %6404 = vmatpush1.bf16.msra.mxu1 %v6403_v19  ;;  %v494_v32 = vld [vmem:[#allocation2 + $0x178] sm:$0xf]  ;;  %v6413_v34 = vpack.c.bf16 %v481_v27, %v475_v25  ;;  %v487_v35 = vld [vmem:[#allocation2 + $0x140] sm:$0xff]  ;;  %p8555_p8 = scmp.ne.s32.totalorder %s9476_s4, %s8554_s27  ;;  %p9561_p11 = scmp.ne.s32.totalorder %s9539_s19, 0 }
 0x103   : > { %v6408_v30 = vpack.c.bf16 %v491_v29, %v485_v28  ;;  %6400 = vmatpush1.bf16.msk.msra.mxu0 %vm8957_vm2, %v6398_v17  ;;  %v6231_v33 = vld [vmem:[%s8966_s17 + $0x18] sm:$0xff]  ;;  %6407 = vmatprep.subr.msk.bf16.mxu1 %vm8957_vm2, %v6405_v26  ;;  %v493_v36 = vld [vmem:[#allocation2 + $0x170] sm:$0xf]  ;;  %v6415_v37 = vpack.c.bf16 %v494_v32, %v488_v31  ;;  %v451_v39 = vld [vmem:[#allocation2 + $0x48] sm:$0xff]  ;;  %s8654_s13 = smov [#allocation16]  }
 0x104   : > { %6412 = vmatprep.subr.bf16.mxu0 %v6411_v22  ;;  %v445_v38 = vld [vmem:[#allocation2 + $0x18] sm:$0xff]  ;;  %v444_v40 = vld [vmem:[#allocation2 + $0x10] sm:$0xff]  ;;  %v450_v42 = vld [vmem:[#allocation2 + $0x40] sm:$0xff]  ;;  %v6418_v47 = vpack.c.bf16 %v493_v36, %v487_v35  ;;  %p8556_p13 = pnand %p8555_p8, %p9561_p11  ;;  %s8558_s29 = sshll.u32 %s8654_s13, 4  ;;  %s8559_s29 = int_to_ptr.vmem [resolvable:$false] %s8558_s29 }
 0x105   : > { %v6431_v41 = vpack.c.bf16 %v451_v39, %v445_v38  ;;  %v443_v43 = vld [vmem:[#allocation2 + $0x8] sm:$0xff]  ;;  %v449_v44 = vld [vmem:[#allocation2 + $0x38] sm:$0xff]  ;;  %v6232_v46 = vld [vmem:[%s8966_s17 + $0x20] sm:$0xff]  ;;  %v6433_v49 = vpack.c.bf16 %v450_v42, %v444_v40  ;;  %s8560_s22 = scalar_lea.vmem %s8559_s29, 32  ;;  %p8561_p0 = scmp.lt.s32.totalorder %s9476_s4, %s8559_s29 }
 0x106   : > { %6236 = vmatmul.mubr.msk.f32.vlgmr.msra.gmra.mrb[0].mxu0 %vm495_vm3, %v6231_v33  ;;  %6410 = vmatpush1.bf16.msk.msra.mxu1 %vm8957_vm2, %v6408_v30  ;;  %v457_v45 = vld [vmem:[#allocation2 + $0x78] sm:$0xff]  ;;  %v463_v48 = vld [vmem:[#allocation2 + $0xa8] sm:$0xf]  ;;  %v6421_v50 = vpack.c.bf16 %v449_v44, %v443_v43  ;;  %v456_v52 = vld [vmem:[#allocation2 + $0x70] sm:$0xff]  ;;  %p8557_p1 = pneg %p8556_p13  ;;  %p8562_p6 = scmp.lt.s32.totalorder %s8560_s22, %s8554_s27 }
 0x107   : > { %6414 = vmatpush1.bf16.msra.mxu0 %v6413_v34  ;;  %594 = vmatprep.mubr.f32.mxu0 %v8652_v0  ;;  %v6435_v51 = vpack.c.bf16 %v463_v48, %v457_v45  ;;  %v462_v53 = vld [vmem:[#allocation2 + $0xa0] sm:$0xf]  ;;  %v1057_v54 = vld [vmem:[#allocation2 + $0x198] sm:$0xff]  ;;  %v1063_v55 = vld [vmem:[#allocation2 + $0x1c8] sm:$0xff] }
 0x108   : > { %6417 = vmatprep.subr.msk.bf16.mxu0 %vm8957_vm2, %v6415_v37  ;;  %6432 = vmatprep.subr.bf16.mxu1 %v6431_v41  ;;  %v6233_v56 = vld [vmem:[%s8966_s17 + $0x28] sm:$0xff]  ;;  %v442_v57 = vld [vmem:[#allocation2] sm:$0xff]  ;;  %v448_v58 = vld [vmem:[#allocation2 + $0x30] sm:$0xff]  ;;  %v6438_v59 = vpack.c.bf16 %v462_v53, %v456_v52  ;;  %v6461_v62 = vpack.c.bf16 %v1063_v55, %v1057_v54  ;;  %p8563_p5 = por %p8562_p6, %p8561_p0 }
 0x109   : > { %6241 = vmatmul.mubr.msk.f32.vlgmr.msra.gmra.mrb[0].mxu1 %vm495_vm3, %v6231_v33  ;;  %v455_v60 = vld [vmem:[#allocation2 + $0x68] sm:$0xff]  ;;  %v461_v61 = vld [vmem:[#allocation2 + $0x98] sm:$0xf]  ;;  %v6423_v63 = vpack.c.bf16 %v448_v58, %v442_v57  ;;  %v454_v3 = vld [vmem:[#allocation2 + $0x60] sm:$0xff] }
 0x10a   : > { %6237 = vmatmul.mubr.msk.f32.gmra.mrb[2].mxu0 %vm495_vm3, %v6232_v46  ;;  %677 = vmatprep.mubr.f32.mxu1 %v8652_v0  ;;  %v6425_v2 = vpack.c.bf16 %v461_v61, %v455_v60  ;;  %v460_v4 = vld [vmem:[#allocation2 + $0x90] sm:$0xf]  ;;  %v1062_v6 = vld [vmem:[#allocation2 + $0x1c0] sm:$0xff]  ;;  %v447_v7 = vld [vmem:[#allocation2 + $0x28] sm:$0xff]  ;;  %p8564_p9 = pnand %p8563_p5, %p8557_p1 }
 0x10b   : > { %600 = vmatprep.mubr.f32.mxu0 %v8652_v0  ;;  %6420 = vmatpush1.bf16.msk.msra.mxu0 %vm8957_vm2, %v6418_v47  ;;  %v1056_v5 = vld [vmem:[#allocation2 + $0x190] sm:$0xff]  ;;  %v453_v8 = vld [vmem:[#allocation2 + $0x58] sm:$0xff]  ;;  %v8999_v9 = vld [vmem:[%s8966_s17] sm:$0xff]  ;;  %v6428_v12 = vpack.c.bf16 %v460_v4, %v454_v3 }
 0x10c   : > { %6434 = vmatpush1.bf16.msra.mxu1 %v6433_v49  ;;  %6422 = vmatprep.subr.bf16.mxu0 %v6421_v50  ;;  %v1069_v10 = vld [vmem:[#allocation2 + $0x1f8] sm:$0xff]  ;;  %v1075_v11 = vld [vmem:[#allocation2 + $0x228] sm:$0xf]  ;;  %v6463_v13 = vpack.c.bf16 %v1062_v6, %v1056_v5  ;;  %v6441_v14 = vpack.c.bf16 %v453_v8, %v447_v7  ;;  %v1068_v16 = vld [vmem:[#allocation2 + $0x1f0] sm:$0xff] }
 0x10d   : > { %6242 = vmatmul.mubr.msk.f32.gmra.mrb[2].mxu1 %vm495_vm3, %v6232_v46  ;;  %6437 = vmatprep.subr.msk.bf16.mxu1 %vm8957_vm2, %v6435_v51  ;;  %v6465_v15 = vpack.c.bf16 %v1075_v11, %v1069_v10  ;;  %v1074_v17 = vld [vmem:[#allocation2 + $0x220] sm:$0xf]  ;;  %v9009_v18 = vld [vmem:[%s8966_s17 + $0x8] sm:$0xff]  ;;  %v1380_v19 = vld [vmem:[#allocation2 + $0x258] sm:$0xff] }
 0x10e   : > { %6238 = vmatmul.mubr.msk.f32.gmra.mrb[4].mxu0 %vm495_vm3, %v6233_v56  ;;  %683 = vmatprep.mubr.f32.mxu1 %v8652_v0  ;;  %v1386_v20 = vld [vmem:[#allocation2 + $0x288] sm:$0xff]  ;;  %v446_v21 = vld [vmem:[#allocation2 + $0x20] sm:$0xff]  ;;  %v452_v22 = vld [vmem:[#allocation2 + $0x50] sm:$0xff]  ;;  %v6468_v23 = vpack.c.bf16 %v1074_v17, %v1068_v16 }
 0x10f   : > { %754 = vmatprep.mubr.f32.mxu0 %v8652_v0  ;;  %v459_v24 = vld [vmem:[#allocation2 + $0x88] sm:$0xff]  ;;  %v465_v25 = vld [vmem:[#allocation2 + $0xb8] sm:$0xf]  ;;  %v6491_v26 = vpack.c.bf16 %v1386_v20, %v1380_v19  ;;  %v9021_v27 = vld [vmem:[%s8966_s17 + $0x10] sm:$0xff]  ;;  %v6443_v28 = vpack.c.bf16 %v452_v22, %v446_v21 }
 0x110   : > { %6440 = vmatpush1.bf16.msk.msra.mxu1 %vm8957_vm2, %v6438_v59  ;;  %v6445_v29 = vpack.c.bf16 %v465_v25, %v459_v24  ;;  %v458_v30 = vld [vmem:[#allocation2 + $0x80] sm:$0xff]  ;;  %v464_v31 = vld [vmem:[#allocation2 + $0xb0] sm:$0xf]  ;;  %v1055_v34 = vld [vmem:[#allocation2 + $0x188] sm:$0xff] }
 0x111   : > { %6243 = vmatmul.mubr.msk.f32.gmra.mrb[4].mxu1 %vm495_vm3, %v6233_v56  ;;  %6462 = vmatprep.subr.bf16.mxu1 %v6461_v62  ;;  %v1379_v32 = vld [vmem:[#allocation2 + $0x250] sm:$0xff]  ;;  %v1061_v35 = vld [vmem:[#allocation2 + $0x1b8] sm:$0xff]  ;;  %v1398_v38 = vld [vmem:[#allocation2 + $0x2e8] sm:$0xf]  ;;  %v6448_v39 = vpack.c.bf16 %v464_v31, %v458_v30 }
 0x112   : > { %6246 = vmatmul.mubr.msk.f32.vlgmr.msra.gmra.mrb[6].mxu0 %vm495_vm3, %v6231_v33  ;;  %947 = vmatprep.mubr.f32.mxu1 %v8652_v0  ;;  %v1385_v33 = vld [vmem:[#allocation2 + $0x280] sm:$0xff]  ;;  %v9032_v36 = vld [vmem:[%s8966_s17 + $0x30] sm:$0xff]  ;;  %v1392_v37 = vld [vmem:[#allocation2 + $0x2b8] sm:$0xff]  ;;  %v6451_v41 = vpack.c.bf16 %v1061_v35, %v1055_v34 }
 0x113   : > { %6424 = vmatpush1.bf16.msra.mxu0 %v6423_v63  ;;  %760 = vmatprep.mubr.f32.mxu0 %v8652_v0  ;;  %v6493_v40 = vpack.c.bf16 %v1385_v33, %v1379_v32  ;;  %v6495_v42 = vpack.c.bf16 %v1398_v38, %v1392_v37  ;;  %v1391_v43 = vld [vmem:[#allocation2 + $0x2b0] sm:$0xff]  ;;  %v1397_v44 = vld [vmem:[#allocation2 + $0x2e0] sm:$0xf]  ;;  %v9043_v45 = vld [vmem:[%s8966_s17 + $0x38] sm:$0xff] }
 0x114   : > { %6427 = vmatprep.subr.msk.bf16.mxu0 %vm8957_vm2, %v6425_v2  ;;  %v1709_v47 = vld [vmem:[#allocation2 + $0x348] sm:$0xff]  ;;  %v1054_v48 = vld [vmem:[#allocation2 + $0x180] sm:$0xff]  ;;  %v1060_v49 = vld [vmem:[#allocation2 + $0x1b0] sm:$0xff]  ;;  %v6498_v50 = vpack.c.bf16 %v1397_v44, %v1391_v43 }
 0x115   : > { %6256 = vmatmul.mubr.msk.f32.vlgmr.msra.gmra.mrb[0].mxu1 %vm495_vm3, %v8999_v9  ;;  %v1067_v51 = vld [vmem:[#allocation2 + $0x1e8] sm:$0xff]  ;;  %v1073_v52 = vld [vmem:[#allocation2 + $0x218] sm:$0xf]  ;;  %v9056_v54 = vld [vmem:[%s8966_s17 + $0x40] sm:$0xff]  ;;  %v6453_v55 = vpack.c.bf16 %v1060_v49, %v1054_v48 }
 0x116   : > { %6247 = vmatmul.mubr.msk.f32.gmra.mrb[8].mxu0 %vm495_vm3, %v6232_v46  ;;  %953 = vmatprep.mubr.f32.mxu1 %v8652_v0  ;;  %v1703_v46 = vld [vmem:[#allocation2 + $0x318] sm:$0xff]  ;;  %v1066_v57 = vld [vmem:[#allocation2 + $0x1e0] sm:$0xff]  ;;  %v1072_v58 = vld [vmem:[#allocation2 + $0x210] sm:$0xf] }
 0x117   : > { %766 = vmatprep.mubr.f32.mxu0 %v8652_v0  ;;  %6430 = vmatpush1.bf16.msk.msra.mxu0 %vm8957_vm2, %v6428_v12  ;;  %v6521_v53 = vpack.c.bf16 %v1709_v47, %v1703_v46  ;;  %v1702_v59 = vld [vmem:[#allocation2 + $0x310] sm:$0xff]  ;;  %v1708_v60 = vld [vmem:[#allocation2 + $0x340] sm:$0xff]  ;;  %v1059_v61 = vld [vmem:[#allocation2 + $0x1a8] sm:$0xff]  ;;  %v6458_v4 = vpack.c.bf16 %v1072_v58, %v1066_v57 }
 0x118   : > { %6464 = vmatpush1.bf16.msra.mxu1 %v6463_v13  ;;  %6442 = vmatprep.subr.bf16.mxu0 %v6441_v14  ;;  %v1065_v62 = vld [vmem:[#allocation2 + $0x1d8] sm:$0xff]  ;;  %v9067_v63 = vld [vmem:[%s8966_s17 + $0x48] sm:$0xff]  ;;  %v6523_v5 = vpack.c.bf16 %v1708_v60, %v1702_v59  ;;  %v1714_v8 = vld [vmem:[#allocation2 + $0x370] sm:$0xff] }
 0x119   : > { %6257 = vmatmul.mubr.msk.f32.gmra.mrb[2].mxu1 %vm495_vm3, %v9009_v18  ;;  %6467 = vmatprep.subr.msk.bf16.mxu1 %vm8957_vm2, %v6465_v15  ;;  %v1715_v2 = vld [vmem:[#allocation2 + $0x378] sm:$0xff]  ;;  %v1721_v3 = vld [vmem:[#allocation2 + $0x3a8] sm:$0xf]  ;;  %v6471_v6 = vpack.c.bf16 %v1065_v62, %v1059_v61  ;;  %v9078_v10 = vld [vmem:[%s8966_s17 + $0x50] sm:$0xff] }
 0x11a   : > { %6248 = vmatmul.mubr.msk.f32.gmra.mrb[10].mxu0 %vm495_vm3, %v6233_v56  ;;  %959 = vmatprep.mubr.f32.mxu1 %v8652_v0  ;;  %v6455_v56 = vpack.c.bf16 %v1073_v52, %v1067_v51  ;;  %v6525_v7 = vpack.c.bf16 %v1721_v3, %v1715_v2  ;;  %v1058_v11 = vld [vmem:[#allocation2 + $0x1a0] sm:$0xff]  ;;  %v1064_v12 = vld [vmem:[#allocation2 + $0x1d0] sm:$0xff]  ;;  %v1071_v14 = vld [vmem:[#allocation2 + $0x208] sm:$0xff] }
 0x11b   : > { %864 = vmatprep.mubr.f32.mxu0 %v8652_v0  ;;  %v1077_v15 = vld [vmem:[#allocation2 + $0x238] sm:$0xf]  ;;  %v6473_v17 = vpack.c.bf16 %v1064_v12, %v1058_v11  ;;  %v1070_v19 = vld [vmem:[#allocation2 + $0x200] sm:$0xff]  ;;  %v1076_v20 = vld [vmem:[#allocation2 + $0x230] sm:$0xf] }
 0x11c   : > { %6470 = vmatpush1.bf16.msk.msra.mxu1 %vm8957_vm2, %v6468_v23  ;;  %v9091_v16 = vld [vmem:[%s8966_s17 + $0x58] sm:$0xff]  ;;  %v1378_v21 = vld [vmem:[#allocation2 + $0x248] sm:$0xff]  ;;  %v9102_v23 = vld [vmem:[%s8966_s17 + $0x60] sm:$0xff]  ;;  %v6478_v24 = vpack.c.bf16 %v1076_v20, %v1070_v19 }
 0x11d   : > { %6258 = vmatmul.mubr.msk.f32.gmra.mrb[4].mxu1 %vm495_vm3, %v9021_v27  ;;  %6492 = vmatprep.subr.bf16.mxu1 %v6491_v26  ;;  %v1384_v22 = vld [vmem:[#allocation2 + $0x278] sm:$0xff]  ;;  %v9113_v26 = vld [vmem:[%s8966_s17 + $0x68] sm:$0xff]  ;;  %v9124_v31 = vld [vmem:[%s8966_s17 + $0x70] sm:$0xff] }
 0x11e   : > { %6251 = vmatmul.mubr.msk.f32.vlgmr.msra.gmra.mrb[0].mxu0 %vm495_vm3, %v8999_v9  ;;  %1252 = vmatprep.mubr.f32.mxu1 %v8652_v0  ;;  %v6481_v25 = vpack.c.bf16 %v1384_v22, %v1378_v21  ;;  %v1396_v30 = vld [vmem:[#allocation2 + $0x2d8] sm:$0xf]  ;;  %v1389_v34 = vld [vmem:[#allocation2 + $0x2a0] sm:$0xff]  ;;  %v1395_v35 = vld [vmem:[#allocation2 + $0x2d0] sm:$0xf] }
 0x11f   : > { %6444 = vmatpush1.bf16.msra.mxu0 %v6443_v28  ;;  %870 = vmatprep.mubr.f32.mxu0 %v8652_v0  ;;  %v1383_v28 = vld [vmem:[#allocation2 + $0x270] sm:$0xff]  ;;  %v1382_v37 = vld [vmem:[#allocation2 + $0x268] sm:$0xff]  ;;  %v1388_v38 = vld [vmem:[#allocation2 + $0x298] sm:$0xff] }
 0x120   : > { %6447 = vmatprep.subr.msk.bf16.mxu0 %vm8957_vm2, %v6445_v29  ;;  %v1390_v29 = vld [vmem:[#allocation2 + $0x2a8] sm:$0xff]  ;;  %v1400_v43 = vld [vmem:[#allocation2 + $0x2f8] sm:$0xf]  ;;  %v1393_v47 = vld [vmem:[#allocation2 + $0x2c0] sm:$0xff] }
 0x121   : > { %6274 = vmatmul.mubr.msk.f32.vlgmr.msra.gmra.mrb[0].mxu1 %vm495_vm3, %v9032_v36  ;;  %v6485_v33 = vpack.c.bf16 %v1396_v30, %v1390_v29  ;;  %v1399_v48 = vld [vmem:[#allocation2 + $0x2f0] sm:$0xf]  ;;  %v1707_v49 = vld [vmem:[#allocation2 + $0x338] sm:$0xff]  ;;  %v1700_v52 = vld [vmem:[#allocation2 + $0x300] sm:$0xff] }
 0x122   : > { %6252 = vmatmul.mubr.msk.f32.gmra.mrb[2].mxu0 %vm495_vm3, %v9009_v18  ;;  %1258 = vmatprep.mubr.f32.mxu1 %v8652_v0  ;;  %v1712_v58 = vld [vmem:[#allocation2 + $0x360] sm:$0xff]  ;;  %v1718_v59 = vld [vmem:[#allocation2 + $0x390] sm:$0xf]  ;;  %v1705_v60 = vld [vmem:[#allocation2 + $0x328] sm:$0xff] }
 0x123   : > { %876 = vmatprep.mubr.f32.mxu0 %v8652_v0  ;;  %6450 = vmatpush1.bf16.msk.msra.mxu0 %vm8957_vm2, %v6448_v39  ;;  %v6488_v39 = vpack.c.bf16 %v1395_v35, %v1389_v34  ;;  %v1711_v61 = vld [vmem:[#allocation2 + $0x358] sm:$0xff]  ;;  %v6518_v62 = vpack.c.bf16 %v1718_v59, %v1712_v58  ;;  %v1704_v3 = vld [vmem:[#allocation2 + $0x320] sm:$0xff]  ;;  %v2386_v1 = vld [vmem:[#allocation7 + $0x608] sm:$0xff] }
 0x124   : > { %6494 = vmatpush1.bf16.msra.mxu1 %v6493_v40  ;;  %6452 = vmatprep.subr.bf16.mxu0 %v6451_v41  ;;  %v6501_v40 = vpack.c.bf16 %v1388_v38, %v1382_v37  ;;  %v1381_v41 = vld [vmem:[#allocation2 + $0x260] sm:$0xff]  ;;  %v6531_v2 = vpack.c.bf16 %v1711_v61, %v1705_v60  ;;  %v2390_v11 = vld [vmem:[#allocation7 + $0x628] sm:$0xff]  ;;  %v2387_v19 = vld [vmem:[#allocation7 + $0x610] sm:$0xff] }
 0x125   : > { %6275 = vmatmul.mubr.msk.f32.gmra.mrb[2].mxu1 %vm495_vm3, %v9043_v45  ;;  %6497 = vmatprep.subr.msk.bf16.mxu1 %vm8957_vm2, %v6495_v42  ;;  %v1387_v42 = vld [vmem:[#allocation2 + $0x290] sm:$0xff]  ;;  %v2388_v12 = vld [vmem:[#allocation7 + $0x618] sm:$0xff] }
 0x126   : > { %6253 = vmatmul.mubr.msk.f32.gmra.mrb[4].mxu0 %vm495_vm3, %v9021_v27  ;;  %1264 = vmatprep.mubr.f32.mxu1 %v8652_v0  ;;  %v6503_v44 = vpack.c.bf16 %v1387_v42, %v1381_v41  ;;  %v2391_v20 = vld [vmem:[#allocation7 + $0x630] sm:$0xff]  ;;  %v2394_v22 = vld [vmem:[#allocation7 + $0x648] sm:$0xff]  ;;  %v2404_v37 = vld [vmem:[#allocation7 + $0x698] sm:$0xff] }
 0x127   : > { %1030 = vmatprep.mubr.f32.mxu0 %v8652_v0  ;;  %v6639_v21 = vpack.c.bf16 %v2391_v20, %v2387_v19  ;;  %v2406_v35 = vld [vmem:[#allocation7 + $0x6a8] sm:$0xff]  ;;  %v2408_v38 = vld [vmem:[#allocation7 + $0x6b8] sm:$0xff]  ;;  %v2401_v41 = vld [vmem:[#allocation7 + $0x680] sm:$0xff] }
 0x128   : > { %6500 = vmatpush1.bf16.msk.msra.mxu1 %vm8957_vm2, %v6498_v50  ;;  %v6508_v50 = vpack.c.bf16 %v1399_v48, %v1393_v47  ;;  %v2405_v42 = vld [vmem:[#allocation7 + $0x6a0] sm:$0xff]  ;;  %v2414_v47 = vld [vmem:[#allocation7 + $0x6e8] sm:$0xff]  ;;  %v2420_v59 = vld [vmem:[#allocation7 + $0x718] sm:$0xff] }
 0x129   : > { %6276 = vmatmul.mubr.msk.f32.gmra.mrb[4].mxu1 %vm495_vm3, %v9056_v54  ;;  %6522 = vmatprep.subr.bf16.mxu1 %v6521_v53  ;;  %v1706_v53 = vld [vmem:[#allocation2 + $0x330] sm:$0xff]  ;;  %v2436_v19 = vld [vmem:[#allocation7 + $0x798] sm:$0xff] }
 0x12a   : > { %6261 = vmatmul.mubr.msk.f32.vlgmr.msra.gmra.mrb[6].mxu0 %vm495_vm3, %v8999_v9  ;;  %1575 = vmatprep.mubr.f32.mxu1 %v8652_v0  ;;  %v1720_v9 = vld [vmem:[#allocation2 + $0x3a0] sm:$0xf]  ;;  %v2422_v58 = vld [vmem:[#allocation7 + $0x728] sm:$0xff] }
 0x12b   : > { %6454 = vmatpush1.bf16.msra.mxu0 %v6453_v55  ;;  %1036 = vmatprep.mubr.f32.mxu0 %v8652_v0  ;;  %v6528_v13 = vpack.c.bf16 %v1720_v9, %v1714_v8  ;;  %v1719_v55 = vld [vmem:[#allocation2 + $0x398] sm:$0xf]  ;;  %v1716_v8 = vld [vmem:[#allocation2 + $0x380] sm:$0xff]  ;;  %v1722_v9 = vld [vmem:[#allocation2 + $0x3b0] sm:$0xf] }
 0x12c   : > { %6457 = vmatprep.subr.msk.bf16.mxu0 %vm8957_vm2, %v6455_v56  ;;  %v6513_v56 = vpack.c.bf16 %v1706_v53, %v1700_v52  ;;  %v2413_v53 = vld [vmem:[#allocation7 + $0x6e0] sm:$0xff]  ;;  %v2440_v20 = vld [vmem:[#allocation7 + $0x7b8] sm:$0xff] }
 0x12d   : > { %6292 = vmatmul.mubr.msk.f32.vlgmr.msra.gmra.mrb[0].mxu1 %vm495_vm3, %v9067_v63 }
 0x12e   : > { %6262 = vmatmul.mubr.msk.f32.gmra.mrb[8].mxu0 %vm495_vm3, %v9009_v18  ;;  %1581 = vmatprep.mubr.f32.mxu1 %v8652_v0  ;;  %v6475_v18 = vpack.c.bf16 %v1077_v15, %v1071_v14  ;;  %v2392_v14 = vld [vmem:[#allocation7 + $0x638] sm:$0xff]  ;;  %v2385_v15 = vld [vmem:[#allocation7 + $0x600] sm:$0xff] }
 0x12f   : > { %1042 = vmatprep.mubr.f32.mxu0 %v8652_v0  ;;  %6460 = vmatpush1.bf16.msk.msra.mxu0 %vm8957_vm2, %v6458_v4  ;;  %v1710_v4 = vld [vmem:[#allocation2 + $0x350] sm:$0xff] }
 0x130   : > { %6524 = vmatpush1.bf16.msra.mxu1 %v6523_v5  ;;  %6472 = vmatprep.subr.bf16.mxu0 %v6471_v6  ;;  %v1723_v5 = vld [vmem:[#allocation2 + $0x3b8] sm:$0xf]  ;;  %v6533_v6 = vpack.c.bf16 %v1710_v4, %v1704_v3  ;;  %v2421_v3 = vld [vmem:[#allocation7 + $0x720] sm:$0xff] }
 0x131   : > { %6293 = vmatmul.mubr.msk.f32.gmra.mrb[2].mxu1 %vm495_vm3, %v9078_v10  ;;  %6527 = vmatprep.subr.msk.bf16.mxu1 %vm8957_vm2, %v6525_v7 }
 0x132   : > { %6263 = vmatmul.mubr.msk.f32.gmra.mrb[10].mxu0 %vm495_vm3, %v9021_v27  ;;  %1587 = vmatprep.mubr.f32.mxu1 %v8652_v0  ;;  %v1377_v27 = vld [vmem:[#allocation2 + $0x240] sm:$0xff] }
 0x133   : > { %1169 = vmatprep.mubr.f32.mxu0 %v8652_v0  ;;  %v6483_v32 = vpack.c.bf16 %v1383_v28, %v1377_v27  ;;  %v2393_v27 = vld [vmem:[#allocation7 + $0x640] sm:$0xff] }
 0x134   : > { %6530 = vmatpush1.bf16.msk.msra.mxu1 %vm8957_vm2, %v6528_v13  ;;  %v6541_v13 = vpack.c.bf16 %v2390_v11, %v2386_v1  ;;  %v2397_v28 = vld [vmem:[#allocation7 + $0x660] sm:$0xff] }
 0x135   : > { %6294 = vmatmul.mubr.msk.f32.gmra.mrb[4].mxu1 %vm495_vm3, %v9091_v16  ;;  %v6547_v30 = vpack.c.bf16 %v2397_v28, %v2393_v27  ;;  %v6661_v27 = vpack.c.bf16 %v2440_v20, %v2436_v19  ;;  %v2439_v28 = vld [vmem:[#allocation7 + $0x7b0] sm:$0xff]  ;;  %v2480_v20 = vld [vmem:[#allocation7 + $0x8f8] sm:$0xff] }
 0x136   : > { %6269 = vmatmul.mubr.msk.f32.vlgmr.msra.gmra.mrb[0].mxu0 %vm495_vm3, %v9032_v36  ;;  %1898 = vmatprep.mubr.f32.mxu1 %v8652_v0 }
 0x137   : > { %6474 = vmatpush1.bf16.msra.mxu0 %v6473_v17  ;;  %1175 = vmatprep.mubr.f32.mxu0 %v8652_v0  ;;  %v6637_v17 = vpack.c.bf16 %v2392_v14, %v2388_v12  ;;  %v2425_v12 = vld [vmem:[#allocation7 + $0x740] sm:$0xff]  ;;  %v2427_v14 = vld [vmem:[#allocation7 + $0x750] sm:$0xff] }
 0x138   : > { %6477 = vmatprep.subr.msk.bf16.mxu0 %vm8957_vm2, %v6475_v18  ;;  %6542 = vmatprep.subr.bf16.mxu1 %v6541_v13  ;;  %v2429_v13 = vld [vmem:[#allocation7 + $0x760] sm:$0xff] }
 0x139   : > { %6310 = vmatmul.mubr.msk.f32.vlgmr.msra.gmra.mrb[0].mxu1 %vm495_vm3, %v9102_v23 }
 0x13a   : > { %6270 = vmatmul.mubr.msk.f32.gmra.mrb[2].mxu0 %vm495_vm3, %v9043_v45  ;;  %1904 = vmatprep.mubr.f32.mxu1 %v8652_v0 }
 0x13b   : > { %1181 = vmatprep.mubr.f32.mxu0 %v8652_v0  ;;  %6480 = vmatpush1.bf16.msk.msra.mxu0 %vm8957_vm2, %v6478_v24  ;;  %v2396_v24 = vld [vmem:[#allocation7 + $0x658] sm:$0xff] }
 0x13c   : > { %6482 = vmatprep.subr.bf16.mxu0 %v6481_v25 }
 0x13d   : > { %6311 = vmatmul.mubr.msk.f32.gmra.mrb[2].mxu1 %vm495_vm3, %v9113_v26 }
 0x13e   : > { %6271 = vmatmul.mubr.msk.f32.gmra.mrb[4].mxu0 %vm495_vm3, %v9056_v54  ;;  %1910 = vmatprep.mubr.f32.mxu1 %v8652_v0 }
 0x13f   : > { %1335 = vmatprep.mubr.f32.mxu0 %v8652_v0 }
 0x141   : > { %6312 = vmatmul.mubr.msk.f32.gmra.mrb[4].mxu1 %vm495_vm3, %v9124_v31 }
 0x142   : > { %6279 = vmatmul.mubr.msk.f32.vlgmr.msra.gmra.mrb[6].mxu0 %vm495_vm3, %v9032_v36  ;;  %v1394_v36 = vld [vmem:[#allocation2 + $0x2c8] sm:$0xff] }
 0x143   : > { %6484 = vmatpush1.bf16.msra.mxu0 %v6483_v32  ;;  %1341 = vmatprep.mubr.f32.mxu0 %v8652_v0  ;;  %v6505_v46 = vpack.c.bf16 %v1400_v43, %v1394_v36  ;;  %v2399_v32 = vld [vmem:[#allocation7 + $0x670] sm:$0xff]  ;;  %v6551_v43 = vpack.c.bf16 %v2405_v42, %v2401_v41 }
 0x144   : > { %6487 = vmatprep.subr.msk.bf16.mxu0 %vm8957_vm2, %v6485_v33  ;;  %v2402_v33 = vld [vmem:[#allocation7 + $0x688] sm:$0xff]  ;;  %v2403_v36 = vld [vmem:[#allocation7 + $0x690] sm:$0xff] }
 0x145   : > { %v2447_v41 = vld [vmem:[#allocation7 + $0x7f0] sm:$0xff] }
 0x146   : > { %6280 = vmatmul.mubr.msk.f32.gmra.mrb[8].mxu0 %vm495_vm3, %v9043_v45  ;;  %v1701_v45 = vld [vmem:[#allocation2 + $0x308] sm:$0xff] }
 0x147   : > { %1347 = vmatprep.mubr.f32.mxu0 %v8652_v0  ;;  %6490 = vmatpush1.bf16.msk.msra.mxu0 %vm8957_vm2, %v6488_v39  ;;  %v6511_v51 = vpack.c.bf16 %v1707_v49, %v1701_v45  ;;  %v6549_v39 = vpack.c.bf16 %v2406_v35, %v2402_v33  ;;  %v2412_v49 = vld [vmem:[#allocation7 + $0x6d8] sm:$0xff] }
 0x148   : > { %6502 = vmatprep.subr.bf16.mxu0 %v6501_v40  ;;  %v6645_v40 = vpack.c.bf16 %v2408_v38, %v2404_v37  ;;  %v2441_v37 = vld [vmem:[#allocation7 + $0x7c0] sm:$0xff] }
 0x149   : > { %v2445_v38 = vld [vmem:[#allocation7 + $0x7e0] sm:$0xff] }
 0x14a   : > { %6281 = vmatmul.mubr.msk.f32.gmra.mrb[10].mxu0 %vm495_vm3, %v9056_v54  ;;  %v1713_v54 = vld [vmem:[#allocation2 + $0x368] sm:$0xff]  ;;  %v6571_v42 = vpack.c.bf16 %v2445_v38, %v2441_v37  ;;  %v2483_v38 = vld [vmem:[#allocation7 + $0x910] sm:$0xff] }
 0x14b   : > { %1492 = vmatprep.mubr.f32.mxu0 %v8652_v0  ;;  %v6515_v57 = vpack.c.bf16 %v1719_v55, %v1713_v54  ;;  %v2411_v54 = vld [vmem:[#allocation7 + $0x6d0] sm:$0xff] }
 0x14c   : > { %v2415_v55 = vld [vmem:[#allocation7 + $0x6f0] sm:$0xff] }
 0x14d   : > { %v6651_v60 = vpack.c.bf16 %v2415_v55, %v2411_v54  ;;  %v2458_v55 = vld [vmem:[#allocation7 + $0x848] sm:$0xff] }
 0x14e   : > { %6287 = vmatmul.mubr.msk.f32.vlgmr.msra.gmra.mrb[0].mxu0 %vm495_vm3, %v9067_v63 }
 0x14f   : > { %6504 = vmatpush1.bf16.msra.mxu0 %v6503_v44  ;;  %1498 = vmatprep.mubr.f32.mxu0 %v8652_v0  ;;  %v2407_v44 = vld [vmem:[#allocation7 + $0x6b0] sm:$0xff] }
 0x150   : > { %6507 = vmatprep.subr.msk.bf16.mxu0 %vm8957_vm2, %v6505_v46  ;;  %v2410_v46 = vld [vmem:[#allocation7 + $0x6c8] sm:$0xff]  ;;  %v6647_v48 = vpack.c.bf16 %v2407_v44, %v2403_v36 }
 0x151   : > { %v6553_v45 = vpack.c.bf16 %v2414_v47, %v2410_v46  ;;  %v2454_v44 = vld [vmem:[#allocation7 + $0x828] sm:$0xff]  ;;  %v2452_v46 = vld [vmem:[#allocation7 + $0x818] sm:$0xff] }
 0x152   : > { %6288 = vmatmul.mubr.msk.f32.gmra.mrb[2].mxu0 %vm495_vm3, %v9078_v10 }
 0x153   : > { %1504 = vmatprep.mubr.f32.mxu0 %v8652_v0  ;;  %6510 = vmatpush1.bf16.msk.msra.mxu0 %vm8957_vm2, %v6508_v50  ;;  %v2416_v50 = vld [vmem:[#allocation7 + $0x6f8] sm:$0xff] }
 0x154   : > { %6512 = vmatprep.subr.bf16.mxu0 %v6511_v51  ;;  %v2409_v51 = vld [vmem:[#allocation7 + $0x6c0] sm:$0xff]  ;;  %v6649_v52 = vpack.c.bf16 %v2416_v50, %v2412_v49 }
 0x155   : > { %v2453_v49 = vld [vmem:[#allocation7 + $0x820] sm:$0xff] }
 0x156   : > { %6289 = vmatmul.mubr.msk.f32.gmra.mrb[4].mxu0 %vm495_vm3, %v9091_v16 }
 0x157   : > { %1658 = vmatprep.mubr.f32.mxu0 %v8652_v0 }
 0x15a   : > { %6297 = vmatmul.mubr.msk.f32.vlgmr.msra.gmra.mrb[6].mxu0 %vm495_vm3, %v9067_v63  ;;  %v1717_v63 = vld [vmem:[#allocation2 + $0x388] sm:$0xff] }
 0x15b   : > { %6514 = vmatpush1.bf16.msra.mxu0 %v6513_v56  ;;  %1664 = vmatprep.mubr.f32.mxu0 %v8652_v0  ;;  %v6535_v7 = vpack.c.bf16 %v1723_v5, %v1717_v63  ;;  %v6555_v56 = vpack.c.bf16 %v2413_v53, %v2409_v51  ;;  %v2419_v63 = vld [vmem:[#allocation7 + $0x710] sm:$0xff] }
 0x15c   : > { %6517 = vmatprep.subr.msk.bf16.mxu0 %vm8957_vm2, %v6515_v57  ;;  %v2418_v57 = vld [vmem:[#allocation7 + $0x708] sm:$0xff]  ;;  %v2423_v5 = vld [vmem:[#allocation7 + $0x730] sm:$0xff] }
 0x15d   : > { %v6557_v61 = vpack.c.bf16 %v2422_v58, %v2418_v57  ;;  %v6655_v1 = vpack.c.bf16 %v2423_v5, %v2419_v63  ;;  %v2455_v53 = vld [vmem:[#allocation7 + $0x830] sm:$0xff]  ;;  %v2460_v57 = vld [vmem:[#allocation7 + $0x858] sm:$0xff]  ;;  %v2466_v5 = vld [vmem:[#allocation7 + $0x888] sm:$0xff] }
 0x15e   : > { %6298 = vmatmul.mubr.msk.f32.gmra.mrb[8].mxu0 %vm495_vm3, %v9078_v10  ;;  %v6538_v10 = vpack.c.bf16 %v1722_v9, %v1716_v8  ;;  %v2428_v8 = vld [vmem:[#allocation7 + $0x758] sm:$0xff] }
 0x15f   : > { %1670 = vmatprep.mubr.f32.mxu0 %v8652_v0  ;;  %6520 = vmatpush1.bf16.msk.msra.mxu0 %vm8957_vm2, %v6518_v62  ;;  %v2424_v62 = vld [vmem:[#allocation7 + $0x738] sm:$0xff] }
 0x160   : > { %6532 = vmatprep.subr.bf16.mxu0 %v6531_v2  ;;  %v2417_v2 = vld [vmem:[#allocation7 + $0x700] sm:$0xff]  ;;  %v6653_v4 = vpack.c.bf16 %v2424_v62, %v2420_v59  ;;  %v2432_v9 = vld [vmem:[#allocation7 + $0x778] sm:$0xff] }
 0x161   : > { %v2464_v59 = vld [vmem:[#allocation7 + $0x878] sm:$0xff] }
 0x162   : > { %6299 = vmatmul.mubr.msk.f32.gmra.mrb[10].mxu0 %vm495_vm3, %v9091_v16  ;;  %v2389_v16 = vld [vmem:[#allocation7 + $0x620] sm:$0xff]  ;;  %v6673_v62 = vpack.c.bf16 %v2464_v59, %v2460_v57 }
 0x163   : > { %1815 = vmatprep.mubr.f32.mxu0 %v8652_v0  ;;  %v6543_v18 = vpack.c.bf16 %v2389_v16, %v2385_v15  ;;  %v6657_v15 = vpack.c.bf16 %v2432_v9, %v2428_v8  ;;  %v2431_v16 = vld [vmem:[#allocation7 + $0x770] sm:$0xff]  ;;  %v2472_v9 = vld [vmem:[#allocation7 + $0x8b8] sm:$0xff]  ;;  %v2497_v57 = vld [vmem:[#allocation7 + $0x980] sm:$0xff] }
 0x165   : > { %6544 = vmatpush1.bf16.msra.mxu1 %v6543_v18  ;;  %v2438_v18 = vld [vmem:[#allocation7 + $0x7a8] sm:$0xff] }
 0x166   : > { %6305 = vmatmul.mubr.msk.f32.vlgmr.msra.gmra.mrb[0].mxu0 %vm495_vm3, %v9102_v23 }
 0x167   : > { %6534 = vmatpush1.bf16.msra.mxu0 %v6533_v6  ;;  %1821 = vmatprep.mubr.f32.mxu0 %v8652_v0  ;;  %v2426_v6 = vld [vmem:[#allocation7 + $0x748] sm:$0xff] }
 0x168   : > { %6537 = vmatprep.subr.msk.bf16.mxu0 %vm8957_vm2, %v6535_v7  ;;  %v2430_v7 = vld [vmem:[#allocation7 + $0x768] sm:$0xff] }
 0x169   : > { %v6561_v11 = vpack.c.bf16 %v2430_v7, %v2426_v6  ;;  %v2470_v6 = vld [vmem:[#allocation7 + $0x8a8] sm:$0xff]  ;;  %v2468_v7 = vld [vmem:[#allocation7 + $0x898] sm:$0xff] }
 0x16a   : > { %6306 = vmatmul.mubr.msk.f32.gmra.mrb[2].mxu0 %vm495_vm3, %v9113_v26  ;;  %v6581_v8 = vpack.c.bf16 %v2470_v6, %v2466_v5  ;;  %v2512_v6 = vld [vmem:[#allocation7 + $0x9f8] sm:$0xff] }
 0x16b   : > { %1827 = vmatprep.mubr.f32.mxu0 %v8652_v0  ;;  %6540 = vmatpush1.bf16.msk.msra.mxu0 %vm8957_vm2, %v6538_v10  ;;  %v6559_v10 = vpack.c.bf16 %v2421_v3, %v2417_v2  ;;  %v2459_v3 = vld [vmem:[#allocation7 + $0x850] sm:$0xff] }
 0x16c   : > { %6638 = vmatprep.subr.bf16.mxu0 %v6637_v17  ;;  %v2434_v17 = vld [vmem:[#allocation7 + $0x788] sm:$0xff] }
 0x16e   : > { %6307 = vmatmul.mubr.msk.f32.gmra.mrb[4].mxu0 %vm495_vm3, %v9124_v31 }
 0x16f   : > { %1981 = vmatprep.mubr.f32.mxu0 %v8652_v0 }
 0x172   : > { %6315 = vmatmul.mubr.msk.f32.vlgmr.msra.gmra.mrb[6].mxu0 %vm495_vm3, %v9102_v23  ;;  %v2398_v23 = vld [vmem:[#allocation7 + $0x668] sm:$0xff] }
 0x173   : > { %1987 = vmatprep.mubr.f32.mxu0 %v8652_v0  ;;  %6640 = vmatpush1.bf16.msra.mxu0 %v6639_v21  ;;  %v6545_v25 = vpack.c.bf16 %v2398_v23, %v2394_v22  ;;  %v6563_v21 = vpack.c.bf16 %v2429_v13, %v2425_v12  ;;  %v6659_v22 = vpack.c.bf16 %v2431_v16, %v2427_v14  ;;  %v2467_v13 = vld [vmem:[#allocation7 + $0x890] sm:$0xff]  ;;  %v2474_v16 = vld [vmem:[#allocation7 + $0x8c8] sm:$0xff] }
 0x174   : > { %v6565_v23 = vpack.c.bf16 %v2438_v18, %v2434_v17  ;;  %v2471_v14 = vld [vmem:[#allocation7 + $0x8b0] sm:$0xff]  ;;  %v2478_v17 = vld [vmem:[#allocation7 + $0x8e8] sm:$0xff]  ;;  %v2476_v18 = vld [vmem:[#allocation7 + $0x8d8] sm:$0xff] }
 0x175   : > { %6546 = vmatprep.subr.bf16.mxu1 %v6545_v25  ;;  %v2437_v25 = vld [vmem:[#allocation7 + $0x7a0] sm:$0xff]  ;;  %v6585_v19 = vpack.c.bf16 %v2478_v17, %v2474_v16  ;;  %v2520_v17 = vld [vmem:[#allocation7 + $0xa38] sm:$0xff] }
 0x176   : > { %6316 = vmatmul.mubr.msk.f32.gmra.mrb[8].mxu0 %vm495_vm3, %v9113_v26  ;;  %v2400_v26 = vld [vmem:[#allocation7 + $0x678] sm:$0xff]  ;;  %6548 = vmatpush1.bf16.msra.mxu1 %v6547_v30  ;;  %v2446_v30 = vld [vmem:[#allocation7 + $0x7e8] sm:$0xff] }
 0x177   : > { %1993 = vmatprep.mubr.f32.mxu0 %v8652_v0  ;;  %v6641_v29 = vpack.c.bf16 %v2400_v26, %v2396_v24  ;;  %6550 = vmatprep.subr.bf16.mxu1 %v6549_v39  ;;  %v2433_v24 = vld [vmem:[#allocation7 + $0x780] sm:$0xff]  ;;  %v2435_v26 = vld [vmem:[#allocation7 + $0x790] sm:$0xff] }
 0x178   : > { %v6567_v33 = vpack.c.bf16 %v2437_v25, %v2433_v24  ;;  %v2475_v25 = vld [vmem:[#allocation7 + $0x8d0] sm:$0xff] }
 0x179   : > { %6642 = vmatprep.subr.bf16.mxu0 %v6641_v29  ;;  %v2442_v29 = vld [vmem:[#allocation7 + $0x7c8] sm:$0xff] }
 0x17a   : > { %6317 = vmatmul.mubr.msk.f32.gmra.mrb[10].mxu0 %vm495_vm3, %v9124_v31  ;;  %v2395_v31 = vld [vmem:[#allocation7 + $0x650] sm:$0xff]  ;;  %6552 = vmatpush1.bf16.msra.mxu1 %v6551_v43  ;;  %v6569_v35 = vpack.c.bf16 %v2446_v30, %v2442_v29  ;;  %v2450_v43 = vld [vmem:[#allocation7 + $0x808] sm:$0xff]  ;;  %v2484_v30 = vld [vmem:[#allocation7 + $0x918] sm:$0xff] }
 0x17b   : > { %v6643_v34 = vpack.c.bf16 %v2399_v32, %v2395_v31  ;;  %6554 = vmatprep.subr.bf16.mxu1 %v6553_v45  ;;  %v2444_v31 = vld [vmem:[#allocation7 + $0x7d8] sm:$0xff]  ;;  %v6573_v47 = vpack.c.bf16 %v2454_v44, %v2450_v43  ;;  %v2449_v45 = vld [vmem:[#allocation7 + $0x800] sm:$0xff]  ;;  %v2486_v29 = vld [vmem:[#allocation7 + $0x928] sm:$0xff] }
 0x17c   : > { %v2448_v32 = vld [vmem:[#allocation7 + $0x7f8] sm:$0xff]  ;;  %v6575_v51 = vpack.c.bf16 %v2453_v49, %v2449_v45  ;;  %v2491_v49 = vld [vmem:[#allocation7 + $0x950] sm:$0xff] }
 0x17d   : > { %6644 = vmatpush1.bf16.msra.mxu0 %v6643_v34  ;;  %v6663_v34 = vpack.c.bf16 %v2439_v28, %v2435_v26  ;;  %v6665_v39 = vpack.c.bf16 %v2448_v32, %v2444_v31  ;;  %v2479_v26 = vld [vmem:[#allocation7 + $0x8f0] sm:$0xff]  ;;  %v2482_v28 = vld [vmem:[#allocation7 + $0x908] sm:$0xff]  ;;  %v2488_v32 = vld [vmem:[#allocation7 + $0x938] sm:$0xff] }
 0x17e   : > { %6646 = vmatprep.subr.bf16.mxu0 %v6645_v40  ;;  %6556 = vmatpush1.bf16.msra.mxu1 %v6555_v56  ;;  %v2443_v40 = vld [vmem:[#allocation7 + $0x7d0] sm:$0xff]  ;;  %v2462_v56 = vld [vmem:[#allocation7 + $0x868] sm:$0xff]  ;;  %v6589_v31 = vpack.c.bf16 %v2486_v29, %v2482_v28  ;;  %v2496_v44 = vld [vmem:[#allocation7 + $0x978] sm:$0xff] }
 0x17f   : > { %6558 = vmatprep.subr.bf16.mxu1 %v6557_v61  ;;  %v6667_v36 = vpack.c.bf16 %v2447_v41, %v2443_v40  ;;  %v6577_v58 = vpack.c.bf16 %v2462_v56, %v2458_v55  ;;  %v2461_v61 = vld [vmem:[#allocation7 + $0x860] sm:$0xff]  ;;  %v2490_v41 = vld [vmem:[#allocation7 + $0x948] sm:$0xff]  ;;  %v2504_v56 = vld [vmem:[#allocation7 + $0x9b8] sm:$0xff] }
 0x181   : > { %6648 = vmatpush1.bf16.msra.mxu0 %v6647_v48  ;;  %v2456_v48 = vld [vmem:[#allocation7 + $0x838] sm:$0xff] }
 0x182   : > { %6650 = vmatprep.subr.bf16.mxu0 %v6649_v52  ;;  %6560 = vmatpush1.bf16.msra.mxu1 %v6559_v10  ;;  %v6669_v50 = vpack.c.bf16 %v2456_v48, %v2452_v46  ;;  %v2451_v52 = vld [vmem:[#allocation7 + $0x810] sm:$0xff]  ;;  %v2465_v10 = vld [vmem:[#allocation7 + $0x880] sm:$0xff] }
 0x183   : > { %6562 = vmatprep.subr.bf16.mxu1 %v6561_v11  ;;  %v6671_v54 = vpack.c.bf16 %v2455_v53, %v2451_v52  ;;  %v6677_v11 = vpack.c.bf16 %v2472_v9, %v2468_v7  ;;  %v2489_v46 = vld [vmem:[#allocation7 + $0x940] sm:$0xff]  ;;  %v2498_v52 = vld [vmem:[#allocation7 + $0x988] sm:$0xff] }
 0x184   : > { %v2502_v53 = vld [vmem:[#allocation7 + $0x9a8] sm:$0xff]  ;;  %v2505_v7 = vld [vmem:[#allocation7 + $0x9c0] sm:$0xff] }
 0x185   : > { %6652 = vmatpush1.bf16.msra.mxu0 %v6651_v60  ;;  %v2457_v60 = vld [vmem:[#allocation7 + $0x840] sm:$0xff]  ;;  %v6597_v55 = vpack.c.bf16 %v2502_v53, %v2498_v52 }
 0x186   : > { %6654 = vmatprep.subr.bf16.mxu0 %v6653_v4  ;;  %6564 = vmatpush1.bf16.msra.mxu1 %v6563_v21  ;;  %v6579_v2 = vpack.c.bf16 %v2461_v61, %v2457_v60  ;;  %v2463_v4 = vld [vmem:[#allocation7 + $0x870] sm:$0xff]  ;;  %v2473_v21 = vld [vmem:[#allocation7 + $0x8c0] sm:$0xff] }
 0x187   : > { %6566 = vmatprep.subr.bf16.mxu1 %v6565_v23  ;;  %v6675_v63 = vpack.c.bf16 %v2463_v4, %v2459_v3  ;;  %v6681_v23 = vpack.c.bf16 %v2480_v20, %v2476_v18  ;;  %v2499_v61 = vld [vmem:[#allocation7 + $0x990] sm:$0xff]  ;;  %v2506_v3 = vld [vmem:[#allocation7 + $0x9c8] sm:$0xff] }
 0x188   : > { %v2510_v4 = vld [vmem:[#allocation7 + $0x9e8] sm:$0xff] }
 0x189   : > { %6656 = vmatpush1.bf16.msra.mxu0 %v6655_v1  ;;  %v2469_v1 = vld [vmem:[#allocation7 + $0x8a0] sm:$0xff]  ;;  %v6601_v5 = vpack.c.bf16 %v2510_v4, %v2506_v3 }
 0x18a   : > { %6658 = vmatprep.subr.bf16.mxu0 %v6657_v15  ;;  %6568 = vmatpush1.bf16.msra.mxu1 %v6567_v33  ;;  %v6583_v12 = vpack.c.bf16 %v2469_v1, %v2465_v10  ;;  %v6679_v15 = vpack.c.bf16 %v2471_v14, %v2467_v13  ;;  %v2481_v33 = vld [vmem:[#allocation7 + $0x900] sm:$0xff]  ;;  %v2507_v1 = vld [vmem:[#allocation7 + $0x9d0] sm:$0xff]  ;;  %v2514_v13 = vld [vmem:[#allocation7 + $0xa08] sm:$0xff] }
 0x18b   : > { %6570 = vmatprep.subr.bf16.mxu1 %v6569_v35  ;;  %v6685_v35 = vpack.c.bf16 %v2488_v32, %v2484_v30  ;;  %v2518_v14 = vld [vmem:[#allocation7 + $0xa28] sm:$0xff] }
 0x18c   : > { %v6605_v16 = vpack.c.bf16 %v2518_v14, %v2514_v13 }
 0x18d   : > { %6660 = vmatpush1.bf16.msra.mxu0 %v6659_v22  ;;  %v2477_v22 = vld [vmem:[#allocation7 + $0x8e0] sm:$0xff] }
 0x18e   : > { %6662 = vmatprep.subr.bf16.mxu0 %v6661_v27  ;;  %6572 = vmatpush1.bf16.msra.mxu1 %v6571_v42  ;;  %v6587_v24 = vpack.c.bf16 %v2477_v22, %v2473_v21  ;;  %v6683_v27 = vpack.c.bf16 %v2479_v26, %v2475_v25  ;;  %v2494_v42 = vld [vmem:[#allocation7 + $0x968] sm:$0xff]  ;;  %v9195_v22 = vld [vmem:[#allocation5] sm:$0x3f] }
 0x18f   : > { %6574 = vmatprep.subr.bf16.mxu1 %v6573_v47  ;;  %v6593_v43 = vpack.c.bf16 %v2494_v42, %v2490_v41  ;;  %v2493_v47 = vld [vmem:[#allocation7 + $0x960] sm:$0xff] }
 0x190   : > { %v6595_v45 = vpack.c.bf16 %v2493_v47, %v2489_v46 }
 0x191   : > { %6664 = vmatpush1.bf16.msra.mxu0 %v6663_v34  ;;  %v2485_v34 = vld [vmem:[#allocation7 + $0x920] sm:$0xff] }
 0x192   : > { %6666 = vmatprep.subr.bf16.mxu0 %v6665_v39  ;;  %6576 = vmatpush1.bf16.msra.mxu1 %v6575_v51  ;;  %v6591_v37 = vpack.c.bf16 %v2485_v34, %v2481_v33  ;;  %v2487_v39 = vld [vmem:[#allocation7 + $0x930] sm:$0xff] }
 0x193   : > { %6578 = vmatprep.subr.bf16.mxu1 %v6577_v58  ;;  %v6687_v40 = vpack.c.bf16 %v2487_v39, %v2483_v38  ;;  %v2501_v58 = vld [vmem:[#allocation7 + $0x9a0] sm:$0xff] }
 0x194   : > { %v6599_v60 = vpack.c.bf16 %v2501_v58, %v2497_v57 }
 0x195   : > { %6668 = vmatpush1.bf16.msra.mxu0 %v6667_v36  ;;  %v2492_v36 = vld [vmem:[#allocation7 + $0x958] sm:$0xff] }
 0x196   : > { %6670 = vmatprep.subr.bf16.mxu0 %v6669_v50  ;;  %6580 = vmatpush1.bf16.msra.mxu1 %v6579_v2  ;;  %v6689_v48 = vpack.c.bf16 %v2496_v44, %v2492_v36  ;;  %v2495_v50 = vld [vmem:[#allocation7 + $0x970] sm:$0xff] }
 0x197   : > { %6582 = vmatprep.subr.bf16.mxu1 %v6581_v8  ;;  %v6691_v51 = vpack.c.bf16 %v2495_v50, %v2491_v49  ;;  %v2509_v8 = vld [vmem:[#allocation7 + $0x9e0] sm:$0xff] }
 0x198   : > { %v6603_v10 = vpack.c.bf16 %v2509_v8, %v2505_v7 }
 0x199   : > { %6672 = vmatpush1.bf16.msra.mxu0 %v6671_v54  ;;  %v2500_v54 = vld [vmem:[#allocation7 + $0x998] sm:$0xff] }
 0x19a   : > { %6674 = vmatprep.subr.bf16.mxu0 %v6673_v62  ;;  %6584 = vmatpush1.bf16.msra.mxu1 %v6583_v12  ;;  %v6693_v59 = vpack.c.bf16 %v2504_v56, %v2500_v54  ;;  %v2503_v62 = vld [vmem:[#allocation7 + $0x9b0] sm:$0xff] }
 0x19b   : > { %6586 = vmatprep.subr.bf16.mxu1 %v6585_v19  ;;  %v6695_v2 = vpack.c.bf16 %v2503_v62, %v2499_v61  ;;  %v2020_v19 = vlaneseq }
 0x19d   : > { %6676 = vmatpush1.bf16.msra.mxu0 %v6675_v63  ;;  %v2508_v63 = vld [vmem:[#allocation7 + $0x9d8] sm:$0xff]  ;;  %v9190_v20 = vshrl.u32 %v2020_v19, 7 }
 0x19e   : > { %6678 = vmatprep.subr.bf16.mxu0 %v6677_v11  ;;  %6588 = vmatpush1.bf16.msra.mxu1 %v6587_v24  ;;  %v6697_v9 = vpack.c.bf16 %v2512_v6, %v2508_v63  ;;  %v2511_v11 = vld [vmem:[#allocation7 + $0x9f0] sm:$0xff] }
 0x19f   : > { %6590 = vmatprep.subr.bf16.mxu1 %v6589_v31  ;;  %v6699_v12 = vpack.c.bf16 %v2511_v11, %v2507_v1  ;;  %v9193_v21 = vsub.s32 2, %v9190_v20  ;;  %v9213_v58 = vsub.s32 0, %v9190_v20  ;;  %v2038_v8 = vsub.s32 4, %v9190_v20 }
 0x1a0   : > { %v2042_v1 = vsub.s32 5, %v9190_v20 }
 0x1a1   : > { %6680 = vmatpush1.bf16.msra.mxu0 %v6679_v15  ;;  %v2516_v15 = vld [vmem:[#allocation7 + $0xa18] sm:$0xff]  ;;  %v2031_v24 = vrot.slane %v9195_v22, %v9193_v21 }
 0x1a2   : > { %6682 = vmatprep.subr.bf16.mxu0 %v6681_v23  ;;  %6592 = vmatpush1.bf16.msra.mxu1 %v6591_v37  ;;  %v6701_v18 = vpack.c.bf16 %v2520_v17, %v2516_v15  ;;  %v9198_v23 = vsub.s32 3, %v9190_v20 }
 0x1a3   : > { %6594 = vmatprep.subr.bf16.mxu1 %v6593_v43 }
 0x1a4   : > { %v2035_v25 = vrot.slane %v9195_v22, %v9198_v23 }
 0x1a5   : > { %6684 = vmatpush1.bf16.msra.mxu0 %v6683_v27 }
 0x1a6   : > { %6686 = vmatprep.subr.bf16.mxu0 %v6685_v35  ;;  %6596 = vmatpush1.bf16.msra.mxu1 %v6595_v45 }
 0x1a7   : > { %6598 = vmatprep.subr.bf16.mxu1 %v6597_v55 }
 0x1a9   : > { %6688 = vmatpush1.bf16.msra.mxu0 %v6687_v40 }
 0x1aa   : > { %6690 = vmatprep.subr.bf16.mxu0 %v6689_v48  ;;  %6600 = vmatpush1.bf16.msra.mxu1 %v6599_v60  ;;  %v2023_v60 = vrot.slane %v9195_v22, %v9213_v58 }
 0x1ab   : > { %6602 = vmatprep.subr.bf16.mxu1 %v6601_v5 }
 0x1ad   : > { %6692 = vmatpush1.bf16.msra.mxu0 %v6691_v51 }
 0x1ae   : > { %6694 = vmatprep.subr.bf16.mxu0 %v6693_v59  ;;  %6604 = vmatpush1.bf16.msra.mxu1 %v6603_v10  ;;  %v9216_v59 = vsub.s32 1, %v9190_v20 }
 0x1af   : > { %6606 = vmatprep.subr.bf16.mxu1 %v6605_v16 }
 0x1b0   : > { %v2027_v61 = vrot.slane %v9195_v22, %v9216_v59 }
 0x1b1   : > { %6696 = vmatpush1.bf16.msra.mxu0 %v6695_v2 }
 0x1b2   : > { %6698 = vmatprep.subr.bf16.mxu0 %v6697_v9 }
 0x1b5   : > { %6700 = vmatpush1.bf16.msra.mxu0 %v6699_v12 }
 0x1b6   : > { %6702 = vmatprep.subr.bf16.mxu0 %v6701_v18  ;;  %v2039_v18 = vrot.slane %v9195_v22, %v2038_v8 }
 0x20c   : > { %v1900_v26 = vpop.f32.mrb[0].mxu1 }
 0x20d   : > { %v2052_v27 = vadd.f32 %v2031_v24, %v1900_v26  ;;  %v1902_v28 = vpop.f32.mrb[1].mxu1 }
 0x20e   : > { %v2053_v29 = vadd.f32 %v2035_v25, %v1902_v28 }
 0x20f   : > { %v2070_v30 = vmax.f32 %v2052_v27, 0.0  ;;  %v2043_v27 = vrot.slane %v9195_v22, %v2042_v1 }
 0x210   : > { %v2071_v31 = vmax.f32 %v2053_v29, 0.0  ;;  %v1906_v32 = vpop.f32.mrb[2].mxu1 }
 0x211   : > { %v2058_v33 = vadd.f32 %v2031_v24, %v1906_v32  ;;  %v1908_v34 = vpop.f32.mrb[3].mxu1  ;;  %v2105_v37 = vrot.slane %v2070_v30, 6 }
 0x212   : > { %v2059_v35 = vadd.f32 %v2035_v25, %v1908_v34  ;;  %v2108_v39 = vrot.slane %v2071_v31, 6 }
 0x213   : > { %v2076_v38 = vmax.f32 %v2058_v33, 0.0 }
 0x214   : > { %v2077_v40 = vmax.f32 %v2059_v35, 0.0  ;;  %v1912_v41 = vpop.f32.mrb[4].mxu1 }
 0x215   : > { %v2106_v42 = vrot.slane %v2076_v38, 6  ;;  %v2064_v36 = vadd.f32 %v2031_v24, %v1912_v41  ;;  %v1914_v43 = vpop.f32.mrb[5].mxu1 }
 0x216   : > { %v2109_v44 = vrot.slane %v2077_v40, 6  ;;  %v2065_v46 = vadd.f32 %v2035_v25, %v1914_v43 }
 0x217   : > { %v2107_v47 = vsel %vm2098_vm4, %v2105_v37, %v2106_v42  ;;  %v2082_v48 = vmax.f32 %v2064_v36, 0.0 }
 0x218   : > { %v9205_v45 = vmax.f32 %v2070_v30, %v2107_v47  ;;  %v2110_v49 = vsel %vm2098_vm4, %v2108_v39, %v2109_v44  ;;  %v2083_v50 = vmax.f32 %v2065_v46, 0.0 }
 0x219   : > { %v2126_v51 = vmax.f32 %v2071_v31, %v2110_v49  ;;  %v2137_v52 = vrot.slane %v2082_v48, 6 }
 0x21a   : > { %v2138_v53 = vrot.slane %v2083_v50, 6 }
 0x21b   : > { %v9208_v54 = vmax.f32 %v2076_v38, %v2137_v52  ;;  %v9210_v55 = vmax.f32 %v2082_v48, %v2137_v52 }
 0x21c   : > { %v2150_v56 = vmax.f32 %v2077_v40, %v2138_v53  ;;  %v2156_v57 = vmax.f32 %v2083_v50, %v2138_v53 }
 0x239   : > { %v1817_v62 = vpop.f32.mrb[0].mxu0 }
 0x23a   : > { %v2050_v2 = vadd.f32 %v2023_v60, %v1817_v62  ;;  %v1819_v3 = vpop.f32.mrb[1].mxu0 }
 0x23b   : > { %v2051_v4 = vadd.f32 %v2027_v61, %v1819_v3 }
 0x23c   : > { %v2068_v5 = vmax.f32 %v2050_v2, 0.0 }
 0x23d   : > { %v1823_v63 = vpop.f32.mrb[2].mxu0  ;;  %v2069_v9 = vmax.f32 %v2051_v4, 0.0 }
 0x23e   : > { %v2056_v6 = vadd.f32 %v2023_v60, %v1823_v63  ;;  %v1825_v7 = vpop.f32.mrb[3].mxu0  ;;  %v2099_v14 = vrot.slane %v2068_v5, 6 }
 0x23f   : > { %v2057_v10 = vadd.f32 %v2027_v61, %v1825_v7  ;;  %v2102_v24 = vrot.slane %v2069_v9, 6 }
 0x240   : > { %v2074_v11 = vmax.f32 %v2056_v6, 0.0 }
 0x241   : > { %v2075_v12 = vmax.f32 %v2057_v10, 0.0  ;;  %v1829_v13 = vpop.f32.mrb[4].mxu0  ;;  %v9245_v10 = vld [vmem:[#allocation7 + $0xa00] sm:$0xff] }
 0x242   : > { %v2100_v15 = vrot.slane %v2074_v11, 6  ;;  %v2062_v16 = vadd.f32 %v2023_v60, %v1829_v13  ;;  %v1831_v17 = vpop.f32.mrb[5].mxu0  ;;  %v9248_v13 = vld [vmem:[#allocation7 + $0xa20] sm:$0xff] }
 0x243   : > { %v2103_v25 = vrot.slane %v2075_v12, 6  ;;  %v2063_v26 = vadd.f32 %v2027_v61, %v1831_v17 }
 0x244   : > { %v2101_v28 = vsel %vm2098_vm4, %v2099_v14, %v2100_v15  ;;  %v2080_v29 = vmax.f32 %v2062_v16, 0.0  ;;  %v9250_v14 = vld [vmem:[#allocation7 + $0xa10] sm:$0xff] }
 0x245   : > { %v2123_v30 = vmax.f32 %v2068_v5, %v2101_v28  ;;  %v2104_v20 = vsel %vm2098_vm4, %v2102_v24, %v2103_v25  ;;  %v2081_v31 = vmax.f32 %v2063_v26, 0.0  ;;  %v1983_v32 = vpop.f32.mrb[6].mxu0  ;;  %v9252_v15 = vld [vmem:[#allocation7 + $0xa30] sm:$0xff]  ;;  %v9256_v24 = vld [vmem:[#allocation7 + $0xa68] sm:$0xff]  ;;  %v9258_v25 = vld [vmem:[#allocation7 + $0xa58] sm:$0xff] }
 0x246   : > { %v2124_v33 = vmax.f32 %v2069_v9, %v2104_v20  ;;  %v2135_v34 = vrot.slane %v2080_v29, 6  ;;  %v2054_v35 = vadd.f32 %v2039_v18, %v1983_v32  ;;  %v1985_v37 = vpop.f32.mrb[7].mxu0  ;;  %v9262_v28 = vld [vmem:[#allocation7 + $0xa78] sm:$0xff] }
 0x247   : > { %v9228_v38 = vmax.f32 %v2123_v30, %v2126_v51  ;;  %v2136_v39 = vrot.slane %v2081_v31, 6  ;;  %v2055_v40 = vadd.f32 %v2043_v27, %v1985_v37  ;;  %v9266_v30 = vld [vmem:[#allocation7 + $0xa60] sm:$0xff] }
 0x248   : > { %v2147_v41 = vmax.f32 %v2074_v11, %v2135_v34  ;;  %v2153_v42 = vmax.f32 %v2080_v29, %v2135_v34  ;;  %v2072_v47 = vmax.f32 %v2054_v35, 0.0  ;;  %v9264_v29 = vld [vmem:[#allocation7 + $0xa40] sm:$0xff]  ;;  %v6607_v34 = vpack.c.bf16 %v9248_v13, %v9245_v10 }
 0x249   : > { %v2148_v36 = vmax.f32 %v2075_v12, %v2136_v39  ;;  %v2154_v22 = vmax.f32 %v2081_v31, %v2136_v39  ;;  %v1989_v43 = vpop.f32.mrb[8].mxu0  ;;  %v2073_v50 = vmax.f32 %v2055_v40, 0.0  ;;  %v2375_v62 = vrot.slane %v9228_v38, 5  ;;  %v9277_v40 = vld [vmem:[#allocation7 + $0xa50] sm:$0xff] }
 0x24a   : > { %v9230_v44 = vmax.f32 %v2147_v41, %v2150_v56  ;;  %v9232_v46 = vmax.f32 %v2153_v42, %v2156_v57  ;;  %v2060_v48 = vadd.f32 %v2039_v18, %v1989_v43  ;;  %v1991_v49 = vpop.f32.mrb[9].mxu0  ;;  %v2111_v56 = vrot.slane %v2072_v47, 6  ;;  %v9279_v41 = vld [vmem:[#allocation7 + $0xa70] sm:$0xff]  ;;  %v9281_v42 = vld [vmem:[#allocation7 + $0xa88] sm:$0xff] }
 0x24b   : > { %v2061_v52 = vadd.f32 %v2043_v27, %v1991_v49  ;;  %v2114_v63 = vrot.slane %v2073_v50, 6  ;;  %v9291_v49 = vld [vmem:[#allocation7 + $0xaa8] sm:$0xff] }
 0x24c   : > { %v2078_v53 = vmax.f32 %v2060_v48, 0.0  ;;  %v2366_v61 = vrot.slane %v9230_v44, 4  ;;  %v9239_v2 = vsel %vm505_vm0, %v9228_v38, %v9230_v44  ;;  %v6611_v48 = vpack.c.bf16 %v9266_v30, %v9264_v29 }
 0x24d   : > { %v2079_v60 = vmax.f32 %v2061_v52, 0.0  ;;  %v1995_v51 = vpop.f32.mrb[10].mxu0  ;;  %v9295_v52 = vld [vmem:[#allocation7 + $0xab8] sm:$0xff]  ;;  %v3653_v13 = vrot.slane %v9232_v46, 5 }
 0x24e   : > { %v2112_v57 = vrot.slane %v2078_v53, 6  ;;  %v2066_v3 = vadd.f32 %v2039_v18, %v1995_v51  ;;  %v1997_v4 = vpop.f32.mrb[11].mxu0  ;;  %v9242_v7 = vsel %vm505_vm0, %v2366_v61, %v2375_v62  ;;  %v9254_v18 = vld [vmem:[#allocation7 + $0xa48] sm:$0xff]  ;;  %v6707_v62 = vpack.c.bf16 %v9279_v41, %v9277_v40 }
 0x24f   : > { %v2115_v5 = vrot.slane %v2079_v60, 6  ;;  %v2067_v6 = vadd.f32 %v2043_v27, %v1997_v4  ;;  %v6609_v39 = vpack.c.bf16 %v9256_v24, %v9254_v18 }
 0x250   : > { %v2113_v8 = vsel %vm2098_vm4, %v2111_v56, %v2112_v57  ;;  %v2084_v9 = vmax.f32 %v2066_v3, 0.0  ;;  %v9318_v57 = vld [vmem:[#allocation7 + $0xa80] sm:$0xff] }
 0x251   : > { %v2127_v1 = vmax.f32 %v2072_v47, %v2113_v8  ;;  %v2116_v11 = vsel %vm2098_vm4, %v2114_v63, %v2115_v5  ;;  %v2085_v12 = vmax.f32 %v2067_v6, 0.0  ;;  %v6705_v47 = vpack.c.bf16 %v9262_v28, %v9258_v25  ;;  %v9320_v3 = vld [vmem:[#allocation7 + $0xaa0] sm:$0xff]  ;;  %v2538_v25 = vld [vmem:[#allocation7 + $0xac8] sm:$0xff] }
 0x252   : > { %v2128_v16 = vmax.f32 %v2073_v50, %v2116_v11  ;;  %v2139_v17 = vrot.slane %v2084_v9, 6  ;;  %v9293_v50 = vld [vmem:[#allocation7 + $0xa98] sm:$0xff] }
 0x253   : > { %v9260_v26 = vmax.f32 %v2124_v33, %v2127_v1  ;;  %v2140_v27 = vrot.slane %v2085_v12, 6  ;;  %v6703_v33 = vpack.c.bf16 %v9252_v15, %v9250_v14  ;;  %v6615_v14 = vpack.c.bf16 %v9320_v3, %v9318_v57  ;;  %v2531_v15 = vld [vmem:[#allocation7 + $0xa90] sm:$0xff]  ;;  %v2541_v57 = vld [vmem:[#allocation7 + $0xae0] sm:$0xff] }
 0x254   : > { %v9269_v20 = vmax.f32 %v9205_v45, %v2128_v16  ;;  %v2151_v31 = vmax.f32 %v2078_v53, %v2139_v17  ;;  %v2157_v32 = vmax.f32 %v2084_v9, %v2139_v17  ;;  %v3156_v53 = vrot.slane %v9232_v46, 1  ;;  %v2535_v16 = vld [vmem:[#allocation7 + $0xab0] sm:$0xff] }
 0x255   : > { %v2152_v35 = vmax.f32 %v2079_v60, %v2140_v27  ;;  %v2158_v37 = vmax.f32 %v2085_v12, %v2140_v27  ;;  %v2376_v61 = vrot.slane %v9260_v26, 5  ;;  %v3145_v9 = vrot.slane %v9228_v38, 1  ;;  %v2539_v3 = vld [vmem:[#allocation7 + $0xad0] sm:$0xff] }
 0x256   : > { %v9283_v45 = vmax.f32 %v2148_v36, %v2151_v31  ;;  %v9285_v43 = vmax.f32 %v2154_v22, %v2157_v32  ;;  %v3155_v22 = vrot.slane %v9230_v44, 1  ;;  %v2377_v63 = vrot.slane %v9269_v20, 5  ;;  %v2542_v31 = vld [vmem:[#allocation7 + $0xae8] sm:$0xff]  ;;  %v2540_v32 = vld [vmem:[#allocation7 + $0xad8] sm:$0xff] }
 0x257   : > { %v9299_v60 = vmax.f32 %v9208_v54, %v2152_v35  ;;  %v9302_v36 = vmax.f32 %v9210_v55, %v2158_v37  ;;  %v6613_v54 = vpack.c.bf16 %v9291_v49, %v9281_v42  ;;  %v6709_v55 = vpack.c.bf16 %v9295_v52, %v9293_v50  ;;  %v2544_v35 = vld [vmem:[#allocation7 + $0xaf8] sm:$0xff]  ;;  %v2537_v49 = vld [vmem:[#allocation7 + $0xac0] sm:$0xff] }
 0x258   : > { %v2367_v51 = vrot.slane %v9283_v45, 4  ;;  %v9312_v56 = vsel %vm505_vm0, %v9260_v26, %v9283_v45  ;;  %v3158_v8 = vrot.slane %v9283_v45, 1  ;;  %v3159_v11 = vrot.slane %v9285_v43, 1 }
 0x259   : > { %v2368_v4 = vrot.slane %v9299_v60, 4  ;;  %v9328_v6 = vsel %vm505_vm0, %v9269_v20, %v9299_v60  ;;  %v3162_v10 = vrot.slane %v9302_v36, 1  ;;  %v3157_v12 = vsel %vm3154_vm5, %v3155_v22, %v3156_v53 }
 0x25a   : > { %v2382_v5 = vsel %vm505_vm0, %v2367_v51, %v2376_v61  ;;  %v3146_v17 = vrot.slane %v9260_v26, 1  ;;  %v9345_v18 = vsel %vm505_vm0, %v3145_v9, %v3157_v12  ;;  %v3659_v24 = vrot.slane %v9302_v36, 5  ;;  %v2546_v9 = vld [vmem:[#allocation7 + $0xb08] sm:$0xff]  ;;  %v2552_v12 = vld [vmem:[#allocation7 + $0xb38] sm:$0xff] }
 0x25b   : > { %2641 = vmatprep.mubr.f32.mxu1 %v2382_v5  ;;  %2783 = vmatprep.mubr.f32.mxu0 %v2382_v5  ;;  %v9334_v1 = vsel %vm505_vm0, %v2368_v4, %v2377_v63  ;;  %v3160_v27 = vsel %vm3154_vm5, %v3158_v8, %v3159_v11  ;;  %v3161_v28 = vrot.slane %v9299_v60, 1  ;;  %v3147_v40 = vrot.slane %v9269_v20, 1  ;;  %v2543_v4 = vld [vmem:[#allocation7 + $0xaf0] sm:$0xff]  ;;  %v2548_v11 = vld [vmem:[#allocation7 + $0xb18] sm:$0xff] }
 0x25c   : > { %2642 = vmatmul.mubr.f32.vlgmr.msra.gmra.mrb[6].mxu1 %v9242_v7  ;;  %2784 = vmatmul.mubr.f32.vlgmr.msra.gmra.mrb[12].mxu0 %v9242_v7  ;;  %v3655_v7 = vrot.slane %v9283_v45, 5  ;;  %v9352_v37 = vsel %vm505_vm0, %v3146_v17, %v3160_v27  ;;  %v6711_v41 = vpack.c.bf16 %v2535_v16, %v2531_v15  ;;  %v3665_v42 = vrot.slane %v9260_v26, 6 }
 0x25d   : > { %6608 = vmatpush1.bf16.msra.mxu1 %v6607_v34  ;;  %6704 = vmatpush1.bf16.msra.mxu0 %v6703_v33  ;;  %v3656_v34 = vrot.slane %v9285_v43, 5  ;;  %v3652_v33 = vrot.slane %v9230_v44, 5  ;;  %v3664_v22 = vrot.slane %v9228_v38, 6  ;;  %v6617_v51 = vpack.c.bf16 %v2542_v31, %v2538_v25  ;;  %v2554_v31 = vld [vmem:[#allocation7 + $0xb48] sm:$0xff] }
 0x25e   : > { %6610 = vmatprep.subr.bf16.mxu1 %v6609_v39  ;;  %6706 = vmatprep.subr.bf16.mxu0 %v6705_v47  ;;  %v3163_v39 = vsel %vm3154_vm5, %v3161_v28, %v3162_v10  ;;  %v3658_v47 = vrot.slane %v9299_v60, 5  ;;  %v6713_v61 = vpack.c.bf16 %v2544_v35, %v2540_v32  ;;  %v3666_v5 = vrot.slane %v9269_v20, 6  ;;  %v2550_v10 = vld [vmem:[#allocation7 + $0xb28] sm:$0xff]  ;;  %v2547_v28 = vld [vmem:[#allocation7 + $0xb10] sm:$0xff]  ;;  %v2556_v35 = vld [vmem:[#allocation7 + $0xb58] sm:$0xff] }
 0x25f   : > { %2712 = vmatprep.mubr.f32.mxu1 %v8652_v0  ;;  %2854 = vmatprep.mubr.f32.mxu0 %v8652_v0  ;;  %v9363_v50 = vsel %vm505_vm0, %v3147_v40, %v3163_v39  ;;  %v3657_v52 = vsel %vm3651_vm6, %v3655_v7, %v3656_v34  ;;  %v3654_v53 = vsel %vm3651_vm6, %v3652_v33, %v3653_v13  ;;  %v4162_v8 = vrot.slane %v9232_v46, 2  ;;  %v2551_v7 = vld [vmem:[#allocation7 + $0xb30] sm:$0xff]  ;;  %v2558_v32 = vld [vmem:[#allocation7 + $0xb68] sm:$0xff]  ;;  %v2560_v40 = vld [vmem:[#allocation7 + $0xb78] sm:$0xff] }
 0x260   : > { %v9372_v63 = vsel %vm505_vm0, %v3657_v52, %v3665_v42  ;;  %v9377_v29 = vsel %vm505_vm0, %v3654_v53, %v3664_v22  ;;  %v3660_v30 = vsel %vm3651_vm6, %v3658_v47, %v3659_v24  ;;  %v4165_v46 = vrot.slane %v9285_v43, 2  ;;  %v2549_v24 = vld [vmem:[#allocation7 + $0xb20] sm:$0xff]  ;;  %v2559_v52 = vld [vmem:[#allocation7 + $0xb70] sm:$0xff]  ;;  %v2562_v53 = vld [vmem:[#allocation7 + $0xb88] sm:$0xff] }
 0x261   : > { %6612 = vmatpush1.bf16.msra.mxu1 %v6611_v48  ;;  %6708 = vmatpush1.bf16.msra.mxu0 %v6707_v62  ;;  %v4164_v48 = vrot.slane %v9283_v45, 2  ;;  %v4168_v62 = vrot.slane %v9302_v36, 2  ;;  %v9383_v13 = vsel %vm505_vm0, %v3660_v30, %v3666_v5  ;;  %v4155_v15 = vrot.slane %v9260_v26, 2  ;;  %v2545_v45 = vld [vmem:[#allocation7 + $0xb00] sm:$0xff]  ;;  %v2566_v22 = vld [vmem:[#allocation7 + $0xba8] sm:$0xff]  ;;  %v2567_v30 = vld [vmem:[#allocation7 + $0xbb0] sm:$0xff] }
 0x262   : > { %6614 = vmatprep.subr.bf16.mxu1 %v6613_v54  ;;  %6710 = vmatprep.subr.bf16.mxu0 %v6709_v55  ;;  %v6619_v54 = vpack.c.bf16 %v2541_v57, %v2537_v49  ;;  %v6715_v55 = vpack.c.bf16 %v2543_v4, %v2539_v3  ;;  %v4161_v16 = vrot.slane %v9230_v44, 2  ;;  %v6621_v17 = vpack.c.bf16 %v2550_v10, %v2546_v9  ;;  %v2553_v39 = vld [vmem:[#allocation7 + $0xb40] sm:$0xff]  ;;  %v2555_v49 = vld [vmem:[#allocation7 + $0xb50] sm:$0xff] }
 0x263   : > { %v4166_v36 = vsel %vm4160_vm7, %v4164_v48, %v4165_v46  ;;  %v4154_v25 = vrot.slane %v9228_v38, 2  ;;  %v4167_v27 = vrot.slane %v9299_v60, 2  ;;  %v6717_v43 = vpack.c.bf16 %v2552_v12, %v2548_v11  ;;  %v2557_v42 = vld [vmem:[#allocation7 + $0xb60] sm:$0xff]  ;;  %v2563_v10 = vld [vmem:[#allocation7 + $0xb90] sm:$0xff]  ;;  %v2570_v48 = vld [vmem:[#allocation7 + $0xbc8] sm:$0xff] }
 0x264   : > { %v9392_v26 = vsel %vm505_vm0, %v4155_v15, %v4166_v36  ;;  %v4163_v44 = vsel %vm4160_vm7, %v4161_v16, %v4162_v8  ;;  %v6623_v33 = vpack.c.bf16 %v2549_v24, %v2545_v45  ;;  %v6721_v47 = vpack.c.bf16 %v2560_v40, %v2556_v35  ;;  %v2561_v4 = vld [vmem:[#allocation7 + $0xb80] sm:$0xff]  ;;  %v2572_v11 = vld [vmem:[#allocation7 + $0xbd8] sm:$0xff]  ;;  %v2571_v45 = vld [vmem:[#allocation7 + $0xbd0] sm:$0xff] }
 0x265   : > { %6616 = vmatpush1.bf16.msra.mxu1 %v6615_v14  ;;  %6712 = vmatpush1.bf16.msra.mxu0 %v6711_v41  ;;  %v4156_v14 = vrot.slane %v9269_v20, 2  ;;  %v9397_v38 = vsel %vm505_vm0, %v4154_v25, %v4163_v44  ;;  %v4169_v60 = vsel %vm4160_vm7, %v4167_v27, %v4168_v62  ;;  %v6719_v41 = vpack.c.bf16 %v2551_v7, %v2547_v28  ;;  %v2565_v5 = vld [vmem:[#allocation7 + $0xba0] sm:$0xff]  ;;  %v2574_v62 = vld [vmem:[#allocation7 + $0xbe8] sm:$0xff]  ;;  %v2576_v12 = vld [vmem:[#allocation7 + $0xbf8] sm:$0xff] }
 0x266   : > { %6618 = vmatprep.subr.bf16.mxu1 %v6617_v51  ;;  %6714 = vmatprep.subr.bf16.mxu0 %v6713_v61  ;;  %v6625_v20 = vpack.c.bf16 %v2558_v32, %v2554_v31  ;;  %v2564_v51 = vld [vmem:[#allocation7 + $0xb98] sm:$0xff]  ;;  %v6627_v57 = vpack.c.bf16 %v2557_v42, %v2553_v39  ;;  %v6723_v3 = vpack.c.bf16 %v2559_v52, %v2555_v49  ;;  %v2573_v15 = vld [vmem:[#allocation7 + $0xbe0] sm:$0xff]  ;;  %v2575_v24 = vld [vmem:[#allocation7 + $0xbf0] sm:$0xff] }
 0x267   : > { %v9401_v34 = vsel %vm505_vm0, %v4156_v14, %v4169_v60  ;;  %v2568_v61 = vld [vmem:[#allocation7 + $0xbb8] sm:$0xff]  ;;  %v6629_v8 = vpack.c.bf16 %v2566_v22, %v2562_v53  ;;  %v6631_v46 = vpack.c.bf16 %v2565_v5, %v2561_v4  ;;  %v6633_v16 = vpack.c.bf16 %v2574_v62, %v2570_v48  ;;  %v2172_v36 = vld [vmem:[#allocation7 + $0x8] sm:$0xff]  ;;  %v2171_v14 = vld [vmem:[#allocation7] sm:$0xff] }
 0x268   : > { %v6725_v9 = vpack.c.bf16 %v2568_v61, %v2564_v51  ;;  %v2176_v25 = vld [vmem:[#allocation7 + $0x28] sm:$0xff]  ;;  %v2174_v27 = vld [vmem:[#allocation7 + $0x18] sm:$0xff]  ;;  %v6731_v7 = vpack.c.bf16 %v2575_v24, %v2571_v45  ;;  %v2175_v32 = vld [vmem:[#allocation7 + $0x20] sm:$0xff] }
 0x269   : > { %6620 = vmatpush1.bf16.msra.mxu1 %v6619_v54  ;;  %6716 = vmatpush1.bf16.msra.mxu0 %v6715_v55  ;;  %v6727_v54 = vpack.c.bf16 %v2567_v30, %v2563_v10  ;;  %v2569_v55 = vld [vmem:[#allocation7 + $0xbc0] sm:$0xff]  ;;  %v6733_v31 = vpack.c.bf16 %v2176_v25, %v2172_v36  ;;  %v2173_v35 = vld [vmem:[#allocation7 + $0x10] sm:$0xff]  ;;  %v2180_v60 = vld [vmem:[#allocation7 + $0x48] sm:$0xff]  ;;  %v6735_v42 = vpack.c.bf16 %v2175_v32, %v2171_v14 }
 0x26a   : > { %6622 = vmatprep.subr.bf16.mxu1 %v6621_v17  ;;  %6718 = vmatprep.subr.bf16.mxu0 %v6717_v43  ;;  %v6729_v17 = vpack.c.bf16 %v2576_v12, %v2572_v11  ;;  %v2178_v43 = vld [vmem:[#allocation7 + $0x38] sm:$0xff]  ;;  %v6635_v28 = vpack.c.bf16 %v2573_v15, %v2569_v55  ;;  %v2177_v40 = vld [vmem:[#allocation7 + $0x30] sm:$0xff]  ;;  %v2183_v49 = vld [vmem:[#allocation7 + $0x60] sm:$0xff] }
 0x26b   : > { %v6829_v44 = vpack.c.bf16 %v2178_v43, %v2174_v27  ;;  %v2186_v39 = vld [vmem:[#allocation7 + $0x78] sm:$0xff]  ;;  %v2181_v52 = vld [vmem:[#allocation7 + $0x50] sm:$0xff]  ;;  %v2188_v61 = vld [vmem:[#allocation7 + $0x88] sm:$0xff] }
 0x26c   : > { %v2185_v51 = vld [vmem:[#allocation7 + $0x70] sm:$0xff]  ;;  %v2194_v4 = vld [vmem:[#allocation7 + $0xb8] sm:$0xff]  ;;  %v2187_v10 = vld [vmem:[#allocation7 + $0x80] sm:$0xff] }
 0x26d   : > { %6624 = vmatpush1.bf16.msra.mxu1 %v6623_v33  ;;  %6720 = vmatpush1.bf16.msra.mxu0 %v6719_v41  ;;  %v2184_v33 = vld [vmem:[#allocation7 + $0x68] sm:$0xff]  ;;  %v2182_v41 = vld [vmem:[#allocation7 + $0x58] sm:$0xff]  ;;  %v2191_v30 = vld [vmem:[#allocation7 + $0xa0] sm:$0xff] }
 0x26e   : > { %6626 = vmatprep.subr.bf16.mxu1 %v6625_v20  ;;  %6722 = vmatprep.subr.bf16.mxu0 %v6721_v47  ;;  %v6831_v20 = vpack.c.bf16 %v2177_v40, %v2173_v35  ;;  %v2179_v47 = vld [vmem:[#allocation7 + $0x40] sm:$0xff]  ;;  %v6737_v53 = vpack.c.bf16 %v2184_v33, %v2180_v60  ;;  %v6833_v22 = vpack.c.bf16 %v2186_v39, %v2182_v41  ;;  %v2189_v48 = vld [vmem:[#allocation7 + $0x90] sm:$0xff]  ;;  %v2196_v12 = vld [vmem:[#allocation7 + $0xc8] sm:$0xff] }
 0x26f   : > { %v6739_v5 = vpack.c.bf16 %v2183_v49, %v2179_v47  ;;  %v2193_v11 = vld [vmem:[#allocation7 + $0xb0] sm:$0xff]  ;;  %v6743_v55 = vpack.c.bf16 %v2191_v30, %v2187_v10  ;;  %v2204_v25 = vld [vmem:[#allocation7 + $0x108] sm:$0xff]  ;;  %v2206_v43 = vld [vmem:[#allocation7 + $0x118] sm:$0xff] }
 0x270   : > { %v6839_v15 = vpack.c.bf16 %v2193_v11, %v2189_v48  ;;  %v2197_v45 = vld [vmem:[#allocation7 + $0xd0] sm:$0xff]  ;;  %v2208_v27 = vld [vmem:[#allocation7 + $0x128] sm:$0xff]  ;;  %v2203_v14 = vld [vmem:[#allocation7 + $0x100] sm:$0xff] }
 0x271   : > { %6628 = vmatpush1.bf16.msra.mxu1 %v6627_v57  ;;  %6724 = vmatpush1.bf16.msra.mxu0 %v6723_v3  ;;  %v2192_v57 = vld [vmem:[#allocation7 + $0xa8] sm:$0xff]  ;;  %v2190_v3 = vld [vmem:[#allocation7 + $0x98] sm:$0xff]  ;;  %v2201_v36 = vld [vmem:[#allocation7 + $0xf0] sm:$0xff] }
 0x272   : > { %6630 = vmatprep.subr.bf16.mxu1 %v6629_v8  ;;  %6726 = vmatprep.subr.bf16.mxu0 %v6725_v9  ;;  %v6835_v8 = vpack.c.bf16 %v2185_v51, %v2181_v52  ;;  %v6741_v9 = vpack.c.bf16 %v2192_v57, %v2188_v61  ;;  %v6837_v62 = vpack.c.bf16 %v2194_v4, %v2190_v3  ;;  %v2207_v32 = vld [vmem:[#allocation7 + $0x120] sm:$0xff]  ;;  %v2205_v35 = vld [vmem:[#allocation7 + $0x110] sm:$0xff]  ;;  %v2212_v33 = vld [vmem:[#allocation7 + $0x148] sm:$0xff] }
 0x273   : > { %v2209_v60 = vld [vmem:[#allocation7 + $0x130] sm:$0xff]  ;;  %v2216_v41 = vld [vmem:[#allocation7 + $0x168] sm:$0xff]  ;;  %v2214_v39 = vld [vmem:[#allocation7 + $0x158] sm:$0xff] }
 0x274   : > { %v6847_v47 = vpack.c.bf16 %v2209_v60, %v2205_v35  ;;  %v6753_v49 = vpack.c.bf16 %v2216_v41, %v2212_v33  ;;  %v2211_v52 = vld [vmem:[#allocation7 + $0x140] sm:$0xff]  ;;  %v2217_v61 = vld [vmem:[#allocation7 + $0x170] sm:$0xff]  ;;  %v2220_v57 = vld [vmem:[#allocation7 + $0x188] sm:$0xff] }
 0x275   : > { %6632 = vmatpush1.bf16.msra.mxu1 %v6631_v46  ;;  %6728 = vmatpush1.bf16.msra.mxu0 %v6727_v54  ;;  %v2198_v46 = vld [vmem:[#allocation7 + $0xd8] sm:$0xff]  ;;  %v2224_v3 = vld [vmem:[#allocation7 + $0x1a8] sm:$0xff]  ;;  %v2219_v30 = vld [vmem:[#allocation7 + $0x180] sm:$0xff] }
 0x276   : > { %6634 = vmatprep.subr.bf16.mxu1 %v6633_v16  ;;  %6730 = vmatprep.subr.bf16.mxu0 %v6729_v17  ;;  %v2202_v54 = vld [vmem:[#allocation7 + $0xf8] sm:$0xff]  ;;  %v2199_v17 = vld [vmem:[#allocation7 + $0xe0] sm:$0xff]  ;;  %v6757_v10 = vpack.c.bf16 %v2224_v3, %v2220_v57  ;;  %v2241_v33 = vld [vmem:[#allocation7 + $0x230] sm:$0xff] }
 0x277   : > { %v6841_v24 = vpack.c.bf16 %v2202_v54, %v2198_v46  ;;  %v2222_v4 = vld [vmem:[#allocation7 + $0x198] sm:$0xff]  ;;  %v2223_v48 = vld [vmem:[#allocation7 + $0x1a0] sm:$0xff]  ;;  %v2232_v46 = vld [vmem:[#allocation7 + $0x1e8] sm:$0xff] }
 0x278   : > { %v2230_v54 = vld [vmem:[#allocation7 + $0x1d8] sm:$0xff]  ;;  %v2239_v35 = vld [vmem:[#allocation7 + $0x220] sm:$0xff]  ;;  %v2244_v41 = vld [vmem:[#allocation7 + $0x248] sm:$0xff] }
 0x279   : > { %6636 = vmatpush1.bf16.msra.mxu1 %v6635_v28  ;;  %6732 = vmatpush1.bf16.msra.mxu0 %v6731_v7  ;;  %v2210_v28 = vld [vmem:[#allocation7 + $0x138] sm:$0xff]  ;;  %v2249_v57 = vld [vmem:[#allocation7 + $0x270] sm:$0xff]  ;;  %v2252_v3 = vld [vmem:[#allocation7 + $0x288] sm:$0xff] }
 0x27a   : > { %6734 = vmatprep.subr.bf16.mxu1 %v6733_v31  ;;  %6830 = vmatprep.subr.bf16.mxu0 %v6829_v44  ;;  %v6843_v31 = vpack.c.bf16 %v2201_v36, %v2197_v45  ;;  %v6749_v44 = vpack.c.bf16 %v2208_v27, %v2204_v25  ;;  %v6845_v40 = vpack.c.bf16 %v2210_v28, %v2206_v43  ;;  %v2231_v45 = vld [vmem:[#allocation7 + $0x1e0] sm:$0xff]  ;;  %v2233_v25 = vld [vmem:[#allocation7 + $0x1f0] sm:$0xff]  ;;  %v2236_v27 = vld [vmem:[#allocation7 + $0x208] sm:$0xff] }
 0x27b   : > { %v2240_v43 = vld [vmem:[#allocation7 + $0x228] sm:$0xff]  ;;  %v2238_v28 = vld [vmem:[#allocation7 + $0x218] sm:$0xff] }
 0x27c   : > { %2713 = vmatmul.mubr.f32.vlgmr.msra.gmra.mrb[6].mxu1 %v9334_v1  ;;  %2855 = vmatmul.mubr.f32.vlgmr.msra.gmra.mrb[12].mxu0 %v9334_v1  ;;  %v2200_v1 = vld [vmem:[#allocation7 + $0xe8] sm:$0xff] }
 0x27d   : > { %6736 = vmatpush1.bf16.msra.mxu1 %v6735_v42  ;;  %2925 = vmatprep.mubr.f32.mxu1 %v9312_v56  ;;  %v6745_v16 = vpack.c.bf16 %v2200_v1, %v2196_v12  ;;  %v2218_v42 = vld [vmem:[#allocation7 + $0x178] sm:$0xff]  ;;  %v2225_v12 = vld [vmem:[#allocation7 + $0x1b0] sm:$0xff]  ;;  %v2228_v1 = vld [vmem:[#allocation7 + $0x1c8] sm:$0xff] }
 0x27e   : > { %6832 = vmatpush1.bf16.msra.mxu0 %v6831_v20  ;;  %3067 = vmatprep.mubr.f32.mxu0 %v9312_v56  ;;  %v2195_v56 = vld [vmem:[#allocation7 + $0xc0] sm:$0xff]  ;;  %v6751_v20 = vpack.c.bf16 %v2207_v32, %v2203_v14  ;;  %v6849_v51 = vpack.c.bf16 %v2218_v42, %v2214_v39  ;;  %v6765_v14 = vpack.c.bf16 %v2240_v43, %v2236_v27  ;;  %v2248_v39 = vld [vmem:[#allocation7 + $0x268] sm:$0xff]  ;;  %v2246_v42 = vld [vmem:[#allocation7 + $0x258] sm:$0xff] }
 0x27f   : > { %6738 = vmatprep.subr.bf16.mxu1 %v6737_v53  ;;  %6834 = vmatprep.subr.bf16.mxu0 %v6833_v22  ;;  %v6747_v7 = vpack.c.bf16 %v2199_v17, %v2195_v56  ;;  %v2215_v53 = vld [vmem:[#allocation7 + $0x160] sm:$0xff]  ;;  %v2213_v22 = vld [vmem:[#allocation7 + $0x150] sm:$0xff]  ;;  %v6761_v56 = vpack.c.bf16 %v2232_v46, %v2228_v1  ;;  %v2260_v46 = vld [vmem:[#allocation7 + $0x2c8] sm:$0xff] }
 0x280   : > { %v2227_v17 = vld [vmem:[#allocation7 + $0x1c0] sm:$0xff]  ;;  %v2257_v1 = vld [vmem:[#allocation7 + $0x2b0] sm:$0xff]  ;;  %v2268_v43 = vld [vmem:[#allocation7 + $0x308] sm:$0xff] }
 0x281   : > { %6740 = vmatpush1.bf16.msra.mxu1 %v6739_v5  ;;  %v2226_v5 = vld [vmem:[#allocation7 + $0x1b8] sm:$0xff]  ;;  %v2235_v32 = vld [vmem:[#allocation7 + $0x200] sm:$0xff]  ;;  %v2265_v27 = vld [vmem:[#allocation7 + $0x2f0] sm:$0xff] }
 0x282   : > { %6836 = vmatpush1.bf16.msra.mxu0 %v6835_v8  ;;  %6742 = vmatprep.subr.bf16.mxu1 %v6741_v9  ;;  %v6755_v8 = vpack.c.bf16 %v2215_v53, %v2211_v52  ;;  %v6851_v9 = vpack.c.bf16 %v2217_v61, %v2213_v22  ;;  %v6853_v11 = vpack.c.bf16 %v2226_v5, %v2222_v4  ;;  %v2243_v53 = vld [vmem:[#allocation7 + $0x240] sm:$0xff]  ;;  %v2256_v4 = vld [vmem:[#allocation7 + $0x2a8] sm:$0xff]  ;;  %v2254_v5 = vld [vmem:[#allocation7 + $0x298] sm:$0xff] }
 0x283   : > { %6838 = vmatprep.subr.bf16.mxu0 %v6837_v62  ;;  %v2221_v62 = vld [vmem:[#allocation7 + $0x190] sm:$0xff]  ;;  %v6769_v52 = vpack.c.bf16 %v2248_v39, %v2244_v41  ;;  %v2247_v22 = vld [vmem:[#allocation7 + $0x260] sm:$0xff]  ;;  %v2276_v39 = vld [vmem:[#allocation7 + $0x348] sm:$0xff] }
 0x284   : > { %v2273_v41 = vld [vmem:[#allocation7 + $0x330] sm:$0xff] }
 0x285   : > { %6744 = vmatpush1.bf16.msra.mxu1 %v6743_v55  ;;  %v2234_v55 = vld [vmem:[#allocation7 + $0x1f8] sm:$0xff] }
 0x286   : > { %6840 = vmatpush1.bf16.msra.mxu0 %v6839_v15  ;;  %6746 = vmatprep.subr.bf16.mxu1 %v6745_v16  ;;  %v6759_v15 = vpack.c.bf16 %v2223_v48, %v2219_v30  ;;  %v6855_v16 = vpack.c.bf16 %v2225_v12, %v2221_v62  ;;  %v6857_v36 = vpack.c.bf16 %v2234_v55, %v2230_v54  ;;  %v2251_v48 = vld [vmem:[#allocation7 + $0x280] sm:$0xff]  ;;  %v2264_v54 = vld [vmem:[#allocation7 + $0x2e8] sm:$0xff]  ;;  %v2262_v55 = vld [vmem:[#allocation7 + $0x2d8] sm:$0xff] }
 0x287   : > { %6842 = vmatprep.subr.bf16.mxu0 %v6841_v24  ;;  %v2229_v24 = vld [vmem:[#allocation7 + $0x1d0] sm:$0xff]  ;;  %v6773_v30 = vpack.c.bf16 %v2256_v4, %v2252_v3  ;;  %v2255_v62 = vld [vmem:[#allocation7 + $0x2a0] sm:$0xff]  ;;  %v2284_v4 = vld [vmem:[#allocation7 + $0x388] sm:$0xff] }
 0x288   : > { %v2281_v3 = vld [vmem:[#allocation7 + $0x370] sm:$0xff] }
 0x289   : > { %6748 = vmatpush1.bf16.msra.mxu1 %v6747_v7  ;;  %v2242_v7 = vld [vmem:[#allocation7 + $0x238] sm:$0xff] }
 0x28a   : > { %6844 = vmatpush1.bf16.msra.mxu0 %v6843_v31  ;;  %6750 = vmatprep.subr.bf16.mxu1 %v6749_v44  ;;  %v6763_v31 = vpack.c.bf16 %v2231_v45, %v2227_v17  ;;  %v6859_v44 = vpack.c.bf16 %v2233_v25, %v2229_v24  ;;  %v6861_v60 = vpack.c.bf16 %v2242_v7, %v2238_v28  ;;  %v2259_v45 = vld [vmem:[#allocation7 + $0x2c0] sm:$0xff]  ;;  %v2272_v28 = vld [vmem:[#allocation7 + $0x328] sm:$0xff]  ;;  %v2270_v7 = vld [vmem:[#allocation7 + $0x318] sm:$0xff] }
 0x28b   : > { %6846 = vmatprep.subr.bf16.mxu0 %v6845_v40  ;;  %v2237_v40 = vld [vmem:[#allocation7 + $0x210] sm:$0xff]  ;;  %v6777_v17 = vpack.c.bf16 %v2264_v54, %v2260_v46  ;;  %v2263_v24 = vld [vmem:[#allocation7 + $0x2e0] sm:$0xff]  ;;  %v2292_v54 = vld [vmem:[#allocation7 + $0x3c8] sm:$0xff] }
 0x28c   : > { %v2289_v46 = vld [vmem:[#allocation7 + $0x3b0] sm:$0xff] }
 0x28d   : > { %6752 = vmatpush1.bf16.msra.mxu1 %v6751_v20  ;;  %v2250_v20 = vld [vmem:[#allocation7 + $0x278] sm:$0xff] }
 0x28e   : > { %6848 = vmatpush1.bf16.msra.mxu0 %v6847_v47  ;;  %6754 = vmatprep.subr.bf16.mxu1 %v6753_v49  ;;  %v6767_v47 = vpack.c.bf16 %v2239_v35, %v2235_v32  ;;  %v6863_v49 = vpack.c.bf16 %v2241_v33, %v2237_v40  ;;  %v6865_v61 = vpack.c.bf16 %v2250_v20, %v2246_v42  ;;  %v2267_v35 = vld [vmem:[#allocation7 + $0x300] sm:$0xff]  ;;  %v2280_v42 = vld [vmem:[#allocation7 + $0x368] sm:$0xff]  ;;  %v2278_v20 = vld [vmem:[#allocation7 + $0x358] sm:$0xff] }
 0x28f   : > { %6850 = vmatprep.subr.bf16.mxu0 %v6849_v51  ;;  %v2245_v51 = vld [vmem:[#allocation7 + $0x250] sm:$0xff]  ;;  %v6781_v32 = vpack.c.bf16 %v2272_v28, %v2268_v43  ;;  %v2271_v40 = vld [vmem:[#allocation7 + $0x320] sm:$0xff]  ;;  %v2300_v28 = vld [vmem:[#allocation7 + $0x408] sm:$0xff] }
 0x290   : > { %v2297_v43 = vld [vmem:[#allocation7 + $0x3f0] sm:$0xff] }
 0x291   : > { %6756 = vmatpush1.bf16.msra.mxu1 %v6755_v8  ;;  %v2258_v8 = vld [vmem:[#allocation7 + $0x2b8] sm:$0xff] }
 0x292   : > { %6852 = vmatpush1.bf16.msra.mxu0 %v6851_v9  ;;  %6758 = vmatprep.subr.bf16.mxu1 %v6757_v10  ;;  %v6771_v9 = vpack.c.bf16 %v2247_v22, %v2243_v53  ;;  %v6867_v10 = vpack.c.bf16 %v2249_v57, %v2245_v51  ;;  %v6869_v12 = vpack.c.bf16 %v2258_v8, %v2254_v5  ;;  %v2275_v22 = vld [vmem:[#allocation7 + $0x340] sm:$0xff]  ;;  %v2288_v5 = vld [vmem:[#allocation7 + $0x3a8] sm:$0xff]  ;;  %v2286_v8 = vld [vmem:[#allocation7 + $0x398] sm:$0xff] }
 0x293   : > { %6854 = vmatprep.subr.bf16.mxu0 %v6853_v11  ;;  %v2253_v11 = vld [vmem:[#allocation7 + $0x290] sm:$0xff]  ;;  %v6785_v53 = vpack.c.bf16 %v2280_v42, %v2276_v39  ;;  %v2279_v51 = vld [vmem:[#allocation7 + $0x360] sm:$0xff]  ;;  %v2308_v42 = vld [vmem:[#allocation7 + $0x448] sm:$0xff] }
 0x294   : > { %v2305_v39 = vld [vmem:[#allocation7 + $0x430] sm:$0xff] }
 0x295   : > { %6760 = vmatpush1.bf16.msra.mxu1 %v6759_v15  ;;  %v2266_v15 = vld [vmem:[#allocation7 + $0x2f8] sm:$0xff] }
 0x296   : > { %6856 = vmatpush1.bf16.msra.mxu0 %v6855_v16  ;;  %6762 = vmatprep.subr.bf16.mxu1 %v6761_v56  ;;  %v6775_v16 = vpack.c.bf16 %v2255_v62, %v2251_v48  ;;  %v6871_v56 = vpack.c.bf16 %v2257_v1, %v2253_v11  ;;  %v6873_v25 = vpack.c.bf16 %v2266_v15, %v2262_v55  ;;  %v2283_v62 = vld [vmem:[#allocation7 + $0x380] sm:$0xff]  ;;  %v2296_v55 = vld [vmem:[#allocation7 + $0x3e8] sm:$0xff]  ;;  %v2294_v15 = vld [vmem:[#allocation7 + $0x3d8] sm:$0xff] }
 0x297   : > { %6858 = vmatprep.subr.bf16.mxu0 %v6857_v36  ;;  %v2261_v36 = vld [vmem:[#allocation7 + $0x2d0] sm:$0xff]  ;;  %v6789_v48 = vpack.c.bf16 %v2288_v5, %v2284_v4  ;;  %v2287_v11 = vld [vmem:[#allocation7 + $0x3a0] sm:$0xff]  ;;  %v2316_v5 = vld [vmem:[#allocation7 + $0x488] sm:$0xff] }
 0x298   : > { %v2313_v4 = vld [vmem:[#allocation7 + $0x470] sm:$0xff] }
 0x299   : > { %6764 = vmatpush1.bf16.msra.mxu1 %v6763_v31  ;;  %v2274_v31 = vld [vmem:[#allocation7 + $0x338] sm:$0xff] }
 0x29a   : > { %6860 = vmatpush1.bf16.msra.mxu0 %v6859_v44  ;;  %6766 = vmatprep.subr.bf16.mxu1 %v6765_v14  ;;  %v6779_v44 = vpack.c.bf16 %v2263_v24, %v2259_v45  ;;  %v6875_v14 = vpack.c.bf16 %v2265_v27, %v2261_v36  ;;  %v6877_v33 = vpack.c.bf16 %v2274_v31, %v2270_v7  ;;  %v2291_v24 = vld [vmem:[#allocation7 + $0x3c0] sm:$0xff]  ;;  %v2304_v7 = vld [vmem:[#allocation7 + $0x428] sm:$0xff]  ;;  %v2302_v31 = vld [vmem:[#allocation7 + $0x418] sm:$0xff] }
 0x29b   : > { %6862 = vmatprep.subr.bf16.mxu0 %v6861_v60  ;;  %v2269_v60 = vld [vmem:[#allocation7 + $0x310] sm:$0xff]  ;;  %v6793_v45 = vpack.c.bf16 %v2296_v55, %v2292_v54  ;;  %v2295_v36 = vld [vmem:[#allocation7 + $0x3e0] sm:$0xff]  ;;  %v2324_v55 = vld [vmem:[#allocation7 + $0x4c8] sm:$0xff] }
 0x29c   : > { %v2321_v54 = vld [vmem:[#allocation7 + $0x4b0] sm:$0xff] }
 0x29d   : > { %6768 = vmatpush1.bf16.msra.mxu1 %v6767_v47  ;;  %v2282_v47 = vld [vmem:[#allocation7 + $0x378] sm:$0xff] }
 0x29e   : > { %6864 = vmatpush1.bf16.msra.mxu0 %v6863_v49  ;;  %6770 = vmatprep.subr.bf16.mxu1 %v6769_v52  ;;  %v6783_v49 = vpack.c.bf16 %v2271_v40, %v2267_v35  ;;  %v6879_v52 = vpack.c.bf16 %v2273_v41, %v2269_v60  ;;  %v6881_v57 = vpack.c.bf16 %v2282_v47, %v2278_v20  ;;  %v2299_v40 = vld [vmem:[#allocation7 + $0x400] sm:$0xff]  ;;  %v2312_v20 = vld [vmem:[#allocation7 + $0x468] sm:$0xff]  ;;  %v2310_v47 = vld [vmem:[#allocation7 + $0x458] sm:$0xff] }
 0x29f   : > { %6866 = vmatprep.subr.bf16.mxu0 %v6865_v61  ;;  %v2277_v61 = vld [vmem:[#allocation7 + $0x350] sm:$0xff]  ;;  %v6797_v35 = vpack.c.bf16 %v2304_v7, %v2300_v28  ;;  %v2303_v60 = vld [vmem:[#allocation7 + $0x420] sm:$0xff]  ;;  %v2332_v28 = vld [vmem:[#allocation7 + $0x508] sm:$0xff] }
 0x2a0   : > { %v2336_v7 = vld [vmem:[#allocation7 + $0x528] sm:$0xff] }
 0x2a1   : > { %6772 = vmatpush1.bf16.msra.mxu1 %v6771_v9  ;;  %v2290_v9 = vld [vmem:[#allocation7 + $0x3b8] sm:$0xff] }
 0x2a2   : > { %6868 = vmatpush1.bf16.msra.mxu0 %v6867_v10  ;;  %6774 = vmatprep.subr.bf16.mxu1 %v6773_v30  ;;  %v6787_v10 = vpack.c.bf16 %v2279_v51, %v2275_v22  ;;  %v6883_v30 = vpack.c.bf16 %v2281_v3, %v2277_v61  ;;  %v6885_v1 = vpack.c.bf16 %v2290_v9, %v2286_v8  ;;  %v2307_v51 = vld [vmem:[#allocation7 + $0x440] sm:$0xff]  ;;  %v2320_v8 = vld [vmem:[#allocation7 + $0x4a8] sm:$0xff]  ;;  %v2318_v9 = vld [vmem:[#allocation7 + $0x498] sm:$0xff] }
 0x2a3   : > { %6870 = vmatprep.subr.bf16.mxu0 %v6869_v12  ;;  %v2285_v12 = vld [vmem:[#allocation7 + $0x390] sm:$0xff]  ;;  %v6801_v22 = vpack.c.bf16 %v2312_v20, %v2308_v42  ;;  %v2311_v61 = vld [vmem:[#allocation7 + $0x460] sm:$0xff]  ;;  %v2340_v42 = vld [vmem:[#allocation7 + $0x548] sm:$0xff] }
 0x2a4   : > { %v2344_v20 = vld [vmem:[#allocation7 + $0x568] sm:$0xff] }
 0x2a5   : > { %6776 = vmatpush1.bf16.msra.mxu1 %v6775_v16  ;;  %v2298_v16 = vld [vmem:[#allocation7 + $0x3f8] sm:$0xff] }
 0x2a6   : > { %6872 = vmatpush1.bf16.msra.mxu0 %v6871_v56  ;;  %6778 = vmatprep.subr.bf16.mxu1 %v6777_v17  ;;  %v6791_v56 = vpack.c.bf16 %v2287_v11, %v2283_v62  ;;  %v6887_v17 = vpack.c.bf16 %v2289_v46, %v2285_v12  ;;  %v6889_v27 = vpack.c.bf16 %v2298_v16, %v2294_v15  ;;  %v2315_v11 = vld [vmem:[#allocation7 + $0x480] sm:$0xff]  ;;  %v2328_v15 = vld [vmem:[#allocation7 + $0x4e8] sm:$0xff]  ;;  %v2326_v16 = vld [vmem:[#allocation7 + $0x4d8] sm:$0xff] }
 0x2a7   : > { %6874 = vmatprep.subr.bf16.mxu0 %v6873_v25  ;;  %v2293_v25 = vld [vmem:[#allocation7 + $0x3d0] sm:$0xff]  ;;  %v6805_v62 = vpack.c.bf16 %v2320_v8, %v2316_v5  ;;  %v2319_v12 = vld [vmem:[#allocation7 + $0x4a0] sm:$0xff]  ;;  %v2348_v5 = vld [vmem:[#allocation7 + $0x588] sm:$0xff] }
 0x2a8   : > { %v2352_v8 = vld [vmem:[#allocation7 + $0x5a8] sm:$0xff] }
 0x2a9   : > { %6780 = vmatpush1.bf16.msra.mxu1 %v6779_v44  ;;  %v2306_v44 = vld [vmem:[#allocation7 + $0x438] sm:$0xff] }
 0x2aa   : > { %6876 = vmatpush1.bf16.msra.mxu0 %v6875_v14  ;;  %6782 = vmatprep.subr.bf16.mxu1 %v6781_v32  ;;  %v6795_v14 = vpack.c.bf16 %v2295_v36, %v2291_v24  ;;  %v6891_v32 = vpack.c.bf16 %v2297_v43, %v2293_v25  ;;  %v6893_v41 = vpack.c.bf16 %v2306_v44, %v2302_v31  ;;  %v2323_v24 = vld [vmem:[#allocation7 + $0x4c0] sm:$0xff]  ;;  %v2325_v25 = vld [vmem:[#allocation7 + $0x4d0] sm:$0xff]  ;;  %v2334_v31 = vld [vmem:[#allocation7 + $0x518] sm:$0xff] }
 0x2ab   : > { %6878 = vmatprep.subr.bf16.mxu0 %v6877_v33  ;;  %v2301_v33 = vld [vmem:[#allocation7 + $0x410] sm:$0xff]  ;;  %v2327_v36 = vld [vmem:[#allocation7 + $0x4e0] sm:$0xff]  ;;  %v2338_v44 = vld [vmem:[#allocation7 + $0x538] sm:$0xff] }
 0x2ac   : > { %v2329_v43 = vld [vmem:[#allocation7 + $0x4f0] sm:$0xff] }
 0x2ad   : > { %6784 = vmatpush1.bf16.msra.mxu1 %v6783_v49  ;;  %v2314_v49 = vld [vmem:[#allocation7 + $0x478] sm:$0xff] }
 0x2ae   : > { %6880 = vmatpush1.bf16.msra.mxu0 %v6879_v52  ;;  %6786 = vmatprep.subr.bf16.mxu1 %v6785_v53  ;;  %v6799_v52 = vpack.c.bf16 %v2303_v60, %v2299_v40  ;;  %v6895_v53 = vpack.c.bf16 %v2305_v39, %v2301_v33  ;;  %v6897_v3 = vpack.c.bf16 %v2314_v49, %v2310_v47  ;;  %v2331_v40 = vld [vmem:[#allocation7 + $0x500] sm:$0xff]  ;;  %v2333_v33 = vld [vmem:[#allocation7 + $0x510] sm:$0xff]  ;;  %v2342_v47 = vld [vmem:[#allocation7 + $0x558] sm:$0xff] }
 0x2af   : > { %6882 = vmatprep.subr.bf16.mxu0 %v6881_v57  ;;  %v2309_v57 = vld [vmem:[#allocation7 + $0x450] sm:$0xff]  ;;  %v2335_v60 = vld [vmem:[#allocation7 + $0x520] sm:$0xff]  ;;  %v2346_v49 = vld [vmem:[#allocation7 + $0x578] sm:$0xff] }
 0x2b0   : > { %v2337_v39 = vld [vmem:[#allocation7 + $0x530] sm:$0xff] }
 0x2b1   : > { %6788 = vmatpush1.bf16.msra.mxu1 %v6787_v10  ;;  %v2322_v10 = vld [vmem:[#allocation7 + $0x4b8] sm:$0xff] }
 0x2b2   : > { %6884 = vmatpush1.bf16.msra.mxu0 %v6883_v30  ;;  %6790 = vmatprep.subr.bf16.mxu1 %v6789_v48  ;;  %v6803_v30 = vpack.c.bf16 %v2311_v61, %v2307_v51  ;;  %v6899_v48 = vpack.c.bf16 %v2313_v4, %v2309_v57  ;;  %v6901_v46 = vpack.c.bf16 %v2322_v10, %v2318_v9  ;;  %v2339_v51 = vld [vmem:[#allocation7 + $0x540] sm:$0xff]  ;;  %v2341_v57 = vld [vmem:[#allocation7 + $0x550] sm:$0xff]  ;;  %v2350_v9 = vld [vmem:[#allocation7 + $0x598] sm:$0xff] }
 0x2b3   : > { %6886 = vmatprep.subr.bf16.mxu0 %v6885_v1  ;;  %v2317_v1 = vld [vmem:[#allocation7 + $0x490] sm:$0xff]  ;;  %v2343_v61 = vld [vmem:[#allocation7 + $0x560] sm:$0xff]  ;;  %v2354_v10 = vld [vmem:[#allocation7 + $0x5b8] sm:$0xff] }
 0x2b4   : > { %v2345_v4 = vld [vmem:[#allocation7 + $0x570] sm:$0xff] }
 0x2b5   : > { %6792 = vmatpush1.bf16.msra.mxu1 %v6791_v56  ;;  %v2330_v56 = vld [vmem:[#allocation7 + $0x4f8] sm:$0xff] }
 0x2b6   : > { %6888 = vmatpush1.bf16.msra.mxu0 %v6887_v17  ;;  %6794 = vmatprep.subr.bf16.mxu1 %v6793_v45  ;;  %v6903_v17 = vpack.c.bf16 %v2321_v54, %v2317_v1  ;;  %v6809_v45 = vpack.c.bf16 %v2328_v15, %v2324_v55  ;;  %v2349_v1 = vld [vmem:[#allocation7 + $0x590] sm:$0xff]  ;;  %v2356_v55 = vld [vmem:[#allocation7 + $0x5c8] sm:$0xff] }
 0x2b7   : > { %6890 = vmatprep.subr.bf16.mxu0 %v6889_v27  ;;  %v6905_v27 = vpack.c.bf16 %v2330_v56, %v2326_v16  ;;  %v2353_v54 = vld [vmem:[#allocation7 + $0x5b0] sm:$0xff]  ;;  %v2360_v15 = vld [vmem:[#allocation7 + $0x5e8] sm:$0xff]  ;;  %v2358_v16 = vld [vmem:[#allocation7 + $0x5d8] sm:$0xff] }
 0x2b8   : > { %v2362_v56 = vld [vmem:[#allocation7 + $0x5f8] sm:$0xff] }
 0x2b9   : > { %6796 = vmatpush1.bf16.msra.mxu1 %v6795_v14  ;;  %v6811_v14 = vpack.c.bf16 %v2327_v36, %v2323_v24  ;;  %v2355_v24 = vld [vmem:[#allocation7 + $0x5c0] sm:$0xff] }
 0x2ba   : > { %6892 = vmatpush1.bf16.msra.mxu0 %v6891_v32  ;;  %6798 = vmatprep.subr.bf16.mxu1 %v6797_v35  ;;  %v6907_v32 = vpack.c.bf16 %v2329_v43, %v2325_v25  ;;  %v6813_v35 = vpack.c.bf16 %v2336_v7, %v2332_v28  ;;  %v2359_v36 = vld [vmem:[#allocation7 + $0x5e0] sm:$0xff]  ;;  %v2357_v25 = vld [vmem:[#allocation7 + $0x5d0] sm:$0xff]  ;;  %v3172_v28 = vld [vmem:[#allocation7 + $0xc08] sm:$0xff] }
 0x2bb   : > { %6894 = vmatprep.subr.bf16.mxu0 %v6893_v41  ;;  %v6909_v41 = vpack.c.bf16 %v2338_v44, %v2334_v31  ;;  %v2361_v43 = vld [vmem:[#allocation7 + $0x5f0] sm:$0xff]  ;;  %v3176_v7 = vld [vmem:[#allocation7 + $0xc28] sm:$0xff]  ;;  %v3174_v31 = vld [vmem:[#allocation7 + $0xc18] sm:$0xff] }
 0x2bc   : > { %2926 = vmatmul.mubr.f32.vlgmr.msra.gmra.mrb[6].mxu1 %v9239_v2  ;;  %v3178_v44 = vld [vmem:[#allocation7 + $0xc38] sm:$0xff] }
 0x2bd   : > { %3068 = vmatmul.mubr.f32.vlgmr.msra.gmra.mrb[12].mxu0 %v9239_v2  ;;  %6800 = vmatpush1.bf16.msra.mxu1 %v6799_v52  ;;  %v6807_v2 = vpack.c.bf16 %v2319_v12, %v2315_v11  ;;  %v6815_v52 = vpack.c.bf16 %v2335_v60, %v2331_v40  ;;  %v2347_v11 = vld [vmem:[#allocation7 + $0x580] sm:$0xff] }
 0x2be   : > { %6896 = vmatpush1.bf16.msra.mxu0 %v6895_v53  ;;  %6802 = vmatprep.subr.bf16.mxu1 %v6801_v22  ;;  %v6911_v53 = vpack.c.bf16 %v2337_v39, %v2333_v33  ;;  %v6817_v22 = vpack.c.bf16 %v2344_v20, %v2340_v42  ;;  %v2351_v12 = vld [vmem:[#allocation7 + $0x5a0] sm:$0xff]  ;;  %v7021_v33 = vpack.c.bf16 %v3178_v44, %v3174_v31  ;;  %v3177_v39 = vld [vmem:[#allocation7 + $0xc30] sm:$0xff]  ;;  %v3180_v42 = vld [vmem:[#allocation7 + $0xc48] sm:$0xff] }
 0x2bf   : > { %6898 = vmatprep.subr.bf16.mxu0 %v6897_v3  ;;  %2996 = vmatprep.mubr.f32.mxu1 %v8652_v0  ;;  %v6913_v3 = vpack.c.bf16 %v2346_v49, %v2342_v47  ;;  %v3171_v40 = vld [vmem:[#allocation7 + $0xc00] sm:$0xff]  ;;  %v3184_v20 = vld [vmem:[#allocation7 + $0xc68] sm:$0xff]  ;;  %v3182_v49 = vld [vmem:[#allocation7 + $0xc58] sm:$0xff] }
 0x2c0   : > { %3138 = vmatprep.mubr.f32.mxu0 %v8652_v0  ;;  %v3175_v60 = vld [vmem:[#allocation7 + $0xc20] sm:$0xff] }
 0x2c1   : > { %6804 = vmatpush1.bf16.msra.mxu1 %v6803_v30  ;;  %v6819_v30 = vpack.c.bf16 %v2343_v61, %v2339_v51  ;;  %v6927_v47 = vpack.c.bf16 %v3175_v60, %v3171_v40  ;;  %v3183_v51 = vld [vmem:[#allocation7 + $0xc60] sm:$0xff]  ;;  %v3181_v61 = vld [vmem:[#allocation7 + $0xc50] sm:$0xff] }
 0x2c2   : > { %6900 = vmatpush1.bf16.msra.mxu0 %v6899_v48  ;;  %6806 = vmatprep.subr.bf16.mxu1 %v6805_v62  ;;  %v6915_v48 = vpack.c.bf16 %v2345_v4, %v2341_v57  ;;  %v6821_v62 = vpack.c.bf16 %v2352_v8, %v2348_v5  ;;  %v6929_v57 = vpack.c.bf16 %v3184_v20, %v3180_v42  ;;  %v3188_v4 = vld [vmem:[#allocation7 + $0xc88] sm:$0xff]  ;;  %v3205_v40 = vld [vmem:[#allocation7 + $0xd10] sm:$0xff]  ;;  %v3214_v42 = vld [vmem:[#allocation7 + $0xd58] sm:$0xff] }
 0x2c3   : > { %6902 = vmatprep.subr.bf16.mxu0 %v6901_v46  ;;  %v6917_v46 = vpack.c.bf16 %v2354_v10, %v2350_v9  ;;  %v3192_v5 = vld [vmem:[#allocation7 + $0xca8] sm:$0xff]  ;;  %v3190_v9 = vld [vmem:[#allocation7 + $0xc98] sm:$0xff] }
 0x2c4   : > { %v3194_v10 = vld [vmem:[#allocation7 + $0xcb8] sm:$0xff] }
 0x2c5   : > { %6808 = vmatpush1.bf16.msra.mxu1 %v6807_v2  ;;  %v6823_v2 = vpack.c.bf16 %v2351_v12, %v2347_v11  ;;  %v3187_v11 = vld [vmem:[#allocation7 + $0xc80] sm:$0xff]  ;;  %v3218_v20 = vld [vmem:[#allocation7 + $0xd78] sm:$0xff] }
 0x2c6   : > { %6904 = vmatpush1.bf16.msra.mxu0 %v6903_v17  ;;  %6810 = vmatprep.subr.bf16.mxu1 %v6809_v45  ;;  %v6919_v17 = vpack.c.bf16 %v2353_v54, %v2349_v1  ;;  %v6825_v45 = vpack.c.bf16 %v2360_v15, %v2356_v55  ;;  %v3191_v12 = vld [vmem:[#allocation7 + $0xca0] sm:$0xff]  ;;  %v3189_v1 = vld [vmem:[#allocation7 + $0xc90] sm:$0xff]  ;;  %v3196_v55 = vld [vmem:[#allocation7 + $0xcc8] sm:$0xff] }
 0x2c7   : > { %6906 = vmatprep.subr.bf16.mxu0 %v6905_v27  ;;  %v6921_v27 = vpack.c.bf16 %v2362_v56, %v2358_v16  ;;  %v3193_v54 = vld [vmem:[#allocation7 + $0xcb0] sm:$0xff]  ;;  %v3200_v15 = vld [vmem:[#allocation7 + $0xce8] sm:$0xff]  ;;  %v3198_v16 = vld [vmem:[#allocation7 + $0xcd8] sm:$0xff]  ;;  %v6935_v56 = vpack.c.bf16 %v3191_v12, %v3187_v11 }
 0x2c8   : > { %v3221_v11 = vld [vmem:[#allocation7 + $0xd90] sm:$0xff] }
 0x2c9   : > { %6812 = vmatpush1.bf16.msra.mxu1 %v6811_v14  ;;  %v6827_v14 = vpack.c.bf16 %v2359_v36, %v2355_v24  ;;  %v3199_v24 = vld [vmem:[#allocation7 + $0xce0] sm:$0xff]  ;;  %v3197_v36 = vld [vmem:[#allocation7 + $0xcd0] sm:$0xff] }
 0x2ca   : > { %6908 = vmatpush1.bf16.msra.mxu0 %v6907_v32  ;;  %6814 = vmatprep.subr.bf16.mxu1 %v6813_v35  ;;  %v6923_v32 = vpack.c.bf16 %v2361_v43, %v2357_v25  ;;  %v6925_v35 = vpack.c.bf16 %v3176_v7, %v3172_v28  ;;  %v3208_v43 = vld [vmem:[#allocation7 + $0xd28] sm:$0xff]  ;;  %v3206_v28 = vld [vmem:[#allocation7 + $0xd18] sm:$0xff] }
 0x2cb   : > { %6910 = vmatprep.subr.bf16.mxu0 %v6909_v41  ;;  %v3173_v41 = vld [vmem:[#allocation7 + $0xc10] sm:$0xff]  ;;  %v3210_v7 = vld [vmem:[#allocation7 + $0xd38] sm:$0xff] }
 0x2cc   : > { %v7037_v60 = vpack.c.bf16 %v3210_v7, %v3206_v28 }
 0x2cd   : > { %6816 = vmatpush1.bf16.msra.mxu1 %v6815_v52  ;;  %v3186_v52 = vld [vmem:[#allocation7 + $0xc78] sm:$0xff] }
 0x2ce   : > { %6912 = vmatpush1.bf16.msra.mxu0 %v6911_v53  ;;  %6818 = vmatprep.subr.bf16.mxu1 %v6817_v22  ;;  %v7023_v53 = vpack.c.bf16 %v3177_v39, %v3173_v41  ;;  %v3179_v22 = vld [vmem:[#allocation7 + $0xc40] sm:$0xff]  ;;  %v7025_v8 = vpack.c.bf16 %v3186_v52, %v3182_v49  ;;  %v3212_v41 = vld [vmem:[#allocation7 + $0xd48] sm:$0xff] }
 0x2cf   : > { %6914 = vmatprep.subr.bf16.mxu0 %v6913_v3  ;;  %v3185_v3 = vld [vmem:[#allocation7 + $0xc70] sm:$0xff]  ;;  %v3216_v39 = vld [vmem:[#allocation7 + $0xd68] sm:$0xff] }
 0x2d0   : > { %v6945_v52 = vpack.c.bf16 %v3216_v39, %v3212_v41  ;;  %v3246_v41 = vld [vmem:[#allocation7 + $0xe58] sm:$0xff] }
 0x2d1   : > { %6820 = vmatpush1.bf16.msra.mxu1 %v6819_v30  ;;  %v6931_v30 = vpack.c.bf16 %v3183_v51, %v3179_v22  ;;  %v3215_v22 = vld [vmem:[#allocation7 + $0xd60] sm:$0xff]  ;;  %v3213_v51 = vld [vmem:[#allocation7 + $0xd50] sm:$0xff]  ;;  %v3250_v39 = vld [vmem:[#allocation7 + $0xe78] sm:$0xff] }
 0x2d2   : > { %6916 = vmatpush1.bf16.msra.mxu0 %v6915_v48  ;;  %6822 = vmatprep.subr.bf16.mxu1 %v6821_v62  ;;  %v7027_v48 = vpack.c.bf16 %v3185_v3, %v3181_v61  ;;  %v6933_v62 = vpack.c.bf16 %v3192_v5, %v3188_v4  ;;  %v7041_v61 = vpack.c.bf16 %v3218_v20, %v3214_v42  ;;  %v3220_v3 = vld [vmem:[#allocation7 + $0xd88] sm:$0xff]  ;;  %v3222_v5 = vld [vmem:[#allocation7 + $0xd98] sm:$0xff] }
 0x2d3   : > { %6918 = vmatprep.subr.bf16.mxu0 %v6917_v46  ;;  %v7029_v46 = vpack.c.bf16 %v3194_v10, %v3190_v9  ;;  %v3224_v4 = vld [vmem:[#allocation7 + $0xda8] sm:$0xff] }
 0x2d5   : > { %6824 = vmatpush1.bf16.msra.mxu1 %v6823_v2  ;;  %v7031_v2 = vpack.c.bf16 %v3193_v54, %v3189_v1  ;;  %v3225_v1 = vld [vmem:[#allocation7 + $0xdb0] sm:$0xff]  ;;  %v3232_v54 = vld [vmem:[#allocation7 + $0xde8] sm:$0xff] }
 0x2d6   : > { %6920 = vmatpush1.bf16.msra.mxu0 %v6919_v17  ;;  %6826 = vmatprep.subr.bf16.mxu1 %v6825_v45  ;;  %v6937_v17 = vpack.c.bf16 %v3200_v15, %v3196_v55  ;;  %v3195_v45 = vld [vmem:[#allocation7 + $0xcc0] sm:$0xff]  ;;  %v3230_v55 = vld [vmem:[#allocation7 + $0xdd8] sm:$0xff] }
 0x2d7   : > { %6922 = vmatprep.subr.bf16.mxu0 %v6921_v27  ;;  %v3204_v27 = vld [vmem:[#allocation7 + $0xd08] sm:$0xff]  ;;  %v6939_v31 = vpack.c.bf16 %v3199_v24, %v3195_v45  ;;  %v3234_v15 = vld [vmem:[#allocation7 + $0xdf8] sm:$0xff]  ;;  %v3229_v45 = vld [vmem:[#allocation7 + $0xdd0] sm:$0xff] }
 0x2d8   : > { %v7049_v24 = vpack.c.bf16 %v3234_v15, %v3230_v55 }
 0x2d9   : > { %6828 = vmatpush1.bf16.msra.mxu1 %v6827_v14  ;;  %v6941_v14 = vpack.c.bf16 %v3208_v43, %v3204_v27  ;;  %v3238_v27 = vld [vmem:[#allocation7 + $0xe18] sm:$0xff] }
 0x2da   : > { %6924 = vmatpush1.bf16.msra.mxu0 %v6923_v32  ;;  %6926 = vmatprep.subr.bf16.mxu1 %v6925_v35  ;;  %v3203_v32 = vld [vmem:[#allocation7 + $0xd00] sm:$0xff]  ;;  %v3242_v43 = vld [vmem:[#allocation7 + $0xe38] sm:$0xff] }
 0x2db   : > { %7022 = vmatprep.subr.bf16.mxu0 %v7021_v33  ;;  %v3207_v35 = vld [vmem:[#allocation7 + $0xd20] sm:$0xff]  ;;  %v3209_v33 = vld [vmem:[#allocation7 + $0xd30] sm:$0xff] }
 0x2dc   : > { %2997 = vmatmul.mubr.f32.vlgmr.msra.gmra.mrb[6].mxu1 %v9328_v6  ;;  %v7039_v49 = vpack.c.bf16 %v3209_v33, %v3205_v40  ;;  %v3241_v40 = vld [vmem:[#allocation7 + $0xe30] sm:$0xff]  ;;  %v3248_v33 = vld [vmem:[#allocation7 + $0xe68] sm:$0xff] }
 0x2dd   : > { %3139 = vmatmul.mubr.f32.vlgmr.msra.gmra.mrb[12].mxu0 %v9328_v6  ;;  %6928 = vmatpush1.bf16.msra.mxu1 %v6927_v47  ;;  %v3202_v6 = vld [vmem:[#allocation7 + $0xcf8] sm:$0xff]  ;;  %v6943_v47 = vpack.c.bf16 %v3207_v35, %v3203_v32  ;;  %v3237_v32 = vld [vmem:[#allocation7 + $0xe10] sm:$0xff]  ;;  %v7053_v35 = vpack.c.bf16 %v3242_v43, %v3238_v27 }
 0x2de   : > { %3427 = vmatprep.mubr.f32.mxu1 %v9352_v37  ;;  %7024 = vmatpush1.bf16.msra.mxu0 %v7023_v53  ;;  %v7033_v25 = vpack.c.bf16 %v3202_v6, %v3198_v16  ;;  %v3211_v53 = vld [vmem:[#allocation7 + $0xd40] sm:$0xff]  ;;  %v7047_v6 = vpack.c.bf16 %v3225_v1, %v3221_v11  ;;  %v7055_v20 = vpack.c.bf16 %v3241_v40, %v3237_v32  ;;  %v3257_v11 = vld [vmem:[#allocation7 + $0xeb0] sm:$0xff]  ;;  %v3264_v1 = vld [vmem:[#allocation7 + $0xee8] sm:$0xff] }
 0x2df   : > { %3569 = vmatprep.mubr.f32.mxu0 %v9352_v37  ;;  %6930 = vmatprep.subr.bf16.mxu1 %v6929_v57  ;;  %v3201_v37 = vld [vmem:[#allocation7 + $0xcf0] sm:$0xff]  ;;  %v6947_v9 = vpack.c.bf16 %v3215_v22, %v3211_v53  ;;  %v7057_v22 = vpack.c.bf16 %v3250_v39, %v3246_v41  ;;  %v3280_v40 = vld [vmem:[#allocation7 + $0xf68] sm:$0xff] }
 0x2e0   : > { %7026 = vmatprep.subr.bf16.mxu0 %v7025_v8  ;;  %v7035_v44 = vpack.c.bf16 %v3201_v37, %v3197_v36  ;;  %v3217_v57 = vld [vmem:[#allocation7 + $0xd70] sm:$0xff]  ;;  %v3226_v8 = vld [vmem:[#allocation7 + $0xdb8] sm:$0xff]  ;;  %v3240_v37 = vld [vmem:[#allocation7 + $0xe28] sm:$0xff] }
 0x2e1   : > { %6932 = vmatpush1.bf16.msra.mxu1 %v6931_v30  ;;  %v7043_v10 = vpack.c.bf16 %v3217_v57, %v3213_v51  ;;  %v6949_v30 = vpack.c.bf16 %v3224_v4, %v3220_v3  ;;  %v7045_v12 = vpack.c.bf16 %v3226_v8, %v3222_v5  ;;  %v3233_v36 = vld [vmem:[#allocation7 + $0xdf0] sm:$0xff]  ;;  %v3256_v57 = vld [vmem:[#allocation7 + $0xea8] sm:$0xff]  ;;  %v3254_v3 = vld [vmem:[#allocation7 + $0xe98] sm:$0xff] }
 0x2e2   : > { %7028 = vmatpush1.bf16.msra.mxu0 %v7027_v48  ;;  %6934 = vmatprep.subr.bf16.mxu1 %v6933_v62  ;;  %v3219_v48 = vld [vmem:[#allocation7 + $0xd80] sm:$0xff]  ;;  %v7051_v7 = vpack.c.bf16 %v3233_v36, %v3229_v45  ;;  %v3245_v53 = vld [vmem:[#allocation7 + $0xe50] sm:$0xff]  ;;  %v3258_v4 = vld [vmem:[#allocation7 + $0xeb8] sm:$0xff] }
 0x2e3   : > { %7030 = vmatprep.subr.bf16.mxu0 %v7029_v46  ;;  %v3223_v62 = vld [vmem:[#allocation7 + $0xda0] sm:$0xff]  ;;  %v3228_v46 = vld [vmem:[#allocation7 + $0xdc8] sm:$0xff]  ;;  %v3249_v51 = vld [vmem:[#allocation7 + $0xe70] sm:$0xff] }
 0x2e4   : > { %v6951_v16 = vpack.c.bf16 %v3223_v62, %v3219_v48  ;;  %v7059_v8 = vpack.c.bf16 %v3249_v51, %v3245_v53  ;;  %v3253_v48 = vld [vmem:[#allocation7 + $0xe90] sm:$0xff]  ;;  %v7061_v62 = vpack.c.bf16 %v3258_v4, %v3254_v3  ;;  %v3272_v36 = vld [vmem:[#allocation7 + $0xf28] sm:$0xff] }
 0x2e5   : > { %6936 = vmatpush1.bf16.msra.mxu1 %v6935_v56  ;;  %v6953_v56 = vpack.c.bf16 %v3232_v54, %v3228_v46  ;;  %v3262_v46 = vld [vmem:[#allocation7 + $0xed8] sm:$0xff]  ;;  %v7063_v15 = vpack.c.bf16 %v3257_v11, %v3253_v48  ;;  %v3265_v45 = vld [vmem:[#allocation7 + $0xef0] sm:$0xff]  ;;  %v3288_v51 = vld [vmem:[#allocation7 + $0xfa8] sm:$0xff] }
 0x2e6   : > { %7032 = vmatpush1.bf16.msra.mxu0 %v7031_v2  ;;  %6938 = vmatprep.subr.bf16.mxu1 %v6937_v17  ;;  %v3227_v2 = vld [vmem:[#allocation7 + $0xdc0] sm:$0xff]  ;;  %v3266_v54 = vld [vmem:[#allocation7 + $0xef8] sm:$0xff]  ;;  %v3273_v32 = vld [vmem:[#allocation7 + $0xf30] sm:$0xff] }
 0x2e7   : > { %7034 = vmatprep.subr.bf16.mxu0 %v7033_v25  ;;  %v3231_v17 = vld [vmem:[#allocation7 + $0xde0] sm:$0xff]  ;;  %v3236_v25 = vld [vmem:[#allocation7 + $0xe08] sm:$0xff]  ;;  %v3281_v53 = vld [vmem:[#allocation7 + $0xf70] sm:$0xff] }
 0x2e8   : > { %v6955_v28 = vpack.c.bf16 %v3231_v17, %v3227_v2  ;;  %v3261_v2 = vld [vmem:[#allocation7 + $0xed0] sm:$0xff]  ;;  %v7065_v17 = vpack.c.bf16 %v3266_v54, %v3262_v46  ;;  %v3296_v11 = vld [vmem:[#allocation7 + $0xfe8] sm:$0xff] }
 0x2e9   : > { %6940 = vmatpush1.bf16.msra.mxu1 %v6939_v31  ;;  %v6957_v31 = vpack.c.bf16 %v3240_v37, %v3236_v25  ;;  %v3270_v25 = vld [vmem:[#allocation7 + $0xf18] sm:$0xff]  ;;  %v7067_v43 = vpack.c.bf16 %v3265_v45, %v3261_v2  ;;  %v3289_v48 = vld [vmem:[#allocation7 + $0xfb0] sm:$0xff]  ;;  %v3304_v45 = vld [vmem:[#allocation7 + $0x1028] sm:$0xff] }
 0x2ea   : > { %7036 = vmatpush1.bf16.msra.mxu0 %v7035_v44  ;;  %6942 = vmatprep.subr.bf16.mxu1 %v6941_v14  ;;  %v3235_v44 = vld [vmem:[#allocation7 + $0xe00] sm:$0xff]  ;;  %v3274_v37 = vld [vmem:[#allocation7 + $0xf38] sm:$0xff]  ;;  %v3297_v2 = vld [vmem:[#allocation7 + $0xff0] sm:$0xff] }
 0x2eb   : > { %7038 = vmatprep.subr.bf16.mxu0 %v7037_v60  ;;  %v3239_v14 = vld [vmem:[#allocation7 + $0xe20] sm:$0xff]  ;;  %v3244_v60 = vld [vmem:[#allocation7 + $0xe48] sm:$0xff] }
 0x2ec   : > { %v6959_v42 = vpack.c.bf16 %v3239_v14, %v3235_v44  ;;  %v3269_v44 = vld [vmem:[#allocation7 + $0xf10] sm:$0xff]  ;;  %v7069_v14 = vpack.c.bf16 %v3274_v37, %v3270_v25 }
 0x2ed   : > { %6944 = vmatpush1.bf16.msra.mxu1 %v6943_v47  ;;  %v6961_v47 = vpack.c.bf16 %v3248_v33, %v3244_v60  ;;  %v3278_v60 = vld [vmem:[#allocation7 + $0xf58] sm:$0xff]  ;;  %v7071_v39 = vpack.c.bf16 %v3273_v32, %v3269_v44  ;;  %v3305_v44 = vld [vmem:[#allocation7 + $0x1030] sm:$0xff]  ;;  %v3312_v32 = vld [vmem:[#allocation7 + $0x1068] sm:$0xff] }
 0x2ee   : > { %7040 = vmatpush1.bf16.msra.mxu0 %v7039_v49  ;;  %6946 = vmatprep.subr.bf16.mxu1 %v6945_v52  ;;  %v3243_v49 = vld [vmem:[#allocation7 + $0xe40] sm:$0xff]  ;;  %v3282_v33 = vld [vmem:[#allocation7 + $0xf78] sm:$0xff] }
 0x2ef   : > { %7042 = vmatprep.subr.bf16.mxu0 %v7041_v61  ;;  %v3247_v52 = vld [vmem:[#allocation7 + $0xe60] sm:$0xff]  ;;  %v3252_v61 = vld [vmem:[#allocation7 + $0xe88] sm:$0xff] }
 0x2f0   : > { %v6963_v5 = vpack.c.bf16 %v3247_v52, %v3243_v49  ;;  %v3277_v49 = vld [vmem:[#allocation7 + $0xf50] sm:$0xff]  ;;  %v7073_v52 = vpack.c.bf16 %v3282_v33, %v3278_v60 }
 0x2f1   : > { %6948 = vmatpush1.bf16.msra.mxu1 %v6947_v9  ;;  %v6965_v9 = vpack.c.bf16 %v3256_v57, %v3252_v61  ;;  %v3286_v61 = vld [vmem:[#allocation7 + $0xf98] sm:$0xff]  ;;  %v7075_v4 = vpack.c.bf16 %v3281_v53, %v3277_v49  ;;  %v3313_v49 = vld [vmem:[#allocation7 + $0x1070] sm:$0xff]  ;;  %v3320_v53 = vld [vmem:[#allocation7 + $0x10a8] sm:$0xff] }
 0x2f2   : > { %7044 = vmatpush1.bf16.msra.mxu0 %v7043_v10  ;;  %6950 = vmatprep.subr.bf16.mxu1 %v6949_v30  ;;  %v3251_v10 = vld [vmem:[#allocation7 + $0xe80] sm:$0xff]  ;;  %v3290_v57 = vld [vmem:[#allocation7 + $0xfb8] sm:$0xff] }
 0x2f3   : > { %7046 = vmatprep.subr.bf16.mxu0 %v7045_v12  ;;  %v3255_v30 = vld [vmem:[#allocation7 + $0xea0] sm:$0xff]  ;;  %v3260_v12 = vld [vmem:[#allocation7 + $0xec8] sm:$0xff] }
 0x2f4   : > { %v6967_v55 = vpack.c.bf16 %v3255_v30, %v3251_v10  ;;  %v3285_v10 = vld [vmem:[#allocation7 + $0xf90] sm:$0xff]  ;;  %v7077_v30 = vpack.c.bf16 %v3290_v57, %v3286_v61 }
 0x2f5   : > { %6952 = vmatpush1.bf16.msra.mxu1 %v6951_v16  ;;  %v6969_v16 = vpack.c.bf16 %v3264_v1, %v3260_v12  ;;  %v3294_v12 = vld [vmem:[#allocation7 + $0xfd8] sm:$0xff]  ;;  %v7079_v54 = vpack.c.bf16 %v3289_v48, %v3285_v10  ;;  %v3321_v10 = vld [vmem:[#allocation7 + $0x10b0] sm:$0xff]  ;;  %v3328_v48 = vld [vmem:[#allocation7 + $0x10e8] sm:$0xff] }
 0x2f6   : > { %7048 = vmatpush1.bf16.msra.mxu0 %v7047_v6  ;;  %6954 = vmatprep.subr.bf16.mxu1 %v6953_v56  ;;  %v3259_v6 = vld [vmem:[#allocation7 + $0xec0] sm:$0xff]  ;;  %v3298_v1 = vld [vmem:[#allocation7 + $0xff8] sm:$0xff] }
 0x2f7   : > { %7050 = vmatprep.subr.bf16.mxu0 %v7049_v24  ;;  %v3263_v56 = vld [vmem:[#allocation7 + $0xee0] sm:$0xff]  ;;  %v3268_v24 = vld [vmem:[#allocation7 + $0xf08] sm:$0xff] }
 0x2f8   : > { %v6971_v27 = vpack.c.bf16 %v3263_v56, %v3259_v6  ;;  %v3293_v6 = vld [vmem:[#allocation7 + $0xfd0] sm:$0xff]  ;;  %v7081_v56 = vpack.c.bf16 %v3298_v1, %v3294_v12 }
 0x2f9   : > { %6956 = vmatpush1.bf16.msra.mxu1 %v6955_v28  ;;  %v6973_v28 = vpack.c.bf16 %v3272_v36, %v3268_v24  ;;  %v3302_v24 = vld [vmem:[#allocation7 + $0x1018] sm:$0xff]  ;;  %v7083_v37 = vpack.c.bf16 %v3297_v2, %v3293_v6  ;;  %v3332_v6 = vld [vmem:[#allocation7 + $0x1108] sm:$0xff] }
 0x2fa   : > { %7052 = vmatpush1.bf16.msra.mxu0 %v7051_v7  ;;  %6958 = vmatprep.subr.bf16.mxu1 %v6957_v31  ;;  %v3267_v7 = vld [vmem:[#allocation7 + $0xf00] sm:$0xff]  ;;  %v3306_v36 = vld [vmem:[#allocation7 + $0x1038] sm:$0xff] }
 0x2fb   : > { %7054 = vmatprep.subr.bf16.mxu0 %v7053_v35  ;;  %v3271_v31 = vld [vmem:[#allocation7 + $0xf20] sm:$0xff]  ;;  %v3276_v35 = vld [vmem:[#allocation7 + $0xf48] sm:$0xff]  ;;  %v3334_v2 = vld [vmem:[#allocation7 + $0x1118] sm:$0xff] }
 0x2fc   : > { %v6975_v41 = vpack.c.bf16 %v3271_v31, %v3267_v7  ;;  %v3301_v7 = vld [vmem:[#allocation7 + $0x1010] sm:$0xff]  ;;  %v7085_v31 = vpack.c.bf16 %v3306_v36, %v3302_v24 }
 0x2fd   : > { %6960 = vmatpush1.bf16.msra.mxu1 %v6959_v42  ;;  %v6977_v42 = vpack.c.bf16 %v3280_v40, %v3276_v35  ;;  %v3310_v35 = vld [vmem:[#allocation7 + $0x1058] sm:$0xff]  ;;  %v7087_v33 = vpack.c.bf16 %v3305_v44, %v3301_v7  ;;  %v3340_v7 = vld [vmem:[#allocation7 + $0x1148] sm:$0xff] }
 0x2fe   : > { %7056 = vmatpush1.bf16.msra.mxu0 %v7055_v20  ;;  %6962 = vmatprep.subr.bf16.mxu1 %v6961_v47  ;;  %v3275_v20 = vld [vmem:[#allocation7 + $0xf40] sm:$0xff]  ;;  %v3314_v40 = vld [vmem:[#allocation7 + $0x1078] sm:$0xff] }
 0x2ff   : > { %7058 = vmatprep.subr.bf16.mxu0 %v7057_v22  ;;  %v3279_v47 = vld [vmem:[#allocation7 + $0xf60] sm:$0xff]  ;;  %v3284_v22 = vld [vmem:[#allocation7 + $0xf88] sm:$0xff]  ;;  %v3342_v44 = vld [vmem:[#allocation7 + $0x1158] sm:$0xff] }
 0x300   : > { %v6979_v3 = vpack.c.bf16 %v3279_v47, %v3275_v20  ;;  %v3309_v20 = vld [vmem:[#allocation7 + $0x1050] sm:$0xff]  ;;  %v7089_v47 = vpack.c.bf16 %v3314_v40, %v3310_v35 }
 0x301   : > { %6964 = vmatpush1.bf16.msra.mxu1 %v6963_v5  ;;  %v6981_v5 = vpack.c.bf16 %v3288_v51, %v3284_v22  ;;  %v3318_v22 = vld [vmem:[#allocation7 + $0x1098] sm:$0xff]  ;;  %v7091_v57 = vpack.c.bf16 %v3313_v49, %v3309_v20  ;;  %v3348_v20 = vld [vmem:[#allocation7 + $0x1188] sm:$0xff] }
 0x302   : > { %7060 = vmatpush1.bf16.msra.mxu0 %v7059_v8  ;;  %6966 = vmatprep.subr.bf16.mxu1 %v6965_v9  ;;  %v3283_v8 = vld [vmem:[#allocation7 + $0xf80] sm:$0xff]  ;;  %v3322_v51 = vld [vmem:[#allocation7 + $0x10b8] sm:$0xff] }
 0x303   : > { %7062 = vmatprep.subr.bf16.mxu0 %v7061_v62  ;;  %v3287_v9 = vld [vmem:[#allocation7 + $0xfa0] sm:$0xff]  ;;  %v3292_v62 = vld [vmem:[#allocation7 + $0xfc8] sm:$0xff]  ;;  %v3350_v49 = vld [vmem:[#allocation7 + $0x1198] sm:$0xff] }
 0x304   : > { %v6983_v46 = vpack.c.bf16 %v3287_v9, %v3283_v8  ;;  %v3317_v8 = vld [vmem:[#allocation7 + $0x1090] sm:$0xff]  ;;  %v7093_v9 = vpack.c.bf16 %v3322_v51, %v3318_v22 }
 0x305   : > { %6968 = vmatpush1.bf16.msra.mxu1 %v6967_v55  ;;  %v6985_v55 = vpack.c.bf16 %v3296_v11, %v3292_v62  ;;  %v3326_v62 = vld [vmem:[#allocation7 + $0x10d8] sm:$0xff]  ;;  %v7095_v12 = vpack.c.bf16 %v3321_v10, %v3317_v8  ;;  %v3356_v8 = vld [vmem:[#allocation7 + $0x11c8] sm:$0xff] }
 0x306   : > { %7064 = vmatpush1.bf16.msra.mxu0 %v7063_v15  ;;  %6970 = vmatprep.subr.bf16.mxu1 %v6969_v16  ;;  %v3291_v15 = vld [vmem:[#allocation7 + $0xfc0] sm:$0xff]  ;;  %v3330_v11 = vld [vmem:[#allocation7 + $0x10f8] sm:$0xff] }
 0x307   : > { %7066 = vmatprep.subr.bf16.mxu0 %v7065_v17  ;;  %v3295_v16 = vld [vmem:[#allocation7 + $0xfe0] sm:$0xff]  ;;  %v3300_v17 = vld [vmem:[#allocation7 + $0x1008] sm:$0xff]  ;;  %v3358_v10 = vld [vmem:[#allocation7 + $0x11d8] sm:$0xff] }
 0x308   : > { %v6987_v25 = vpack.c.bf16 %v3295_v16, %v3291_v15  ;;  %v7097_v15 = vpack.c.bf16 %v3330_v11, %v3326_v62  ;;  %v3329_v16 = vld [vmem:[#allocation7 + $0x10f0] sm:$0xff] }
 0x309   : > { %6972 = vmatpush1.bf16.msra.mxu1 %v6971_v27  ;;  %v6989_v27 = vpack.c.bf16 %v3304_v45, %v3300_v17  ;;  %v3338_v17 = vld [vmem:[#allocation7 + $0x1138] sm:$0xff] }
 0x30a   : > { %7068 = vmatpush1.bf16.msra.mxu0 %v7067_v43  ;;  %6974 = vmatprep.subr.bf16.mxu1 %v6973_v28  ;;  %v3299_v43 = vld [vmem:[#allocation7 + $0x1000] sm:$0xff] }
 0x30b   : > { %7070 = vmatprep.subr.bf16.mxu0 %v7069_v14  ;;  %v3303_v28 = vld [vmem:[#allocation7 + $0x1020] sm:$0xff]  ;;  %v3308_v14 = vld [vmem:[#allocation7 + $0x1048] sm:$0xff] }
 0x30c   : > { %v6991_v60 = vpack.c.bf16 %v3303_v28, %v3299_v43  ;;  %v7101_v43 = vpack.c.bf16 %v3338_v17, %v3334_v2  ;;  %v3337_v28 = vld [vmem:[#allocation7 + $0x1130] sm:$0xff] }
 0x30d   : > { %6976 = vmatpush1.bf16.msra.mxu1 %v6975_v41  ;;  %v6993_v41 = vpack.c.bf16 %v3312_v32, %v3308_v14  ;;  %v3346_v14 = vld [vmem:[#allocation7 + $0x1178] sm:$0xff] }
 0x30e   : > { %7072 = vmatpush1.bf16.msra.mxu0 %v7071_v39  ;;  %6978 = vmatprep.subr.bf16.mxu1 %v6977_v42  ;;  %v3307_v39 = vld [vmem:[#allocation7 + $0x1040] sm:$0xff] }
 0x30f   : > { %7074 = vmatprep.subr.bf16.mxu0 %v7073_v52  ;;  %v3311_v42 = vld [vmem:[#allocation7 + $0x1060] sm:$0xff]  ;;  %v3316_v52 = vld [vmem:[#allocation7 + $0x1088] sm:$0xff] }
 0x310   : > { %v6995_v61 = vpack.c.bf16 %v3311_v42, %v3307_v39  ;;  %v7105_v39 = vpack.c.bf16 %v3346_v14, %v3342_v44  ;;  %v3345_v42 = vld [vmem:[#allocation7 + $0x1170] sm:$0xff]  ;;  %v3682_v14 = vld [vmem:[#allocation7 + $0x1240] sm:$0xff] }
 0x311   : > { %6980 = vmatpush1.bf16.msra.mxu1 %v6979_v3  ;;  %v6997_v3 = vpack.c.bf16 %v3320_v53, %v3316_v52  ;;  %v3354_v52 = vld [vmem:[#allocation7 + $0x11b8] sm:$0xff] }
 0x312   : > { %7076 = vmatpush1.bf16.msra.mxu0 %v7075_v4  ;;  %6982 = vmatprep.subr.bf16.mxu1 %v6981_v5  ;;  %v3315_v4 = vld [vmem:[#allocation7 + $0x1080] sm:$0xff] }
 0x313   : > { %7078 = vmatprep.subr.bf16.mxu0 %v7077_v30  ;;  %v3319_v5 = vld [vmem:[#allocation7 + $0x10a0] sm:$0xff]  ;;  %v3324_v30 = vld [vmem:[#allocation7 + $0x10c8] sm:$0xff] }
 0x314   : > { %v7001_v1 = vpack.c.bf16 %v3328_v48, %v3324_v30  ;;  %v3362_v30 = vld [vmem:[#allocation7 + $0x11f8] sm:$0xff] }
 0x315   : > { %6984 = vmatpush1.bf16.msra.mxu1 %v6983_v46  ;;  %v3323_v46 = vld [vmem:[#allocation7 + $0x10c0] sm:$0xff] }
 0x316   : > { %7080 = vmatpush1.bf16.msra.mxu0 %v7079_v54  ;;  %6986 = vmatprep.subr.bf16.mxu1 %v6985_v55  ;;  %v3327_v54 = vld [vmem:[#allocation7 + $0x10e0] sm:$0xff]  ;;  %v3325_v55 = vld [vmem:[#allocation7 + $0x10d0] sm:$0xff] }
 0x317   : > { %7082 = vmatprep.subr.bf16.mxu0 %v7081_v56  ;;  %v3336_v56 = vld [vmem:[#allocation7 + $0x1128] sm:$0xff]  ;;  %v7003_v45 = vpack.c.bf16 %v3327_v54, %v3323_v46  ;;  %v7099_v24 = vpack.c.bf16 %v3329_v16, %v3325_v55  ;;  %v7113_v46 = vpack.c.bf16 %v3362_v30, %v3358_v10  ;;  %v3361_v54 = vld [vmem:[#allocation7 + $0x11f0] sm:$0xff]  ;;  %v3677_v16 = vld [vmem:[#allocation7 + $0x1218] sm:$0xff] }
 0x318   : > { %v7005_v36 = vpack.c.bf16 %v3336_v56, %v3332_v6  ;;  %v3675_v55 = vld [vmem:[#allocation7 + $0x1208] sm:$0xff]  ;;  %v3681_v6 = vld [vmem:[#allocation7 + $0x1238] sm:$0xff]  ;;  %v3698_v30 = vld [vmem:[#allocation7 + $0x12c0] sm:$0xff] }
 0x319   : > { %6988 = vmatpush1.bf16.msra.mxu1 %v6987_v25  ;;  %v3331_v25 = vld [vmem:[#allocation7 + $0x1100] sm:$0xff] }
 0x31a   : > { %7084 = vmatpush1.bf16.msra.mxu0 %v7083_v37  ;;  %6990 = vmatprep.subr.bf16.mxu1 %v6989_v27  ;;  %v3335_v37 = vld [vmem:[#allocation7 + $0x1120] sm:$0xff]  ;;  %v3333_v27 = vld [vmem:[#allocation7 + $0x1110] sm:$0xff] }
 0x31b   : > { %7086 = vmatprep.subr.bf16.mxu0 %v7085_v31  ;;  %v3344_v31 = vld [vmem:[#allocation7 + $0x1168] sm:$0xff]  ;;  %v7007_v32 = vpack.c.bf16 %v3335_v37, %v3331_v25  ;;  %v7103_v35 = vpack.c.bf16 %v3337_v28, %v3333_v27  ;;  %v3676_v25 = vld [vmem:[#allocation7 + $0x1210] sm:$0xff] }
 0x31c   : > { %3428 = vmatmul.mubr.f32.vlgmr.msra.gmra.mrb[6].mxu1 %v9345_v18  ;;  %v7009_v40 = vpack.c.bf16 %v3344_v31, %v3340_v7  ;;  %v3680_v37 = vld [vmem:[#allocation7 + $0x1230] sm:$0xff]  ;;  %v3683_v27 = vld [vmem:[#allocation7 + $0x1248] sm:$0xff]  ;;  %v3685_v7 = vld [vmem:[#allocation7 + $0x1258] sm:$0xff] }
 0x31d   : > { %3570 = vmatmul.mubr.f32.vlgmr.msra.gmra.mrb[12].mxu0 %v9345_v18  ;;  %6992 = vmatpush1.bf16.msra.mxu1 %v6991_v60  ;;  %v6999_v18 = vpack.c.bf16 %v3319_v5, %v3315_v4  ;;  %v3339_v60 = vld [vmem:[#allocation7 + $0x1140] sm:$0xff]  ;;  %v7109_v4 = vpack.c.bf16 %v3354_v52, %v3350_v49  ;;  %v3353_v5 = vld [vmem:[#allocation7 + $0x11b0] sm:$0xff]  ;;  %v3689_v31 = vld [vmem:[#allocation7 + $0x1278] sm:$0xff]  ;;  %v7215_v44 = vpack.c.bf16 %v3680_v37, %v3676_v25 }
 0x31e   : > { %7088 = vmatpush1.bf16.msra.mxu0 %v7087_v33  ;;  %6994 = vmatprep.subr.bf16.mxu1 %v6993_v41  ;;  %v3343_v33 = vld [vmem:[#allocation7 + $0x1160] sm:$0xff]  ;;  %v3341_v41 = vld [vmem:[#allocation7 + $0x1150] sm:$0xff]  ;;  %v3721_v25 = vld [vmem:[#allocation7 + $0x1378] sm:$0xff] }
 0x31f   : > { %7090 = vmatprep.subr.bf16.mxu0 %v7089_v47  ;;  %3498 = vmatprep.mubr.f32.mxu1 %v8652_v0  ;;  %v3352_v47 = vld [vmem:[#allocation7 + $0x11a8] sm:$0xff]  ;;  %v7011_v53 = vpack.c.bf16 %v3343_v33, %v3339_v60  ;;  %v7107_v22 = vpack.c.bf16 %v3345_v42, %v3341_v41  ;;  %v3688_v60 = vld [vmem:[#allocation7 + $0x1270] sm:$0xff]  ;;  %v3693_v42 = vld [vmem:[#allocation7 + $0x1298] sm:$0xff] }
 0x320   : > { %3640 = vmatprep.mubr.f32.mxu0 %v8652_v0  ;;  %v7013_v51 = vpack.c.bf16 %v3352_v47, %v3348_v20  ;;  %v3691_v33 = vld [vmem:[#allocation7 + $0x1288] sm:$0xff]  ;;  %v3697_v20 = vld [vmem:[#allocation7 + $0x12b8] sm:$0xff] }
 0x321   : > { %6996 = vmatpush1.bf16.msra.mxu1 %v6995_v61  ;;  %v3347_v61 = vld [vmem:[#allocation7 + $0x1180] sm:$0xff]  ;;  %v3695_v41 = vld [vmem:[#allocation7 + $0x12a8] sm:$0xff] }
 0x322   : > { %7092 = vmatpush1.bf16.msra.mxu0 %v7091_v57  ;;  %6998 = vmatprep.subr.bf16.mxu1 %v6997_v3  ;;  %v3351_v57 = vld [vmem:[#allocation7 + $0x11a0] sm:$0xff]  ;;  %v3349_v3 = vld [vmem:[#allocation7 + $0x1190] sm:$0xff]  ;;  %v7125_v52 = vpack.c.bf16 %v3695_v41, %v3691_v33 }
 0x323   : > { %7094 = vmatprep.subr.bf16.mxu0 %v7093_v9  ;;  %v3360_v9 = vld [vmem:[#allocation7 + $0x11e8] sm:$0xff]  ;;  %v7015_v48 = vpack.c.bf16 %v3351_v57, %v3347_v61  ;;  %v7111_v62 = vpack.c.bf16 %v3353_v5, %v3349_v3  ;;  %v7221_v61 = vpack.c.bf16 %v3697_v20, %v3693_v42  ;;  %v3696_v57 = vld [vmem:[#allocation7 + $0x12b0] sm:$0xff]  ;;  %v3701_v5 = vld [vmem:[#allocation7 + $0x12d8] sm:$0xff] }
 0x324   : > { %v7017_v11 = vpack.c.bf16 %v3360_v9, %v3356_v8  ;;  %v3699_v3 = vld [vmem:[#allocation7 + $0x12c8] sm:$0xff]  ;;  %v3722_v42 = vld [vmem:[#allocation7 + $0x1380] sm:$0xff] }
 0x325   : > { %7000 = vmatpush1.bf16.msra.mxu1 %v6999_v18  ;;  %v3355_v18 = vld [vmem:[#allocation7 + $0x11c0] sm:$0xff] }
 0x326   : > { %7096 = vmatpush1.bf16.msra.mxu0 %v7095_v12  ;;  %7002 = vmatprep.subr.bf16.mxu1 %v7001_v1  ;;  %v3359_v12 = vld [vmem:[#allocation7 + $0x11e0] sm:$0xff]  ;;  %v3357_v1 = vld [vmem:[#allocation7 + $0x11d0] sm:$0xff] }
 0x327   : > { %7098 = vmatprep.subr.bf16.mxu0 %v7097_v15  ;;  %v3679_v15 = vld [vmem:[#allocation7 + $0x1228] sm:$0xff]  ;;  %v7019_v56 = vpack.c.bf16 %v3359_v12, %v3355_v18  ;;  %v7115_v2 = vpack.c.bf16 %v3361_v54, %v3357_v1  ;;  %v3709_v1 = vld [vmem:[#allocation7 + $0x1318] sm:$0xff]  ;;  %v3726_v20 = vld [vmem:[#allocation7 + $0x13a0] sm:$0xff] }
 0x328   : > { %v7117_v17 = vpack.c.bf16 %v3679_v15, %v3675_v55  ;;  %v3707_v18 = vld [vmem:[#allocation7 + $0x1308] sm:$0xff] }
 0x329   : > { %7004 = vmatpush1.bf16.msra.mxu1 %v7003_v45  ;;  %v3674_v45 = vld [vmem:[#allocation7 + $0x1200] sm:$0xff]  ;;  %v3711_v12 = vld [vmem:[#allocation7 + $0x1328] sm:$0xff] }
 0x32a   : > { %7100 = vmatpush1.bf16.msra.mxu0 %v7099_v24  ;;  %7006 = vmatprep.subr.bf16.mxu1 %v7005_v36  ;;  %v3678_v24 = vld [vmem:[#allocation7 + $0x1220] sm:$0xff]  ;;  %v7213_v36 = vpack.c.bf16 %v3681_v6, %v3677_v16  ;;  %v7133_v15 = vpack.c.bf16 %v3711_v12, %v3707_v18 }
 0x32b   : > { %7102 = vmatprep.subr.bf16.mxu0 %v7101_v43  ;;  %v3687_v43 = vld [vmem:[#allocation7 + $0x1268] sm:$0xff]  ;;  %v7119_v28 = vpack.c.bf16 %v3678_v24, %v3674_v45  ;;  %v3706_v16 = vld [vmem:[#allocation7 + $0x1300] sm:$0xff] }
 0x32c   : > { %v3710_v6 = vld [vmem:[#allocation7 + $0x1320] sm:$0xff]  ;;  %v3715_v45 = vld [vmem:[#allocation7 + $0x1348] sm:$0xff] }
 0x32d   : > { %7008 = vmatpush1.bf16.msra.mxu1 %v7007_v32  ;;  %v3686_v32 = vld [vmem:[#allocation7 + $0x1260] sm:$0xff]  ;;  %v3719_v24 = vld [vmem:[#allocation7 + $0x1368] sm:$0xff]  ;;  %v7135_v37 = vpack.c.bf16 %v3710_v6, %v3706_v16 }
 0x32e   : > { %7104 = vmatpush1.bf16.msra.mxu0 %v7103_v35  ;;  %7010 = vmatprep.subr.bf16.mxu1 %v7009_v40  ;;  %v3684_v35 = vld [vmem:[#allocation7 + $0x1250] sm:$0xff]  ;;  %v7121_v40 = vpack.c.bf16 %v3687_v43, %v3683_v27  ;;  %v7123_v47 = vpack.c.bf16 %v3686_v32, %v3682_v14  ;;  %v7137_v43 = vpack.c.bf16 %v3719_v24, %v3715_v45  ;;  %v3723_v32 = vld [vmem:[#allocation7 + $0x1388] sm:$0xff] }
 0x32f   : > { %7106 = vmatprep.subr.bf16.mxu0 %v7105_v39  ;;  %v7217_v39 = vpack.c.bf16 %v3689_v31, %v3685_v7  ;;  %v7219_v49 = vpack.c.bf16 %v3688_v60, %v3684_v35  ;;  %v3718_v7 = vld [vmem:[#allocation7 + $0x1360] sm:$0xff]  ;;  %v3716_v31 = vld [vmem:[#allocation7 + $0x1350] sm:$0xff]  ;;  %v3727_v35 = vld [vmem:[#allocation7 + $0x13a8] sm:$0xff] }
 0x330   : > { %v3720_v14 = vld [vmem:[#allocation7 + $0x1370] sm:$0xff]  ;;  %v3729_v60 = vld [vmem:[#allocation7 + $0x13b8] sm:$0xff]  ;;  %v3747_v16 = vld [vmem:[#allocation7 + $0x1448] sm:$0xff] }
 0x331   : > { %7012 = vmatpush1.bf16.msra.mxu1 %v7011_v53  ;;  %v3690_v53 = vld [vmem:[#allocation7 + $0x1280] sm:$0xff]  ;;  %v7235_v41 = vpack.c.bf16 %v3720_v14, %v3716_v31  ;;  %v3751_v6 = vld [vmem:[#allocation7 + $0x1468] sm:$0xff]  ;;  %v3757_v31 = vld [vmem:[#allocation7 + $0x1498] sm:$0xff] }
 0x332   : > { %7108 = vmatpush1.bf16.msra.mxu0 %v7107_v22  ;;  %7014 = vmatprep.subr.bf16.mxu1 %v7013_v51  ;;  %v3694_v22 = vld [vmem:[#allocation7 + $0x12a0] sm:$0xff]  ;;  %v3692_v51 = vld [vmem:[#allocation7 + $0x1290] sm:$0xff]  ;;  %v7153_v24 = vpack.c.bf16 %v3751_v6, %v3747_v16 }
 0x333   : > { %7110 = vmatprep.subr.bf16.mxu0 %v7109_v4  ;;  %v3703_v4 = vld [vmem:[#allocation7 + $0x12e8] sm:$0xff]  ;;  %v7127_v8 = vpack.c.bf16 %v3694_v22, %v3690_v53  ;;  %v7223_v9 = vpack.c.bf16 %v3696_v57, %v3692_v51  ;;  %v3733_v51 = vld [vmem:[#allocation7 + $0x13d8] sm:$0xff]  ;;  %v7143_v57 = vpack.c.bf16 %v3726_v20, %v3722_v42 }
 0x334   : > { %v7129_v10 = vpack.c.bf16 %v3703_v4, %v3699_v3  ;;  %v3731_v53 = vld [vmem:[#allocation7 + $0x13c8] sm:$0xff] }
 0x335   : > { %7016 = vmatpush1.bf16.msra.mxu1 %v7015_v48  ;;  %v3702_v48 = vld [vmem:[#allocation7 + $0x12e0] sm:$0xff]  ;;  %v3735_v22 = vld [vmem:[#allocation7 + $0x13e8] sm:$0xff] }
 0x336   : > { %7112 = vmatpush1.bf16.msra.mxu0 %v7111_v62  ;;  %7018 = vmatprep.subr.bf16.mxu1 %v7017_v11  ;;  %v3700_v62 = vld [vmem:[#allocation7 + $0x12d0] sm:$0xff]  ;;  %v7131_v54 = vpack.c.bf16 %v3702_v48, %v3698_v30  ;;  %v7145_v4 = vpack.c.bf16 %v3735_v22, %v3731_v53  ;;  %v3739_v30 = vld [vmem:[#allocation7 + $0x1408] sm:$0xff] }
 0x337   : > { %7114 = vmatprep.subr.bf16.mxu0 %v7113_v46  ;;  %v3713_v46 = vld [vmem:[#allocation7 + $0x1338] sm:$0xff]  ;;  %v3743_v48 = vld [vmem:[#allocation7 + $0x1428] sm:$0xff] }
 0x338   : > { %v7149_v12 = vpack.c.bf16 %v3743_v48, %v3739_v30  ;;  %v3763_v42 = vld [vmem:[#allocation7 + $0x14c8] sm:$0xff] }
 0x339   : > { %7020 = vmatpush1.bf16.msra.mxu1 %v7019_v56  ;;  %v3708_v56 = vld [vmem:[#allocation7 + $0x1310] sm:$0xff]  ;;  %v3767_v20 = vld [vmem:[#allocation7 + $0x14e8] sm:$0xff] }
 0x33a   : > { %7116 = vmatpush1.bf16.msra.mxu0 %v7115_v2  ;;  %7118 = vmatprep.subr.bf16.mxu1 %v7117_v17  ;;  %v7229_v2 = vpack.c.bf16 %v3713_v46, %v3709_v1  ;;  %v3712_v17 = vld [vmem:[#allocation7 + $0x1330] sm:$0xff]  ;;  %v3738_v1 = vld [vmem:[#allocation7 + $0x1400] sm:$0xff]  ;;  %v7161_v22 = vpack.c.bf16 %v3767_v20, %v3763_v42 }
 0x33b   : > { %7214 = vmatprep.subr.bf16.mxu0 %v7213_v36  ;;  %v3717_v36 = vld [vmem:[#allocation7 + $0x1358] sm:$0xff]  ;;  %v7231_v27 = vpack.c.bf16 %v3712_v17, %v3708_v56  ;;  %v3742_v46 = vld [vmem:[#allocation7 + $0x1420] sm:$0xff] }
 0x33c   : > { %3499 = vmatmul.mubr.f32.vlgmr.msra.gmra.mrb[6].mxu1 %v9363_v50  ;;  %v3749_v56 = vld [vmem:[#allocation7 + $0x1458] sm:$0xff]  ;;  %v7151_v17 = vpack.c.bf16 %v3742_v46, %v3738_v1  ;;  %v3779_v1 = vld [vmem:[#allocation7 + $0x1548] sm:$0xff] }
 0x33d   : > { %3641 = vmatmul.mubr.f32.vlgmr.msra.gmra.mrb[12].mxu0 %v9363_v50  ;;  %7120 = vmatpush1.bf16.msra.mxu1 %v7119_v28  ;;  %v3705_v50 = vld [vmem:[#allocation7 + $0x12f8] sm:$0xff]  ;;  %v3714_v28 = vld [vmem:[#allocation7 + $0x1340] sm:$0xff]  ;;  %v3783_v46 = vld [vmem:[#allocation7 + $0x1568] sm:$0xff] }
 0x33e   : > { %3930 = vmatprep.mubr.f32.mxu1 %v9372_v63  ;;  %7216 = vmatpush1.bf16.msra.mxu0 %v7215_v44  ;;  %v7225_v11 = vpack.c.bf16 %v3705_v50, %v3701_v5  ;;  %v7233_v44 = vpack.c.bf16 %v3721_v25, %v3717_v36  ;;  %v7139_v33 = vpack.c.bf16 %v3718_v7, %v3714_v28  ;;  %v3730_v5 = vld [vmem:[#allocation7 + $0x13c0] sm:$0xff]  ;;  %v3755_v28 = vld [vmem:[#allocation7 + $0x1488] sm:$0xff] }
 0x33f   : > { %4072 = vmatprep.mubr.f32.mxu0 %v9372_v63  ;;  %7122 = vmatprep.subr.bf16.mxu1 %v7121_v40  ;;  %v3704_v63 = vld [vmem:[#allocation7 + $0x12f0] sm:$0xff]  ;;  %v3725_v40 = vld [vmem:[#allocation7 + $0x1398] sm:$0xff]  ;;  %v3734_v50 = vld [vmem:[#allocation7 + $0x13e0] sm:$0xff]  ;;  %v7169_v6 = vpack.c.bf16 %v3783_v46, %v3779_v1 }
 0x340   : > { %7218 = vmatprep.subr.bf16.mxu0 %v7217_v39  ;;  %v7227_v55 = vpack.c.bf16 %v3704_v63, %v3700_v62  ;;  %v7141_v39 = vpack.c.bf16 %v3727_v35, %v3723_v32  ;;  %v3741_v62 = vld [vmem:[#allocation7 + $0x1418] sm:$0xff]  ;;  %v7147_v63 = vpack.c.bf16 %v3734_v50, %v3730_v5  ;;  %v3746_v36 = vld [vmem:[#allocation7 + $0x1440] sm:$0xff]  ;;  %v3759_v7 = vld [vmem:[#allocation7 + $0x14a8] sm:$0xff] }
 0x341   : > { %7124 = vmatpush1.bf16.msra.mxu1 %v7123_v47  ;;  %v3724_v47 = vld [vmem:[#allocation7 + $0x1390] sm:$0xff]  ;;  %v3750_v25 = vld [vmem:[#allocation7 + $0x1460] sm:$0xff]  ;;  %v7157_v35 = vpack.c.bf16 %v3759_v7, %v3755_v28  ;;  %v3771_v5 = vld [vmem:[#allocation7 + $0x1508] sm:$0xff] }
 0x342   : > { %7220 = vmatpush1.bf16.msra.mxu0 %v7219_v49  ;;  %7126 = vmatprep.subr.bf16.mxu1 %v7125_v52  ;;  %v7237_v49 = vpack.c.bf16 %v3729_v60, %v3725_v40  ;;  %v3728_v52 = vld [vmem:[#allocation7 + $0x13b0] sm:$0xff]  ;;  %v7155_v14 = vpack.c.bf16 %v3750_v25, %v3746_v36  ;;  %v3754_v40 = vld [vmem:[#allocation7 + $0x1480] sm:$0xff]  ;;  %v3775_v50 = vld [vmem:[#allocation7 + $0x1528] sm:$0xff] }
 0x343   : > { %7222 = vmatprep.subr.bf16.mxu0 %v7221_v61  ;;  %v3737_v61 = vld [vmem:[#allocation7 + $0x13f8] sm:$0xff]  ;;  %v7239_v3 = vpack.c.bf16 %v3728_v52, %v3724_v47  ;;  %v3758_v60 = vld [vmem:[#allocation7 + $0x14a0] sm:$0xff]  ;;  %v7165_v48 = vpack.c.bf16 %v3775_v50, %v3771_v5  ;;  %v3787_v36 = vld [vmem:[#allocation7 + $0x1588] sm:$0xff] }
 0x344   : > { %v3765_v47 = vld [vmem:[#allocation7 + $0x14d8] sm:$0xff]  ;;  %v7159_v52 = vpack.c.bf16 %v3758_v60, %v3754_v40  ;;  %v3791_v25 = vld [vmem:[#allocation7 + $0x15a8] sm:$0xff] }
 0x345   : > { %7128 = vmatpush1.bf16.msra.mxu1 %v7127_v8  ;;  %v3732_v8 = vld [vmem:[#allocation7 + $0x13d0] sm:$0xff]  ;;  %v7173_v7 = vpack.c.bf16 %v3791_v25, %v3787_v36  ;;  %v3795_v40 = vld [vmem:[#allocation7 + $0x15c8] sm:$0xff] }
 0x346   : > { %7224 = vmatpush1.bf16.msra.mxu0 %v7223_v9  ;;  %7130 = vmatprep.subr.bf16.mxu1 %v7129_v10  ;;  %v7241_v9 = vpack.c.bf16 %v3737_v61, %v3733_v51  ;;  %v3736_v10 = vld [vmem:[#allocation7 + $0x13f0] sm:$0xff]  ;;  %v3762_v51 = vld [vmem:[#allocation7 + $0x14c0] sm:$0xff]  ;;  %v3799_v60 = vld [vmem:[#allocation7 + $0x15e8] sm:$0xff] }
 0x347   : > { %7226 = vmatprep.subr.bf16.mxu0 %v7225_v11  ;;  %v3745_v11 = vld [vmem:[#allocation7 + $0x1438] sm:$0xff]  ;;  %v7243_v18 = vpack.c.bf16 %v3736_v10, %v3732_v8  ;;  %v3766_v61 = vld [vmem:[#allocation7 + $0x14e0] sm:$0xff]  ;;  %v7177_v20 = vpack.c.bf16 %v3799_v60, %v3795_v40 }
 0x348   : > { %v3773_v8 = vld [vmem:[#allocation7 + $0x1518] sm:$0xff]  ;;  %v7163_v10 = vpack.c.bf16 %v3766_v61, %v3762_v51  ;;  %v3803_v51 = vld [vmem:[#allocation7 + $0x1608] sm:$0xff]  ;;  %v3826_v60 = vld [vmem:[#allocation7 + $0x16c0] sm:$0xff] }
 0x349   : > { %7132 = vmatpush1.bf16.msra.mxu1 %v7131_v54  ;;  %v3740_v54 = vld [vmem:[#allocation7 + $0x1410] sm:$0xff]  ;;  %v3807_v61 = vld [vmem:[#allocation7 + $0x1628] sm:$0xff] }
 0x34a   : > { %7228 = vmatpush1.bf16.msra.mxu0 %v7227_v55  ;;  %7134 = vmatprep.subr.bf16.mxu1 %v7133_v15  ;;  %v7245_v55 = vpack.c.bf16 %v3745_v11, %v3741_v62  ;;  %v3744_v15 = vld [vmem:[#allocation7 + $0x1430] sm:$0xff]  ;;  %v3770_v62 = vld [vmem:[#allocation7 + $0x1500] sm:$0xff]  ;;  %v7181_v50 = vpack.c.bf16 %v3807_v61, %v3803_v51 }
 0x34b   : > { %7230 = vmatprep.subr.bf16.mxu0 %v7229_v2  ;;  %v3753_v2 = vld [vmem:[#allocation7 + $0x1478] sm:$0xff]  ;;  %v7247_v45 = vpack.c.bf16 %v3744_v15, %v3740_v54  ;;  %v3774_v11 = vld [vmem:[#allocation7 + $0x1520] sm:$0xff] }
 0x34c   : > { %v3781_v54 = vld [vmem:[#allocation7 + $0x1558] sm:$0xff]  ;;  %v7167_v15 = vpack.c.bf16 %v3774_v11, %v3770_v62  ;;  %v3811_v62 = vld [vmem:[#allocation7 + $0x1648] sm:$0xff]  ;;  %v3834_v61 = vld [vmem:[#allocation7 + $0x1700] sm:$0xff] }
 0x34d   : > { %7136 = vmatpush1.bf16.msra.mxu1 %v7135_v37  ;;  %v3748_v37 = vld [vmem:[#allocation7 + $0x1450] sm:$0xff]  ;;  %v3815_v11 = vld [vmem:[#allocation7 + $0x1668] sm:$0xff] }
 0x34e   : > { %7232 = vmatpush1.bf16.msra.mxu0 %v7231_v27  ;;  %7138 = vmatprep.subr.bf16.mxu1 %v7137_v43  ;;  %v7249_v27 = vpack.c.bf16 %v3753_v2, %v3749_v56  ;;  %v3752_v43 = vld [vmem:[#allocation7 + $0x1470] sm:$0xff]  ;;  %v3778_v56 = vld [vmem:[#allocation7 + $0x1540] sm:$0xff]  ;;  %v7185_v46 = vpack.c.bf16 %v3815_v11, %v3811_v62 }
 0x34f   : > { %7234 = vmatprep.subr.bf16.mxu0 %v7233_v44  ;;  %v3761_v44 = vld [vmem:[#allocation7 + $0x14b8] sm:$0xff]  ;;  %v7251_v32 = vpack.c.bf16 %v3752_v43, %v3748_v37  ;;  %v3782_v2 = vld [vmem:[#allocation7 + $0x1560] sm:$0xff] }
 0x350   : > { %v3789_v37 = vld [vmem:[#allocation7 + $0x1598] sm:$0xff]  ;;  %v7171_v43 = vpack.c.bf16 %v3782_v2, %v3778_v56  ;;  %v3819_v56 = vld [vmem:[#allocation7 + $0x1688] sm:$0xff]  ;;  %v3842_v11 = vld [vmem:[#allocation7 + $0x1740] sm:$0xff] }
 0x351   : > { %7140 = vmatpush1.bf16.msra.mxu1 %v7139_v33  ;;  %v3756_v33 = vld [vmem:[#allocation7 + $0x1490] sm:$0xff]  ;;  %v3823_v2 = vld [vmem:[#allocation7 + $0x16a8] sm:$0xff] }
 0x352   : > { %7236 = vmatpush1.bf16.msra.mxu0 %v7235_v41  ;;  %7142 = vmatprep.subr.bf16.mxu1 %v7141_v39  ;;  %v7253_v41 = vpack.c.bf16 %v3761_v44, %v3757_v31  ;;  %v3760_v39 = vld [vmem:[#allocation7 + $0x14b0] sm:$0xff]  ;;  %v3786_v31 = vld [vmem:[#allocation7 + $0x1580] sm:$0xff]  ;;  %v7189_v25 = vpack.c.bf16 %v3823_v2, %v3819_v56 }
 0x353   : > { %7238 = vmatprep.subr.bf16.mxu0 %v7237_v49  ;;  %v3769_v49 = vld [vmem:[#allocation7 + $0x14f8] sm:$0xff]  ;;  %v7255_v53 = vpack.c.bf16 %v3760_v39, %v3756_v33  ;;  %v3790_v44 = vld [vmem:[#allocation7 + $0x15a0] sm:$0xff] }
 0x354   : > { %v3797_v33 = vld [vmem:[#allocation7 + $0x15d8] sm:$0xff]  ;;  %v7175_v39 = vpack.c.bf16 %v3790_v44, %v3786_v31  ;;  %v3827_v31 = vld [vmem:[#allocation7 + $0x16c8] sm:$0xff]  ;;  %v3850_v2 = vld [vmem:[#allocation7 + $0x1780] sm:$0xff] }
 0x355   : > { %7144 = vmatpush1.bf16.msra.mxu1 %v7143_v57  ;;  %v3764_v57 = vld [vmem:[#allocation7 + $0x14d0] sm:$0xff]  ;;  %v3831_v44 = vld [vmem:[#allocation7 + $0x16e8] sm:$0xff] }
 0x356   : > { %7240 = vmatpush1.bf16.msra.mxu0 %v7239_v3  ;;  %7146 = vmatprep.subr.bf16.mxu1 %v7145_v4  ;;  %v7257_v3 = vpack.c.bf16 %v3769_v49, %v3765_v47  ;;  %v3768_v4 = vld [vmem:[#allocation7 + $0x14f0] sm:$0xff]  ;;  %v3794_v47 = vld [vmem:[#allocation7 + $0x15c0] sm:$0xff]  ;;  %v7193_v40 = vpack.c.bf16 %v3831_v44, %v3827_v31 }
 0x357   : > { %7242 = vmatprep.subr.bf16.mxu0 %v7241_v9  ;;  %v3777_v9 = vld [vmem:[#allocation7 + $0x1538] sm:$0xff]  ;;  %v7259_v30 = vpack.c.bf16 %v3768_v4, %v3764_v57  ;;  %v3798_v49 = vld [vmem:[#allocation7 + $0x15e0] sm:$0xff] }
 0x358   : > { %v3805_v57 = vld [vmem:[#allocation7 + $0x1618] sm:$0xff]  ;;  %v7179_v4 = vpack.c.bf16 %v3798_v49, %v3794_v47  ;;  %v3839_v47 = vld [vmem:[#allocation7 + $0x1728] sm:$0xff]  ;;  %v3858_v44 = vld [vmem:[#allocation7 + $0x17c0] sm:$0xff] }
 0x359   : > { %7148 = vmatpush1.bf16.msra.mxu1 %v7147_v63  ;;  %v3772_v63 = vld [vmem:[#allocation7 + $0x1510] sm:$0xff]  ;;  %v3837_v49 = vld [vmem:[#allocation7 + $0x1718] sm:$0xff] }
 0x35a   : > { %7244 = vmatpush1.bf16.msra.mxu0 %v7243_v18  ;;  %7150 = vmatprep.subr.bf16.mxu1 %v7149_v12  ;;  %v7261_v18 = vpack.c.bf16 %v3777_v9, %v3773_v8  ;;  %v3776_v12 = vld [vmem:[#allocation7 + $0x1530] sm:$0xff]  ;;  %v3802_v8 = vld [vmem:[#allocation7 + $0x1600] sm:$0xff] }
 0x35b   : > { %7246 = vmatprep.subr.bf16.mxu0 %v7245_v55  ;;  %v3785_v55 = vld [vmem:[#allocation7 + $0x1578] sm:$0xff]  ;;  %v7263_v16 = vpack.c.bf16 %v3776_v12, %v3772_v63  ;;  %v3806_v9 = vld [vmem:[#allocation7 + $0x1620] sm:$0xff] }
 0x35c   : > { %v3813_v63 = vld [vmem:[#allocation7 + $0x1658] sm:$0xff]  ;;  %v7183_v12 = vpack.c.bf16 %v3806_v9, %v3802_v8  ;;  %v3847_v8 = vld [vmem:[#allocation7 + $0x1768] sm:$0xff] }
 0x35d   : > { %7152 = vmatpush1.bf16.msra.mxu1 %v7151_v17  ;;  %v3780_v17 = vld [vmem:[#allocation7 + $0x1550] sm:$0xff]  ;;  %v3845_v9 = vld [vmem:[#allocation7 + $0x1758] sm:$0xff] }
 0x35e   : > { %7248 = vmatpush1.bf16.msra.mxu0 %v7247_v45  ;;  %7154 = vmatprep.subr.bf16.mxu1 %v7153_v24  ;;  %v7265_v45 = vpack.c.bf16 %v3785_v55, %v3781_v54  ;;  %v3784_v24 = vld [vmem:[#allocation7 + $0x1570] sm:$0xff]  ;;  %v3810_v54 = vld [vmem:[#allocation7 + $0x1640] sm:$0xff] }
 0x35f   : > { %7250 = vmatprep.subr.bf16.mxu0 %v7249_v27  ;;  %v3793_v27 = vld [vmem:[#allocation7 + $0x15b8] sm:$0xff]  ;;  %v7267_v28 = vpack.c.bf16 %v3784_v24, %v3780_v17  ;;  %v3814_v55 = vld [vmem:[#allocation7 + $0x1660] sm:$0xff] }
 0x360   : > { %v3821_v17 = vld [vmem:[#allocation7 + $0x1698] sm:$0xff]  ;;  %v7187_v24 = vpack.c.bf16 %v3814_v55, %v3810_v54  ;;  %v3855_v54 = vld [vmem:[#allocation7 + $0x17a8] sm:$0xff] }
 0x361   : > { %7156 = vmatpush1.bf16.msra.mxu1 %v7155_v14  ;;  %v3788_v14 = vld [vmem:[#allocation7 + $0x1590] sm:$0xff]  ;;  %v3853_v55 = vld [vmem:[#allocation7 + $0x1798] sm:$0xff] }
 0x362   : > { %7252 = vmatpush1.bf16.msra.mxu0 %v7251_v32  ;;  %7158 = vmatprep.subr.bf16.mxu1 %v7157_v35  ;;  %v7269_v32 = vpack.c.bf16 %v3793_v27, %v3789_v37  ;;  %v3792_v35 = vld [vmem:[#allocation7 + $0x15b0] sm:$0xff]  ;;  %v3818_v37 = vld [vmem:[#allocation7 + $0x1680] sm:$0xff] }
 0x363   : > { %7254 = vmatprep.subr.bf16.mxu0 %v7253_v41  ;;  %v3801_v41 = vld [vmem:[#allocation7 + $0x15f8] sm:$0xff]  ;;  %v7271_v42 = vpack.c.bf16 %v3792_v35, %v3788_v14  ;;  %v3822_v27 = vld [vmem:[#allocation7 + $0x16a0] sm:$0xff] }
 0x364   : > { %v3829_v14 = vld [vmem:[#allocation7 + $0x16d8] sm:$0xff] }
 0x365   : > { %7160 = vmatpush1.bf16.msra.mxu1 %v7159_v52  ;;  %v3796_v52 = vld [vmem:[#allocation7 + $0x15d0] sm:$0xff] }
 0x366   : > { %7256 = vmatpush1.bf16.msra.mxu0 %v7255_v53  ;;  %7162 = vmatprep.subr.bf16.mxu1 %v7161_v22  ;;  %v7273_v53 = vpack.c.bf16 %v3801_v41, %v3797_v33  ;;  %v3800_v22 = vld [vmem:[#allocation7 + $0x15f0] sm:$0xff]  ;;  %v3830_v33 = vld [vmem:[#allocation7 + $0x16e0] sm:$0xff] }
 0x367   : > { %7258 = vmatprep.subr.bf16.mxu0 %v7257_v3  ;;  %v3809_v3 = vld [vmem:[#allocation7 + $0x1638] sm:$0xff]  ;;  %v7275_v5 = vpack.c.bf16 %v3800_v22, %v3796_v52  ;;  %v3828_v41 = vld [vmem:[#allocation7 + $0x16d0] sm:$0xff] }
 0x368   : > { %v3841_v52 = vld [vmem:[#allocation7 + $0x1738] sm:$0xff] }
 0x369   : > { %7164 = vmatpush1.bf16.msra.mxu1 %v7163_v10  ;;  %v3804_v10 = vld [vmem:[#allocation7 + $0x1610] sm:$0xff] }
 0x36a   : > { %7260 = vmatpush1.bf16.msra.mxu0 %v7259_v30  ;;  %7166 = vmatprep.subr.bf16.mxu1 %v7165_v48  ;;  %v7277_v30 = vpack.c.bf16 %v3809_v3, %v3805_v57  ;;  %v3808_v48 = vld [vmem:[#allocation7 + $0x1630] sm:$0xff]  ;;  %v3838_v57 = vld [vmem:[#allocation7 + $0x1720] sm:$0xff] }
 0x36b   : > { %7262 = vmatprep.subr.bf16.mxu0 %v7261_v18  ;;  %v3817_v18 = vld [vmem:[#allocation7 + $0x1678] sm:$0xff]  ;;  %v7279_v1 = vpack.c.bf16 %v3808_v48, %v3804_v10  ;;  %v3836_v3 = vld [vmem:[#allocation7 + $0x1710] sm:$0xff] }
 0x36c   : > { %v3849_v10 = vld [vmem:[#allocation7 + $0x1778] sm:$0xff] }
 0x36d   : > { %7168 = vmatpush1.bf16.msra.mxu1 %v7167_v15  ;;  %v3812_v15 = vld [vmem:[#allocation7 + $0x1650] sm:$0xff] }
 0x36e   : > { %7264 = vmatpush1.bf16.msra.mxu0 %v7263_v16  ;;  %7170 = vmatprep.subr.bf16.mxu1 %v7169_v6  ;;  %v7281_v16 = vpack.c.bf16 %v3817_v18, %v3813_v63  ;;  %v3816_v6 = vld [vmem:[#allocation7 + $0x1670] sm:$0xff]  ;;  %v3846_v63 = vld [vmem:[#allocation7 + $0x1760] sm:$0xff] }
 0x36f   : > { %7266 = vmatprep.subr.bf16.mxu0 %v7265_v45  ;;  %v3825_v45 = vld [vmem:[#allocation7 + $0x16b8] sm:$0xff]  ;;  %v7283_v36 = vpack.c.bf16 %v3816_v6, %v3812_v15  ;;  %v3844_v18 = vld [vmem:[#allocation7 + $0x1750] sm:$0xff] }
 0x370   : > { %v3857_v15 = vld [vmem:[#allocation7 + $0x17b8] sm:$0xff] }
 0x371   : > { %7172 = vmatpush1.bf16.msra.mxu1 %v7171_v43  ;;  %v3820_v43 = vld [vmem:[#allocation7 + $0x1690] sm:$0xff] }
 0x372   : > { %7268 = vmatpush1.bf16.msra.mxu0 %v7267_v28  ;;  %7174 = vmatprep.subr.bf16.mxu1 %v7173_v7  ;;  %v7285_v28 = vpack.c.bf16 %v3825_v45, %v3821_v17  ;;  %v3824_v7 = vld [vmem:[#allocation7 + $0x16b0] sm:$0xff]  ;;  %v3854_v17 = vld [vmem:[#allocation7 + $0x17a0] sm:$0xff] }
 0x373   : > { %7270 = vmatprep.subr.bf16.mxu0 %v7269_v32  ;;  %v3833_v32 = vld [vmem:[#allocation7 + $0x16f8] sm:$0xff]  ;;  %v7287_v35 = vpack.c.bf16 %v3824_v7, %v3820_v43  ;;  %v3852_v45 = vld [vmem:[#allocation7 + $0x1790] sm:$0xff] }
 0x374   : > { %v3865_v43 = vld [vmem:[#allocation7 + $0x17f8] sm:$0xff] }
 0x375   : > { %7176 = vmatpush1.bf16.msra.mxu1 %v7175_v39  ;;  %v7289_v39 = vpack.c.bf16 %v3833_v32, %v3829_v14  ;;  %v3862_v14 = vld [vmem:[#allocation7 + $0x17e0] sm:$0xff]  ;;  %v3860_v32 = vld [vmem:[#allocation7 + $0x17d0] sm:$0xff] }
 0x376   : > { %7272 = vmatpush1.bf16.msra.mxu0 %v7271_v42  ;;  %7178 = vmatprep.subr.bf16.mxu1 %v7177_v20  ;;  %v3832_v42 = vld [vmem:[#allocation7 + $0x16f0] sm:$0xff]  ;;  %v3835_v20 = vld [vmem:[#allocation7 + $0x1708] sm:$0xff] }
 0x377   : > { %7274 = vmatprep.subr.bf16.mxu0 %v7273_v53  ;;  %v7195_v53 = vpack.c.bf16 %v3830_v33, %v3826_v60  ;;  %v7291_v22 = vpack.c.bf16 %v3832_v42, %v3828_v41  ;;  %v7197_v51 = vpack.c.bf16 %v3839_v47, %v3835_v20  ;;  %v4182_v60 = vld [vmem:[#allocation7 + $0x1828] sm:$0xff]  ;;  %v4180_v33 = vld [vmem:[#allocation7 + $0x1818] sm:$0xff]  ;;  %v4177_v47 = vld [vmem:[#allocation7 + $0x1800] sm:$0xff] }
 0x378   : > { %v4184_v41 = vld [vmem:[#allocation7 + $0x1838] sm:$0xff] }
 0x379   : > { %7180 = vmatpush1.bf16.msra.mxu1 %v7179_v4  ;;  %v7293_v4 = vpack.c.bf16 %v3841_v52, %v3837_v49  ;;  %v4181_v49 = vld [vmem:[#allocation7 + $0x1820] sm:$0xff]  ;;  %v7405_v52 = vpack.c.bf16 %v4184_v41, %v4180_v33  ;;  %v4215_v41 = vld [vmem:[#allocation7 + $0x1930] sm:$0xff] }
 0x37a   : > { %7276 = vmatpush1.bf16.msra.mxu0 %v7275_v5  ;;  %7182 = vmatprep.subr.bf16.mxu1 %v7181_v50  ;;  %v3840_v5 = vld [vmem:[#allocation7 + $0x1730] sm:$0xff]  ;;  %v3843_v50 = vld [vmem:[#allocation7 + $0x1748] sm:$0xff] }
 0x37b   : > { %7278 = vmatprep.subr.bf16.mxu0 %v7277_v30  ;;  %v7199_v30 = vpack.c.bf16 %v3838_v57, %v3834_v61  ;;  %v7295_v48 = vpack.c.bf16 %v3840_v5, %v3836_v3  ;;  %v7201_v62 = vpack.c.bf16 %v3847_v8, %v3843_v50  ;;  %v4190_v61 = vld [vmem:[#allocation7 + $0x1868] sm:$0xff]  ;;  %v7311_v57 = vpack.c.bf16 %v4181_v49, %v4177_v47  ;;  %v4188_v3 = vld [vmem:[#allocation7 + $0x1858] sm:$0xff]  ;;  %v4185_v50 = vld [vmem:[#allocation7 + $0x1840] sm:$0xff] }
 0x37c   : > { %3931 = vmatmul.mubr.f32.vlgmr.msra.gmra.mrb[6].mxu1 %v9377_v29  ;;  %v4189_v8 = vld [vmem:[#allocation7 + $0x1860] sm:$0xff]  ;;  %v4224_v47 = vld [vmem:[#allocation7 + $0x1978] sm:$0xff] }
 0x37d   : > { %4073 = vmatmul.mubr.f32.vlgmr.msra.gmra.mrb[12].mxu0 %v9377_v29  ;;  %7184 = vmatpush1.bf16.msra.mxu1 %v7183_v12  ;;  %v7191_v29 = vpack.c.bf16 %v3822_v27, %v3818_v37  ;;  %v7297_v12 = vpack.c.bf16 %v3849_v10, %v3845_v9  ;;  %v3863_v37 = vld [vmem:[#allocation7 + $0x17e8] sm:$0xff]  ;;  %v3861_v27 = vld [vmem:[#allocation7 + $0x17d8] sm:$0xff]  ;;  %v4187_v9 = vld [vmem:[#allocation7 + $0x1850] sm:$0xff] }
 0x37e   : > { %7280 = vmatpush1.bf16.msra.mxu0 %v7279_v1  ;;  %7186 = vmatprep.subr.bf16.mxu1 %v7185_v46  ;;  %v3848_v1 = vld [vmem:[#allocation7 + $0x1770] sm:$0xff]  ;;  %v3851_v46 = vld [vmem:[#allocation7 + $0x1788] sm:$0xff] }
 0x37f   : > { %7282 = vmatprep.subr.bf16.mxu0 %v7281_v16  ;;  %4001 = vmatprep.mubr.f32.mxu1 %v8652_v0  ;;  %v7203_v16 = vpack.c.bf16 %v3846_v63, %v3842_v11  ;;  %v7299_v6 = vpack.c.bf16 %v3848_v1, %v3844_v18  ;;  %v7205_v56 = vpack.c.bf16 %v3855_v54, %v3851_v46  ;;  %v4196_v63 = vld [vmem:[#allocation7 + $0x1898] sm:$0xff]  ;;  %v4193_v54 = vld [vmem:[#allocation7 + $0x1880] sm:$0xff] }
 0x380   : > { %4143 = vmatprep.mubr.f32.mxu0 %v8652_v0  ;;  %v4200_v18 = vld [vmem:[#allocation7 + $0x18b8] sm:$0xff] }
 0x381   : > { %7188 = vmatpush1.bf16.msra.mxu1 %v7187_v24  ;;  %v7301_v24 = vpack.c.bf16 %v3857_v15, %v3853_v55  ;;  %v4197_v55 = vld [vmem:[#allocation7 + $0x18a0] sm:$0xff]  ;;  %v4195_v15 = vld [vmem:[#allocation7 + $0x1890] sm:$0xff] }
 0x382   : > { %7284 = vmatpush1.bf16.msra.mxu0 %v7283_v36  ;;  %7190 = vmatprep.subr.bf16.mxu1 %v7189_v25  ;;  %v3856_v36 = vld [vmem:[#allocation7 + $0x17b0] sm:$0xff]  ;;  %v3859_v25 = vld [vmem:[#allocation7 + $0x17c8] sm:$0xff] }
 0x383   : > { %7286 = vmatprep.subr.bf16.mxu0 %v7285_v28  ;;  %v7207_v28 = vpack.c.bf16 %v3854_v17, %v3850_v2  ;;  %v7303_v7 = vpack.c.bf16 %v3856_v36, %v3852_v45  ;;  %v7209_v31 = vpack.c.bf16 %v3863_v37, %v3859_v25  ;;  %v4206_v2 = vld [vmem:[#allocation7 + $0x18e8] sm:$0xff]  ;;  %v4204_v17 = vld [vmem:[#allocation7 + $0x18d8] sm:$0xff]  ;;  %v7319_v45 = vpack.c.bf16 %v4197_v55, %v4193_v54  ;;  %v4201_v25 = vld [vmem:[#allocation7 + $0x18c0] sm:$0xff] }
 0x384   : > { %v4205_v37 = vld [vmem:[#allocation7 + $0x18e0] sm:$0xff]  ;;  %v4240_v54 = vld [vmem:[#allocation7 + $0x19f8] sm:$0xff] }
 0x385   : > { %7192 = vmatpush1.bf16.msra.mxu1 %v7191_v29  ;;  %v7305_v29 = vpack.c.bf16 %v3865_v43, %v3861_v27  ;;  %v4203_v27 = vld [vmem:[#allocation7 + $0x18d0] sm:$0xff] }
 0x386   : > { %7288 = vmatpush1.bf16.msra.mxu0 %v7287_v35  ;;  %7194 = vmatprep.subr.bf16.mxu1 %v7193_v40  ;;  %v3864_v35 = vld [vmem:[#allocation7 + $0x17f0] sm:$0xff]  ;;  %v4178_v40 = vld [vmem:[#allocation7 + $0x1808] sm:$0xff] }
 0x387   : > { %7290 = vmatprep.subr.bf16.mxu0 %v7289_v39  ;;  %v7211_v39 = vpack.c.bf16 %v3862_v14, %v3858_v44  ;;  %v7307_v42 = vpack.c.bf16 %v3864_v35, %v3860_v32  ;;  %v7309_v20 = vpack.c.bf16 %v4182_v60, %v4178_v40  ;;  %v4216_v44 = vld [vmem:[#allocation7 + $0x1938] sm:$0xff]  ;;  %v7323_v14 = vpack.c.bf16 %v4205_v37, %v4201_v25  ;;  %v4209_v35 = vld [vmem:[#allocation7 + $0x1900] sm:$0xff]  ;;  %v4211_v60 = vld [vmem:[#allocation7 + $0x1910] sm:$0xff] }
 0x388   : > { %v4213_v40 = vld [vmem:[#allocation7 + $0x1920] sm:$0xff]  ;;  %v4248_v25 = vld [vmem:[#allocation7 + $0x1a38] sm:$0xff] }
 0x389   : > { %7196 = vmatpush1.bf16.msra.mxu1 %v7195_v53  ;;  %v4179_v53 = vld [vmem:[#allocation7 + $0x1810] sm:$0xff]  ;;  %v7327_v49 = vpack.c.bf16 %v4213_v40, %v4209_v35  ;;  %v4256_v35 = vld [vmem:[#allocation7 + $0x1a78] sm:$0xff] }
 0x38a   : > { %7292 = vmatpush1.bf16.msra.mxu0 %v7291_v22  ;;  %7198 = vmatprep.subr.bf16.mxu1 %v7197_v51  ;;  %v4183_v22 = vld [vmem:[#allocation7 + $0x1830] sm:$0xff]  ;;  %v4186_v51 = vld [vmem:[#allocation7 + $0x1848] sm:$0xff] }
 0x38b   : > { %7294 = vmatprep.subr.bf16.mxu0 %v7293_v4  ;;  %v4192_v4 = vld [vmem:[#allocation7 + $0x1878] sm:$0xff]  ;;  %v7407_v5 = vpack.c.bf16 %v4183_v22, %v4179_v53  ;;  %v7313_v10 = vpack.c.bf16 %v4190_v61, %v4186_v51  ;;  %v4217_v22 = vld [vmem:[#allocation7 + $0x1940] sm:$0xff]  ;;  %v4219_v61 = vld [vmem:[#allocation7 + $0x1950] sm:$0xff] }
 0x38c   : > { %v7409_v11 = vpack.c.bf16 %v4192_v4, %v4188_v3  ;;  %v4221_v51 = vld [vmem:[#allocation7 + $0x1960] sm:$0xff]  ;;  %v4223_v3 = vld [vmem:[#allocation7 + $0x1970] sm:$0xff]  ;;  %v4226_v4 = vld [vmem:[#allocation7 + $0x1988] sm:$0xff] }
 0x38d   : > { %7200 = vmatpush1.bf16.msra.mxu1 %v7199_v30  ;;  %v4191_v30 = vld [vmem:[#allocation7 + $0x1870] sm:$0xff] }
 0x38e   : > { %7296 = vmatpush1.bf16.msra.mxu0 %v7295_v48  ;;  %7202 = vmatprep.subr.bf16.mxu1 %v7201_v62  ;;  %v4194_v48 = vld [vmem:[#allocation7 + $0x1888] sm:$0xff]  ;;  %v7411_v1 = vpack.c.bf16 %v4191_v30, %v4187_v9  ;;  %v7331_v9 = vpack.c.bf16 %v4221_v51, %v4217_v22  ;;  %v4264_v22 = vld [vmem:[#allocation7 + $0x1ab8] sm:$0xff] }
 0x38f   : > { %7298 = vmatprep.subr.bf16.mxu0 %v7297_v12  ;;  %v4198_v62 = vld [vmem:[#allocation7 + $0x18a8] sm:$0xff]  ;;  %v7315_v12 = vpack.c.bf16 %v4189_v8, %v4185_v50  ;;  %v4228_v50 = vld [vmem:[#allocation7 + $0x1998] sm:$0xff] }
 0x390   : > { %v7317_v46 = vpack.c.bf16 %v4198_v62, %v4194_v48  ;;  %v4232_v8 = vld [vmem:[#allocation7 + $0x19b8] sm:$0xff]  ;;  %v4225_v48 = vld [vmem:[#allocation7 + $0x1980] sm:$0xff] }
 0x391   : > { %7204 = vmatpush1.bf16.msra.mxu1 %v7203_v16  ;;  %v7413_v16 = vpack.c.bf16 %v4200_v18, %v4196_v63  ;;  %v4229_v62 = vld [vmem:[#allocation7 + $0x19a0] sm:$0xff]  ;;  %v7429_v63 = vpack.c.bf16 %v4232_v8, %v4228_v50  ;;  %v4231_v18 = vld [vmem:[#allocation7 + $0x19b0] sm:$0xff] }
 0x392   : > { %7300 = vmatpush1.bf16.msra.mxu0 %v7299_v6  ;;  %7206 = vmatprep.subr.bf16.mxu1 %v7205_v56  ;;  %v4199_v6 = vld [vmem:[#allocation7 + $0x18b0] sm:$0xff]  ;;  %v4202_v56 = vld [vmem:[#allocation7 + $0x18c8] sm:$0xff]  ;;  %v7335_v55 = vpack.c.bf16 %v4229_v62, %v4225_v48  ;;  %v4272_v48 = vld [vmem:[#allocation7 + $0x1af8] sm:$0xff] }
 0x393   : > { %7302 = vmatprep.subr.bf16.mxu0 %v7301_v24  ;;  %v7415_v24 = vpack.c.bf16 %v4199_v6, %v4195_v15  ;;  %v7321_v36 = vpack.c.bf16 %v4206_v2, %v4202_v56  ;;  %v4233_v6 = vld [vmem:[#allocation7 + $0x19c0] sm:$0xff]  ;;  %v4235_v2 = vld [vmem:[#allocation7 + $0x19d0] sm:$0xff] }
 0x394   : > { %v4237_v56 = vld [vmem:[#allocation7 + $0x19e0] sm:$0xff]  ;;  %v4263_v8 = vld [vmem:[#allocation7 + $0x1ab0] sm:$0xff] }
 0x395   : > { %7208 = vmatpush1.bf16.msra.mxu1 %v7207_v28  ;;  %v4210_v28 = vld [vmem:[#allocation7 + $0x1908] sm:$0xff]  ;;  %v7339_v37 = vpack.c.bf16 %v4237_v56, %v4233_v6  ;;  %v4280_v6 = vld [vmem:[#allocation7 + $0x1b38] sm:$0xff] }
 0x396   : > { %7304 = vmatpush1.bf16.msra.mxu0 %v7303_v7  ;;  %7210 = vmatprep.subr.bf16.mxu1 %v7209_v31  ;;  %v4214_v7 = vld [vmem:[#allocation7 + $0x1928] sm:$0xff]  ;;  %v4212_v31 = vld [vmem:[#allocation7 + $0x1918] sm:$0xff] }
 0x397   : > { %7306 = vmatprep.subr.bf16.mxu0 %v7305_v29  ;;  %v7325_v29 = vpack.c.bf16 %v4214_v7, %v4210_v28  ;;  %v7421_v33 = vpack.c.bf16 %v4216_v44, %v4212_v31  ;;  %v4245_v28 = vld [vmem:[#allocation7 + $0x1a20] sm:$0xff]  ;;  %v4243_v7 = vld [vmem:[#allocation7 + $0x1a10] sm:$0xff] }
 0x398   : > { %v4247_v44 = vld [vmem:[#allocation7 + $0x1a30] sm:$0xff] }
 0x399   : > { %7212 = vmatpush1.bf16.msra.mxu1 %v7211_v39  ;;  %v4218_v39 = vld [vmem:[#allocation7 + $0x1948] sm:$0xff] }
 0x39a   : > { %7308 = vmatpush1.bf16.msra.mxu0 %v7307_v42  ;;  %7310 = vmatprep.subr.bf16.mxu1 %v7309_v20  ;;  %v4222_v42 = vld [vmem:[#allocation7 + $0x1968] sm:$0xff]  ;;  %v4220_v20 = vld [vmem:[#allocation7 + $0x1958] sm:$0xff] }
 0x39b   : > { %7406 = vmatprep.subr.bf16.mxu0 %v7405_v52  ;;  %v7423_v52 = vpack.c.bf16 %v4215_v41, %v4211_v60  ;;  %v7329_v53 = vpack.c.bf16 %v4222_v42, %v4218_v39  ;;  %v7439_v60 = vpack.c.bf16 %v4247_v44, %v4243_v7  ;;  %v4249_v41 = vld [vmem:[#allocation7 + $0x1a40] sm:$0xff]  ;;  %v4251_v42 = vld [vmem:[#allocation7 + $0x1a50] sm:$0xff] }
 0x39c   : > { %4002 = vmatmul.mubr.f32.vlgmr.msra.gmra.mrb[6].mxu1 %v9383_v13  ;;  %v4253_v39 = vld [vmem:[#allocation7 + $0x1a60] sm:$0xff] }
 0x39d   : > { %4144 = vmatmul.mubr.f32.vlgmr.msra.gmra.mrb[12].mxu0 %v9383_v13  ;;  %7312 = vmatpush1.bf16.msra.mxu1 %v7311_v57  ;;  %v4208_v13 = vld [vmem:[#allocation7 + $0x18f8] sm:$0xff]  ;;  %v7425_v57 = vpack.c.bf16 %v4224_v47, %v4220_v20  ;;  %v4255_v47 = vld [vmem:[#allocation7 + $0x1a70] sm:$0xff]  ;;  %v7347_v51 = vpack.c.bf16 %v4253_v39, %v4249_v41  ;;  %v4281_v44 = vld [vmem:[#allocation7 + $0x1b40] sm:$0xff] }
 0x39e   : > { %4433 = vmatprep.mubr.f32.mxu1 %v9392_v26  ;;  %7408 = vmatpush1.bf16.msra.mxu0 %v7407_v5  ;;  %v7417_v43 = vpack.c.bf16 %v4208_v13, %v4204_v17  ;;  %v4230_v5 = vld [vmem:[#allocation7 + $0x19a8] sm:$0xff]  ;;  %v4239_v13 = vld [vmem:[#allocation7 + $0x19f0] sm:$0xff]  ;;  %v4296_v41 = vld [vmem:[#allocation7 + $0x1bb8] sm:$0xff] }
 0x39f   : > { %4575 = vmatprep.mubr.f32.mxu0 %v9392_v26  ;;  %7314 = vmatprep.subr.bf16.mxu1 %v7313_v10  ;;  %v4207_v26 = vld [vmem:[#allocation7 + $0x18f0] sm:$0xff]  ;;  %v7427_v10 = vpack.c.bf16 %v4223_v3, %v4219_v61  ;;  %v7333_v30 = vpack.c.bf16 %v4230_v5, %v4226_v4  ;;  %v7443_v61 = vpack.c.bf16 %v4255_v47, %v4251_v42  ;;  %v4257_v3 = vld [vmem:[#allocation7 + $0x1a80] sm:$0xff] }
 0x3a0   : > { %7410 = vmatprep.subr.bf16.mxu0 %v7409_v11  ;;  %v7419_v32 = vpack.c.bf16 %v4207_v26, %v4203_v27  ;;  %v4227_v11 = vld [vmem:[#allocation7 + $0x1990] sm:$0xff]  ;;  %v7435_v27 = vpack.c.bf16 %v4239_v13, %v4235_v2  ;;  %v4241_v26 = vld [vmem:[#allocation7 + $0x1a00] sm:$0xff] }
 0x3a1   : > { %7316 = vmatpush1.bf16.msra.mxu1 %v7315_v12  ;;  %v4234_v12 = vld [vmem:[#allocation7 + $0x19c8] sm:$0xff]  ;;  %v7431_v15 = vpack.c.bf16 %v4231_v18, %v4227_v11  ;;  %v7343_v40 = vpack.c.bf16 %v4245_v28, %v4241_v26  ;;  %v4261_v4 = vld [vmem:[#allocation7 + $0x1aa0] sm:$0xff]  ;;  %v4259_v5 = vld [vmem:[#allocation7 + $0x1a90] sm:$0xff] }
 0x3a2   : > { %7412 = vmatpush1.bf16.msra.mxu0 %v7411_v1  ;;  %7318 = vmatprep.subr.bf16.mxu1 %v7317_v46  ;;  %v4238_v1 = vld [vmem:[#allocation7 + $0x19e8] sm:$0xff]  ;;  %v4236_v46 = vld [vmem:[#allocation7 + $0x19d8] sm:$0xff]  ;;  %v7351_v62 = vpack.c.bf16 %v4261_v4, %v4257_v3  ;;  %v7447_v11 = vpack.c.bf16 %v4263_v8, %v4259_v5  ;;  %v4265_v18 = vld [vmem:[#allocation7 + $0x1ac0] sm:$0xff] }
 0x3a3   : > { %7414 = vmatprep.subr.bf16.mxu0 %v7413_v16  ;;  %v7337_v16 = vpack.c.bf16 %v4238_v1, %v4234_v12  ;;  %v7433_v17 = vpack.c.bf16 %v4240_v54, %v4236_v46  ;;  %v4269_v12 = vld [vmem:[#allocation7 + $0x1ae0] sm:$0xff]  ;;  %v4267_v1 = vld [vmem:[#allocation7 + $0x1ad0] sm:$0xff]  ;;  %v4288_v26 = vld [vmem:[#allocation7 + $0x1b78] sm:$0xff] }
 0x3a4   : > { %v4271_v54 = vld [vmem:[#allocation7 + $0x1af0] sm:$0xff]  ;;  %v7355_v56 = vpack.c.bf16 %v4269_v12, %v4265_v18  ;;  %v4273_v13 = vld [vmem:[#allocation7 + $0x1b00] sm:$0xff]  ;;  %v4304_v3 = vld [vmem:[#allocation7 + $0x1bf8] sm:$0xff] }
 0x3a5   : > { %7320 = vmatpush1.bf16.msra.mxu1 %v7319_v45  ;;  %v4242_v45 = vld [vmem:[#allocation7 + $0x1a08] sm:$0xff]  ;;  %v7451_v2 = vpack.c.bf16 %v4271_v54, %v4267_v1  ;;  %v4289_v47 = vld [vmem:[#allocation7 + $0x1b80] sm:$0xff]  ;;  %v4312_v18 = vld [vmem:[#allocation7 + $0x1c38] sm:$0xff] }
 0x3a6   : > { %7416 = vmatpush1.bf16.msra.mxu0 %v7415_v24  ;;  %7322 = vmatprep.subr.bf16.mxu1 %v7321_v36  ;;  %v4246_v24 = vld [vmem:[#allocation7 + $0x1a28] sm:$0xff]  ;;  %v4244_v36 = vld [vmem:[#allocation7 + $0x1a18] sm:$0xff]  ;;  %v4297_v8 = vld [vmem:[#allocation7 + $0x1bc0] sm:$0xff] }
 0x3a7   : > { %7418 = vmatprep.subr.bf16.mxu0 %v7417_v43  ;;  %v7341_v43 = vpack.c.bf16 %v4246_v24, %v4242_v45  ;;  %v7437_v31 = vpack.c.bf16 %v4248_v25, %v4244_v36  ;;  %v4277_v45 = vld [vmem:[#allocation7 + $0x1b20] sm:$0xff]  ;;  %v4275_v24 = vld [vmem:[#allocation7 + $0x1b10] sm:$0xff] }
 0x3a8   : > { %v4279_v25 = vld [vmem:[#allocation7 + $0x1b30] sm:$0xff]  ;;  %v7359_v28 = vpack.c.bf16 %v4277_v45, %v4273_v13  ;;  %v4305_v54 = vld [vmem:[#allocation7 + $0x1c00] sm:$0xff]  ;;  %v4320_v13 = vld [vmem:[#allocation7 + $0x1c78] sm:$0xff] }
 0x3a9   : > { %7324 = vmatpush1.bf16.msra.mxu1 %v7323_v14  ;;  %v4250_v14 = vld [vmem:[#allocation7 + $0x1a48] sm:$0xff]  ;;  %v7455_v7 = vpack.c.bf16 %v4279_v25, %v4275_v24  ;;  %v4313_v25 = vld [vmem:[#allocation7 + $0x1c40] sm:$0xff] }
 0x3aa   : > { %7420 = vmatpush1.bf16.msra.mxu0 %v7419_v32  ;;  %7326 = vmatprep.subr.bf16.mxu1 %v7325_v29  ;;  %v4254_v32 = vld [vmem:[#allocation7 + $0x1a68] sm:$0xff]  ;;  %v4252_v29 = vld [vmem:[#allocation7 + $0x1a58] sm:$0xff] }
 0x3ab   : > { %7422 = vmatprep.subr.bf16.mxu0 %v7421_v33  ;;  %v7345_v33 = vpack.c.bf16 %v4254_v32, %v4250_v14  ;;  %v7441_v20 = vpack.c.bf16 %v4256_v35, %v4252_v29  ;;  %v4285_v14 = vld [vmem:[#allocation7 + $0x1b60] sm:$0xff]  ;;  %v4283_v32 = vld [vmem:[#allocation7 + $0x1b50] sm:$0xff] }
 0x3ac   : > { %v4287_v35 = vld [vmem:[#allocation7 + $0x1b70] sm:$0xff]  ;;  %v7363_v39 = vpack.c.bf16 %v4285_v14, %v4281_v44  ;;  %v4328_v44 = vld [vmem:[#allocation7 + $0x1cb8] sm:$0xff] }
 0x3ad   : > { %7328 = vmatpush1.bf16.msra.mxu1 %v7327_v49  ;;  %v4258_v49 = vld [vmem:[#allocation7 + $0x1a88] sm:$0xff]  ;;  %v7459_v42 = vpack.c.bf16 %v4287_v35, %v4283_v32  ;;  %v4321_v35 = vld [vmem:[#allocation7 + $0x1c80] sm:$0xff] }
 0x3ae   : > { %7424 = vmatpush1.bf16.msra.mxu0 %v7423_v52  ;;  %7330 = vmatprep.subr.bf16.mxu1 %v7329_v53  ;;  %v4262_v52 = vld [vmem:[#allocation7 + $0x1aa8] sm:$0xff]  ;;  %v4260_v53 = vld [vmem:[#allocation7 + $0x1a98] sm:$0xff] }
 0x3af   : > { %7426 = vmatprep.subr.bf16.mxu0 %v7425_v57  ;;  %v7349_v57 = vpack.c.bf16 %v4262_v52, %v4258_v49  ;;  %v7445_v50 = vpack.c.bf16 %v4264_v22, %v4260_v53  ;;  %v4293_v49 = vld [vmem:[#allocation7 + $0x1ba0] sm:$0xff]  ;;  %v4291_v52 = vld [vmem:[#allocation7 + $0x1b90] sm:$0xff] }
 0x3b0   : > { %v4295_v22 = vld [vmem:[#allocation7 + $0x1bb0] sm:$0xff]  ;;  %v7367_v4 = vpack.c.bf16 %v4293_v49, %v4289_v47  ;;  %v4336_v47 = vld [vmem:[#allocation7 + $0x1cf8] sm:$0xff] }
 0x3b1   : > { %7332 = vmatpush1.bf16.msra.mxu1 %v7331_v9  ;;  %v4266_v9 = vld [vmem:[#allocation7 + $0x1ac8] sm:$0xff]  ;;  %v7463_v5 = vpack.c.bf16 %v4295_v22, %v4291_v52  ;;  %v4333_v22 = vld [vmem:[#allocation7 + $0x1ce0] sm:$0xff] }
 0x3b2   : > { %7428 = vmatpush1.bf16.msra.mxu0 %v7427_v10  ;;  %7334 = vmatprep.subr.bf16.mxu1 %v7333_v30  ;;  %v4270_v10 = vld [vmem:[#allocation7 + $0x1ae8] sm:$0xff]  ;;  %v4268_v30 = vld [vmem:[#allocation7 + $0x1ad8] sm:$0xff] }
 0x3b3   : > { %7430 = vmatprep.subr.bf16.mxu0 %v7429_v63  ;;  %v7353_v63 = vpack.c.bf16 %v4270_v10, %v4266_v9  ;;  %v7449_v46 = vpack.c.bf16 %v4272_v48, %v4268_v30  ;;  %v4301_v9 = vld [vmem:[#allocation7 + $0x1be0] sm:$0xff]  ;;  %v4299_v10 = vld [vmem:[#allocation7 + $0x1bd0] sm:$0xff] }
 0x3b4   : > { %v4303_v48 = vld [vmem:[#allocation7 + $0x1bf0] sm:$0xff]  ;;  %v7371_v12 = vpack.c.bf16 %v4301_v9, %v4297_v8 }
 0x3b5   : > { %7336 = vmatpush1.bf16.msra.mxu1 %v7335_v55  ;;  %v4274_v55 = vld [vmem:[#allocation7 + $0x1b08] sm:$0xff]  ;;  %v7467_v1 = vpack.c.bf16 %v4303_v48, %v4299_v10  ;;  %v4337_v10 = vld [vmem:[#allocation7 + $0x1d00] sm:$0xff]  ;;  %v4339_v48 = vld [vmem:[#allocation7 + $0x1d10] sm:$0xff] }
 0x3b6   : > { %7432 = vmatpush1.bf16.msra.mxu0 %v7431_v15  ;;  %7338 = vmatprep.subr.bf16.mxu1 %v7337_v16  ;;  %v4278_v15 = vld [vmem:[#allocation7 + $0x1b28] sm:$0xff]  ;;  %v4276_v16 = vld [vmem:[#allocation7 + $0x1b18] sm:$0xff] }
 0x3b7   : > { %7434 = vmatprep.subr.bf16.mxu0 %v7433_v17  ;;  %v7357_v17 = vpack.c.bf16 %v4278_v15, %v4274_v55  ;;  %v7453_v36 = vpack.c.bf16 %v4280_v6, %v4276_v16  ;;  %v4309_v55 = vld [vmem:[#allocation7 + $0x1c20] sm:$0xff]  ;;  %v4307_v15 = vld [vmem:[#allocation7 + $0x1c10] sm:$0xff] }
 0x3b8   : > { %v4311_v6 = vld [vmem:[#allocation7 + $0x1c30] sm:$0xff]  ;;  %v7375_v45 = vpack.c.bf16 %v4309_v55, %v4305_v54 }
 0x3b9   : > { %7340 = vmatpush1.bf16.msra.mxu1 %v7339_v37  ;;  %v4282_v37 = vld [vmem:[#allocation7 + $0x1b48] sm:$0xff]  ;;  %v7471_v24 = vpack.c.bf16 %v4311_v6, %v4307_v15  ;;  %v4345_v15 = vld [vmem:[#allocation7 + $0x1d40] sm:$0xff]  ;;  %v4347_v6 = vld [vmem:[#allocation7 + $0x1d50] sm:$0xff] }
 0x3ba   : > { %7436 = vmatpush1.bf16.msra.mxu0 %v7435_v27  ;;  %7342 = vmatprep.subr.bf16.mxu1 %v7341_v43  ;;  %v4286_v27 = vld [vmem:[#allocation7 + $0x1b68] sm:$0xff]  ;;  %v4284_v43 = vld [vmem:[#allocation7 + $0x1b58] sm:$0xff] }
 0x3bb   : > { %7438 = vmatprep.subr.bf16.mxu0 %v7437_v31  ;;  %v7361_v31 = vpack.c.bf16 %v4286_v27, %v4282_v37  ;;  %v7457_v29 = vpack.c.bf16 %v4288_v26, %v4284_v43  ;;  %v4317_v37 = vld [vmem:[#allocation7 + $0x1c60] sm:$0xff]  ;;  %v4315_v27 = vld [vmem:[#allocation7 + $0x1c50] sm:$0xff] }
 0x3bc   : > { %v4319_v26 = vld [vmem:[#allocation7 + $0x1c70] sm:$0xff]  ;;  %v7379_v14 = vpack.c.bf16 %v4317_v37, %v4313_v25 }
 0x3bd   : > { %7344 = vmatpush1.bf16.msra.mxu1 %v7343_v40  ;;  %v4290_v40 = vld [vmem:[#allocation7 + $0x1b88] sm:$0xff]  ;;  %v7475_v32 = vpack.c.bf16 %v4319_v26, %v4315_v27  ;;  %v4353_v27 = vld [vmem:[#allocation7 + $0x1d80] sm:$0xff]  ;;  %v4355_v26 = vld [vmem:[#allocation7 + $0x1d90] sm:$0xff] }
 0x3be   : > { %7440 = vmatpush1.bf16.msra.mxu0 %v7439_v60  ;;  %7346 = vmatprep.subr.bf16.mxu1 %v7345_v33  ;;  %v4294_v60 = vld [vmem:[#allocation7 + $0x1ba8] sm:$0xff]  ;;  %v4292_v33 = vld [vmem:[#allocation7 + $0x1b98] sm:$0xff] }
 0x3bf   : > { %7442 = vmatprep.subr.bf16.mxu0 %v7441_v20  ;;  %v7365_v20 = vpack.c.bf16 %v4294_v60, %v4290_v40  ;;  %v7461_v53 = vpack.c.bf16 %v4296_v41, %v4292_v33  ;;  %v4325_v40 = vld [vmem:[#allocation7 + $0x1ca0] sm:$0xff]  ;;  %v4323_v60 = vld [vmem:[#allocation7 + $0x1c90] sm:$0xff] }
 0x3c0   : > { %v4327_v41 = vld [vmem:[#allocation7 + $0x1cb0] sm:$0xff] }
 0x3c1   : > { %7348 = vmatpush1.bf16.msra.mxu1 %v7347_v51  ;;  %v4298_v51 = vld [vmem:[#allocation7 + $0x1bc8] sm:$0xff]  ;;  %v7479_v49 = vpack.c.bf16 %v4327_v41, %v4323_v60  ;;  %v4361_v60 = vld [vmem:[#allocation7 + $0x1dc0] sm:$0xff]  ;;  %v4363_v41 = vld [vmem:[#allocation7 + $0x1dd0] sm:$0xff] }
 0x3c2   : > { %7444 = vmatpush1.bf16.msra.mxu0 %v7443_v61  ;;  %7350 = vmatprep.subr.bf16.mxu1 %v7349_v57  ;;  %v4302_v61 = vld [vmem:[#allocation7 + $0x1be8] sm:$0xff]  ;;  %v4300_v57 = vld [vmem:[#allocation7 + $0x1bd8] sm:$0xff] }
 0x3c3   : > { %7446 = vmatprep.subr.bf16.mxu0 %v7445_v50  ;;  %v7369_v50 = vpack.c.bf16 %v4302_v61, %v4298_v51  ;;  %v7465_v30 = vpack.c.bf16 %v4304_v3, %v4300_v57  ;;  %v4331_v51 = vld [vmem:[#allocation7 + $0x1cd0] sm:$0xff]  ;;  %v4338_v3 = vld [vmem:[#allocation7 + $0x1d08] sm:$0xff] }
 0x3c4   : > { %v4335_v57 = vld [vmem:[#allocation7 + $0x1cf0] sm:$0xff] }
 0x3c5   : > { %7352 = vmatpush1.bf16.msra.mxu1 %v7351_v62  ;;  %v4306_v62 = vld [vmem:[#allocation7 + $0x1c08] sm:$0xff] }
 0x3c6   : > { %7448 = vmatpush1.bf16.msra.mxu0 %v7447_v11  ;;  %7354 = vmatprep.subr.bf16.mxu1 %v7353_v63  ;;  %v4310_v11 = vld [vmem:[#allocation7 + $0x1c28] sm:$0xff]  ;;  %v4308_v63 = vld [vmem:[#allocation7 + $0x1c18] sm:$0xff] }
 0x3c7   : > { %7450 = vmatprep.subr.bf16.mxu0 %v7449_v46  ;;  %v7373_v46 = vpack.c.bf16 %v4310_v11, %v4306_v62  ;;  %v7469_v16 = vpack.c.bf16 %v4312_v18, %v4308_v63  ;;  %v4343_v11 = vld [vmem:[#allocation7 + $0x1d30] sm:$0xff]  ;;  %v4346_v63 = vld [vmem:[#allocation7 + $0x1d48] sm:$0xff] }
 0x3c8   : > { %v4350_v18 = vld [vmem:[#allocation7 + $0x1d68] sm:$0xff]  ;;  %v7487_v54 = vpack.c.bf16 %v4343_v11, %v4339_v48  ;;  %v4844_v11 = vld [vmem:[#allocation10 + $0x450] sm:$0xff] }
 0x3c9   : > { %7356 = vmatpush1.bf16.msra.mxu1 %v7355_v56  ;;  %v4314_v56 = vld [vmem:[#allocation7 + $0x1c48] sm:$0xff]  ;;  %v7393_v55 = vpack.c.bf16 %v4350_v18, %v4346_v63  ;;  %v4848_v18 = vld [vmem:[#allocation10 + $0x470] sm:$0xff] }
 0x3ca   : > { %7452 = vmatpush1.bf16.msra.mxu0 %v7451_v2  ;;  %7358 = vmatprep.subr.bf16.mxu1 %v7357_v17  ;;  %v4318_v2 = vld [vmem:[#allocation7 + $0x1c68] sm:$0xff]  ;;  %v4316_v17 = vld [vmem:[#allocation7 + $0x1c58] sm:$0xff] }
 0x3cb   : > { %7454 = vmatprep.subr.bf16.mxu0 %v7453_v36  ;;  %v7377_v36 = vpack.c.bf16 %v4318_v2, %v4314_v56  ;;  %v7473_v43 = vpack.c.bf16 %v4320_v13, %v4316_v17  ;;  %v4351_v2 = vld [vmem:[#allocation7 + $0x1d70] sm:$0xff]  ;;  %v4354_v17 = vld [vmem:[#allocation7 + $0x1d88] sm:$0xff] }
 0x3cc   : > { %v4358_v13 = vld [vmem:[#allocation7 + $0x1da8] sm:$0xff]  ;;  %v7491_v25 = vpack.c.bf16 %v4351_v2, %v4347_v6  ;;  %v4852_v2 = vld [vmem:[#allocation10 + $0x490] sm:$0xff] }
 0x3cd   : > { %7360 = vmatpush1.bf16.msra.mxu1 %v7359_v28  ;;  %v4322_v28 = vld [vmem:[#allocation7 + $0x1c88] sm:$0xff]  ;;  %v7397_v37 = vpack.c.bf16 %v4358_v13, %v4354_v17  ;;  %v4856_v13 = vld [vmem:[#allocation10 + $0x4b0] sm:$0xff] }
 0x3ce   : > { %7456 = vmatpush1.bf16.msra.mxu0 %v7455_v7  ;;  %7362 = vmatprep.subr.bf16.mxu1 %v7361_v31  ;;  %v4326_v7 = vld [vmem:[#allocation7 + $0x1ca8] sm:$0xff]  ;;  %v4324_v31 = vld [vmem:[#allocation7 + $0x1c98] sm:$0xff] }
 0x3cf   : > { %7458 = vmatprep.subr.bf16.mxu0 %v7457_v29  ;;  %v7381_v29 = vpack.c.bf16 %v4326_v7, %v4322_v28  ;;  %v7477_v33 = vpack.c.bf16 %v4328_v44, %v4324_v31  ;;  %v4359_v7 = vld [vmem:[#allocation7 + $0x1db0] sm:$0xff]  ;;  %v4362_v31 = vld [vmem:[#allocation7 + $0x1dc8] sm:$0xff] }
 0x3d0   : > { %v4366_v44 = vld [vmem:[#allocation7 + $0x1de8] sm:$0xff] }
 0x3d1   : > { %7364 = vmatpush1.bf16.msra.mxu1 %v7363_v39  ;;  %v4330_v39 = vld [vmem:[#allocation7 + $0x1cc8] sm:$0xff] }
 0x3d2   : > { %7460 = vmatpush1.bf16.msra.mxu0 %v7459_v42  ;;  %7366 = vmatprep.subr.bf16.mxu1 %v7365_v20  ;;  %v4334_v42 = vld [vmem:[#allocation7 + $0x1ce8] sm:$0xff]  ;;  %v4332_v20 = vld [vmem:[#allocation7 + $0x1cd8] sm:$0xff] }
 0x3d3   : > { %7462 = vmatprep.subr.bf16.mxu0 %v7461_v53  ;;  %v7385_v52 = vpack.c.bf16 %v4334_v42, %v4330_v39  ;;  %v4329_v53 = vld [vmem:[#allocation7 + $0x1cc0] sm:$0xff]  ;;  %v7481_v61 = vpack.c.bf16 %v4336_v47, %v4332_v20  ;;  %v4367_v42 = vld [vmem:[#allocation7 + $0x1df0] sm:$0xff] }
 0x3d4   : > { %v7387_v8 = vpack.c.bf16 %v4333_v22, %v4329_v53  ;;  %v4835_v20 = vld [vmem:[#allocation10 + $0x408] sm:$0xff]  ;;  %v7499_v53 = vpack.c.bf16 %v4367_v42, %v4363_v41  ;;  %v4842_v48 = vld [vmem:[#allocation10 + $0x440] sm:$0xff] }
 0x3d5   : > { %7368 = vmatpush1.bf16.msra.mxu1 %v7367_v4  ;;  %v4342_v4 = vld [vmem:[#allocation7 + $0x1d28] sm:$0xff] }
 0x3d6   : > { %7464 = vmatpush1.bf16.msra.mxu0 %v7463_v5  ;;  %7370 = vmatprep.subr.bf16.mxu1 %v7369_v50  ;;  %v4340_v5 = vld [vmem:[#allocation7 + $0x1d18] sm:$0xff]  ;;  %v7389_v9 = vpack.c.bf16 %v4342_v4, %v4338_v3  ;;  %v4839_v47 = vld [vmem:[#allocation10 + $0x428] sm:$0xff]  ;;  %v4850_v6 = vld [vmem:[#allocation10 + $0x480] sm:$0xff] }
 0x3d7   : > { %7466 = vmatprep.subr.bf16.mxu0 %v7465_v30  ;;  %v4344_v50 = vld [vmem:[#allocation7 + $0x1d38] sm:$0xff]  ;;  %v4341_v30 = vld [vmem:[#allocation7 + $0x1d20] sm:$0xff]  ;;  %v7501_v22 = vpack.c.bf16 %v4839_v47, %v4835_v20  ;;  %v4875_v47 = vld [vmem:[#allocation10 + $0x548] sm:$0xff] }
 0x3d8   : > { %v7485_v62 = vpack.c.bf16 %v4344_v50, %v4340_v5  ;;  %v4840_v4 = vld [vmem:[#allocation10 + $0x430] sm:$0xff]  ;;  %v4843_v5 = vld [vmem:[#allocation10 + $0x448] sm:$0xff]  ;;  %v4870_v41 = vld [vmem:[#allocation10 + $0x520] sm:$0xff] }
 0x3d9   : > { %7372 = vmatpush1.bf16.msra.mxu1 %v7371_v12  ;;  %v4348_v12 = vld [vmem:[#allocation7 + $0x1d58] sm:$0xff]  ;;  %v4847_v50 = vld [vmem:[#allocation10 + $0x468] sm:$0xff] }
 0x3da   : > { %7468 = vmatpush1.bf16.msra.mxu0 %v7467_v1  ;;  %7374 = vmatprep.subr.bf16.mxu1 %v7373_v46  ;;  %v4352_v1 = vld [vmem:[#allocation7 + $0x1d78] sm:$0xff]  ;;  %v7391_v46 = vpack.c.bf16 %v4341_v30, %v4337_v10  ;;  %v7505_v30 = vpack.c.bf16 %v4847_v50, %v4843_v5  ;;  %v4883_v50 = vld [vmem:[#allocation10 + $0x588] sm:$0xff] }
 0x3db   : > { %7470 = vmatprep.subr.bf16.mxu0 %v7469_v16  ;;  %v4349_v16 = vld [vmem:[#allocation7 + $0x1d60] sm:$0xff]  ;;  %v7489_v56 = vpack.c.bf16 %v4352_v1, %v4348_v12  ;;  %v4851_v12 = vld [vmem:[#allocation10 + $0x488] sm:$0xff]  ;;  %v4872_v20 = vld [vmem:[#allocation10 + $0x530] sm:$0xff] }
 0x3dc   : > { %4434 = vmatmul.mubr.f32.vlgmr.msra.gmra.mrb[6].mxu1 %v9397_v38  ;;  %v4855_v1 = vld [vmem:[#allocation10 + $0x4a8] sm:$0xff]  ;;  %v4880_v5 = vld [vmem:[#allocation10 + $0x570] sm:$0xff] }
 0x3dd   : > { %4576 = vmatmul.mubr.f32.vlgmr.msra.gmra.mrb[12].mxu0 %v9397_v38  ;;  %7376 = vmatpush1.bf16.msra.mxu1 %v7375_v45  ;;  %v7383_v38 = vpack.c.bf16 %v4325_v40, %v4321_v35  ;;  %v4356_v45 = vld [vmem:[#allocation7 + $0x1d98] sm:$0xff]  ;;  %v7495_v35 = vpack.c.bf16 %v4359_v7, %v4355_v26  ;;  %v7401_v40 = vpack.c.bf16 %v4366_v44, %v4362_v31  ;;  %v4862_v26 = vld [vmem:[#allocation10 + $0x4e0] sm:$0xff]  ;;  %v4867_v44 = vld [vmem:[#allocation10 + $0x508] sm:$0xff] }
 0x3de   : > { %7472 = vmatpush1.bf16.msra.mxu0 %v7471_v24  ;;  %7378 = vmatprep.subr.bf16.mxu1 %v7377_v36  ;;  %v4360_v24 = vld [vmem:[#allocation7 + $0x1db8] sm:$0xff]  ;;  %v7395_v36 = vpack.c.bf16 %v4349_v16, %v4345_v15  ;;  %v7571_v15 = vpack.c.bf16 %v4848_v18, %v4844_v11  ;;  %v7509_v16 = vpack.c.bf16 %v4855_v1, %v4851_v12  ;;  %v4886_v11 = vld [vmem:[#allocation10 + $0x5a0] sm:$0xff]  ;;  %v4891_v1 = vld [vmem:[#allocation10 + $0x5c8] sm:$0xff] }
 0x3df   : > { %7474 = vmatprep.subr.bf16.mxu0 %v7473_v43  ;;  %4504 = vmatprep.mubr.f32.mxu1 %v8652_v0  ;;  %v4357_v43 = vld [vmem:[#allocation7 + $0x1da0] sm:$0xff]  ;;  %v7493_v28 = vpack.c.bf16 %v4360_v24, %v4356_v45  ;;  %v4859_v45 = vld [vmem:[#allocation10 + $0x4c8] sm:$0xff]  ;;  %v4864_v31 = vld [vmem:[#allocation10 + $0x4f0] sm:$0xff] }
 0x3e0   : > { %4646 = vmatprep.mubr.f32.mxu0 %v8652_v0  ;;  %v7483_v0 = vpack.c.bf16 %v4335_v57, %v4331_v51  ;;  %v4834_v51 = vld [vmem:[#allocation10 + $0x400] sm:$0xff]  ;;  %v4836_v57 = vld [vmem:[#allocation10 + $0x410] sm:$0xff]  ;;  %v4863_v24 = vld [vmem:[#allocation10 + $0x4e8] sm:$0xff] }
 0x3e1   : > { %7380 = vmatpush1.bf16.msra.mxu1 %v7379_v14  ;;  %v4364_v14 = vld [vmem:[#allocation7 + $0x1dd8] sm:$0xff]  ;;  %v7567_v10 = vpack.c.bf16 %v4840_v4, %v4836_v57  ;;  %v4878_v57 = vld [vmem:[#allocation10 + $0x560] sm:$0xff] }
 0x3e2   : > { %7476 = vmatpush1.bf16.msra.mxu0 %v7475_v32  ;;  %7382 = vmatprep.subr.bf16.mxu1 %v7381_v29  ;;  %v4368_v32 = vld [vmem:[#allocation7 + $0x1df8] sm:$0xff]  ;;  %v7399_v29 = vpack.c.bf16 %v4357_v43, %v4353_v27  ;;  %v7513_v27 = vpack.c.bf16 %v4863_v24, %v4859_v45  ;;  %v4858_v43 = vld [vmem:[#allocation10 + $0x4c0] sm:$0xff]  ;;  %v4899_v24 = vld [vmem:[#allocation10 + $0x608] sm:$0xff] }
 0x3e3   : > { %7478 = vmatprep.subr.bf16.mxu0 %v7477_v33  ;;  %v4365_v33 = vld [vmem:[#allocation7 + $0x1de0] sm:$0xff]  ;;  %v7497_v39 = vpack.c.bf16 %v4368_v32, %v4364_v14  ;;  %v4871_v14 = vld [vmem:[#allocation10 + $0x528] sm:$0xff]  ;;  %v4888_v12 = vld [vmem:[#allocation10 + $0x5b0] sm:$0xff] }
 0x3e4   : > { %v4869_v32 = vld [vmem:[#allocation10 + $0x518] sm:$0xff]  ;;  %v4896_v45 = vld [vmem:[#allocation10 + $0x5f0] sm:$0xff] }
 0x3e5   : > { %7384 = vmatpush1.bf16.msra.mxu1 %v7383_v38  ;;  %v4837_v38 = vld [vmem:[#allocation10 + $0x418] sm:$0xff] }
 0x3e6   : > { %7480 = vmatpush1.bf16.msra.mxu0 %v7479_v49  ;;  %7386 = vmatprep.subr.bf16.mxu1 %v7385_v52  ;;  %v4841_v49 = vld [vmem:[#allocation10 + $0x438] sm:$0xff]  ;;  %v7403_v52 = vpack.c.bf16 %v4365_v33, %v4361_v60  ;;  %v7517_v60 = vpack.c.bf16 %v4871_v14, %v4867_v44  ;;  %v4866_v33 = vld [vmem:[#allocation10 + $0x500] sm:$0xff]  ;;  %v4904_v44 = vld [vmem:[#allocation10 + $0x630] sm:$0xff] }
 0x3e7   : > { %7482 = vmatprep.subr.bf16.mxu0 %v7481_v61  ;;  %v4838_v61 = vld [vmem:[#allocation10 + $0x420] sm:$0xff]  ;;  %v7565_v3 = vpack.c.bf16 %v4841_v49, %v4837_v38  ;;  %v4879_v38 = vld [vmem:[#allocation10 + $0x568] sm:$0xff]  ;;  %v4877_v49 = vld [vmem:[#allocation10 + $0x558] sm:$0xff] }
 0x3e8   : > { %v4907_v14 = vld [vmem:[#allocation10 + $0x648] sm:$0xff] }
 0x3e9   : > { %7388 = vmatpush1.bf16.msra.mxu1 %v7387_v8  ;;  %v4845_v8 = vld [vmem:[#allocation10 + $0x458] sm:$0xff] }
 0x3ea   : > { %7484 = vmatpush1.bf16.msra.mxu0 %v7483_v0  ;;  %7390 = vmatprep.subr.bf16.mxu1 %v7389_v9  ;;  %v4849_v0 = vld [vmem:[#allocation10 + $0x478] sm:$0xff]  ;;  %v7503_v9 = vpack.c.bf16 %v4838_v61, %v4834_v51  ;;  %v7521_v51 = vpack.c.bf16 %v4879_v38, %v4875_v47  ;;  %v4874_v61 = vld [vmem:[#allocation10 + $0x540] sm:$0xff]  ;;  %v4912_v47 = vld [vmem:[#allocation10 + $0x670] sm:$0xff] }
 0x3eb   : > { %7486 = vmatprep.subr.bf16.mxu0 %v7485_v62  ;;  %v4846_v62 = vld [vmem:[#allocation10 + $0x460] sm:$0xff]  ;;  %v7569_v63 = vpack.c.bf16 %v4849_v0, %v4845_v8  ;;  %v4887_v8 = vld [vmem:[#allocation10 + $0x5a8] sm:$0xff]  ;;  %v4885_v0 = vld [vmem:[#allocation10 + $0x598] sm:$0xff] }
 0x3ec   : > { %v4915_v38 = vld [vmem:[#allocation10 + $0x688] sm:$0xff] }
 0x3ed   : > { %7392 = vmatpush1.bf16.msra.mxu1 %v7391_v46  ;;  %v4853_v46 = vld [vmem:[#allocation10 + $0x498] sm:$0xff] }
 0x3ee   : > { %7488 = vmatpush1.bf16.msra.mxu0 %v7487_v54  ;;  %7394 = vmatprep.subr.bf16.mxu1 %v7393_v55  ;;  %v4857_v54 = vld [vmem:[#allocation10 + $0x4b8] sm:$0xff]  ;;  %v7507_v55 = vpack.c.bf16 %v4846_v62, %v4842_v48  ;;  %v7525_v48 = vpack.c.bf16 %v4887_v8, %v4883_v50  ;;  %v4882_v62 = vld [vmem:[#allocation10 + $0x580] sm:$0xff]  ;;  %v4920_v50 = vld [vmem:[#allocation10 + $0x6b0] sm:$0xff] }
 0x3ef   : > { %7490 = vmatprep.subr.bf16.mxu0 %v7489_v56  ;;  %v4854_v56 = vld [vmem:[#allocation10 + $0x4a0] sm:$0xff]  ;;  %v7573_v17 = vpack.c.bf16 %v4857_v54, %v4853_v46  ;;  %v4895_v46 = vld [vmem:[#allocation10 + $0x5e8] sm:$0xff]  ;;  %v4893_v54 = vld [vmem:[#allocation10 + $0x5d8] sm:$0xff] }
 0x3f0   : > { %v4923_v8 = vld [vmem:[#allocation10 + $0x6c8] sm:$0xff] }
 0x3f1   : > { %7396 = vmatpush1.bf16.msra.mxu1 %v7395_v36  ;;  %v4861_v36 = vld [vmem:[#allocation10 + $0x4d8] sm:$0xff] }
 0x3f2   : > { %7492 = vmatpush1.bf16.msra.mxu0 %v7491_v25  ;;  %7398 = vmatprep.subr.bf16.mxu1 %v7397_v37  ;;  %v4865_v25 = vld [vmem:[#allocation10 + $0x4f8] sm:$0xff]  ;;  %v7511_v37 = vpack.c.bf16 %v4854_v56, %v4850_v6  ;;  %v7529_v6 = vpack.c.bf16 %v4895_v46, %v4891_v1  ;;  %v4890_v56 = vld [vmem:[#allocation10 + $0x5c0] sm:$0xff]  ;;  %v4928_v1 = vld [vmem:[#allocation10 + $0x6f0] sm:$0xff] }
 0x3f3   : > { %7494 = vmatprep.subr.bf16.mxu0 %v7493_v28  ;;  %v4860_v28 = vld [vmem:[#allocation10 + $0x4d0] sm:$0xff]  ;;  %v7577_v7 = vpack.c.bf16 %v4865_v25, %v4861_v36  ;;  %v4903_v36 = vld [vmem:[#allocation10 + $0x628] sm:$0xff]  ;;  %v4901_v25 = vld [vmem:[#allocation10 + $0x618] sm:$0xff] }
 0x3f4   : > { %v4931_v46 = vld [vmem:[#allocation10 + $0x708] sm:$0xff] }
 0x3f5   : > { %7400 = vmatpush1.bf16.msra.mxu1 %v7399_v29  ;;  %v4873_v29 = vld [vmem:[#allocation10 + $0x538] sm:$0xff] }
 0x3f6   : > { %7496 = vmatpush1.bf16.msra.mxu0 %v7495_v35  ;;  %7402 = vmatprep.subr.bf16.mxu1 %v7401_v40  ;;  %v7515_v35 = vpack.c.bf16 %v4862_v26, %v4858_v43  ;;  %v7579_v40 = vpack.c.bf16 %v4864_v31, %v4860_v28  ;;  %v7581_v42 = vpack.c.bf16 %v4873_v29, %v4869_v32  ;;  %v4898_v26 = vld [vmem:[#allocation10 + $0x600] sm:$0xff]  ;;  %v4911_v32 = vld [vmem:[#allocation10 + $0x668] sm:$0xff]  ;;  %v4909_v29 = vld [vmem:[#allocation10 + $0x658] sm:$0xff] }
 0x3f7   : > { %7498 = vmatprep.subr.bf16.mxu0 %v7497_v39  ;;  %v4868_v39 = vld [vmem:[#allocation10 + $0x510] sm:$0xff]  ;;  %v7533_v43 = vpack.c.bf16 %v4903_v36, %v4899_v24  ;;  %v4902_v28 = vld [vmem:[#allocation10 + $0x620] sm:$0xff] }
 0x3f8   : > { %v4936_v24 = vld [vmem:[#allocation10 + $0x730] sm:$0xff] }
 0x3f9   : > { %7404 = vmatpush1.bf16.msra.mxu1 %v7403_v52  ;;  %v4881_v52 = vld [vmem:[#allocation10 + $0x578] sm:$0xff] }
 0x3fa   : > { %7500 = vmatpush1.bf16.msra.mxu0 %v7499_v53  ;;  %7502 = vmatprep.subr.bf16.mxu1 %v7501_v22  ;;  %v7519_v53 = vpack.c.bf16 %v4870_v41, %v4866_v33  ;;  %v7583_v22 = vpack.c.bf16 %v4872_v20, %v4868_v39  ;;  %v7585_v4 = vpack.c.bf16 %v4881_v52, %v4877_v49  ;;  %v4906_v41 = vld [vmem:[#allocation10 + $0x640] sm:$0xff]  ;;  %v4919_v49 = vld [vmem:[#allocation10 + $0x6a8] sm:$0xff]  ;;  %v4917_v52 = vld [vmem:[#allocation10 + $0x698] sm:$0xff] }
 0x3fb   : > { %7566 = vmatprep.subr.bf16.mxu0 %v7565_v3  ;;  %v4876_v3 = vld [vmem:[#allocation10 + $0x550] sm:$0xff]  ;;  %v7537_v33 = vpack.c.bf16 %v4911_v32, %v4907_v14  ;;  %v4910_v39 = vld [vmem:[#allocation10 + $0x660] sm:$0xff] }
 0x3fc   : > { %4505 = vmatmul.mubr.f32.vlgmr.msra.gmra.mrb[6].mxu1 %v9401_v34  ;;  %v4940_v14 = vld [vmem:[#allocation10 + $0x750] sm:$0xff] }
 0x3fd   : > { %4647 = vmatmul.mubr.f32.vlgmr.msra.gmra.mrb[12].mxu0 %v9401_v34  ;;  %7504 = vmatpush1.bf16.msra.mxu1 %v7503_v9  ;;  %v7575_v34 = vpack.c.bf16 %v4856_v13, %v4852_v2  ;;  %v4889_v9 = vld [vmem:[#allocation10 + $0x5b8] sm:$0xff]  ;;  %v4894_v2 = vld [vmem:[#allocation10 + $0x5e0] sm:$0xff]  ;;  %v4944_v32 = vld [vmem:[#allocation10 + $0x770] sm:$0xff] }
 0x3fe   : > { %7568 = vmatpush1.bf16.msra.mxu0 %v7567_v10  ;;  %7506 = vmatprep.subr.bf16.mxu1 %v7505_v30  ;;  %v7523_v10 = vpack.c.bf16 %v4878_v57, %v4874_v61  ;;  %v7587_v30 = vpack.c.bf16 %v4880_v5, %v4876_v3  ;;  %v7589_v18 = vpack.c.bf16 %v4889_v9, %v4885_v0  ;;  %v4914_v57 = vld [vmem:[#allocation10 + $0x680] sm:$0xff]  ;;  %v4927_v0 = vld [vmem:[#allocation10 + $0x6e8] sm:$0xff]  ;;  %v4925_v9 = vld [vmem:[#allocation10 + $0x6d8] sm:$0xff] }
 0x3ff   : > { %7570 = vmatprep.subr.bf16.mxu0 %v7569_v63  ;;  %v4884_v63 = vld [vmem:[#allocation10 + $0x590] sm:$0xff]  ;;  %v7541_v61 = vpack.c.bf16 %v4919_v49, %v4915_v38  ;;  %v4918_v3 = vld [vmem:[#allocation10 + $0x6a0] sm:$0xff] }
 0x400   : > { %v4952_v49 = vld [vmem:[#allocation10 + $0x7b0] sm:$0xff] }
 0x401   : > { %7508 = vmatpush1.bf16.msra.mxu1 %v7507_v55  ;;  %v4897_v55 = vld [vmem:[#allocation10 + $0x5f8] sm:$0xff] }
 0x402   : > { %7572 = vmatpush1.bf16.msra.mxu0 %v7571_v15  ;;  %7510 = vmatprep.subr.bf16.mxu1 %v7509_v16  ;;  %v7527_v15 = vpack.c.bf16 %v4886_v11, %v4882_v62  ;;  %v7591_v16 = vpack.c.bf16 %v4888_v12, %v4884_v63  ;;  %v7593_v13 = vpack.c.bf16 %v4897_v55, %v4893_v54  ;;  %v4922_v11 = vld [vmem:[#allocation10 + $0x6c0] sm:$0xff]  ;;  %v4935_v54 = vld [vmem:[#allocation10 + $0x728] sm:$0xff]  ;;  %v4933_v55 = vld [vmem:[#allocation10 + $0x718] sm:$0xff] }
 0x403   : > { %7574 = vmatprep.subr.bf16.mxu0 %v7573_v17  ;;  %v4892_v17 = vld [vmem:[#allocation10 + $0x5d0] sm:$0xff]  ;;  %v7545_v62 = vpack.c.bf16 %v4927_v0, %v4923_v8  ;;  %v4926_v63 = vld [vmem:[#allocation10 + $0x6e0] sm:$0xff] }
 0x404   : > { %v4960_v8 = vld [vmem:[#allocation10 + $0x7f0] sm:$0xff] }
 0x405   : > { %7512 = vmatpush1.bf16.msra.mxu1 %v7511_v37  ;;  %v4905_v37 = vld [vmem:[#allocation10 + $0x638] sm:$0xff] }
 0x406   : > { %7576 = vmatpush1.bf16.msra.mxu0 %v7575_v34  ;;  %7514 = vmatprep.subr.bf16.mxu1 %v7513_v27  ;;  %v7531_v34 = vpack.c.bf16 %v4894_v2, %v4890_v56  ;;  %v7595_v27 = vpack.c.bf16 %v4896_v45, %v4892_v17  ;;  %v7597_v31 = vpack.c.bf16 %v4905_v37, %v4901_v25  ;;  %v4930_v2 = vld [vmem:[#allocation10 + $0x700] sm:$0xff]  ;;  %v4932_v45 = vld [vmem:[#allocation10 + $0x710] sm:$0xff]  ;;  %v4939_v37 = vld [vmem:[#allocation10 + $0x748] sm:$0xff] }
 0x407   : > { %7578 = vmatprep.subr.bf16.mxu0 %v7577_v7  ;;  %v4900_v7 = vld [vmem:[#allocation10 + $0x610] sm:$0xff]  ;;  %v7549_v56 = vpack.c.bf16 %v4935_v54, %v4931_v46  ;;  %v4934_v17 = vld [vmem:[#allocation10 + $0x720] sm:$0xff]  ;;  %v7615_v25 = vpack.c.bf16 %v4936_v24, %v4932_v45 }
 0x408   : > { %v7551_v36 = vpack.c.bf16 %v4934_v17, %v4930_v2 }
 0x409   : > { %7516 = vmatpush1.bf16.msra.mxu1 %v7515_v35  ;;  %v4913_v35 = vld [vmem:[#allocation10 + $0x678] sm:$0xff] }
 0x40a   : > { %7580 = vmatpush1.bf16.msra.mxu0 %v7579_v40  ;;  %7518 = vmatprep.subr.bf16.mxu1 %v7517_v60  ;;  %v7535_v40 = vpack.c.bf16 %v4902_v28, %v4898_v26  ;;  %v7599_v60 = vpack.c.bf16 %v4904_v44, %v4900_v7  ;;  %v7601_v20 = vpack.c.bf16 %v4913_v35, %v4909_v29  ;;  %v4945_v26 = vld [vmem:[#allocation10 + $0x778] sm:$0xff]  ;;  %v4938_v28 = vld [vmem:[#allocation10 + $0x740] sm:$0xff]  ;;  %v4947_v29 = vld [vmem:[#allocation10 + $0x788] sm:$0xff] }
 0x40b   : > { %7582 = vmatprep.subr.bf16.mxu0 %v7581_v42  ;;  %v4908_v42 = vld [vmem:[#allocation10 + $0x650] sm:$0xff]  ;;  %v4942_v7 = vld [vmem:[#allocation10 + $0x760] sm:$0xff]  ;;  %v7619_v35 = vpack.c.bf16 %v4944_v32, %v4940_v14 }
 0x40c   : > { %v7555_v44 = vpack.c.bf16 %v4942_v7, %v4938_v28  ;;  %v4709_v32 = vld [vmem:[#allocation10 + $0x20] sm:$0xff] }
 0x40d   : > { %7520 = vmatpush1.bf16.msra.mxu1 %v7519_v53  ;;  %v4921_v53 = vld [vmem:[#allocation10 + $0x6b8] sm:$0xff] }
 0x40e   : > { %7584 = vmatpush1.bf16.msra.mxu0 %v7583_v22  ;;  %7522 = vmatprep.subr.bf16.mxu1 %v7521_v51  ;;  %v7539_v22 = vpack.c.bf16 %v4910_v39, %v4906_v41  ;;  %v7603_v51 = vpack.c.bf16 %v4912_v47, %v4908_v42  ;;  %v7605_v5 = vpack.c.bf16 %v4921_v53, %v4917_v52  ;;  %v4946_v42 = vld [vmem:[#allocation10 + $0x780] sm:$0xff]  ;;  %v4948_v47 = vld [vmem:[#allocation10 + $0x790] sm:$0xff]  ;;  %v4955_v52 = vld [vmem:[#allocation10 + $0x7c8] sm:$0xff] }
 0x40f   : > { %7586 = vmatprep.subr.bf16.mxu0 %v7585_v4  ;;  %v4916_v4 = vld [vmem:[#allocation10 + $0x690] sm:$0xff]  ;;  %v4959_v53 = vld [vmem:[#allocation10 + $0x7e8] sm:$0xff] }
 0x411   : > { %7524 = vmatpush1.bf16.msra.mxu1 %v7523_v10  ;;  %v4929_v10 = vld [vmem:[#allocation10 + $0x6f8] sm:$0xff] }
 0x412   : > { %7588 = vmatpush1.bf16.msra.mxu0 %v7587_v30  ;;  %7526 = vmatprep.subr.bf16.mxu1 %v7525_v48  ;;  %v7543_v30 = vpack.c.bf16 %v4918_v3, %v4914_v57  ;;  %v7607_v48 = vpack.c.bf16 %v4920_v50, %v4916_v4  ;;  %v7609_v12 = vpack.c.bf16 %v4929_v10, %v4925_v9  ;;  %v4961_v57 = vld [vmem:[#allocation10 + $0x7f8] sm:$0xff]  ;;  %v4954_v3 = vld [vmem:[#allocation10 + $0x7c0] sm:$0xff]  ;;  %v4956_v50 = vld [vmem:[#allocation10 + $0x7d0] sm:$0xff] }
 0x413   : > { %7590 = vmatprep.subr.bf16.mxu0 %v7589_v18  ;;  %v4924_v18 = vld [vmem:[#allocation10 + $0x6d0] sm:$0xff]  ;;  %v4706_v9 = vld [vmem:[#allocation10 + $0x8] sm:$0xff] }
 0x414   : > { %v4710_v10 = vld [vmem:[#allocation10 + $0x28] sm:$0xff] }
 0x415   : > { %7528 = vmatpush1.bf16.msra.mxu1 %v7527_v15  ;;  %v4937_v15 = vld [vmem:[#allocation10 + $0x738] sm:$0xff] }
 0x416   : > { %7592 = vmatpush1.bf16.msra.mxu0 %v7591_v16  ;;  %7530 = vmatprep.subr.bf16.mxu1 %v7529_v6  ;;  %v7547_v16 = vpack.c.bf16 %v4926_v63, %v4922_v11  ;;  %v7611_v6 = vpack.c.bf16 %v4928_v1, %v4924_v18  ;;  %v4712_v11 = vld [vmem:[#allocation10 + $0x38] sm:$0xff] }
 0x417   : > { %7594 = vmatprep.subr.bf16.mxu0 %v7593_v13  ;;  %v7613_v13 = vpack.c.bf16 %v4937_v15, %v4933_v55  ;;  %v4657_v18 = vld [vmem:[#allocation8] sm:$0xf] }
 0x418   : > { %v4670_v1 = vrot.slane %v4657_v18, %v9193_v21  ;;  %v4666_v46 = vrot.slane %v4657_v18, %v9216_v59  ;;  %v4674_v54 = vrot.slane %v4657_v18, %v9198_v23 }
 0x419   : > { %7532 = vmatpush1.bf16.msra.mxu1 %v7531_v34  ;;  %v4943_v34 = vld [vmem:[#allocation10 + $0x768] sm:$0xff] }
 0x41a   : > { %7596 = vmatpush1.bf16.msra.mxu0 %v7595_v27  ;;  %7534 = vmatprep.subr.bf16.mxu1 %v7533_v43  ;;  %v4941_v27 = vld [vmem:[#allocation10 + $0x758] sm:$0xff]  ;;  %v7553_v43 = vpack.c.bf16 %v4943_v34, %v4939_v37 }
 0x41b   : > { %7598 = vmatprep.subr.bf16.mxu0 %v7597_v31  ;;  %v7617_v31 = vpack.c.bf16 %v4945_v26, %v4941_v27 }
 0x41d   : > { %7536 = vmatpush1.bf16.msra.mxu1 %v7535_v40  ;;  %v4951_v40 = vld [vmem:[#allocation10 + $0x7a8] sm:$0xff] }
 0x41e   : > { %7600 = vmatpush1.bf16.msra.mxu0 %v7599_v60  ;;  %7538 = vmatprep.subr.bf16.mxu1 %v7537_v33  ;;  %v4949_v60 = vld [vmem:[#allocation10 + $0x798] sm:$0xff]  ;;  %v7557_v41 = vpack.c.bf16 %v4951_v40, %v4947_v29  ;;  %v4707_v29 = vld [vmem:[#allocation10 + $0x10] sm:$0xff] }
 0x41f   : > { %7602 = vmatprep.subr.bf16.mxu0 %v7601_v20  ;;  %v4953_v33 = vld [vmem:[#allocation10 + $0x7b8] sm:$0xff]  ;;  %v4950_v20 = vld [vmem:[#allocation10 + $0x7a0] sm:$0xff] }
 0x420   : > { %v7621_v39 = vpack.c.bf16 %v4953_v33, %v4949_v60  ;;  %v7559_v38 = vpack.c.bf16 %v4950_v20, %v4946_v42  ;;  %v4714_v60 = vld [vmem:[#allocation10 + $0x48] sm:$0xff] }
 0x421   : > { %7540 = vmatpush1.bf16.msra.mxu1 %v7539_v22  ;;  %v7623_v22 = vpack.c.bf16 %v4952_v49, %v4948_v47  ;;  %v4718_v33 = vld [vmem:[#allocation10 + $0x68] sm:$0xff]  ;;  %v4717_v49 = vld [vmem:[#allocation10 + $0x60] sm:$0xff] }
 0x422   : > { %7604 = vmatpush1.bf16.msra.mxu0 %v7603_v51  ;;  %7542 = vmatprep.subr.bf16.mxu1 %v7541_v61  ;;  %v7561_v51 = vpack.c.bf16 %v4959_v53, %v4955_v52  ;;  %v4957_v61 = vld [vmem:[#allocation10 + $0x7d8] sm:$0xff]  ;;  %v4715_v53 = vld [vmem:[#allocation10 + $0x50] sm:$0xff] }
 0x423   : > { %7606 = vmatprep.subr.bf16.mxu0 %v7605_v5  ;;  %v7625_v4 = vpack.c.bf16 %v4961_v57, %v4957_v61  ;;  %v4958_v5 = vld [vmem:[#allocation10 + $0x7e0] sm:$0xff]  ;;  %v7633_v61 = vpack.c.bf16 %v4718_v33, %v4714_v60 }
 0x424   : > { %v7563_v0 = vpack.c.bf16 %v4958_v5, %v4954_v3  ;;  %v4726_v3 = vld [vmem:[#allocation10 + $0xa8] sm:$0xff]  ;;  %v4728_v5 = vld [vmem:[#allocation10 + $0xb8] sm:$0xff]  ;;  %v4749_v60 = vld [vmem:[#allocation10 + $0x160] sm:$0xff] }
 0x425   : > { %7544 = vmatpush1.bf16.msra.mxu1 %v7543_v30  ;;  %v4708_v30 = vld [vmem:[#allocation10 + $0x18] sm:$0xff] }
 0x426   : > { %7608 = vmatpush1.bf16.msra.mxu0 %v7607_v48  ;;  %7546 = vmatprep.subr.bf16.mxu1 %v7545_v62  ;;  %v7627_v48 = vpack.c.bf16 %v4960_v8, %v4956_v50  ;;  %v7629_v62 = vpack.c.bf16 %v4710_v10, %v4706_v9  ;;  %v7693_v63 = vpack.c.bf16 %v4712_v11, %v4708_v30  ;;  %v4725_v9 = vld [vmem:[#allocation10 + $0xa0] sm:$0xff]  ;;  %v4730_v11 = vld [vmem:[#allocation10 + $0xc8] sm:$0xff] }
 0x427   : > { %7610 = vmatprep.subr.bf16.mxu0 %v7609_v12  ;;  %v4662_v12 = vrot.slane %v4657_v18, %v9213_v58  ;;  %v4732_v18 = vld [vmem:[#allocation10 + $0xd8] sm:$0xff] }
 0x429   : > { %7548 = vmatpush1.bf16.msra.mxu1 %v7547_v16 }
 0x42a   : > { %7612 = vmatpush1.bf16.msra.mxu0 %v7611_v6  ;;  %7550 = vmatprep.subr.bf16.mxu1 %v7549_v56 }
 0x42b   : > { %7614 = vmatprep.subr.bf16.mxu0 %v7613_v13 }
 0x42d   : > { %7552 = vmatpush1.bf16.msra.mxu1 %v7551_v36 }
 0x42e   : > { %7616 = vmatpush1.bf16.msra.mxu0 %v7615_v25  ;;  %7554 = vmatprep.subr.bf16.mxu1 %v7553_v43 }
 0x42f   : > { %7618 = vmatprep.subr.bf16.mxu0 %v7617_v31 }
 0x431   : > { %7556 = vmatpush1.bf16.msra.mxu1 %v7555_v44  ;;  %v4705_v44 = vld [vmem:[#allocation10] sm:$0xff] }
 0x432   : > { %7620 = vmatpush1.bf16.msra.mxu0 %v7619_v35  ;;  %7558 = vmatprep.subr.bf16.mxu1 %v7557_v41  ;;  %v4711_v35 = vld [vmem:[#allocation10 + $0x30] sm:$0xff]  ;;  %v4716_v41 = vld [vmem:[#allocation10 + $0x58] sm:$0xff]  ;;  %v7631_v20 = vpack.c.bf16 %v4709_v32, %v4705_v44 }
 0x433   : > { %7622 = vmatprep.subr.bf16.mxu0 %v7621_v39  ;;  %v4720_v39 = vld [vmem:[#allocation10 + $0x78] sm:$0xff]  ;;  %v7695_v47 = vpack.c.bf16 %v4711_v35, %v4707_v29  ;;  %v4745_v35 = vld [vmem:[#allocation10 + $0x140] sm:$0xff] }
 0x434   : > { %v7697_v57 = vpack.c.bf16 %v4720_v39, %v4716_v41  ;;  %v4752_v44 = vld [vmem:[#allocation10 + $0x178] sm:$0xff]  ;;  %v4747_v39 = vld [vmem:[#allocation10 + $0x150] sm:$0xff] }
 0x435   : > { %7560 = vmatpush1.bf16.msra.mxu1 %v7559_v38  ;;  %v4713_v38 = vld [vmem:[#allocation10 + $0x40] sm:$0xff] }
 0x436   : > { %7624 = vmatpush1.bf16.msra.mxu0 %v7623_v22  ;;  %7562 = vmatprep.subr.bf16.mxu1 %v7561_v51  ;;  %v4719_v22 = vld [vmem:[#allocation10 + $0x70] sm:$0xff]  ;;  %v4722_v51 = vld [vmem:[#allocation10 + $0x88] sm:$0xff]  ;;  %v7635_v50 = vpack.c.bf16 %v4717_v49, %v4713_v38  ;;  %v4756_v38 = vld [vmem:[#allocation10 + $0x198] sm:$0xff] }
 0x437   : > { %7626 = vmatprep.subr.bf16.mxu0 %v7625_v4  ;;  %v4724_v4 = vld [vmem:[#allocation10 + $0x98] sm:$0xff]  ;;  %v7699_v8 = vpack.c.bf16 %v4719_v22, %v4715_v53  ;;  %v7637_v10 = vpack.c.bf16 %v4726_v3, %v4722_v51  ;;  %v4753_v22 = vld [vmem:[#allocation10 + $0x180] sm:$0xff]  ;;  %v4755_v3 = vld [vmem:[#allocation10 + $0x190] sm:$0xff] }
 0x438   : > { %v7701_v30 = vpack.c.bf16 %v4728_v5, %v4724_v4  ;;  %v4760_v49 = vld [vmem:[#allocation10 + $0x1b8] sm:$0xff]  ;;  %v4757_v51 = vld [vmem:[#allocation10 + $0x1a0] sm:$0xff]  ;;  %v4759_v4 = vld [vmem:[#allocation10 + $0x1b0] sm:$0xff] }
 0x439   : > { %7564 = vmatpush1.bf16.msra.mxu1 %v7563_v0  ;;  %v4721_v0 = vld [vmem:[#allocation10 + $0x80] sm:$0xff]  ;;  %v4762_v5 = vld [vmem:[#allocation10 + $0x1c8] sm:$0xff] }
 0x43a   : > { %7628 = vmatpush1.bf16.msra.mxu0 %v7627_v48  ;;  %7630 = vmatprep.subr.bf16.mxu1 %v7629_v62  ;;  %v4723_v48 = vld [vmem:[#allocation10 + $0x90] sm:$0xff] }
 0x43b   : > { %7694 = vmatprep.subr.bf16.mxu0 %v7693_v63  ;;  %v4727_v62 = vld [vmem:[#allocation10 + $0xb0] sm:$0xff]  ;;  %v4734_v63 = vld [vmem:[#allocation10 + $0xe8] sm:$0xff] }
 0x4cf   : > { %v4506_v55 = vpop.f32.mrb[6].mxu1 }
 0x4d0   : > { %v4679_v15 = vadd.f32 %v4662_v12, %v4506_v55  ;;  %v4648_v16 = vpop.f32.mrb[12].mxu0  ;;  %v4508_v6 = vpop.f32.mrb[7].mxu1  ;;  %v4736_v12 = vld [vmem:[#allocation10 + $0xf8] sm:$0xff]  ;;  %v4733_v55 = vld [vmem:[#allocation10 + $0xe0] sm:$0xff] }
 0x4d1   : > { %v4681_v56 = vadd.f32 %v4670_v1, %v4648_v16  ;;  %v4680_v2 = vadd.f32 %v4666_v46, %v4508_v6  ;;  %v4650_v17 = vpop.f32.mrb[13].mxu0  ;;  %v7639_v1 = vpack.c.bf16 %v4725_v9, %v4721_v0  ;;  %v7703_v46 = vpack.c.bf16 %v4727_v62, %v4723_v48  ;;  %v4731_v6 = vld [vmem:[#allocation10 + $0xd0] sm:$0xff]  ;;  %v4768_v0 = vld [vmem:[#allocation10 + $0x1f8] sm:$0xff]  ;;  %v4765_v48 = vld [vmem:[#allocation10 + $0x1e0] sm:$0xff] }
 0x4d2   : > { %v4683_v13 = vmax.f32 %v4679_v15, 0.0  ;;  %v4682_v45 = vadd.f32 %v4674_v54, %v4650_v17  ;;  %v4729_v54 = vld [vmem:[#allocation10 + $0xc0] sm:$0xff]  ;;  %v7641_v15 = vpack.c.bf16 %v4734_v63, %v4730_v11  ;;  %v7705_v16 = vpack.c.bf16 %v4736_v12, %v4732_v18  ;;  %v4742_v17 = vld [vmem:[#allocation10 + $0x128] sm:$0xff]  ;;  %v4763_v63 = vld [vmem:[#allocation10 + $0x1d0] sm:$0xff] }
 0x4d3   : > { %v4685_v24 = vmax.f32 %v4681_v56, 0.0  ;;  %v4684_v36 = vmax.f32 %v4680_v2, 0.0  ;;  %v4735_v56 = vld [vmem:[#allocation10 + $0xf0] sm:$0xff]  ;;  %v4738_v2 = vld [vmem:[#allocation10 + $0x108] sm:$0xff]  ;;  %v7655_v9 = vpack.c.bf16 %v4757_v51, %v4753_v22  ;;  %v4800_v22 = vld [vmem:[#allocation10 + $0x2f8] sm:$0xff] }
 0x4d4   : > { %v4691_v25 = vrot.slane %v4683_v13, 4  ;;  %v4686_v37 = vmax.f32 %v4682_v45, 0.0  ;;  %v4744_v45 = vld [vmem:[#allocation10 + $0x138] sm:$0xff]  ;;  %v4767_v18 = vld [vmem:[#allocation10 + $0x1f0] sm:$0xff]  ;;  %v4770_v12 = vld [vmem:[#allocation10 + $0x208] sm:$0xff] }
 0x4d5   : > { %v4693_v34 = vrot.slane %v4685_v24, 4  ;;  %v4692_v27 = vrot.slane %v4684_v36, 4 }
 0x4d6   : > { %v4699_v43 = vmax.f32 %v4683_v13, %v4691_v25  ;;  %v4694_v26 = vrot.slane %v4686_v37, 4  ;;  %v4740_v13 = vld [vmem:[#allocation10 + $0x118] sm:$0xff]  ;;  %v4737_v25 = vld [vmem:[#allocation10 + $0x100] sm:$0xff] }
 0x4d7   : > { %v4701_v28 = vmax.f32 %v4685_v24, %v4693_v34  ;;  %v4700_v7 = vmax.f32 %v4684_v36, %v4692_v27  ;;  %v7643_v24 = vpack.c.bf16 %v4733_v55, %v4729_v54  ;;  %v7707_v36 = vpack.c.bf16 %v4735_v56, %v4731_v6  ;;  %v4776_v54 = vld [vmem:[#allocation10 + $0x238] sm:$0xff]  ;;  %v4773_v6 = vld [vmem:[#allocation10 + $0x220] sm:$0xff] }
 0x4d8   : > { %v4702_v31 = vmax.f32 %v4686_v37, %v4694_v26  ;;  %v4741_v37 = vld [vmem:[#allocation10 + $0x120] sm:$0xff]  ;;  %v7645_v34 = vpack.c.bf16 %v4742_v17, %v4738_v2  ;;  %v7709_v27 = vpack.c.bf16 %v4744_v45, %v4740_v13  ;;  %v4743_v26 = vld [vmem:[#allocation10 + $0x130] sm:$0xff]  ;;  %v4778_v45 = vld [vmem:[#allocation10 + $0x248] sm:$0xff] }
 0x4d9   : > { %v9441_v14 = vmax.f32 %v4699_v43, %v4701_v28  ;;  %v4739_v43 = vld [vmem:[#allocation10 + $0x110] sm:$0xff]  ;;  %v4746_v28 = vld [vmem:[#allocation10 + $0x148] sm:$0xff]  ;;  %v7647_v32 = vpack.c.bf16 %v4741_v37, %v4737_v25  ;;  %v4784_v25 = vld [vmem:[#allocation10 + $0x278] sm:$0xff] }
 0x4da   : > { %v9443_v40 = vmax.f32 %v4700_v7, %v4702_v31  ;;  %v4750_v7 = vld [vmem:[#allocation10 + $0x168] sm:$0xff]  ;;  %v4748_v31 = vld [vmem:[#allocation10 + $0x158] sm:$0xff]  ;;  %v7711_v29 = vpack.c.bf16 %v4743_v26, %v4739_v43  ;;  %v4771_v17 = vld [vmem:[#allocation10 + $0x210] sm:$0xff] }
 0x4db   : > { %v4964_v52 = vrot.slane %v9441_v14, 1  ;;  %v7649_v33 = vpack.c.bf16 %v4750_v7, %v4746_v28  ;;  %v7713_v41 = vpack.c.bf16 %v4752_v44, %v4748_v31  ;;  %v4775_v13 = vld [vmem:[#allocation10 + $0x230] sm:$0xff]  ;;  %v4781_v43 = vld [vmem:[#allocation10 + $0x260] sm:$0xff]  ;;  %v4786_v44 = vld [vmem:[#allocation10 + $0x288] sm:$0xff] }
 0x4dc   : > { %v4965_v42 = vrot.slane %v9443_v40, 1  ;;  %v4779_v7 = vld [vmem:[#allocation10 + $0x250] sm:$0xff] }
 0x4dd   : > { %v4783_v31 = vld [vmem:[#allocation10 + $0x270] sm:$0xff] }
 0x4de   : > { %5032 = vmatprep.mubr.f32.mxu1 %v4965_v42  ;;  %5103 = vmatprep.mubr.f32.mxu0 %v4965_v42  ;;  %v4751_v42 = vld [vmem:[#allocation10 + $0x170] sm:$0xff] }
 0x4df   : > { %5033 = vmatmul.mubr.f32.vlgmr.msra.gmra.mrb[8].mxu1 %v4964_v52  ;;  %5104 = vmatmul.mubr.f32.vlgmr.msra.gmra.mrb[14].mxu0 %v4964_v52  ;;  %v7651_v52 = vpack.c.bf16 %v4749_v60, %v4745_v35  ;;  %v7715_v53 = vpack.c.bf16 %v4751_v42, %v4747_v39  ;;  %v4792_v35 = vld [vmem:[#allocation10 + $0x2b8] sm:$0xff]  ;;  %v4789_v39 = vld [vmem:[#allocation10 + $0x2a0] sm:$0xff] }
 0x4e0   : > { %7632 = vmatpush1.bf16.msra.mxu1 %v7631_v20  ;;  %7696 = vmatpush1.bf16.msra.mxu0 %v7695_v47  ;;  %v4754_v20 = vld [vmem:[#allocation10 + $0x188] sm:$0xff] }
 0x4e1   : > { %5174 = vmatprep.mubr.f32.mxu1 %v9443_v40  ;;  %5245 = vmatprep.mubr.f32.mxu0 %v9443_v40  ;;  %v4758_v47 = vld [vmem:[#allocation10 + $0x1a8] sm:$0xff] }
 0x4e2   : > { %7634 = vmatprep.subr.bf16.mxu1 %v7633_v61  ;;  %7698 = vmatprep.subr.bf16.mxu0 %v7697_v57  ;;  %v7653_v61 = vpack.c.bf16 %v4758_v47, %v4754_v20  ;;  %v7717_v57 = vpack.c.bf16 %v4760_v49, %v4756_v38  ;;  %v4787_v47 = vld [vmem:[#allocation10 + $0x290] sm:$0xff]  ;;  %v4794_v49 = vld [vmem:[#allocation10 + $0x2c8] sm:$0xff] }
 0x4e3   : > { %v4791_v38 = vld [vmem:[#allocation10 + $0x2b0] sm:$0xff] }
 0x4e4   : > { %7636 = vmatpush1.bf16.msra.mxu1 %v7635_v50  ;;  %7700 = vmatpush1.bf16.msra.mxu0 %v7699_v8  ;;  %v4766_v50 = vld [vmem:[#allocation10 + $0x1e8] sm:$0xff]  ;;  %v4764_v8 = vld [vmem:[#allocation10 + $0x1d8] sm:$0xff] }
 0x4e5   : > { %7638 = vmatprep.subr.bf16.mxu1 %v7637_v10  ;;  %7702 = vmatprep.subr.bf16.mxu0 %v7701_v30  ;;  %v7719_v10 = vpack.c.bf16 %v4759_v4, %v4755_v3  ;;  %v4761_v30 = vld [vmem:[#allocation10 + $0x1c0] sm:$0xff]  ;;  %v7657_v62 = vpack.c.bf16 %v4766_v50, %v4762_v5  ;;  %v7721_v11 = vpack.c.bf16 %v4768_v0, %v4764_v8  ;;  %v4795_v50 = vld [vmem:[#allocation10 + $0x2d0] sm:$0xff]  ;;  %v4802_v0 = vld [vmem:[#allocation10 + $0x308] sm:$0xff] }
 0x4e6   : > { %v7659_v55 = vpack.c.bf16 %v4765_v48, %v4761_v30  ;;  %v4797_v3 = vld [vmem:[#allocation10 + $0x2e0] sm:$0xff]  ;;  %v4799_v8 = vld [vmem:[#allocation10 + $0x2f0] sm:$0xff]  ;;  %v4808_v30 = vld [vmem:[#allocation10 + $0x338] sm:$0xff] }
 0x4e8   : > { %7640 = vmatpush1.bf16.msra.mxu1 %v7639_v1  ;;  %7704 = vmatpush1.bf16.msra.mxu0 %v7703_v46  ;;  %v4774_v1 = vld [vmem:[#allocation10 + $0x228] sm:$0xff]  ;;  %v4772_v46 = vld [vmem:[#allocation10 + $0x218] sm:$0xff] }
 0x4e9   : > { %7642 = vmatprep.subr.bf16.mxu1 %v7641_v15  ;;  %7706 = vmatprep.subr.bf16.mxu0 %v7705_v16  ;;  %v7723_v15 = vpack.c.bf16 %v4767_v18, %v4763_v63  ;;  %v4769_v16 = vld [vmem:[#allocation10 + $0x200] sm:$0xff]  ;;  %v7661_v56 = vpack.c.bf16 %v4774_v1, %v4770_v12  ;;  %v7725_v2 = vpack.c.bf16 %v4776_v54, %v4772_v46  ;;  %v4803_v1 = vld [vmem:[#allocation10 + $0x310] sm:$0xff]  ;;  %v4810_v54 = vld [vmem:[#allocation10 + $0x348] sm:$0xff] }
 0x4ea   : > { %v7663_v37 = vpack.c.bf16 %v4773_v6, %v4769_v16  ;;  %v4805_v63 = vld [vmem:[#allocation10 + $0x320] sm:$0xff]  ;;  %v4807_v46 = vld [vmem:[#allocation10 + $0x330] sm:$0xff]  ;;  %v4816_v16 = vld [vmem:[#allocation10 + $0x378] sm:$0xff] }
 0x4ec   : > { %7644 = vmatpush1.bf16.msra.mxu1 %v7643_v24  ;;  %7708 = vmatpush1.bf16.msra.mxu0 %v7707_v36  ;;  %v4782_v24 = vld [vmem:[#allocation10 + $0x268] sm:$0xff]  ;;  %v4780_v36 = vld [vmem:[#allocation10 + $0x258] sm:$0xff] }
 0x4ed   : > { %7646 = vmatprep.subr.bf16.mxu1 %v7645_v34  ;;  %7710 = vmatprep.subr.bf16.mxu0 %v7709_v27  ;;  %v7727_v34 = vpack.c.bf16 %v4775_v13, %v4771_v17  ;;  %v4777_v27 = vld [vmem:[#allocation10 + $0x240] sm:$0xff]  ;;  %v7665_v26 = vpack.c.bf16 %v4782_v24, %v4778_v45  ;;  %v7729_v28 = vpack.c.bf16 %v4784_v25, %v4780_v36  ;;  %v4811_v24 = vld [vmem:[#allocation10 + $0x350] sm:$0xff]  ;;  %v4818_v25 = vld [vmem:[#allocation10 + $0x388] sm:$0xff] }
 0x4ee   : > { %v7667_v60 = vpack.c.bf16 %v4781_v43, %v4777_v27  ;;  %v4813_v17 = vld [vmem:[#allocation10 + $0x360] sm:$0xff]  ;;  %v4815_v36 = vld [vmem:[#allocation10 + $0x370] sm:$0xff]  ;;  %v4824_v27 = vld [vmem:[#allocation10 + $0x3b8] sm:$0xff] }
 0x4f0   : > { %7648 = vmatpush1.bf16.msra.mxu1 %v7647_v32  ;;  %7712 = vmatpush1.bf16.msra.mxu0 %v7711_v29  ;;  %v4790_v32 = vld [vmem:[#allocation10 + $0x2a8] sm:$0xff]  ;;  %v4788_v29 = vld [vmem:[#allocation10 + $0x298] sm:$0xff] }
 0x4f1   : > { %7650 = vmatprep.subr.bf16.mxu1 %v7649_v33  ;;  %7714 = vmatprep.subr.bf16.mxu0 %v7713_v41  ;;  %v7731_v33 = vpack.c.bf16 %v4783_v31, %v4779_v7  ;;  %v4785_v41 = vld [vmem:[#allocation10 + $0x280] sm:$0xff]  ;;  %v7669_v42 = vpack.c.bf16 %v4790_v32, %v4786_v44  ;;  %v7733_v20 = vpack.c.bf16 %v4792_v35, %v4788_v29  ;;  %v4819_v32 = vld [vmem:[#allocation10 + $0x390] sm:$0xff]  ;;  %v4826_v35 = vld [vmem:[#allocation10 + $0x3c8] sm:$0xff] }
 0x4f2   : > { %v7671_v51 = vpack.c.bf16 %v4789_v39, %v4785_v41  ;;  %v4821_v7 = vld [vmem:[#allocation10 + $0x3a0] sm:$0xff]  ;;  %v4823_v29 = vld [vmem:[#allocation10 + $0x3b0] sm:$0xff]  ;;  %v4832_v41 = vld [vmem:[#allocation10 + $0x3f8] sm:$0xff] }
 0x4f4   : > { %7652 = vmatpush1.bf16.msra.mxu1 %v7651_v52  ;;  %7716 = vmatpush1.bf16.msra.mxu0 %v7715_v53  ;;  %v4798_v52 = vld [vmem:[#allocation10 + $0x2e8] sm:$0xff]  ;;  %v4796_v53 = vld [vmem:[#allocation10 + $0x2d8] sm:$0xff] }
 0x4f5   : > { %7654 = vmatprep.subr.bf16.mxu1 %v7653_v61  ;;  %7718 = vmatprep.subr.bf16.mxu0 %v7717_v57  ;;  %v7735_v61 = vpack.c.bf16 %v4791_v38, %v4787_v47  ;;  %v4793_v57 = vld [vmem:[#allocation10 + $0x2c0] sm:$0xff]  ;;  %v7673_v4 = vpack.c.bf16 %v4798_v52, %v4794_v49  ;;  %v7737_v5 = vpack.c.bf16 %v4800_v22, %v4796_v53  ;;  %v4827_v52 = vld [vmem:[#allocation10 + $0x3d0] sm:$0xff]  ;;  %v5254_v22 = vld [vmem:[#allocation10 + $0x808] sm:$0xff] }
 0x4f6   : > { %v7675_v48 = vpack.c.bf16 %v4797_v3, %v4793_v57  ;;  %v4829_v47 = vld [vmem:[#allocation10 + $0x3e0] sm:$0xff]  ;;  %v4831_v53 = vld [vmem:[#allocation10 + $0x3f0] sm:$0xff]  ;;  %v5260_v57 = vld [vmem:[#allocation10 + $0x838] sm:$0xff] }
 0x4f8   : > { %7656 = vmatpush1.bf16.msra.mxu1 %v7655_v9  ;;  %7720 = vmatpush1.bf16.msra.mxu0 %v7719_v10  ;;  %v4806_v9 = vld [vmem:[#allocation10 + $0x328] sm:$0xff]  ;;  %v4804_v10 = vld [vmem:[#allocation10 + $0x318] sm:$0xff] }
 0x4f9   : > { %7658 = vmatprep.subr.bf16.mxu1 %v7657_v62  ;;  %7722 = vmatprep.subr.bf16.mxu0 %v7721_v11  ;;  %v7739_v62 = vpack.c.bf16 %v4799_v8, %v4795_v50  ;;  %v4801_v11 = vld [vmem:[#allocation10 + $0x300] sm:$0xff]  ;;  %v7677_v18 = vpack.c.bf16 %v4806_v9, %v4802_v0  ;;  %v7741_v12 = vpack.c.bf16 %v4808_v30, %v4804_v10  ;;  %v5255_v9 = vld [vmem:[#allocation10 + $0x810] sm:$0xff]  ;;  %v5262_v30 = vld [vmem:[#allocation10 + $0x848] sm:$0xff] }
 0x4fa   : > { %v7679_v6 = vpack.c.bf16 %v4805_v63, %v4801_v11  ;;  %v5253_v8 = vld [vmem:[#allocation10 + $0x800] sm:$0xff]  ;;  %v5259_v10 = vld [vmem:[#allocation10 + $0x830] sm:$0xff]  ;;  %v5268_v11 = vld [vmem:[#allocation10 + $0x878] sm:$0xff] }
 0x4fb   : > { %v5257_v0 = vld [vmem:[#allocation10 + $0x820] sm:$0xff] }
 0x4fc   : > { %7660 = vmatpush1.bf16.msra.mxu1 %v7659_v55  ;;  %7724 = vmatpush1.bf16.msra.mxu0 %v7723_v15  ;;  %v4814_v55 = vld [vmem:[#allocation10 + $0x368] sm:$0xff]  ;;  %v4812_v15 = vld [vmem:[#allocation10 + $0x358] sm:$0xff]  ;;  %v7759_v63 = vpack.c.bf16 %v5257_v0, %v5253_v8 }
 0x4fd   : > { %7662 = vmatprep.subr.bf16.mxu1 %v7661_v56  ;;  %7726 = vmatprep.subr.bf16.mxu0 %v7725_v2  ;;  %v7743_v56 = vpack.c.bf16 %v4807_v46, %v4803_v1  ;;  %v4809_v2 = vld [vmem:[#allocation10 + $0x340] sm:$0xff]  ;;  %v7681_v13 = vpack.c.bf16 %v4814_v55, %v4810_v54  ;;  %v7745_v45 = vpack.c.bf16 %v4816_v16, %v4812_v15  ;;  %v5263_v46 = vld [vmem:[#allocation10 + $0x850] sm:$0xff]  ;;  %v5382_v54 = vrot.slane %v9443_v40, 2 }
 0x4fe   : > { %v7683_v43 = vpack.c.bf16 %v4813_v17, %v4809_v2  ;;  %v5265_v1 = vld [vmem:[#allocation10 + $0x860] sm:$0xff]  ;;  %v5267_v16 = vld [vmem:[#allocation10 + $0x870] sm:$0xff]  ;;  %v5272_v2 = vld [vmem:[#allocation10 + $0x898] sm:$0xff] }
 0x4ff   : > { %v5276_v17 = vld [vmem:[#allocation10 + $0x8b8] sm:$0xff] }
 0x500   : > { %7664 = vmatpush1.bf16.msra.mxu1 %v7663_v37  ;;  %7728 = vmatpush1.bf16.msra.mxu0 %v7727_v34  ;;  %v4822_v37 = vld [vmem:[#allocation10 + $0x3a8] sm:$0xff]  ;;  %v4820_v34 = vld [vmem:[#allocation10 + $0x398] sm:$0xff] }
 0x501   : > { %7666 = vmatprep.subr.bf16.mxu1 %v7665_v26  ;;  %7730 = vmatprep.subr.bf16.mxu0 %v7729_v28  ;;  %v7747_v26 = vpack.c.bf16 %v4815_v36, %v4811_v24  ;;  %v4817_v28 = vld [vmem:[#allocation10 + $0x380] sm:$0xff]  ;;  %v7685_v31 = vpack.c.bf16 %v4822_v37, %v4818_v25  ;;  %v7749_v44 = vpack.c.bf16 %v4824_v27, %v4820_v34  ;;  %v5271_v37 = vld [vmem:[#allocation10 + $0x890] sm:$0xff] }
 0x502   : > { %v7687_v39 = vpack.c.bf16 %v4821_v7, %v4817_v28  ;;  %v5269_v36 = vld [vmem:[#allocation10 + $0x880] sm:$0xff]  ;;  %v7829_v34 = vpack.c.bf16 %v5276_v17, %v5272_v2  ;;  %v5275_v27 = vld [vmem:[#allocation10 + $0x8b0] sm:$0xff]  ;;  %v5280_v28 = vld [vmem:[#allocation10 + $0x8d8] sm:$0xff] }
 0x503   : > { %v5273_v25 = vld [vmem:[#allocation10 + $0x8a0] sm:$0xff]  ;;  %v5284_v7 = vld [vmem:[#allocation10 + $0x8f8] sm:$0xff]  ;;  %v5307_v2 = vld [vmem:[#allocation10 + $0x9b0] sm:$0xff] }
 0x504   : > { %7668 = vmatpush1.bf16.msra.mxu1 %v7667_v60  ;;  %7732 = vmatpush1.bf16.msra.mxu0 %v7731_v33  ;;  %v4830_v60 = vld [vmem:[#allocation10 + $0x3e8] sm:$0xff]  ;;  %v4828_v33 = vld [vmem:[#allocation10 + $0x3d8] sm:$0xff] }
 0x505   : > { %7670 = vmatprep.subr.bf16.mxu1 %v7669_v42  ;;  %7734 = vmatprep.subr.bf16.mxu0 %v7733_v20  ;;  %v7751_v42 = vpack.c.bf16 %v4823_v29, %v4819_v32  ;;  %v4825_v20 = vld [vmem:[#allocation10 + $0x3c0] sm:$0xff]  ;;  %v7689_v38 = vpack.c.bf16 %v4830_v60, %v4826_v35  ;;  %v7753_v49 = vpack.c.bf16 %v4832_v41, %v4828_v33  ;;  %v5279_v60 = vld [vmem:[#allocation10 + $0x8d0] sm:$0xff]  ;;  %v5310_v17 = vld [vmem:[#allocation10 + $0x9c8] sm:$0xff] }
 0x506   : > { %v7691_v3 = vpack.c.bf16 %v4829_v47, %v4825_v20  ;;  %v5277_v29 = vld [vmem:[#allocation10 + $0x8c0] sm:$0xff]  ;;  %v7833_v33 = vpack.c.bf16 %v5284_v7, %v5280_v28  ;;  %v5283_v41 = vld [vmem:[#allocation10 + $0x8f0] sm:$0xff]  ;;  %v5288_v20 = vld [vmem:[#allocation10 + $0x918] sm:$0xff] }
 0x507   : > { %v5281_v35 = vld [vmem:[#allocation10 + $0x8e0] sm:$0xff]  ;;  %v5292_v47 = vld [vmem:[#allocation10 + $0x938] sm:$0xff]  ;;  %v5315_v28 = vld [vmem:[#allocation10 + $0x9f0] sm:$0xff] }
 0x508   : > { %7672 = vmatpush1.bf16.msra.mxu1 %v7671_v51  ;;  %7736 = vmatpush1.bf16.msra.mxu0 %v7735_v61  ;;  %v5258_v51 = vld [vmem:[#allocation10 + $0x828] sm:$0xff]  ;;  %v5256_v61 = vld [vmem:[#allocation10 + $0x818] sm:$0xff] }
 0x509   : > { %7674 = vmatprep.subr.bf16.mxu1 %v7673_v4  ;;  %7738 = vmatprep.subr.bf16.mxu0 %v7737_v5  ;;  %v7755_v4 = vpack.c.bf16 %v4831_v53, %v4827_v52  ;;  %v7757_v5 = vpack.c.bf16 %v5258_v51, %v5254_v22  ;;  %v7821_v50 = vpack.c.bf16 %v5260_v57, %v5256_v61  ;;  %v5285_v53 = vld [vmem:[#allocation10 + $0x900] sm:$0xff]  ;;  %v5287_v51 = vld [vmem:[#allocation10 + $0x910] sm:$0xff]  ;;  %v5318_v7 = vld [vmem:[#allocation10 + $0xa08] sm:$0xff] }
 0x50a   : > { %v5289_v22 = vld [vmem:[#allocation10 + $0x920] sm:$0xff]  ;;  %v7837_v61 = vpack.c.bf16 %v5292_v47, %v5288_v20  ;;  %v5291_v57 = vld [vmem:[#allocation10 + $0x930] sm:$0xff]  ;;  %v5326_v47 = vld [vmem:[#allocation10 + $0xa48] sm:$0xff] }
 0x50b   : > { %v7775_v8 = vpack.c.bf16 %v5289_v22, %v5285_v53  ;;  %v7839_v0 = vpack.c.bf16 %v5291_v57, %v5287_v51  ;;  %v5323_v20 = vld [vmem:[#allocation10 + $0xa30] sm:$0xff]  ;;  %v5329_v57 = vld [vmem:[#allocation10 + $0xa60] sm:$0xff] }
 0x50c   : > { %7676 = vmatpush1.bf16.msra.mxu1 %v7675_v48  ;;  %7740 = vmatpush1.bf16.msra.mxu0 %v7739_v62  ;;  %v5266_v48 = vld [vmem:[#allocation10 + $0x868] sm:$0xff]  ;;  %v5264_v62 = vld [vmem:[#allocation10 + $0x858] sm:$0xff] }
 0x50d   : > { %7678 = vmatprep.subr.bf16.mxu1 %v7677_v18  ;;  %7742 = vmatprep.subr.bf16.mxu0 %v7741_v12  ;;  %v7823_v18 = vpack.c.bf16 %v5259_v10, %v5255_v9  ;;  %v5261_v12 = vld [vmem:[#allocation10 + $0x840] sm:$0xff]  ;;  %v7761_v55 = vpack.c.bf16 %v5266_v48, %v5262_v30  ;;  %v7825_v15 = vpack.c.bf16 %v5268_v11, %v5264_v62  ;;  %v5295_v48 = vld [vmem:[#allocation10 + $0x950] sm:$0xff] }
 0x50e   : > { %v5293_v10 = vld [vmem:[#allocation10 + $0x940] sm:$0xff]  ;;  %v5299_v11 = vld [vmem:[#allocation10 + $0x970] sm:$0xff] }
 0x50f   : > { %v5297_v30 = vld [vmem:[#allocation10 + $0x960] sm:$0xff] }
 0x510   : > { %7680 = vmatpush1.bf16.msra.mxu1 %v7679_v6  ;;  %7744 = vmatpush1.bf16.msra.mxu0 %v7743_v56  ;;  %v5270_v6 = vld [vmem:[#allocation10 + $0x888] sm:$0xff] }
 0x511   : > { %7682 = vmatprep.subr.bf16.mxu1 %v7681_v13  ;;  %7746 = vmatprep.subr.bf16.mxu0 %v7745_v45  ;;  %v5274_v56 = vld [vmem:[#allocation10 + $0x8a8] sm:$0xff]  ;;  %v7763_v13 = vpack.c.bf16 %v5265_v1, %v5261_v12  ;;  %v7827_v45 = vpack.c.bf16 %v5267_v16, %v5263_v46  ;;  %v5304_v12 = vld [vmem:[#allocation10 + $0x998] sm:$0xff]  ;;  %v7779_v46 = vpack.c.bf16 %v5297_v30, %v5293_v10  ;;  %v5305_v16 = vld [vmem:[#allocation10 + $0x9a0] sm:$0xff] }
 0x512   : > { %v7765_v24 = vpack.c.bf16 %v5274_v56, %v5270_v6  ;;  %v5308_v1 = vld [vmem:[#allocation10 + $0x9b8] sm:$0xff]  ;;  %v5303_v6 = vld [vmem:[#allocation10 + $0x990] sm:$0xff] }
 0x513   : > { %v7845_v56 = vpack.c.bf16 %v5308_v1, %v5304_v12  ;;  %v5339_v12 = vld [vmem:[#allocation10 + $0xab0] sm:$0xff]  ;;  %v5342_v1 = vld [vmem:[#allocation10 + $0xac8] sm:$0xff] }
 0x514   : > { %7684 = vmatpush1.bf16.msra.mxu1 %v7683_v43  ;;  %7748 = vmatpush1.bf16.msra.mxu0 %v7747_v26  ;;  %v5278_v43 = vld [vmem:[#allocation10 + $0x8c8] sm:$0xff] }
 0x515   : > { %7686 = vmatprep.subr.bf16.mxu1 %v7685_v31  ;;  %7750 = vmatprep.subr.bf16.mxu0 %v7749_v44  ;;  %v5282_v26 = vld [vmem:[#allocation10 + $0x8e8] sm:$0xff]  ;;  %v7767_v31 = vpack.c.bf16 %v5273_v25, %v5269_v36  ;;  %v7831_v44 = vpack.c.bf16 %v5275_v27, %v5271_v37  ;;  %v7847_v25 = vpack.c.bf16 %v5307_v2, %v5303_v6  ;;  %v5313_v27 = vld [vmem:[#allocation10 + $0x9e0] sm:$0xff] }
 0x516   : > { %v7769_v32 = vpack.c.bf16 %v5282_v26, %v5278_v43  ;;  %v5311_v43 = vld [vmem:[#allocation10 + $0x9d0] sm:$0xff]  ;;  %v5345_v2 = vld [vmem:[#allocation10 + $0xae0] sm:$0xff] }
 0x518   : > { %7688 = vmatpush1.bf16.msra.mxu1 %v7687_v39  ;;  %7752 = vmatpush1.bf16.msra.mxu0 %v7751_v42  ;;  %v5286_v39 = vld [vmem:[#allocation10 + $0x908] sm:$0xff] }
 0x519   : > { %7690 = vmatprep.subr.bf16.mxu1 %v7689_v38  ;;  %7754 = vmatprep.subr.bf16.mxu0 %v7753_v49  ;;  %v5290_v42 = vld [vmem:[#allocation10 + $0x928] sm:$0xff]  ;;  %v7771_v38 = vpack.c.bf16 %v5281_v35, %v5277_v29  ;;  %v7835_v49 = vpack.c.bf16 %v5283_v41, %v5279_v60  ;;  %v7851_v35 = vpack.c.bf16 %v5315_v28, %v5311_v43  ;;  %v5321_v41 = vld [vmem:[#allocation10 + $0xa20] sm:$0xff] }
 0x51a   : > { %v7773_v52 = vpack.c.bf16 %v5290_v42, %v5286_v39  ;;  %v5319_v39 = vld [vmem:[#allocation10 + $0xa10] sm:$0xff]  ;;  %v5353_v28 = vld [vmem:[#allocation10 + $0xb20] sm:$0xff] }
 0x51b   : > { %v7855_v22 = vpack.c.bf16 %v5323_v20, %v5319_v39  ;;  %v5361_v20 = vld [vmem:[#allocation10 + $0xb60] sm:$0xff] }
 0x51c   : > { %7692 = vmatpush1.bf16.msra.mxu1 %v7691_v3  ;;  %7756 = vmatpush1.bf16.msra.mxu0 %v7755_v4  ;;  %v5294_v3 = vld [vmem:[#allocation10 + $0x948] sm:$0xff] }
 0x51d   : > { %7758 = vmatprep.subr.bf16.mxu1 %v7757_v5  ;;  %7822 = vmatprep.subr.bf16.mxu0 %v7821_v50  ;;  %v5298_v4 = vld [vmem:[#allocation10 + $0x968] sm:$0xff]  ;;  %v5296_v5 = vld [vmem:[#allocation10 + $0x958] sm:$0xff] }
 0x51e   : > { %v5300_v50 = vld [vmem:[#allocation10 + $0x978] sm:$0xff]  ;;  %v7777_v9 = vpack.c.bf16 %v5298_v4, %v5294_v3  ;;  %v5327_v3 = vld [vmem:[#allocation10 + $0xa50] sm:$0xff] }
 0x51f   : > { %5175 = vmatmul.mubr.f32.vlgmr.msra.gmra.mrb[8].mxu1 %v9441_v14  ;;  %5246 = vmatmul.mubr.f32.vlgmr.msra.gmra.mrb[14].mxu0 %v9441_v14  ;;  %v7841_v62 = vpack.c.bf16 %v5300_v50, %v5296_v5  ;;  %v5331_v5 = vld [vmem:[#allocation10 + $0xa70] sm:$0xff]  ;;  %v5334_v50 = vld [vmem:[#allocation10 + $0xa88] sm:$0xff] }
 0x520   : > { %7760 = vmatpush1.bf16.msra.mxu1 %v7759_v63  ;;  %5449 = vmatprep.mubr.f32.mxu1 %v5382_v54  ;;  %v5302_v63 = vld [vmem:[#allocation10 + $0x988] sm:$0xff]  ;;  %v7859_v30 = vpack.c.bf16 %v5331_v5, %v5327_v3  ;;  %v5369_v5 = vld [vmem:[#allocation10 + $0xba0] sm:$0xff] }
 0x521   : > { %7824 = vmatpush1.bf16.msra.mxu0 %v7823_v18  ;;  %5520 = vmatprep.mubr.f32.mxu0 %v5382_v54  ;;  %v5306_v18 = vld [vmem:[#allocation10 + $0x9a8] sm:$0xff]  ;;  %v7843_v54 = vpack.c.bf16 %v5299_v11, %v5295_v48  ;;  %v5337_v11 = vld [vmem:[#allocation10 + $0xaa0] sm:$0xff] }
 0x522   : > { %7762 = vmatprep.subr.bf16.mxu1 %v7761_v55  ;;  %7826 = vmatprep.subr.bf16.mxu0 %v7825_v15  ;;  %v7781_v55 = vpack.c.bf16 %v5306_v18, %v5302_v63  ;;  %v5301_v15 = vld [vmem:[#allocation10 + $0x980] sm:$0xff]  ;;  %v5335_v63 = vld [vmem:[#allocation10 + $0xa90] sm:$0xff] }
 0x523   : > { %v7783_v36 = vpack.c.bf16 %v5305_v16, %v5301_v15  ;;  %v7863_v16 = vpack.c.bf16 %v5339_v12, %v5335_v63  ;;  %v5377_v12 = vld [vmem:[#allocation10 + $0xbe0] sm:$0xff] }
 0x524   : > { %7764 = vmatpush1.bf16.msra.mxu1 %v7763_v13  ;;  %v5314_v13 = vld [vmem:[#allocation10 + $0x9e8] sm:$0xff] }
 0x525   : > { %7828 = vmatpush1.bf16.msra.mxu0 %v7827_v45  ;;  %7766 = vmatprep.subr.bf16.mxu1 %v7765_v24  ;;  %v5312_v45 = vld [vmem:[#allocation10 + $0x9d8] sm:$0xff]  ;;  %v7785_v37 = vpack.c.bf16 %v5314_v13, %v5310_v17  ;;  %v5343_v17 = vld [vmem:[#allocation10 + $0xad0] sm:$0xff] }
 0x526   : > { %7830 = vmatprep.subr.bf16.mxu0 %v7829_v34  ;;  %v5316_v24 = vld [vmem:[#allocation10 + $0x9f8] sm:$0xff]  ;;  %v5309_v34 = vld [vmem:[#allocation10 + $0x9c0] sm:$0xff] }
 0x527   : > { %v7849_v26 = vpack.c.bf16 %v5316_v24, %v5312_v45  ;;  %v7787_v29 = vpack.c.bf16 %v5313_v27, %v5309_v34  ;;  %v5347_v45 = vld [vmem:[#allocation10 + $0xaf0] sm:$0xff]  ;;  %v5350_v24 = vld [vmem:[#allocation10 + $0xb08] sm:$0xff] }
 0x528   : > { %7768 = vmatpush1.bf16.msra.mxu1 %v7767_v31  ;;  %v5322_v31 = vld [vmem:[#allocation10 + $0xa28] sm:$0xff]  ;;  %v7867_v27 = vpack.c.bf16 %v5347_v45, %v5343_v17  ;;  %v5536_v45 = vld [vmem:[#allocation10 + $0xc20] sm:$0xff] }
 0x529   : > { %7832 = vmatpush1.bf16.msra.mxu0 %v7831_v44  ;;  %7770 = vmatprep.subr.bf16.mxu1 %v7769_v32  ;;  %v5320_v44 = vld [vmem:[#allocation10 + $0xa18] sm:$0xff]  ;;  %v7789_v60 = vpack.c.bf16 %v5322_v31, %v5318_v7  ;;  %v5351_v7 = vld [vmem:[#allocation10 + $0xb10] sm:$0xff] }
 0x52a   : > { %7834 = vmatprep.subr.bf16.mxu0 %v7833_v33  ;;  %v5324_v32 = vld [vmem:[#allocation10 + $0xa38] sm:$0xff]  ;;  %v5317_v33 = vld [vmem:[#allocation10 + $0xa00] sm:$0xff] }
 0x52b   : > { %v7853_v42 = vpack.c.bf16 %v5324_v32, %v5320_v44  ;;  %v7791_v53 = vpack.c.bf16 %v5321_v41, %v5317_v33  ;;  %v5355_v44 = vld [vmem:[#allocation10 + $0xb30] sm:$0xff]  ;;  %v5358_v32 = vld [vmem:[#allocation10 + $0xb48] sm:$0xff] }
 0x52c   : > { %7772 = vmatpush1.bf16.msra.mxu1 %v7771_v38  ;;  %v5330_v38 = vld [vmem:[#allocation10 + $0xa68] sm:$0xff]  ;;  %v7871_v41 = vpack.c.bf16 %v5355_v44, %v5351_v7  ;;  %v5544_v44 = vld [vmem:[#allocation10 + $0xc60] sm:$0xff] }
 0x52d   : > { %7836 = vmatpush1.bf16.msra.mxu0 %v7835_v49  ;;  %7774 = vmatprep.subr.bf16.mxu1 %v7773_v52  ;;  %v5328_v49 = vld [vmem:[#allocation10 + $0xa58] sm:$0xff]  ;;  %v7793_v51 = vpack.c.bf16 %v5330_v38, %v5326_v47  ;;  %v5359_v47 = vld [vmem:[#allocation10 + $0xb50] sm:$0xff] }
 0x52e   : > { %7838 = vmatprep.subr.bf16.mxu0 %v7837_v61  ;;  %v5332_v52 = vld [vmem:[#allocation10 + $0xa78] sm:$0xff]  ;;  %v5325_v61 = vld [vmem:[#allocation10 + $0xa40] sm:$0xff] }
 0x52f   : > { %v7857_v4 = vpack.c.bf16 %v5332_v52, %v5328_v49  ;;  %v7795_v10 = vpack.c.bf16 %v5329_v57, %v5325_v61  ;;  %v5363_v49 = vld [vmem:[#allocation10 + $0xb70] sm:$0xff]  ;;  %v5366_v52 = vld [vmem:[#allocation10 + $0xb88] sm:$0xff] }
 0x530   : > { %7776 = vmatpush1.bf16.msra.mxu1 %v7775_v8  ;;  %v5338_v8 = vld [vmem:[#allocation10 + $0xaa8] sm:$0xff]  ;;  %v7875_v57 = vpack.c.bf16 %v5363_v49, %v5359_v47 }
 0x531   : > { %7840 = vmatpush1.bf16.msra.mxu0 %v7839_v0  ;;  %7778 = vmatprep.subr.bf16.mxu1 %v7777_v9  ;;  %v5336_v0 = vld [vmem:[#allocation10 + $0xa98] sm:$0xff]  ;;  %v7797_v48 = vpack.c.bf16 %v5338_v8, %v5334_v50  ;;  %v5367_v50 = vld [vmem:[#allocation10 + $0xb90] sm:$0xff] }
 0x532   : > { %7842 = vmatprep.subr.bf16.mxu0 %v7841_v62  ;;  %v5340_v9 = vld [vmem:[#allocation10 + $0xab8] sm:$0xff]  ;;  %v5333_v62 = vld [vmem:[#allocation10 + $0xa80] sm:$0xff] }
 0x533   : > { %v7861_v18 = vpack.c.bf16 %v5340_v9, %v5336_v0  ;;  %v7799_v15 = vpack.c.bf16 %v5337_v11, %v5333_v62  ;;  %v5371_v0 = vld [vmem:[#allocation10 + $0xbb0] sm:$0xff]  ;;  %v5374_v9 = vld [vmem:[#allocation10 + $0xbc8] sm:$0xff] }
 0x534   : > { %7780 = vmatpush1.bf16.msra.mxu1 %v7779_v46  ;;  %v5346_v46 = vld [vmem:[#allocation10 + $0xae8] sm:$0xff]  ;;  %v7879_v11 = vpack.c.bf16 %v5371_v0, %v5367_v50  ;;  %v5556_v0 = vld [vmem:[#allocation10 + $0xcc0] sm:$0xff] }
 0x535   : > { %7844 = vmatpush1.bf16.msra.mxu0 %v7843_v54  ;;  %7782 = vmatprep.subr.bf16.mxu1 %v7781_v55  ;;  %v5344_v54 = vld [vmem:[#allocation10 + $0xad8] sm:$0xff]  ;;  %v7801_v6 = vpack.c.bf16 %v5346_v46, %v5342_v1  ;;  %v5375_v1 = vld [vmem:[#allocation10 + $0xbd0] sm:$0xff] }
 0x536   : > { %7846 = vmatprep.subr.bf16.mxu0 %v7845_v56  ;;  %v5348_v55 = vld [vmem:[#allocation10 + $0xaf8] sm:$0xff]  ;;  %v5341_v56 = vld [vmem:[#allocation10 + $0xac0] sm:$0xff] }
 0x537   : > { %v7865_v13 = vpack.c.bf16 %v5348_v55, %v5344_v54  ;;  %v7803_v34 = vpack.c.bf16 %v5345_v2, %v5341_v56  ;;  %v5379_v54 = vld [vmem:[#allocation10 + $0xbf0] sm:$0xff]  ;;  %v5533_v55 = vld [vmem:[#allocation10 + $0xc08] sm:$0xff] }
 0x538   : > { %7784 = vmatpush1.bf16.msra.mxu1 %v7783_v36  ;;  %v5354_v36 = vld [vmem:[#allocation10 + $0xb28] sm:$0xff]  ;;  %v7883_v2 = vpack.c.bf16 %v5379_v54, %v5375_v1  ;;  %v5564_v54 = vld [vmem:[#allocation10 + $0xd00] sm:$0xff] }
 0x539   : > { %7848 = vmatpush1.bf16.msra.mxu0 %v7847_v25  ;;  %7786 = vmatprep.subr.bf16.mxu1 %v7785_v37  ;;  %v5352_v25 = vld [vmem:[#allocation10 + $0xb18] sm:$0xff]  ;;  %v7805_v43 = vpack.c.bf16 %v5354_v36, %v5350_v24  ;;  %v5534_v36 = vld [vmem:[#allocation10 + $0xc10] sm:$0xff] }
 0x53a   : > { %7850 = vmatprep.subr.bf16.mxu0 %v7849_v26  ;;  %v5356_v37 = vld [vmem:[#allocation10 + $0xb38] sm:$0xff]  ;;  %v5349_v26 = vld [vmem:[#allocation10 + $0xb00] sm:$0xff] }
 0x53b   : > { %v7869_v31 = vpack.c.bf16 %v5356_v37, %v5352_v25  ;;  %v7807_v33 = vpack.c.bf16 %v5353_v28, %v5349_v26  ;;  %v5538_v25 = vld [vmem:[#allocation10 + $0xc30] sm:$0xff]  ;;  %v5541_v37 = vld [vmem:[#allocation10 + $0xc48] sm:$0xff]  ;;  %v5547_v26 = vld [vmem:[#allocation10 + $0xc78] sm:$0xff]  ;;  %v5381_v28 = vrot.slane %v9441_v14, 2 }
 0x53c   : > { %7788 = vmatpush1.bf16.msra.mxu1 %v7787_v29  ;;  %v5362_v29 = vld [vmem:[#allocation10 + $0xb68] sm:$0xff]  ;;  %v7951_v7 = vpack.c.bf16 %v5538_v25, %v5534_v36  ;;  %v5572_v25 = vld [vmem:[#allocation10 + $0xd40] sm:$0xff] }
 0x53d   : > { %7852 = vmatpush1.bf16.msra.mxu0 %v7851_v35  ;;  %7790 = vmatprep.subr.bf16.mxu1 %v7789_v60  ;;  %v5360_v35 = vld [vmem:[#allocation10 + $0xb58] sm:$0xff]  ;;  %v7809_v39 = vpack.c.bf16 %v5362_v29, %v5358_v32  ;;  %v5542_v32 = vld [vmem:[#allocation10 + $0xc50] sm:$0xff] }
 0x53e   : > { %7854 = vmatprep.subr.bf16.mxu0 %v7853_v42  ;;  %v5364_v60 = vld [vmem:[#allocation10 + $0xb78] sm:$0xff]  ;;  %v5357_v42 = vld [vmem:[#allocation10 + $0xb40] sm:$0xff] }
 0x53f   : > { %v7873_v38 = vpack.c.bf16 %v5364_v60, %v5360_v35  ;;  %v7811_v61 = vpack.c.bf16 %v5361_v20, %v5357_v42  ;;  %v5546_v35 = vld [vmem:[#allocation10 + $0xc70] sm:$0xff]  ;;  %v5549_v60 = vld [vmem:[#allocation10 + $0xc88] sm:$0xff]  ;;  %v5551_v42 = vld [vmem:[#allocation10 + $0xc98] sm:$0xff] }
 0x540   : > { %7792 = vmatpush1.bf16.msra.mxu1 %v7791_v53  ;;  %v5370_v53 = vld [vmem:[#allocation10 + $0xba8] sm:$0xff]  ;;  %v5555_v20 = vld [vmem:[#allocation10 + $0xcb8] sm:$0xff] }
 0x541   : > { %7856 = vmatpush1.bf16.msra.mxu0 %v7855_v22  ;;  %7794 = vmatprep.subr.bf16.mxu1 %v7793_v51  ;;  %v5368_v22 = vld [vmem:[#allocation10 + $0xb98] sm:$0xff]  ;;  %v7813_v3 = vpack.c.bf16 %v5370_v53, %v5366_v52  ;;  %v5548_v52 = vld [vmem:[#allocation10 + $0xc80] sm:$0xff] }
 0x542   : > { %7858 = vmatprep.subr.bf16.mxu0 %v7857_v4  ;;  %v5372_v51 = vld [vmem:[#allocation10 + $0xbb8] sm:$0xff]  ;;  %v5365_v4 = vld [vmem:[#allocation10 + $0xb80] sm:$0xff] }
 0x543   : > { %v7877_v8 = vpack.c.bf16 %v5372_v51, %v5368_v22  ;;  %v7815_v62 = vpack.c.bf16 %v5369_v5, %v5365_v4  ;;  %v5552_v53 = vld [vmem:[#allocation10 + $0xca0] sm:$0xff]  ;;  %v5550_v22 = vld [vmem:[#allocation10 + $0xc90] sm:$0xff]  ;;  %v7957_v51 = vpack.c.bf16 %v5555_v20, %v5551_v42  ;;  %v5563_v4 = vld [vmem:[#allocation10 + $0xcf8] sm:$0xff] }
 0x544   : > { %7796 = vmatpush1.bf16.msra.mxu1 %v7795_v10  ;;  %v5378_v10 = vld [vmem:[#allocation10 + $0xbe8] sm:$0xff]  ;;  %v7895_v5 = vpack.c.bf16 %v5552_v53, %v5548_v52 }
 0x545   : > { %7860 = vmatpush1.bf16.msra.mxu0 %v7859_v30  ;;  %7798 = vmatprep.subr.bf16.mxu1 %v7797_v48  ;;  %v5376_v30 = vld [vmem:[#allocation10 + $0xbd8] sm:$0xff]  ;;  %v7817_v63 = vpack.c.bf16 %v5378_v10, %v5374_v9  ;;  %v5560_v9 = vld [vmem:[#allocation10 + $0xce0] sm:$0xff]  ;;  %v5558_v10 = vld [vmem:[#allocation10 + $0xcd0] sm:$0xff] }
 0x546   : > { %7862 = vmatprep.subr.bf16.mxu0 %v7861_v18  ;;  %v5380_v48 = vld [vmem:[#allocation10 + $0xbf8] sm:$0xff]  ;;  %v5373_v18 = vld [vmem:[#allocation10 + $0xbc0] sm:$0xff]  ;;  %v5589_v42 = vld [vmem:[#allocation10 + $0xdc8] sm:$0xff] }
 0x547   : > { %v7881_v46 = vpack.c.bf16 %v5380_v48, %v5376_v30  ;;  %v7819_v56 = vpack.c.bf16 %v5377_v12, %v5373_v18  ;;  %v5562_v48 = vld [vmem:[#allocation10 + $0xcf0] sm:$0xff]  ;;  %v5571_v18 = vld [vmem:[#allocation10 + $0xd38] sm:$0xff]  ;;  %v7899_v12 = vpack.c.bf16 %v5560_v9, %v5556_v0  ;;  %v5593_v20 = vld [vmem:[#allocation10 + $0xde8] sm:$0xff] }
 0x548   : > { %7800 = vmatpush1.bf16.msra.mxu1 %v7799_v15  ;;  %v5537_v15 = vld [vmem:[#allocation10 + $0xc28] sm:$0xff]  ;;  %v7963_v1 = vpack.c.bf16 %v5562_v48, %v5558_v10  ;;  %v7913_v53 = vpack.c.bf16 %v5593_v20, %v5589_v42  ;;  %v5596_v10 = vld [vmem:[#allocation10 + $0xe00] sm:$0xff]  ;;  %v5598_v48 = vld [vmem:[#allocation10 + $0xe10] sm:$0xff] }
 0x549   : > { %7864 = vmatpush1.bf16.msra.mxu0 %v7863_v16  ;;  %7802 = vmatprep.subr.bf16.mxu1 %v7801_v6  ;;  %v5535_v16 = vld [vmem:[#allocation10 + $0xc18] sm:$0xff]  ;;  %v7885_v17 = vpack.c.bf16 %v5537_v15, %v5533_v55  ;;  %v5568_v55 = vld [vmem:[#allocation10 + $0xd20] sm:$0xff]  ;;  %v5566_v15 = vld [vmem:[#allocation10 + $0xd10] sm:$0xff] }
 0x54a   : > { %7866 = vmatprep.subr.bf16.mxu0 %v7865_v13  ;;  %v5539_v6 = vld [vmem:[#allocation10 + $0xc38] sm:$0xff]  ;;  %v5532_v13 = vld [vmem:[#allocation10 + $0xc00] sm:$0xff]  ;;  %v5626_v20 = vld [vmem:[#allocation10 + $0xef0] sm:$0xff] }
 0x54b   : > { %v7949_v24 = vpack.c.bf16 %v5539_v6, %v5535_v16  ;;  %v5570_v6 = vld [vmem:[#allocation10 + $0xd30] sm:$0xff] }
 0x54c   : > { %7804 = vmatpush1.bf16.msra.mxu1 %v7803_v34  ;;  %v5545_v34 = vld [vmem:[#allocation10 + $0xc68] sm:$0xff] }
 0x54d   : > { %7868 = vmatpush1.bf16.msra.mxu0 %v7867_v27  ;;  %7806 = vmatprep.subr.bf16.mxu1 %v7805_v43  ;;  %v7887_v27 = vpack.c.bf16 %v5536_v45, %v5532_v13  ;;  %v5543_v43 = vld [vmem:[#allocation10 + $0xc58] sm:$0xff]  ;;  %v7889_v29 = vpack.c.bf16 %v5545_v34, %v5541_v37  ;;  %v7903_v45 = vpack.c.bf16 %v5568_v55, %v5564_v54  ;;  %v5576_v37 = vld [vmem:[#allocation10 + $0xd60] sm:$0xff]  ;;  %v5574_v34 = vld [vmem:[#allocation10 + $0xd50] sm:$0xff] }
 0x54e   : > { %7870 = vmatprep.subr.bf16.mxu0 %v7869_v31  ;;  %v5540_v31 = vld [vmem:[#allocation10 + $0xc40] sm:$0xff]  ;;  %v5579_v13 = vld [vmem:[#allocation10 + $0xd78] sm:$0xff] }
 0x54f   : > { %v7891_v47 = vpack.c.bf16 %v5544_v44, %v5540_v31  ;;  %v5587_v31 = vld [vmem:[#allocation10 + $0xdb8] sm:$0xff]  ;;  %v7907_v44 = vpack.c.bf16 %v5576_v37, %v5572_v25 }
 0x550   : > { %7808 = vmatpush1.bf16.msra.mxu1 %v7807_v33  ;;  %v5553_v33 = vld [vmem:[#allocation10 + $0xca8] sm:$0xff] }
 0x551   : > { %7872 = vmatpush1.bf16.msra.mxu0 %v7871_v41  ;;  %7810 = vmatprep.subr.bf16.mxu1 %v7809_v39  ;;  %v5661_v41 = vrot.slane %v9443_v40, 3  ;;  %v7953_v39 = vpack.c.bf16 %v5547_v26, %v5543_v43  ;;  %v7893_v49 = vpack.c.bf16 %v5553_v33, %v5549_v60  ;;  %v5559_v40 = vld [vmem:[#allocation10 + $0xcd8] sm:$0xff]  ;;  %v5578_v43 = vld [vmem:[#allocation10 + $0xd70] sm:$0xff]  ;;  %v5581_v26 = vld [vmem:[#allocation10 + $0xd88] sm:$0xff] }
 0x552   : > { %7874 = vmatprep.subr.bf16.mxu0 %v7873_v38  ;;  %v7955_v38 = vpack.c.bf16 %v5546_v35, %v5542_v32  ;;  %v7961_v30 = vpack.c.bf16 %v5563_v4, %v5559_v40  ;;  %v7971_v32 = vpack.c.bf16 %v5578_v43, %v5574_v34  ;;  %v5580_v35 = vld [vmem:[#allocation10 + $0xd80] sm:$0xff]  ;;  %v5582_v33 = vld [vmem:[#allocation10 + $0xd90] sm:$0xff]  ;;  %v5597_v40 = vld [vmem:[#allocation10 + $0xe08] sm:$0xff] }
 0x553   : > { %v5584_v60 = vld [vmem:[#allocation10 + $0xda0] sm:$0xff]  ;;  %v5601_v4 = vld [vmem:[#allocation10 + $0xe28] sm:$0xff]  ;;  %v5614_v43 = vld [vmem:[#allocation10 + $0xe90] sm:$0xff] }
 0x554   : > { %7812 = vmatpush1.bf16.msra.mxu1 %v7811_v61  ;;  %v5554_v61 = vld [vmem:[#allocation10 + $0xcb0] sm:$0xff]  ;;  %v7917_v9 = vpack.c.bf16 %v5601_v4, %v5597_v40  ;;  %v5612_v34 = vld [vmem:[#allocation10 + $0xe80] sm:$0xff] }
 0x555   : > { %7876 = vmatpush1.bf16.msra.mxu0 %v7875_v57  ;;  %7814 = vmatprep.subr.bf16.mxu1 %v7813_v3  ;;  %v5557_v57 = vld [vmem:[#allocation10 + $0xcc8] sm:$0xff]  ;;  %v7959_v50 = vpack.c.bf16 %v5554_v61, %v5550_v22  ;;  %v5588_v22 = vld [vmem:[#allocation10 + $0xdc0] sm:$0xff]  ;;  %v5590_v61 = vld [vmem:[#allocation10 + $0xdd0] sm:$0xff] }
 0x556   : > { %7878 = vmatprep.subr.bf16.mxu0 %v7877_v8  ;;  %v5561_v3 = vld [vmem:[#allocation10 + $0xce8] sm:$0xff]  ;;  %v5634_v4 = vld [vmem:[#allocation10 + $0xf30] sm:$0xff] }
 0x557   : > { %v7897_v8 = vpack.c.bf16 %v5561_v3, %v5557_v57  ;;  %v5594_v3 = vld [vmem:[#allocation10 + $0xdf0] sm:$0xff] }
 0x558   : > { %7816 = vmatpush1.bf16.msra.mxu1 %v7815_v62  ;;  %v5565_v62 = vld [vmem:[#allocation10 + $0xd08] sm:$0xff]  ;;  %v7979_v0 = vpack.c.bf16 %v5594_v3, %v5590_v61  ;;  %v5628_v61 = vld [vmem:[#allocation10 + $0xf00] sm:$0xff]  ;;  %v5630_v3 = vld [vmem:[#allocation10 + $0xf10] sm:$0xff] }
 0x559   : > { %7880 = vmatpush1.bf16.msra.mxu0 %v7879_v11  ;;  %7818 = vmatprep.subr.bf16.mxu1 %v7817_v63  ;;  %v5569_v11 = vld [vmem:[#allocation10 + $0xd28] sm:$0xff]  ;;  %v5567_v63 = vld [vmem:[#allocation10 + $0xd18] sm:$0xff] }
 0x55a   : > { %7882 = vmatprep.subr.bf16.mxu0 %v7881_v46  ;;  %v7901_v46 = vpack.c.bf16 %v5569_v11, %v5565_v62  ;;  %v7965_v16 = vpack.c.bf16 %v5571_v18, %v5567_v63  ;;  %v5602_v11 = vld [vmem:[#allocation10 + $0xe30] sm:$0xff]  ;;  %v5605_v63 = vld [vmem:[#allocation10 + $0xe48] sm:$0xff] }
 0x55b   : > { %v5609_v18 = vld [vmem:[#allocation10 + $0xe68] sm:$0xff]  ;;  %v7983_v54 = vpack.c.bf16 %v5602_v11, %v5598_v48  ;;  %v5636_v48 = vld [vmem:[#allocation10 + $0xf40] sm:$0xff]  ;;  %v5638_v11 = vld [vmem:[#allocation10 + $0xf50] sm:$0xff] }
 0x55c   : > { %7820 = vmatpush1.bf16.msra.mxu1 %v7819_v56  ;;  %v5573_v56 = vld [vmem:[#allocation10 + $0xd48] sm:$0xff]  ;;  %v7921_v55 = vpack.c.bf16 %v5609_v18, %v5605_v63  ;;  %v5642_v18 = vld [vmem:[#allocation10 + $0xf70] sm:$0xff] }
 0x55d   : > { %7884 = vmatpush1.bf16.msra.mxu0 %v7883_v2  ;;  %7886 = vmatprep.subr.bf16.mxu1 %v7885_v17  ;;  %v5577_v2 = vld [vmem:[#allocation10 + $0xd68] sm:$0xff]  ;;  %v5575_v17 = vld [vmem:[#allocation10 + $0xd58] sm:$0xff] }
 0x55e   : > { %7950 = vmatprep.subr.bf16.mxu0 %v7949_v24  ;;  %v7967_v24 = vpack.c.bf16 %v5570_v6, %v5566_v15  ;;  %v7905_v36 = vpack.c.bf16 %v5577_v2, %v5573_v56  ;;  %v5604_v15 = vld [vmem:[#allocation10 + $0xe40] sm:$0xff]  ;;  %v5606_v6 = vld [vmem:[#allocation10 + $0xe50] sm:$0xff] }
 0x55f   : > { %5450 = vmatmul.mubr.f32.vlgmr.msra.gmra.mrb[8].mxu1 %v5381_v28  ;;  %v5610_v2 = vld [vmem:[#allocation10 + $0xe70] sm:$0xff] }
 0x560   : > { %5521 = vmatmul.mubr.f32.vlgmr.msra.gmra.mrb[14].mxu0 %v5381_v28  ;;  %7888 = vmatpush1.bf16.msra.mxu1 %v7887_v27  ;;  %v7969_v27 = vpack.c.bf16 %v5579_v13, %v5575_v17  ;;  %v5585_v28 = vld [vmem:[#allocation10 + $0xda8] sm:$0xff]  ;;  %v7987_v25 = vpack.c.bf16 %v5610_v2, %v5606_v6  ;;  %v5644_v6 = vld [vmem:[#allocation10 + $0xf80] sm:$0xff]  ;;  %v5646_v2 = vld [vmem:[#allocation10 + $0xf90] sm:$0xff] }
 0x561   : > { %5728 = vmatprep.mubr.f32.mxu1 %v5661_v41  ;;  %7952 = vmatpush1.bf16.msra.mxu0 %v7951_v7  ;;  %v5583_v7 = vld [vmem:[#allocation10 + $0xd98] sm:$0xff]  ;;  %v5613_v17 = vld [vmem:[#allocation10 + $0xe88] sm:$0xff] }
 0x562   : > { %5799 = vmatprep.mubr.f32.mxu0 %v5661_v41  ;;  %7890 = vmatprep.subr.bf16.mxu1 %v7889_v29  ;;  %v7909_v29 = vpack.c.bf16 %v5585_v28, %v5581_v26  ;;  %v7973_v41 = vpack.c.bf16 %v5587_v31, %v5583_v7  ;;  %v5617_v13 = vld [vmem:[#allocation10 + $0xea8] sm:$0xff]  ;;  %v5618_v28 = vld [vmem:[#allocation10 + $0xeb0] sm:$0xff] }
 0x563   : > { %7954 = vmatprep.subr.bf16.mxu0 %v7953_v39  ;;  %v5586_v39 = vld [vmem:[#allocation10 + $0xdb0] sm:$0xff]  ;;  %v7925_v37 = vpack.c.bf16 %v5617_v13, %v5613_v17  ;;  %v5621_v7 = vld [vmem:[#allocation10 + $0xec8] sm:$0xff] }
 0x564   : > { %7892 = vmatpush1.bf16.msra.mxu1 %v7891_v47  ;;  %v5591_v47 = vld [vmem:[#allocation10 + $0xdd8] sm:$0xff]  ;;  %v7975_v52 = vpack.c.bf16 %v5586_v39, %v5582_v33  ;;  %v5625_v31 = vld [vmem:[#allocation10 + $0xee8] sm:$0xff]  ;;  %v5620_v33 = vld [vmem:[#allocation10 + $0xec0] sm:$0xff] }
 0x565   : > { %7956 = vmatpush1.bf16.msra.mxu0 %v7955_v38  ;;  %7894 = vmatprep.subr.bf16.mxu1 %v7893_v49  ;;  %v5595_v38 = vld [vmem:[#allocation10 + $0xdf8] sm:$0xff]  ;;  %v7911_v49 = vpack.c.bf16 %v5584_v60, %v5580_v35  ;;  %v7991_v35 = vpack.c.bf16 %v5618_v28, %v5614_v43  ;;  %v7929_v60 = vpack.c.bf16 %v5625_v31, %v5621_v7  ;;  %v5622_v39 = vld [vmem:[#allocation10 + $0xed0] sm:$0xff]  ;;  %v5652_v43 = vld [vmem:[#allocation10 + $0xfc0] sm:$0xff] }
 0x566   : > { %7958 = vmatprep.subr.bf16.mxu0 %v7957_v51  ;;  %v5592_v51 = vld [vmem:[#allocation10 + $0xde0] sm:$0xff]  ;;  %v7977_v57 = vpack.c.bf16 %v5595_v38, %v5591_v47  ;;  %v5629_v47 = vld [vmem:[#allocation10 + $0xf08] sm:$0xff]  ;;  %v5650_v13 = vld [vmem:[#allocation10 + $0xfb0] sm:$0xff] }
 0x567   : > { %v5633_v38 = vld [vmem:[#allocation10 + $0xf28] sm:$0xff]  ;;  %v5654_v28 = vld [vmem:[#allocation10 + $0xfd0] sm:$0xff] }
 0x568   : > { %7896 = vmatpush1.bf16.msra.mxu1 %v7895_v5  ;;  %v5599_v5 = vld [vmem:[#allocation10 + $0xe18] sm:$0xff]  ;;  %v5658_v31 = vld [vmem:[#allocation10 + $0xff0] sm:$0xff] }
 0x569   : > { %7960 = vmatpush1.bf16.msra.mxu0 %v7959_v50  ;;  %7898 = vmatprep.subr.bf16.mxu1 %v7897_v8  ;;  %v5603_v50 = vld [vmem:[#allocation10 + $0xe38] sm:$0xff]  ;;  %v7915_v8 = vpack.c.bf16 %v5592_v51, %v5588_v22  ;;  %v7995_v22 = vpack.c.bf16 %v5626_v20, %v5622_v39  ;;  %v7933_v51 = vpack.c.bf16 %v5633_v38, %v5629_v47  ;;  %v5660_v47 = vrot.slane %v9441_v14, 3 }
 0x56a   : > { %7962 = vmatprep.subr.bf16.mxu0 %v7961_v30  ;;  %v5600_v30 = vld [vmem:[#allocation10 + $0xe20] sm:$0xff]  ;;  %v7981_v62 = vpack.c.bf16 %v5603_v50, %v5599_v5  ;;  %v5637_v5 = vld [vmem:[#allocation10 + $0xf48] sm:$0xff]  ;;  %v5858_v39 = vld [vmem:[#allocation13 + $0x90] sm:$0xff] }
 0x56b   : > { %v5641_v50 = vld [vmem:[#allocation10 + $0xf68] sm:$0xff] }
 0x56c   : > { %7900 = vmatpush1.bf16.msra.mxu1 %v7899_v12  ;;  %v5607_v12 = vld [vmem:[#allocation10 + $0xe58] sm:$0xff] }
 0x56d   : > { %7964 = vmatpush1.bf16.msra.mxu0 %v7963_v1  ;;  %7902 = vmatprep.subr.bf16.mxu1 %v7901_v46  ;;  %v5611_v1 = vld [vmem:[#allocation10 + $0xe78] sm:$0xff]  ;;  %v7919_v46 = vpack.c.bf16 %v5600_v30, %v5596_v10  ;;  %v7999_v10 = vpack.c.bf16 %v5634_v4, %v5630_v3  ;;  %v7937_v30 = vpack.c.bf16 %v5641_v50, %v5637_v5  ;;  %v5845_v3 = vld [vmem:[#allocation13 + $0x28] sm:$0xff] }
 0x56e   : > { %7966 = vmatprep.subr.bf16.mxu0 %v7965_v16  ;;  %v5608_v16 = vld [vmem:[#allocation10 + $0xe60] sm:$0xff]  ;;  %v7985_v56 = vpack.c.bf16 %v5611_v1, %v5607_v12  ;;  %v5645_v12 = vld [vmem:[#allocation10 + $0xf88] sm:$0xff]  ;;  %v5846_v50 = vld [vmem:[#allocation13 + $0x30] sm:$0xff] }
 0x56f   : > { %v5649_v1 = vld [vmem:[#allocation10 + $0xfa8] sm:$0xff]  ;;  %v5863_v4 = vld [vmem:[#allocation13 + $0xb8] sm:$0xff] }
 0x570   : > { %7904 = vmatpush1.bf16.msra.mxu1 %v7903_v45  ;;  %v5615_v45 = vld [vmem:[#allocation10 + $0xe98] sm:$0xff] }
 0x571   : > { %7968 = vmatpush1.bf16.msra.mxu0 %v7967_v24  ;;  %7906 = vmatprep.subr.bf16.mxu1 %v7905_v36  ;;  %v5619_v24 = vld [vmem:[#allocation10 + $0xeb8] sm:$0xff]  ;;  %v7923_v36 = vpack.c.bf16 %v5608_v16, %v5604_v15  ;;  %v8003_v15 = vpack.c.bf16 %v5642_v18, %v5638_v11  ;;  %v7941_v16 = vpack.c.bf16 %v5649_v1, %v5645_v12 }
 0x572   : > { %7970 = vmatprep.subr.bf16.mxu0 %v7969_v27  ;;  %v5616_v27 = vld [vmem:[#allocation10 + $0xea0] sm:$0xff]  ;;  %v7989_v26 = vpack.c.bf16 %v5619_v24, %v5615_v45  ;;  %v5653_v45 = vld [vmem:[#allocation10 + $0xfc8] sm:$0xff]  ;;  %v5866_v11 = vld [vmem:[#allocation13 + $0xd0] sm:$0xff] }
 0x573   : > { %v5657_v24 = vld [vmem:[#allocation10 + $0xfe8] sm:$0xff]  ;;  %v5850_v1 = vld [vmem:[#allocation13 + $0x50] sm:$0xff] }
 0x574   : > { %7908 = vmatpush1.bf16.msra.mxu1 %v7907_v44  ;;  %v5623_v44 = vld [vmem:[#allocation10 + $0xed8] sm:$0xff] }
 0x575   : > { %7972 = vmatpush1.bf16.msra.mxu0 %v7971_v32  ;;  %7910 = vmatprep.subr.bf16.mxu1 %v7909_v29  ;;  %v5627_v32 = vld [vmem:[#allocation10 + $0xef8] sm:$0xff]  ;;  %v7927_v29 = vpack.c.bf16 %v5616_v27, %v5612_v34  ;;  %v8007_v34 = vpack.c.bf16 %v5650_v13, %v5646_v2  ;;  %v7945_v27 = vpack.c.bf16 %v5657_v24, %v5653_v45 }
 0x576   : > { %7974 = vmatprep.subr.bf16.mxu0 %v7973_v41  ;;  %v5624_v41 = vld [vmem:[#allocation10 + $0xee0] sm:$0xff]  ;;  %v7993_v42 = vpack.c.bf16 %v5627_v32, %v5623_v44  ;;  %v5857_v32 = vld [vmem:[#allocation13 + $0x88] sm:$0xff]  ;;  %v5854_v45 = vld [vmem:[#allocation13 + $0x70] sm:$0xff] }
 0x577   : > { %v5856_v44 = vld [vmem:[#allocation13 + $0x80] sm:$0xff]  ;;  %v5871_v13 = vld [vmem:[#allocation13 + $0xf8] sm:$0xff] }
 0x578   : > { %7912 = vmatpush1.bf16.msra.mxu1 %v7911_v49  ;;  %v5631_v49 = vld [vmem:[#allocation10 + $0xf18] sm:$0xff] }
 0x579   : > { %7976 = vmatpush1.bf16.msra.mxu0 %v7975_v52  ;;  %7914 = vmatprep.subr.bf16.mxu1 %v7913_v53  ;;  %v5635_v52 = vld [vmem:[#allocation10 + $0xf38] sm:$0xff]  ;;  %v7931_v53 = vpack.c.bf16 %v5624_v41, %v5620_v33  ;;  %v5840_v33 = vld [vmem:[#allocation13] sm:$0xff]  ;;  %v5841_v41 = vld [vmem:[#allocation13 + $0x8] sm:$0xff] }
 0x57a   : > { %7978 = vmatprep.subr.bf16.mxu0 %v7977_v57  ;;  %v5632_v57 = vld [vmem:[#allocation10 + $0xf20] sm:$0xff]  ;;  %v7997_v40 = vpack.c.bf16 %v5635_v52, %v5631_v49  ;;  %v8015_v20 = vpack.c.bf16 %v5841_v41, %v5840_v33  ;;  %v5842_v49 = vld [vmem:[#allocation13 + $0x10] sm:$0xff] }
 0x57b   : > { %v5843_v52 = vld [vmem:[#allocation13 + $0x18] sm:$0xff] }
 0x57c   : > { %7916 = vmatpush1.bf16.msra.mxu1 %v7915_v8  ;;  %v5639_v8 = vld [vmem:[#allocation10 + $0xf58] sm:$0xff] }
 0x57d   : > { %7980 = vmatpush1.bf16.msra.mxu0 %v7979_v0  ;;  %7918 = vmatprep.subr.bf16.mxu1 %v7917_v9  ;;  %v5643_v0 = vld [vmem:[#allocation10 + $0xf78] sm:$0xff]  ;;  %v7935_v9 = vpack.c.bf16 %v5632_v57, %v5628_v61  ;;  %v5844_v57 = vld [vmem:[#allocation13 + $0x20] sm:$0xff] }
 0x57e   : > { %7982 = vmatprep.subr.bf16.mxu0 %v7981_v62  ;;  %v5640_v62 = vld [vmem:[#allocation10 + $0xf60] sm:$0xff]  ;;  %v8001_v63 = vpack.c.bf16 %v5643_v0, %v5639_v8  ;;  %v8023_v5 = vpack.c.bf16 %v5845_v3, %v5844_v57  ;;  %v5877_v3 = vld [vmem:[#allocation13 + $0x128] sm:$0xff] }
 0x57f   : > { %v5847_v8 = vld [vmem:[#allocation13 + $0x38] sm:$0xff]  ;;  %v5864_v0 = vld [vmem:[#allocation13 + $0xc0] sm:$0xff] }
 0x580   : > { %7920 = vmatpush1.bf16.msra.mxu1 %v7919_v46  ;;  %v5647_v46 = vld [vmem:[#allocation10 + $0xf98] sm:$0xff]  ;;  %v5876_v57 = vld [vmem:[#allocation13 + $0x120] sm:$0xff] }
 0x581   : > { %7984 = vmatpush1.bf16.msra.mxu0 %v7983_v54  ;;  %7922 = vmatprep.subr.bf16.mxu1 %v7921_v55  ;;  %v5651_v54 = vld [vmem:[#allocation10 + $0xfb8] sm:$0xff]  ;;  %v7939_v55 = vpack.c.bf16 %v5640_v62, %v5636_v48  ;;  %v5848_v48 = vld [vmem:[#allocation13 + $0x40] sm:$0xff]  ;;  %v5849_v62 = vld [vmem:[#allocation13 + $0x48] sm:$0xff] }
 0x582   : > { %7986 = vmatprep.subr.bf16.mxu0 %v7985_v56  ;;  %v5648_v56 = vld [vmem:[#allocation10 + $0xfa0] sm:$0xff]  ;;  %v8005_v17 = vpack.c.bf16 %v5651_v54, %v5647_v46  ;;  %v8031_v18 = vpack.c.bf16 %v5849_v62, %v5848_v48  ;;  %v5881_v62 = vld [vmem:[#allocation13 + $0x148] sm:$0xff] }
 0x583   : > { %v5851_v46 = vld [vmem:[#allocation13 + $0x58] sm:$0xff]  ;;  %v5868_v54 = vld [vmem:[#allocation13 + $0xe0] sm:$0xff] }
 0x584   : > { %7924 = vmatpush1.bf16.msra.mxu1 %v7923_v36  ;;  %v5655_v36 = vld [vmem:[#allocation10 + $0xfd8] sm:$0xff]  ;;  %v5880_v48 = vld [vmem:[#allocation13 + $0x140] sm:$0xff] }
 0x585   : > { %7988 = vmatpush1.bf16.msra.mxu0 %v7987_v25  ;;  %7926 = vmatprep.subr.bf16.mxu1 %v7925_v37  ;;  %v5659_v25 = vld [vmem:[#allocation10 + $0xff8] sm:$0xff]  ;;  %v7943_v37 = vpack.c.bf16 %v5648_v56, %v5644_v6  ;;  %v5852_v6 = vld [vmem:[#allocation13 + $0x60] sm:$0xff]  ;;  %v5853_v56 = vld [vmem:[#allocation13 + $0x68] sm:$0xff] }
 0x586   : > { %7990 = vmatprep.subr.bf16.mxu0 %v7989_v26  ;;  %v5656_v26 = vld [vmem:[#allocation10 + $0xfe0] sm:$0xff]  ;;  %v8009_v7 = vpack.c.bf16 %v5659_v25, %v5655_v36  ;;  %v8039_v2 = vpack.c.bf16 %v5853_v56, %v5852_v6  ;;  %v5885_v56 = vld [vmem:[#allocation13 + $0x168] sm:$0xff] }
 0x587   : > { %v5855_v36 = vld [vmem:[#allocation13 + $0x78] sm:$0xff]  ;;  %v5888_v25 = vld [vmem:[#allocation13 + $0x180] sm:$0xff] }
 0x588   : > { %7928 = vmatpush1.bf16.msra.mxu1 %v7927_v29  ;;  %v7947_v29 = vpack.c.bf16 %v5656_v26, %v5652_v43  ;;  %v9455_v43 = vld [vmem:[#allocation11] sm:$0xf]  ;;  %v5884_v6 = vld [vmem:[#allocation13 + $0x160] sm:$0xff] }
 0x589   : > { %7992 = vmatpush1.bf16.msra.mxu0 %v7991_v35  ;;  %7930 = vmatprep.subr.bf16.mxu1 %v7929_v60  ;;  %v8011_v35 = vpack.c.bf16 %v5658_v31, %v5654_v28  ;;  %v8013_v60 = vpack.c.bf16 %v5857_v32, %v5856_v44  ;;  %v5815_v26 = vrot.slane %v9455_v43, %v9213_v58 }
 0x58a   : > { %7994 = vmatprep.subr.bf16.mxu0 %v7993_v42  ;;  %v5859_v42 = vld [vmem:[#allocation13 + $0x98] sm:$0xff]  ;;  %v5819_v28 = vrot.slane %v9455_v43, %v9216_v59  ;;  %v5874_v59 = vld [vmem:[#allocation13 + $0x110] sm:$0xff] }
 0x58b   : > { %v8017_v38 = vpack.c.bf16 %v5859_v42, %v5858_v39  ;;  %v5890_v39 = vld [vmem:[#allocation13 + $0x190] sm:$0xff]  ;;  %v5891_v42 = vld [vmem:[#allocation13 + $0x198] sm:$0xff] }
 0x58c   : > { %7932 = vmatpush1.bf16.msra.mxu1 %v7931_v53  ;;  %v5860_v53 = vld [vmem:[#allocation13 + $0xa0] sm:$0xff] }
 0x58d   : > { %7996 = vmatpush1.bf16.msra.mxu0 %v7995_v22  ;;  %7934 = vmatprep.subr.bf16.mxu1 %v7933_v51  ;;  %v5861_v22 = vld [vmem:[#allocation13 + $0xa8] sm:$0xff]  ;;  %v8019_v51 = vpack.c.bf16 %v5843_v52, %v5842_v49  ;;  %v8049_v49 = vpack.c.bf16 %v5891_v42, %v5890_v39  ;;  %v5875_v52 = vld [vmem:[#allocation13 + $0x118] sm:$0xff] }
 0x58e   : > { %7998 = vmatprep.subr.bf16.mxu0 %v7997_v40  ;;  %v8021_v61 = vpack.c.bf16 %v5861_v22, %v5860_v53  ;;  %v5862_v40 = vld [vmem:[#allocation13 + $0xb0] sm:$0xff]  ;;  %v5893_v22 = vld [vmem:[#allocation13 + $0x1a8] sm:$0xff] }
 0x58f   : > { %v8025_v14 = vpack.c.bf16 %v5863_v4, %v5862_v40  ;;  %v5894_v40 = vld [vmem:[#allocation13 + $0x1b0] sm:$0xff]  ;;  %v5895_v4 = vld [vmem:[#allocation13 + $0x1b8] sm:$0xff] }
 0x590   : > { %7936 = vmatpush1.bf16.msra.mxu1 %v7935_v9  ;;  %v5865_v9 = vld [vmem:[#allocation13 + $0xc8] sm:$0xff] }
 0x591   : > { %8000 = vmatpush1.bf16.msra.mxu0 %v7999_v10  ;;  %7938 = vmatprep.subr.bf16.mxu1 %v7937_v30  ;;  %v8027_v10 = vpack.c.bf16 %v5847_v8, %v5846_v50  ;;  %v8029_v30 = vpack.c.bf16 %v5865_v9, %v5864_v0  ;;  %v5878_v50 = vld [vmem:[#allocation13 + $0x130] sm:$0xff]  ;;  %v5879_v8 = vld [vmem:[#allocation13 + $0x138] sm:$0xff]  ;;  %v5896_v0 = vld [vmem:[#allocation13 + $0x1c0] sm:$0xff] }
 0x592   : > { %8002 = vmatprep.subr.bf16.mxu0 %v8001_v63  ;;  %v5867_v63 = vld [vmem:[#allocation13 + $0xd8] sm:$0xff]  ;;  %v5897_v9 = vld [vmem:[#allocation13 + $0x1c8] sm:$0xff] }
 0x593   : > { %v8033_v12 = vpack.c.bf16 %v5867_v63, %v5866_v11  ;;  %v5898_v11 = vld [vmem:[#allocation13 + $0x1d0] sm:$0xff]  ;;  %v5899_v63 = vld [vmem:[#allocation13 + $0x1d8] sm:$0xff] }
 0x594   : > { %7940 = vmatpush1.bf16.msra.mxu1 %v7939_v55  ;;  %v5869_v55 = vld [vmem:[#allocation13 + $0xe8] sm:$0xff] }
 0x595   : > { %8004 = vmatpush1.bf16.msra.mxu0 %v8003_v15  ;;  %7942 = vmatprep.subr.bf16.mxu1 %v7941_v16  ;;  %v8035_v15 = vpack.c.bf16 %v5851_v46, %v5850_v1  ;;  %v8037_v16 = vpack.c.bf16 %v5869_v55, %v5868_v54  ;;  %v5882_v1 = vld [vmem:[#allocation13 + $0x150] sm:$0xff]  ;;  %v5883_v46 = vld [vmem:[#allocation13 + $0x158] sm:$0xff]  ;;  %v5900_v54 = vld [vmem:[#allocation13 + $0x1e0] sm:$0xff] }
 0x596   : > { %8006 = vmatprep.subr.bf16.mxu0 %v8005_v17  ;;  %v5870_v17 = vld [vmem:[#allocation13 + $0xf0] sm:$0xff]  ;;  %v5901_v55 = vld [vmem:[#allocation13 + $0x1e8] sm:$0xff] }
 0x597   : > { %v8041_v24 = vpack.c.bf16 %v5871_v13, %v5870_v17  ;;  %v5903_v17 = vld [vmem:[#allocation13 + $0x1f8] sm:$0xff]  ;;  %v8071_v13 = vpack.c.bf16 %v5885_v56, %v5884_v6 }
 0x598   : > { %7944 = vmatpush1.bf16.msra.mxu1 %v7943_v37  ;;  %v5889_v37 = vld [vmem:[#allocation13 + $0x188] sm:$0xff] }
 0x599   : > { %8008 = vmatpush1.bf16.msra.mxu0 %v8007_v34  ;;  %7946 = vmatprep.subr.bf16.mxu1 %v7945_v27  ;;  %v8043_v34 = vpack.c.bf16 %v5855_v36, %v5854_v45  ;;  %v8045_v27 = vpack.c.bf16 %v5889_v37, %v5888_v25  ;;  %v5823_v45 = vrot.slane %v9455_v43, %v9193_v21  ;;  %v5886_v36 = vld [vmem:[#allocation13 + $0x170] sm:$0xff]  ;;  %v5887_v25 = vld [vmem:[#allocation13 + $0x178] sm:$0xff] }
 0x59a   : > { %8010 = vmatprep.subr.bf16.mxu0 %v8009_v7  ;;  %v5827_v7 = vrot.slane %v9455_v43, %v9198_v23  ;;  %v5892_v23 = vld [vmem:[#allocation13 + $0x1a0] sm:$0xff]  ;;  %v8075_v37 = vpack.c.bf16 %v5887_v25, %v5886_v36 }
 0x59c   : > { %7948 = vmatpush1.bf16.msra.mxu1 %v7947_v29 }
 0x59d   : > { %8012 = vmatpush1.bf16.msra.mxu0 %v8011_v35  ;;  %8014 = vmatprep.subr.bf16.mxu1 %v8013_v60  ;;  %v5872_v35 = vld [vmem:[#allocation13 + $0x100] sm:$0xff]  ;;  %v5873_v60 = vld [vmem:[#allocation13 + $0x108] sm:$0xff] }
 0x59e   : > { %v8047_v58 = vpack.c.bf16 %v5873_v60, %v5872_v35 }
 0x59f   : > { %5729 = vmatmul.mubr.f32.vlgmr.msra.gmra.mrb[8].mxu1 %v5660_v47 }
 0x5a0   : > { %5800 = vmatmul.mubr.f32.vlgmr.msra.gmra.mrb[14].mxu0 %v5660_v47  ;;  %8016 = vmatpush3.bf16.msra.mxu1 %v8015_v20 }
 0x5a1   : > { %8018 = vmatprep.subr.bf16.mxu1 %v8017_v38 }
 0x5a4   : > { %8020 = vmatpush3.bf16.msra.mxu1 %v8019_v51  ;;  %v8051_v51 = vpack.c.bf16 %v5875_v52, %v5874_v59 }
 0x5a5   : > { %8022 = vmatprep.subr.bf16.mxu1 %v8021_v61  ;;  %v8053_v61 = vpack.c.bf16 %v5893_v22, %v5892_v23 }
 0x5a8   : > { %8024 = vmatpush3.bf16.msra.mxu1 %v8023_v5  ;;  %v8055_v5 = vpack.c.bf16 %v5877_v3, %v5876_v57 }
 0x5a9   : > { %8026 = vmatprep.subr.bf16.mxu1 %v8025_v14  ;;  %v8057_v14 = vpack.c.bf16 %v5895_v4, %v5894_v40 }
 0x5ac   : > { %8028 = vmatpush3.bf16.msra.mxu1 %v8027_v10  ;;  %v8059_v10 = vpack.c.bf16 %v5879_v8, %v5878_v50 }
 0x5ad   : > { %8030 = vmatprep.subr.bf16.mxu1 %v8029_v30  ;;  %v8061_v30 = vpack.c.bf16 %v5897_v9, %v5896_v0 }
 0x5b0   : > { %8032 = vmatpush3.bf16.msra.mxu1 %v8031_v18  ;;  %v8063_v18 = vpack.c.bf16 %v5881_v62, %v5880_v48 }
 0x5b1   : > { %8034 = vmatprep.subr.bf16.mxu1 %v8033_v12  ;;  %v8065_v12 = vpack.c.bf16 %v5899_v63, %v5898_v11 }
 0x5b4   : > { %8036 = vmatpush3.bf16.msra.mxu1 %v8035_v15  ;;  %v8067_v15 = vpack.c.bf16 %v5883_v46, %v5882_v1 }
 0x5b5   : > { %8038 = vmatprep.subr.bf16.mxu1 %v8037_v16  ;;  %v8069_v16 = vpack.c.bf16 %v5901_v55, %v5900_v54 }
 0x5b8   : > { %8040 = vmatpush3.bf16.msra.mxu1 %v8039_v2  ;;  %v5902_v2 = vld [vmem:[#allocation13 + $0x1f0] sm:$0xff] }
 0x5b9   : > { %8042 = vmatprep.subr.bf16.mxu1 %v8041_v24  ;;  %v8073_v24 = vpack.c.bf16 %v5903_v17, %v5902_v2 }
 0x5bc   : > { %8044 = vmatpush3.bf16.msra.mxu1 %v8043_v34 }
 0x5bd   : > { %8046 = vmatprep.subr.bf16.mxu1 %v8045_v27 }
 0x672   : > { %v5730_v31 = vpop.f32.mrb[8].mxu1 }
 0x673   : > { %v5832_v44 = vadd.f32 %v5815_v26, %v5730_v31  ;;  %v9463_v32 = vpop.f32.mrb[14].mxu0  ;;  %v5732_v29 = vpop.f32.mrb[9].mxu1  ;;  %v5904_v31 = vld [vmem:[#allocation14] sm:$0x1] }
 0x674   : > { %v5833_v33 = vadd.f32 %v5819_v28, %v5732_v29  ;;  %v5803_v41 = vpop.f32.mrb[15].mxu0  ;;  %v5834_v34 = vadd.f32 %v5823_v45, %v9463_v32 }
 0x675   : > { %v5835_v20 = vadd.f32 %v5827_v7, %v5803_v41  ;;  %v5836_v38 = vmax.f32 %v5832_v44, 0.0  ;;  %v6046_v44 = vand.u32 127, %v2020_v19 }
 0x676   : > { %v5837_v47 = vmax.f32 %v5833_v33, 0.0  ;;  %v5838_v27 = vmax.f32 %v5834_v34, 0.0 }
 0x677   : > { %v5839_v53 = vmax.f32 %v5835_v20, 0.0  ;;  %vm6047_vm8 = vcmp.lt.s32.totalorder %v6046_v44, 3 }
 0x678   : > { %5969 = vmatprep.mubr.f32.mxu1 %v5837_v47 }
 0x679   : > { %5970 = vmatmul.mubr.f32.vlgmr.msra.gmra.mrb[10].mxu1 %v5836_v38 }
 0x67a   : > { %8048 = vmatpush3.bf16.msra.mxu1 %v8047_v58  ;;  %6039 = vmatprep.mubr.f32.mxu1 %v5839_v53 }
 0x67b   : > { %8050 = vmatprep.subr.bf16.mxu1 %v8049_v49 }
 0x67e   : > { %8052 = vmatpush3.bf16.msra.mxu1 %v8051_v51 }
 0x67f   : > { %8054 = vmatprep.subr.bf16.mxu1 %v8053_v61 }
 0x682   : > { %8056 = vmatpush3.bf16.msra.mxu1 %v8055_v5 }
 0x683   : > { %8058 = vmatprep.subr.bf16.mxu1 %v8057_v14 }
 0x686   : > { %8060 = vmatpush3.bf16.msra.mxu1 %v8059_v10 }
 0x687   : > { %8062 = vmatprep.subr.bf16.mxu1 %v8061_v30 }
 0x68a   : > { %8064 = vmatpush3.bf16.msra.mxu1 %v8063_v18 }
 0x68b   : > { %8066 = vmatprep.subr.bf16.mxu1 %v8065_v12 }
 0x68e   : > { %8068 = vmatpush3.bf16.msra.mxu1 %v8067_v15 }
 0x68f   : > { %8070 = vmatprep.subr.bf16.mxu1 %v8069_v16 }
 0x692   : > { %8072 = vmatpush3.bf16.msra.mxu1 %v8071_v13 }
 0x693   : > { %8074 = vmatprep.subr.bf16.mxu1 %v8073_v24 }
 0x696   : > { %8076 = vmatpush3.bf16.msra.mxu1 %v8075_v37 }
 0x699   : > { %6040 = vmatmul.mubr.f32.vlgmr.msra.gmra.mrb[12].mxu1 %v5838_v27 }
 0x74c   : > { %v6353_v26 = vpop.f32.mrb[10].mxu1 }
 0x74d   : > { %v6354_v28 = vpop.f32.mrb[11].mxu1 }
 0x74e   : > { %v6355_v7 = vadd.f32 %v6354_v28, %v6353_v26 }
 0x750   : > { %v5972_v43 = vadd.f32 %v6355_v7, %v5904_v31 }
 0x76c   : > { %v6388_v29 = vpop.f32.mrb[12].mxu1 }
 0x76d   : > { %v6389_v21 = vpop.f32.mrb[13].mxu1 }
 0x76e   : > { %v6390_v35 = vadd.f32 %v6389_v21, %v6388_v29 }
 0x770   : > { %v6042_v60 = vadd.f32 %v6390_v35, %v5972_v43 }
 0x772   : > { %v6048_v32 = vsel %vm6047_vm8, %v6042_v60, -1e+30 }
 0x773   : > { %v6050_v33 = vsel %vm6049_vm9, %v6048_v32, -inf }
 0x774   : > { %6051 = vmax.xlane.f32.xlu0 %v6050_v33 }
 0x801   : > { %v6052_v41 = vpop.xlane.xlu0 %6051 }
 0x802   : > { %v6053_v39 = vsub.f32 %v6048_v32, %v6052_v41 }
 0x804   : > { %v6054_v42 = vmul.f32 1.442695, %v6053_v39 }
 0x806   : > { %8326 = vpow2.f32 %v6054_v42 }
 0x810   : > { %v8327_v20 = vpop.eup %8326 }
 0x811   : > { %v6056_v47 = vsel %vm6049_vm9, %v8327_v20, 0.0 }
 0x812   : > { %6057 = vadd.xlane.f32.xlu0 %v6056_v47 }
 0x89f   : > { %v6058_v19 = vpop.xlane.xlu0 %6057 }
 0x8a0   : > { %8328 = vlog2.f32 %v6058_v19 }
 0x8aa   : > { %v8329_v58 = vpop.eup %8328 }
 0x8ab   : > { %v6060_v38 = vmul.f32 0.6931472, %v8329_v58 }
 0x8ad   : > { %v6061_v49 = vsub.f32 %v6053_v39, %v6060_v38 }
 0x8af   : > { %6062 = vst [vmem:[%s433_s2] sm:$0x1] %v6061_v49 }
 0x8b0   : > { %8567 = shalt.err (!%p8564_p9)
}
 0x8b1   : > { %s8568_s25 = scalar_lea.hbm %s9474_s15, 16  ;;  %s8572_s21 = scalar_lea.hbm %s9525_s9, 32 }
 0x8b2   : > { %p8569_p12 = scmp.ne.s32.totalorder %s9474_s15, %s8568_s25  ;;  %p8573_p3 = scmp.lt.u32.totalorder %s9474_s15, %s9525_s9 }
 0x8b3   : > { %p8574_p4 = scmp.lt.u32.totalorder %s8572_s21, %s8568_s25  ;;  %p8576_p8 = scmp.lt.u32.totalorder %s8568_s25, %s9474_s15 }
 0x8b4   : > { %p8570_p10 = pnand %p8569_p12, %p9561_p11 }
 0x8b5   : > { %p8575_p7 = por %p8574_p4, %p8573_p3 }
 0x8b6   : > { %p8571_p2 = pneg %p8570_p10 }
 0x8b7   : > { %p8577_p13 = por %p8576_p8, %p8575_p7 }
 0x8b9   : > { %p8578_p1 = pnand %p8577_p13, %p8571_p2 }
 0x8bb   : > { %8581 = shalt.err (!%p8578_p1)
}
 0x8bc   : > { %8230 = dma.vmem_to_hbm [thread:$0]  (%p9561_p11), %s9476_s4, 16, %s9474_s15, %s6064_s18  }
 0x8bd PF: > { %p8277_p0 = scmp.ge.s32.totalorder %s8636_s12, 2  ;;  %s6088_s11 = sand.u32 1, %s8624_s30  }
 0x8be   : > { %p9562_p6 = scmp.ne.s32.totalorder %s9540_s20, 0  ;;  %s6089_s17 = scalar_lea.sflag [#allocation4], %s6088_s11 }
 0x8c0   : > { %p8258_p5 = pnand %p8277_p0, %p9562_p6 }
 0x8c2   : > { %8619 = dma.done.wait (!%p8258_p5), %s6089_s17, 16  }
 0x8c3   : > { %8621 = vsyncadd (!%p8258_p5), %s6089_s17, 4294967280  ;;  %s9563_s12 = sld [smem:[#allocation24_spill]]  ;;  %s9564_s14 = sld [smem:[#allocation23_spill]] }
 0x8c4   : > { %s9565_s11 = sld [smem:[#allocation25_spill]]  ;;  %s9566_s30 = smov %s8628_s10 }
 0x8c9   : > { %p24_p9 = scmp.ge.s32.totalorder %s9563_s12, 4   ;;  %s9567_s10 = smov %s9564_s14 }
 0x8cb   :  { %26 = sbr.rel (!%p24_p9) target bundleno = 13 (0xd), region = 139 }
 0x8d2   :  { %6093 = vsyncpa [#allocation3], 1 }
 0x8d3   :  { %6095 = vsyncpa [#allocation3 + $0x1], 1 }
 0x8d4   :  { %6096 = vsyncpa [#allocation6], 1 }
 0x8d5   :  { %6097 = vsyncpa [#allocation9], 1 }
 0x8d6   :  { %6098 = vsyncpa [#allocation12], 1 }
 0x8d7   :  { %6099 = vsyncpa [#allocation15], 1 }
 0x8d8   :  { %6100 = vsyncpa [#allocation4], 1 }
 0x8d9   :  { %6102 = vsyncpa [#allocation4 + $0x1], 1 }

</bundles_post_ra>
